<compile_context>
chip_gen: v7x
topology: tpu7x:2x2x1
jax: 0.10.0
libtpu: 0.0.40
codegen_flags: <defaults>
</compile_context>

<pallas_src>
import functools

import jax
import jax.numpy as jnp
from jax.experimental import pallas as pl
from jax.experimental.pallas import tpu as pltpu

# ----------------------------- configuration --------------------------------
SEQ_LEN = 80          # scaled down from 8500 for the demo
PATCH_LEN = 10
EMBED_LEN = 64
N_LAYERS = 2          # scaled down from 8 for the demo
N_HEADS = 4
D_FF = 256
N_FEAT = 1024
N_CLS = 230
P = SEQ_LEN // PATCH_LEN          # patches (transformer sequence length)
D = PATCH_LEN * EMBED_LEN         # model dimension (640)
DH = D // N_HEADS                 # per-head dim (160)
LN_EPS = 1e-5
Q_TILE = min(P, 128)              # query-row tile (P must be padded to a multiple at full scale)
BATCH_BLOCK = 8                   # max batch rows per grid step

assert P % Q_TILE == 0, "pad P to a multiple of Q_TILE at full scale"

WKEYS = ("wq", "bq", "wk", "bk", "wv", "bv", "wo", "bo",
         "g1", "be1", "w1", "b1", "w2", "b2", "g2", "be2")


def _vmem_limit_bytes():
    # Per-generation VMEM scoped limit: ~100 MiB on 128-MiB chips (v5e/v6e),
    # conservative 48 MiB on v7x (64 MiB physical).
    cap = 64 * 1024 * 1024
    try:
        cap = getattr(pltpu.get_tpu_info(), "vmem_capacity_bytes", cap)
    except Exception:
        pass
    return 100 * 1024 * 1024 if cap >= 128 * 1024 * 1024 else 48 * 1024 * 1024


def _pick_batch_block(batch):
    # Largest block <= BATCH_BLOCK dividing batch; keep the (Bb, D) mean-output
    # block sublane-legal (Bb % 8 == 0 or Bb == batch). Whole batch is always legal.
    if batch <= BATCH_BLOCK:
        return batch
    for bb in range(BATCH_BLOCK, 0, -1):
        if batch % bb == 0 and (bb % 8 == 0 or bb == batch):
            return bb
    return batch


# ------------------------------- kernels -------------------------------------
def _layer_norm(x, g, b):
    mu = jnp.mean(x, axis=-1, keepdims=True)
    var = jnp.mean((x - mu) ** 2, axis=-1, keepdims=True)
    return (x - mu) * jax.lax.rsqrt(var + LN_EPS) * g + b


def encoder_stack_kernel(x_ref,
                         wq_ref, bq_ref, wk_ref, bk_ref, wv_ref, bv_ref,
                         wo_ref, bo_ref, g1_ref, be1_ref, w1_ref, b1_ref,
                         w2_ref, b2_ref, g2_ref, be2_ref,
                         mean_ref, carry_ref, *, n_heads, q_tile):
    """One (batch-block, layer) grid step of the fused encoder stack.

    carry_ref is a VMEM scratch holding the (Bb, P, D) activations; it stays
    resident across the layer axis (re-initialized from x at l == 0).
    The patch-mean is emitted on the last layer only.
    """
    l = pl.program_id(1)

    @pl.when(l == 0)
    def _():
        carry_ref[...] = x_ref[...]

    bb, p_dim, d = carry_ref.shape
    dh = d // n_heads

    # ---- K / V projections (full sequence, once per layer), head-major ----
    x_full_bf = carry_ref[...].reshape(bb * p_dim, d).astype(jnp.bfloat16)
    ks, vs = [], []
    for h in range(n_heads):
        k_h = (jnp.dot(x_full_bf, wk_ref[0, h], preferred_element_type=jnp.float32)
               + bk_ref[0, h])
        v_h = (jnp.dot(x_full_bf, wv_ref[0, h], preferred_element_type=jnp.float32)
               + bv_ref[0, h])
        ks.append(k_h.reshape(bb, p_dim, dh).astype(jnp.bfloat16))
        vs.append(v_h.reshape(bb, p_dim, dh).astype(jnp.bfloat16))

    def tile_body(qs):
        x_t = carry_ref[:, pl.ds(qs, q_tile), :]            # (Bb, tq, D) f32
        x_t_flat = x_t.reshape(bb * q_tile, d)
        x_t_bf = x_t_flat.astype(jnp.bfloat16)

        # Attention + output projection fused per tile (no (P, D) scratch).
        attn = jnp.zeros((bb * q_tile, d), jnp.float32)
        for h in range(n_heads):
            # 1/sqrt(dh) already folded into wq/bq.
            q_h = (jnp.dot(x_t_bf, wq_ref[0, h], preferred_element_type=jnp.float32)
                   + bq_ref[0, h])
            q_h = q_h.reshape(bb, q_tile, dh).astype(jnp.bfloat16)
            s = jnp.einsum('bqd,bkd->bqk', q_h, ks[h],
                           preferred_element_type=jnp.float32)       # (Bb, tq, P)
            s = s - jnp.max(s, axis=-1, keepdims=True)
            p = jnp.exp(s)
            p = p * pl.reciprocal(jnp.sum(p, axis=-1, keepdims=True), approx=True)
            o_h = jnp.einsum('bqk,bkd->bqd', p.astype(jnp.bfloat16), vs[h],
                             preferred_element_type=jnp.float32)     # (Bb, tq, dh)
            attn = attn + jnp.dot(
                o_h.reshape(bb * q_tile, dh).astype(jnp.bfloat16),
                wo_ref[0, h], preferred_element_type=jnp.float32)
        attn = attn + bo_ref[0]

        x1 = _layer_norm(x_t_flat + attn, g1_ref[0], be1_ref[0])    # residual + LN1
        h1 = jnp.dot(x1.astype(jnp.bfloat16), w1_ref[0],
                     preferred_element_type=jnp.float32) + b1_ref[0]
        h1 = jnp.maximum(h1, 0.0)                                   # ReLU
        ff = jnp.dot(h1.astype(jnp.bfloat16), w2_ref[0],
                     preferred_element_type=jnp.float32) + b2_ref[0]
        out = _layer_norm(x1 + ff, g2_ref[0], be2_ref[0])           # residual + LN2
        carry_ref[:, pl.ds(qs, q_tile), :] = out.reshape(bb, q_tile, d)

    n_tiles = p_dim // q_tile
    if n_tiles == 1:
        tile_body(0)
    else:
        def loop_body(i, c):
            tile_body(pl.multiple_of(i * q_tile, q_tile))
            return c
        jax.lax.fori_loop(0, n_tiles, loop_body, 0, unroll=n_tiles <= 4)

    # Last-layer epilogue: emit the patch-mean only (the full activations never
    # leave VMEM / never hit HBM).
    @pl.when(l == pl.num_programs(1) - 1)
    def _():
        mean_ref[...] = jnp.mean(carry_ref[...], axis=1)


def head_kernel(xm_ref, wf_ref, bf_ref, wc_ref, bc_ref, feat_ref, cls_ref):
    # All batch rows in one step: (B, D) x (D, 1024) then (B, 1024) x (1024, 230).
    feat = jnp.dot(xm_ref[...].astype(jnp.bfloat16), wf_ref[...],
                   preferred_element_type=jnp.float32) + bf_ref[...]
    feat_ref[...] = feat
    cls_ref[...] = jnp.dot(feat.astype(jnp.bfloat16), wc_ref[...],
                           preferred_element_type=jnp.float32) + bc_ref[...]


# ------------------------------ wrappers --------------------------------------
def _weight_map(ndim):
    def m(b, l, _n=ndim):
        return (l,) + (0,) * (_n - 1)
    return m


def encoder_stack(x, params, batch_block=None):
    """All encoder layers in one pallas_call; returns the (B, D) patch-mean."""
    B, P_, D_ = x.shape
    L = params["wq"].shape[0]
    Bb = batch_block or _pick_batch_block(B)
    assert B % Bb == 0

    weights = [params[k] for k in WKEYS]
    w_specs = [pl.BlockSpec((1,) + w.shape[1:], _weight_map(w.ndim)) for w in weights]

    return pl.pallas_call(
        functools.partial(encoder_stack_kernel, n_heads=N_HEADS, q_tile=Q_TILE),
        out_shape=jax.ShapeDtypeStruct((B, D_), jnp.float32),
        grid=(B // Bb, L),
        in_specs=[pl.BlockSpec((Bb, P_, D_), lambda b, l: (b, 0, 0))] + w_specs,
        out_specs=pl.BlockSpec((Bb, D_), lambda b, l: (b, 0)),
        scratch_shapes=[pltpu.VMEM((Bb, P_, D_), jnp.float32)],   # activation carry
        compiler_params=pltpu.CompilerParams(
            dimension_semantics=("parallel", "arbitrary"),
            vmem_limit_bytes=_vmem_limit_bytes()),
    )(x, *weights)


def head(xmean, wf, bf, wc, bc):
    B = xmean.shape[0]
    return pl.pallas_call(
        head_kernel,
        out_shape=(jax.ShapeDtypeStruct((B, N_FEAT), jnp.float32),
                   jax.ShapeDtypeStruct((B, N_CLS), jnp.float32)),
        compiler_params=pltpu.CompilerParams(vmem_limit_bytes=_vmem_limit_bytes()),
    )(xmean, wf, bf, wc, bc)


# --------------------------- parameter init ------------------------------------
def init_params(key):
    def nrm(k, shape, scale=0.02):
        return (scale * jax.random.normal(k, shape)).astype(jnp.float32)

    qk_scale = jnp.float32(1.0 / (DH ** 0.5))
    keys = jax.random.split(key, 3 + N_LAYERS)
    params = {
        "embed": nrm(keys[0], (SEQ_LEN, EMBED_LEN), 1.0),
        "wf": nrm(keys[1], (D, N_FEAT)).astype(jnp.bfloat16),
        "bf": jnp.zeros((1, N_FEAT), jnp.float32),
        "wc": nrm(keys[2], (N_FEAT, N_CLS)).astype(jnp.bfloat16),
        "bc": jnp.zeros((1, N_CLS), jnp.float32),
    }

    per_layer = {k: [] for k in WKEYS}
    for l in range(N_LAYERS):
        lk = jax.random.split(keys[3 + l], 6)
        # Head-major weight layout: wq/wk/wv (H, D, dh); wo (H, dh, D).
        wq = (nrm(lk[0], (D, D)) * qk_scale).reshape(D, N_HEADS, DH).transpose(1, 0, 2)
        wk = nrm(lk[1], (D, D)).reshape(D, N_HEADS, DH).transpose(1, 0, 2)
        wv = nrm(lk[2], (D, D)).reshape(D, N_HEADS, DH).transpose(1, 0, 2)
        wo = nrm(lk[3], (D, D)).reshape(N_HEADS, DH, D)
        per_layer["wq"].append(wq)
        per_layer["wk"].append(wk)
        per_layer["wv"].append(wv)
        per_layer["wo"].append(wo)
        # Biases are zero at init; when importing real weights, bq must also be
        # scaled by 1/sqrt(dh) (same fold as wq).
        per_layer["bq"].append(jnp.zeros((N_HEADS, 1, DH), jnp.float32))
        per_layer["bk"].append(jnp.zeros((N_HEADS, 1, DH), jnp.float32))
        per_layer["bv"].append(jnp.zeros((N_HEADS, 1, DH), jnp.float32))
        per_layer["bo"].append(jnp.zeros((1, D), jnp.float32))
        per_layer["g1"].append(jnp.ones((1, D), jnp.float32))
        per_layer["be1"].append(jnp.zeros((1, D), jnp.float32))
        per_layer["w1"].append(nrm(lk[4], (D, D_FF)))
        per_layer["b1"].append(jnp.zeros((1, D_FF), jnp.float32))
        per_layer["w2"].append(nrm(lk[5], (D_FF, D)))
        per_layer["b2"].append(jnp.zeros((1, D), jnp.float32))
        per_layer["g2"].append(jnp.ones((1, D), jnp.float32))
        per_layer["be2"].append(jnp.zeros((1, D), jnp.float32))

    bf16_keys = {"wq", "wk", "wv", "wo", "w1", "w2"}
    for k in WKEYS:
        arr = jnp.stack(per_layer[k], axis=0)
        params[k] = arr.astype(jnp.bfloat16) if k in bf16_keys else arr
    return params


# ------------------------------ forward ----------------------------------------
def att_distil_forward(params, intensity, index):
    B = intensity.shape[0]
    inten = intensity.astype(jnp.float32).reshape(B, SEQ_LEN, 1) / 100.0
    idx = index.astype(jnp.int32)
    # Embedding gather + intensity scale left to XLA (data-dependent gather);
    # the result is reshaped to the lane-dense (B, P, D) layout.
    emb = jnp.take(params["embed"], idx, axis=0)                      # (B, S, E)
    x = (emb * inten).reshape(B, P, D)                                # (B, P, D)
    xmean = encoder_stack(x, params)                                  # (B, D) patch-mean
    features, cls = head(xmean, params["wf"], params["bf"],
                         params["wc"], params["bc"])
    return features, cls


# -------------------------------- main ------------------------------------------
if __name__ == "__main__":
    key = jax.random.PRNGKey(0)
    k_par, k_int, k_idx = jax.random.split(key, 3)

    B = 2
    params = init_params(k_par)
    intensity = (jax.random.uniform(k_int, (B, SEQ_LEN)) * 100.0).astype(jnp.float32)
    index = jax.random.randint(k_idx, (B, SEQ_LEN), 0, SEQ_LEN, dtype=jnp.int32)

    features, cls = att_distil_forward(params, intensity, index)
    jax.block_until_ready((features, cls))

    assert features.shape == (B, N_FEAT) and cls.shape == (B, N_CLS)
    assert bool(jnp.all(jnp.isfinite(features))) and bool(jnp.all(jnp.isfinite(cls)))
    print("KERNEL_OK")
</pallas_src>

<mosaic_0001>
module attributes {stable_mosaic.version = 11 : i64} {
  func.func @encoder_stack_kernel(%arg0: i32, %arg1: i32, %arg2: memref<2x8x640xf32, #tpu.memory_space<vmem>>, %arg3: memref<1x4x640x160xbf16, #tpu.memory_space<vmem>>, %arg4: memref<1x4x1x160xf32, #tpu.memory_space<vmem>>, %arg5: memref<1x4x640x160xbf16, #tpu.memory_space<vmem>>, %arg6: memref<1x4x1x160xf32, #tpu.memory_space<vmem>>, %arg7: memref<1x4x640x160xbf16, #tpu.memory_space<vmem>>, %arg8: memref<1x4x1x160xf32, #tpu.memory_space<vmem>>, %arg9: memref<1x4x160x640xbf16, #tpu.memory_space<vmem>>, %arg10: memref<1x1x640xf32, #tpu.memory_space<vmem>>, %arg11: memref<1x1x640xf32, #tpu.memory_space<vmem>>, %arg12: memref<1x1x640xf32, #tpu.memory_space<vmem>>, %arg13: memref<1x640x256xbf16, #tpu.memory_space<vmem>>, %arg14: memref<1x1x256xf32, #tpu.memory_space<vmem>>, %arg15: memref<1x256x640xbf16, #tpu.memory_space<vmem>>, %arg16: memref<1x1x640xf32, #tpu.memory_space<vmem>>, %arg17: memref<1x1x640xf32, #tpu.memory_space<vmem>>, %arg18: memref<1x1x640xf32, #tpu.memory_space<vmem>>, %arg19: memref<2x640xf32, #tpu.memory_space<vmem>>, %arg20: memref<2x8x640xf32, #tpu.memory_space<vmem>>) attributes {dimension_semantics = [#tpu.dimension_semantics<parallel>, #tpu.dimension_semantics<arbitrary>], iteration_bounds = array<i64: 1, 2>, scalar_prefetch = 0 : i64, scratch_operands = 1 : i64, tpu.core_type = #tpu.core_type<tc>, window_params = [{transform_indices = @transform_0, window_bounds = array<i64: 2, 8, 640>}, {transform_indices = @transform_1, window_bounds = array<i64: 1, 4, 640, 160>}, {transform_indices = @transform_2, window_bounds = array<i64: 1, 4, 1, 160>}, {transform_indices = @transform_3, window_bounds = array<i64: 1, 4, 640, 160>}, {transform_indices = @transform_4, window_bounds = array<i64: 1, 4, 1, 160>}, {transform_indices = @transform_5, window_bounds = array<i64: 1, 4, 640, 160>}, {transform_indices = @transform_6, window_bounds = array<i64: 1, 4, 1, 160>}, {transform_indices = @transform_7, window_bounds = array<i64: 1, 4, 160, 640>}, {transform_indices = @transform_8, window_bounds = array<i64: 1, 1, 640>}, {transform_indices = @transform_9, window_bounds = array<i64: 1, 1, 640>}, {transform_indices = @transform_10, window_bounds = array<i64: 1, 1, 640>}, {transform_indices = @transform_11, window_bounds = array<i64: 1, 640, 256>}, {transform_indices = @transform_12, window_bounds = array<i64: 1, 1, 256>}, {transform_indices = @transform_13, window_bounds = array<i64: 1, 256, 640>}, {transform_indices = @transform_14, window_bounds = array<i64: 1, 1, 640>}, {transform_indices = @transform_15, window_bounds = array<i64: 1, 1, 640>}, {transform_indices = @transform_16, window_bounds = array<i64: 1, 1, 640>}, {transform_indices = @transform_17, window_bounds = array<i64: 2, 640>}]} {
    %c0_i32 = arith.constant 0 : i32
    %0 = arith.cmpi eq, %arg1, %c0_i32 : i32
    %1 = arith.extui %0 : i1 to i32
    %c0_i32_0 = arith.constant 0 : i32
    %2 = arith.cmpi ne, %1, %c0_i32_0 : i32
    scf.if %2 {
      %c0_191 = arith.constant 0 : index
      %c0_192 = arith.constant 0 : index
      %c0_193 = arith.constant 0 : index
      %275 = vector.load %arg2[%c0_191, %c0_192, %c0_193] : memref<2x8x640xf32, #tpu.memory_space<vmem>>, vector<2x8x640xf32>
      %c0_194 = arith.constant 0 : index
      %c0_195 = arith.constant 0 : index
      %c0_196 = arith.constant 0 : index
      %276 = vector.load %arg20[%c0_194, %c0_195, %c0_196] : memref<2x8x640xf32, #tpu.memory_space<vmem>>, vector<2x8x640xf32>
      tpu.vector_store %arg20[%c0_194, %c0_195, %c0_196], %275 {strides = array<i32>} : memref<2x8x640xf32, #tpu.memory_space<vmem>>, vector<2x8x640xf32>,
    } else {
    }
    %c0 = arith.constant 0 : index
    %c0_1 = arith.constant 0 : index
    %c0_2 = arith.constant 0 : index
    %3 = vector.load %arg20[%c0, %c0_1, %c0_2] : memref<2x8x640xf32, #tpu.memory_space<vmem>>, vector<2x8x640xf32>
    %4 = vector.shape_cast %3 : vector<2x8x640xf32> to vector<16x640xf32>
    %5 = arith.truncf %4 : vector<16x640xf32> to vector<16x640xbf16>
    %c0_3 = arith.constant 0 : index
    %c0_4 = arith.constant 0 : index
    %c0_5 = arith.constant 0 : index
    %c0_6 = arith.constant 0 : index
    %6 = vector.load %arg5[%c0_3, %c0_4, %c0_5, %c0_6] : memref<1x4x640x160xbf16, #tpu.memory_space<vmem>>, vector<1x1x640x160xbf16>
    %7 = vector.shape_cast %6 : vector<1x1x640x160xbf16> to vector<640x160xbf16>
    %cst = arith.constant dense<0.000000e+00> : vector<16x160xf32>
    %8 = tpu.matmul %5, %7, %cst {dimension_numbers = #tpu.dot_dimension_numbers<[1], [0], [0], [1], [0, 0, 1, 1], [], []>} : vector<16x640xbf16>, vector<640x160xbf16>, vector<16x160xf32> -> vector<16x160xf32>
    %c0_7 = arith.constant 0 : index
    %c0_8 = arith.constant 0 : index
    %c0_9 = arith.constant 0 : index
    %c0_10 = arith.constant 0 : index
    %9 = vector.load %arg6[%c0_7, %c0_8, %c0_9, %c0_10] : memref<1x4x1x160xf32, #tpu.memory_space<vmem>>, vector<1x1x1x160xf32>
    %10 = vector.shape_cast %9 : vector<1x1x1x160xf32> to vector<1x160xf32>
    %11 = vector.broadcast %10 : vector<1x160xf32> to vector<16x160xf32>
    %12 = arith.addf %8, %11 : vector<16x160xf32>
    %c0_11 = arith.constant 0 : index
    %c0_12 = arith.constant 0 : index
    %c0_13 = arith.constant 0 : index
    %c0_14 = arith.constant 0 : index
    %13 = vector.load %arg7[%c0_11, %c0_12, %c0_13, %c0_14] : memref<1x4x640x160xbf16, #tpu.memory_space<vmem>>, vector<1x1x640x160xbf16>
    %14 = vector.shape_cast %13 : vector<1x1x640x160xbf16> to vector<640x160xbf16>
    %cst_15 = arith.constant dense<0.000000e+00> : vector<16x160xf32>
    %15 = tpu.matmul %5, %14, %cst_15 {dimension_numbers = #tpu.dot_dimension_numbers<[1], [0], [0], [1], [0, 0, 1, 1], [], []>} : vector<16x640xbf16>, vector<640x160xbf16>, vector<16x160xf32> -> vector<16x160xf32>
    %c0_16 = arith.constant 0 : index
    %c0_17 = arith.constant 0 : index
    %c0_18 = arith.constant 0 : index
    %c0_19 = arith.constant 0 : index
    %16 = vector.load %arg8[%c0_16, %c0_17, %c0_18, %c0_19] : memref<1x4x1x160xf32, #tpu.memory_space<vmem>>, vector<1x1x1x160xf32>
    %17 = vector.shape_cast %16 : vector<1x1x1x160xf32> to vector<1x160xf32>
    %18 = vector.broadcast %17 : vector<1x160xf32> to vector<16x160xf32>
    %19 = arith.addf %15, %18 : vector<16x160xf32>
    %20 = vector.shape_cast %12 : vector<16x160xf32> to vector<2x8x160xf32>
    %21 = arith.truncf %20 : vector<2x8x160xf32> to vector<2x8x160xbf16>
    %22 = vector.shape_cast %19 : vector<16x160xf32> to vector<2x8x160xf32>
    %23 = arith.truncf %22 : vector<2x8x160xf32> to vector<2x8x160xbf16>
    %c0_20 = arith.constant 0 : index
    %c1 = arith.constant 1 : index
    %c0_21 = arith.constant 0 : index
    %c0_22 = arith.constant 0 : index
    %24 = vector.load %arg5[%c0_20, %c1, %c0_21, %c0_22] : memref<1x4x640x160xbf16, #tpu.memory_space<vmem>>, vector<1x1x640x160xbf16>
    %25 = vector.shape_cast %24 : vector<1x1x640x160xbf16> to vector<640x160xbf16>
    %cst_23 = arith.constant dense<0.000000e+00> : vector<16x160xf32>
    %26 = tpu.matmul %5, %25, %cst_23 {dimension_numbers = #tpu.dot_dimension_numbers<[1], [0], [0], [1], [0, 0, 1, 1], [], []>} : vector<16x640xbf16>, vector<640x160xbf16>, vector<16x160xf32> -> vector<16x160xf32>
    %c0_24 = arith.constant 0 : index
    %c1_25 = arith.constant 1 : index
    %c0_26 = arith.constant 0 : index
    %c0_27 = arith.constant 0 : index
    %27 = vector.load %arg6[%c0_24, %c1_25, %c0_26, %c0_27] : memref<1x4x1x160xf32, #tpu.memory_space<vmem>>, vector<1x1x1x160xf32>
    %28 = vector.shape_cast %27 : vector<1x1x1x160xf32> to vector<1x160xf32>
    %29 = vector.broadcast %28 : vector<1x160xf32> to vector<16x160xf32>
    %30 = arith.addf %26, %29 : vector<16x160xf32>
    %c0_28 = arith.constant 0 : index
    %c1_29 = arith.constant 1 : index
    %c0_30 = arith.constant 0 : index
    %c0_31 = arith.constant 0 : index
    %31 = vector.load %arg7[%c0_28, %c1_29, %c0_30, %c0_31] : memref<1x4x640x160xbf16, #tpu.memory_space<vmem>>, vector<1x1x640x160xbf16>
    %32 = vector.shape_cast %31 : vector<1x1x640x160xbf16> to vector<640x160xbf16>
    %cst_32 = arith.constant dense<0.000000e+00> : vector<16x160xf32>
    %33 = tpu.matmul %5, %32, %cst_32 {dimension_numbers = #tpu.dot_dimension_numbers<[1], [0], [0], [1], [0, 0, 1, 1], [], []>} : vector<16x640xbf16>, vector<640x160xbf16>, vector<16x160xf32> -> vector<16x160xf32>
    %c0_33 = arith.constant 0 : index
    %c1_34 = arith.constant 1 : index
    %c0_35 = arith.constant 0 : index
    %c0_36 = arith.constant 0 : index
    %34 = vector.load %arg8[%c0_33, %c1_34, %c0_35, %c0_36] : memref<1x4x1x160xf32, #tpu.memory_space<vmem>>, vector<1x1x1x160xf32>
    %35 = vector.shape_cast %34 : vector<1x1x1x160xf32> to vector<1x160xf32>
    %36 = vector.broadcast %35 : vector<1x160xf32> to vector<16x160xf32>
    %37 = arith.addf %33, %36 : vector<16x160xf32>
    %38 = vector.shape_cast %30 : vector<16x160xf32> to vector<2x8x160xf32>
    %39 = arith.truncf %38 : vector<2x8x160xf32> to vector<2x8x160xbf16>
    %40 = vector.shape_cast %37 : vector<16x160xf32> to vector<2x8x160xf32>
    %41 = arith.truncf %40 : vector<2x8x160xf32> to vector<2x8x160xbf16>
    %c0_37 = arith.constant 0 : index
    %c2 = arith.constant 2 : index
    %c0_38 = arith.constant 0 : index
    %c0_39 = arith.constant 0 : index
    %42 = vector.load %arg5[%c0_37, %c2, %c0_38, %c0_39] : memref<1x4x640x160xbf16, #tpu.memory_space<vmem>>, vector<1x1x640x160xbf16>
    %43 = vector.shape_cast %42 : vector<1x1x640x160xbf16> to vector<640x160xbf16>
    %cst_40 = arith.constant dense<0.000000e+00> : vector<16x160xf32>
    %44 = tpu.matmul %5, %43, %cst_40 {dimension_numbers = #tpu.dot_dimension_numbers<[1], [0], [0], [1], [0, 0, 1, 1], [], []>} : vector<16x640xbf16>, vector<640x160xbf16>, vector<16x160xf32> -> vector<16x160xf32>
    %c0_41 = arith.constant 0 : index
    %c2_42 = arith.constant 2 : index
    %c0_43 = arith.constant 0 : index
    %c0_44 = arith.constant 0 : index
    %45 = vector.load %arg6[%c0_41, %c2_42, %c0_43, %c0_44] : memref<1x4x1x160xf32, #tpu.memory_space<vmem>>, vector<1x1x1x160xf32>
    %46 = vector.shape_cast %45 : vector<1x1x1x160xf32> to vector<1x160xf32>
    %47 = vector.broadcast %46 : vector<1x160xf32> to vector<16x160xf32>
    %48 = arith.addf %44, %47 : vector<16x160xf32>
    %c0_45 = arith.constant 0 : index
    %c2_46 = arith.constant 2 : index
    %c0_47 = arith.constant 0 : index
    %c0_48 = arith.constant 0 : index
    %49 = vector.load %arg7[%c0_45, %c2_46, %c0_47, %c0_48] : memref<1x4x640x160xbf16, #tpu.memory_space<vmem>>, vector<1x1x640x160xbf16>
    %50 = vector.shape_cast %49 : vector<1x1x640x160xbf16> to vector<640x160xbf16>
    %cst_49 = arith.constant dense<0.000000e+00> : vector<16x160xf32>
    %51 = tpu.matmul %5, %50, %cst_49 {dimension_numbers = #tpu.dot_dimension_numbers<[1], [0], [0], [1], [0, 0, 1, 1], [], []>} : vector<16x640xbf16>, vector<640x160xbf16>, vector<16x160xf32> -> vector<16x160xf32>
    %c0_50 = arith.constant 0 : index
    %c2_51 = arith.constant 2 : index
    %c0_52 = arith.constant 0 : index
    %c0_53 = arith.constant 0 : index
    %52 = vector.load %arg8[%c0_50, %c2_51, %c0_52, %c0_53] : memref<1x4x1x160xf32, #tpu.memory_space<vmem>>, vector<1x1x1x160xf32>
    %53 = vector.shape_cast %52 : vector<1x1x1x160xf32> to vector<1x160xf32>
    %54 = vector.broadcast %53 : vector<1x160xf32> to vector<16x160xf32>
    %55 = arith.addf %51, %54 : vector<16x160xf32>
    %56 = vector.shape_cast %48 : vector<16x160xf32> to vector<2x8x160xf32>
    %57 = arith.truncf %56 : vector<2x8x160xf32> to vector<2x8x160xbf16>
    %58 = vector.shape_cast %55 : vector<16x160xf32> to vector<2x8x160xf32>
    %59 = arith.truncf %58 : vector<2x8x160xf32> to vector<2x8x160xbf16>
    %c0_54 = arith.constant 0 : index
    %c3 = arith.constant 3 : index
    %c0_55 = arith.constant 0 : index
    %c0_56 = arith.constant 0 : index
    %60 = vector.load %arg5[%c0_54, %c3, %c0_55, %c0_56] : memref<1x4x640x160xbf16, #tpu.memory_space<vmem>>, vector<1x1x640x160xbf16>
    %61 = vector.shape_cast %60 : vector<1x1x640x160xbf16> to vector<640x160xbf16>
    %cst_57 = arith.constant dense<0.000000e+00> : vector<16x160xf32>
    %62 = tpu.matmul %5, %61, %cst_57 {dimension_numbers = #tpu.dot_dimension_numbers<[1], [0], [0], [1], [0, 0, 1, 1], [], []>} : vector<16x640xbf16>, vector<640x160xbf16>, vector<16x160xf32> -> vector<16x160xf32>
    %c0_58 = arith.constant 0 : index
    %c3_59 = arith.constant 3 : index
    %c0_60 = arith.constant 0 : index
    %c0_61 = arith.constant 0 : index
    %63 = vector.load %arg6[%c0_58, %c3_59, %c0_60, %c0_61] : memref<1x4x1x160xf32, #tpu.memory_space<vmem>>, vector<1x1x1x160xf32>
    %64 = vector.shape_cast %63 : vector<1x1x1x160xf32> to vector<1x160xf32>
    %65 = vector.broadcast %64 : vector<1x160xf32> to vector<16x160xf32>
    %66 = arith.addf %62, %65 : vector<16x160xf32>
    %c0_62 = arith.constant 0 : index
    %c3_63 = arith.constant 3 : index
    %c0_64 = arith.constant 0 : index
    %c0_65 = arith.constant 0 : index
    %67 = vector.load %arg7[%c0_62, %c3_63, %c0_64, %c0_65] : memref<1x4x640x160xbf16, #tpu.memory_space<vmem>>, vector<1x1x640x160xbf16>
    %68 = vector.shape_cast %67 : vector<1x1x640x160xbf16> to vector<640x160xbf16>
    %cst_66 = arith.constant dense<0.000000e+00> : vector<16x160xf32>
    %69 = tpu.matmul %5, %68, %cst_66 {dimension_numbers = #tpu.dot_dimension_numbers<[1], [0], [0], [1], [0, 0, 1, 1], [], []>} : vector<16x640xbf16>, vector<640x160xbf16>, vector<16x160xf32> -> vector<16x160xf32>
    %c0_67 = arith.constant 0 : index
    %c3_68 = arith.constant 3 : index
    %c0_69 = arith.constant 0 : index
    %c0_70 = arith.constant 0 : index
    %70 = vector.load %arg8[%c0_67, %c3_68, %c0_69, %c0_70] : memref<1x4x1x160xf32, #tpu.memory_space<vmem>>, vector<1x1x1x160xf32>
    %71 = vector.shape_cast %70 : vector<1x1x1x160xf32> to vector<1x160xf32>
    %72 = vector.broadcast %71 : vector<1x160xf32> to vector<16x160xf32>
    %73 = arith.addf %69, %72 : vector<16x160xf32>
    %74 = vector.shape_cast %66 : vector<16x160xf32> to vector<2x8x160xf32>
    %75 = arith.truncf %74 : vector<2x8x160xf32> to vector<2x8x160xbf16>
    %76 = vector.shape_cast %73 : vector<16x160xf32> to vector<2x8x160xf32>
    %77 = arith.truncf %76 : vector<2x8x160xf32> to vector<2x8x160xbf16>
    %c0_71 = arith.constant 0 : index
    %c0_72 = arith.constant 0 : index
    %c0_73 = arith.constant 0 : index
    %78 = vector.load %arg20[%c0_71, %c0_72, %c0_73] : memref<2x8x640xf32, #tpu.memory_space<vmem>>, vector<2x8x640xf32>
    %79 = vector.shape_cast %78 : vector<2x8x640xf32> to vector<16x640xf32>
    %80 = arith.truncf %79 : vector<16x640xf32> to vector<16x640xbf16>
    %cst_74 = arith.constant 0.000000e+00 : f32
    %81 = vector.broadcast %cst_74 : f32 to vector<16x640xf32>
    %c0_75 = arith.constant 0 : index
    %c0_76 = arith.constant 0 : index
    %c0_77 = arith.constant 0 : index
    %c0_78 = arith.constant 0 : index
    %82 = vector.load %arg3[%c0_75, %c0_76, %c0_77, %c0_78] : memref<1x4x640x160xbf16, #tpu.memory_space<vmem>>, vector<1x1x640x160xbf16>
    %83 = vector.shape_cast %82 : vector<1x1x640x160xbf16> to vector<640x160xbf16>
    %cst_79 = arith.constant dense<0.000000e+00> : vector<16x160xf32>
    %84 = tpu.matmul %80, %83, %cst_79 {dimension_numbers = #tpu.dot_dimension_numbers<[1], [0], [0], [1], [0, 0, 1, 1], [], []>} : vector<16x640xbf16>, vector<640x160xbf16>, vector<16x160xf32> -> vector<16x160xf32>
    %c0_80 = arith.constant 0 : index
    %c0_81 = arith.constant 0 : index
    %c0_82 = arith.constant 0 : index
    %c0_83 = arith.constant 0 : index
    %85 = vector.load %arg4[%c0_80, %c0_81, %c0_82, %c0_83] : memref<1x4x1x160xf32, #tpu.memory_space<vmem>>, vector<1x1x1x160xf32>
    %86 = vector.shape_cast %85 : vector<1x1x1x160xf32> to vector<1x160xf32>
    %87 = vector.broadcast %86 : vector<1x160xf32> to vector<16x160xf32>
    %88 = arith.addf %84, %87 : vector<16x160xf32>
    %89 = vector.shape_cast %88 : vector<16x160xf32> to vector<2x8x160xf32>
    %90 = arith.truncf %89 : vector<2x8x160xf32> to vector<2x8x160xbf16>
    "tpu.trace_start"() <{level = 10 : i32, message = "bqd,bkd->bqk"}> : () -> ()
    %cst_84 = arith.constant dense<0.000000e+00> : vector<2x8x8xf32>
    %91 = tpu.matmul %90, %21, %cst_84 {dimension_numbers = #tpu.dot_dimension_numbers<[2], [2], [1], [1], [0, 0, 0, 1, 1, 1], [0], [0]>} : vector<2x8x160xbf16>, vector<2x8x160xbf16>, vector<2x8x8xf32> -> vector<2x8x8xf32>
    "tpu.trace_stop"() : () -> ()
    %cst_85 = arith.constant dense<0xFF800000> : vector<2x8xf32>
    %92 = vector.multi_reduction <maximumf>, %91, %cst_85 [2] : vector<2x8x8xf32> to vector<2x8xf32>
    %93 = vector.shape_cast %92 : vector<2x8xf32> to vector<2x8x1xf32>
    %94 = vector.broadcast %93 : vector<2x8x1xf32> to vector<2x8x8xf32>
    %95 = arith.subf %91, %94 : vector<2x8x8xf32>
    %96 = math.exp %95 : vector<2x8x8xf32>
    %cst_86 = arith.constant dense<0.000000e+00> : vector<2x8xf32>
    %97 = vector.multi_reduction <add>, %96, %cst_86 [2] : vector<2x8x8xf32> to vector<2x8xf32>
    %98 = vector.shape_cast %97 : vector<2x8xf32> to vector<2x8x1xf32>
    %99 = tpu.reciprocal %98 {approx = true} : vector<2x8x1xf32> -> vector<2x8x1xf32>
    %100 = vector.broadcast %99 : vector<2x8x1xf32> to vector<2x8x8xf32>
    %101 = arith.mulf %96, %100 : vector<2x8x8xf32>
    %102 = arith.truncf %101 : vector<2x8x8xf32> to vector<2x8x8xbf16>
    "tpu.trace_start"() <{level = 10 : i32, message = "bqk,bkd->bqd"}> : () -> ()
    %cst_87 = arith.constant dense<0.000000e+00> : vector<2x8x160xf32>
    %103 = tpu.matmul %102, %23, %cst_87 {dimension_numbers = #tpu.dot_dimension_numbers<[2], [1], [1], [2], [0, 0, 0, 1, 1, 2], [0], [0]>} : vector<2x8x8xbf16>, vector<2x8x160xbf16>, vector<2x8x160xf32> -> vector<2x8x160xf32>
    "tpu.trace_stop"() : () -> ()
    %104 = vector.shape_cast %103 : vector<2x8x160xf32> to vector<16x160xf32>
    %105 = arith.truncf %104 : vector<16x160xf32> to vector<16x160xbf16>
    %c0_88 = arith.constant 0 : index
    %c0_89 = arith.constant 0 : index
    %c0_90 = arith.constant 0 : index
    %c0_91 = arith.constant 0 : index
    %106 = vector.load %arg9[%c0_88, %c0_89, %c0_90, %c0_91] : memref<1x4x160x640xbf16, #tpu.memory_space<vmem>>, vector<1x1x160x640xbf16>
    %107 = vector.shape_cast %106 : vector<1x1x160x640xbf16> to vector<160x640xbf16>
    %cst_92 = arith.constant dense<0.000000e+00> : vector<16x640xf32>
    %108 = tpu.matmul %105, %107, %cst_92 {dimension_numbers = #tpu.dot_dimension_numbers<[1], [0], [0], [1], [0, 0, 1, 1], [], []>} : vector<16x160xbf16>, vector<160x640xbf16>, vector<16x640xf32> -> vector<16x640xf32>
    %109 = arith.addf %81, %108 : vector<16x640xf32>
    %c0_93 = arith.constant 0 : index
    %c1_94 = arith.constant 1 : index
    %c0_95 = arith.constant 0 : index
    %c0_96 = arith.constant 0 : index
    %110 = vector.load %arg3[%c0_93, %c1_94, %c0_95, %c0_96] : memref<1x4x640x160xbf16, #tpu.memory_space<vmem>>, vector<1x1x640x160xbf16>
    %111 = vector.shape_cast %110 : vector<1x1x640x160xbf16> to vector<640x160xbf16>
    %cst_97 = arith.constant dense<0.000000e+00> : vector<16x160xf32>
    %112 = tpu.matmul %80, %111, %cst_97 {dimension_numbers = #tpu.dot_dimension_numbers<[1], [0], [0], [1], [0, 0, 1, 1], [], []>} : vector<16x640xbf16>, vector<640x160xbf16>, vector<16x160xf32> -> vector<16x160xf32>
    %c0_98 = arith.constant 0 : index
    %c1_99 = arith.constant 1 : index
    %c0_100 = arith.constant 0 : index
    %c0_101 = arith.constant 0 : index
    %113 = vector.load %arg4[%c0_98, %c1_99, %c0_100, %c0_101] : memref<1x4x1x160xf32, #tpu.memory_space<vmem>>, vector<1x1x1x160xf32>
    %114 = vector.shape_cast %113 : vector<1x1x1x160xf32> to vector<1x160xf32>
    %115 = vector.broadcast %114 : vector<1x160xf32> to vector<16x160xf32>
    %116 = arith.addf %112, %115 : vector<16x160xf32>
    %117 = vector.shape_cast %116 : vector<16x160xf32> to vector<2x8x160xf32>
    %118 = arith.truncf %117 : vector<2x8x160xf32> to vector<2x8x160xbf16>
    "tpu.trace_start"() <{level = 10 : i32, message = "bqd,bkd->bqk"}> : () -> ()
    %cst_102 = arith.constant dense<0.000000e+00> : vector<2x8x8xf32>
    %119 = tpu.matmul %118, %39, %cst_102 {dimension_numbers = #tpu.dot_dimension_numbers<[2], [2], [1], [1], [0, 0, 0, 1, 1, 1], [0], [0]>} : vector<2x8x160xbf16>, vector<2x8x160xbf16>, vector<2x8x8xf32> -> vector<2x8x8xf32>
    "tpu.trace_stop"() : () -> ()
    %cst_103 = arith.constant dense<0xFF800000> : vector<2x8xf32>
    %120 = vector.multi_reduction <maximumf>, %119, %cst_103 [2] : vector<2x8x8xf32> to vector<2x8xf32>
    %121 = vector.shape_cast %120 : vector<2x8xf32> to vector<2x8x1xf32>
    %122 = vector.broadcast %121 : vector<2x8x1xf32> to vector<2x8x8xf32>
    %123 = arith.subf %119, %122 : vector<2x8x8xf32>
    %124 = math.exp %123 : vector<2x8x8xf32>
    %cst_104 = arith.constant dense<0.000000e+00> : vector<2x8xf32>
    %125 = vector.multi_reduction <add>, %124, %cst_104 [2] : vector<2x8x8xf32> to vector<2x8xf32>
    %126 = vector.shape_cast %125 : vector<2x8xf32> to vector<2x8x1xf32>
    %127 = tpu.reciprocal %126 {approx = true} : vector<2x8x1xf32> -> vector<2x8x1xf32>
    %128 = vector.broadcast %127 : vector<2x8x1xf32> to vector<2x8x8xf32>
    %129 = arith.mulf %124, %128 : vector<2x8x8xf32>
    %130 = arith.truncf %129 : vector<2x8x8xf32> to vector<2x8x8xbf16>
    "tpu.trace_start"() <{level = 10 : i32, message = "bqk,bkd->bqd"}> : () -> ()
    %cst_105 = arith.constant dense<0.000000e+00> : vector<2x8x160xf32>
    %131 = tpu.matmul %130, %41, %cst_105 {dimension_numbers = #tpu.dot_dimension_numbers<[2], [1], [1], [2], [0, 0, 0, 1, 1, 2], [0], [0]>} : vector<2x8x8xbf16>, vector<2x8x160xbf16>, vector<2x8x160xf32> -> vector<2x8x160xf32>
    "tpu.trace_stop"() : () -> ()
    %132 = vector.shape_cast %131 : vector<2x8x160xf32> to vector<16x160xf32>
    %133 = arith.truncf %132 : vector<16x160xf32> to vector<16x160xbf16>
    %c0_106 = arith.constant 0 : index
    %c1_107 = arith.constant 1 : index
    %c0_108 = arith.constant 0 : index
    %c0_109 = arith.constant 0 : index
    %134 = vector.load %arg9[%c0_106, %c1_107, %c0_108, %c0_109] : memref<1x4x160x640xbf16, #tpu.memory_space<vmem>>, vector<1x1x160x640xbf16>
    %135 = vector.shape_cast %134 : vector<1x1x160x640xbf16> to vector<160x640xbf16>
    %cst_110 = arith.constant dense<0.000000e+00> : vector<16x640xf32>
    %136 = tpu.matmul %133, %135, %cst_110 {dimension_numbers = #tpu.dot_dimension_numbers<[1], [0], [0], [1], [0, 0, 1, 1], [], []>} : vector<16x160xbf16>, vector<160x640xbf16>, vector<16x640xf32> -> vector<16x640xf32>
    %137 = arith.addf %109, %136 : vector<16x640xf32>
    %c0_111 = arith.constant 0 : index
    %c2_112 = arith.constant 2 : index
    %c0_113 = arith.constant 0 : index
    %c0_114 = arith.constant 0 : index
    %138 = vector.load %arg3[%c0_111, %c2_112, %c0_113, %c0_114] : memref<1x4x640x160xbf16, #tpu.memory_space<vmem>>, vector<1x1x640x160xbf16>
    %139 = vector.shape_cast %138 : vector<1x1x640x160xbf16> to vector<640x160xbf16>
    %cst_115 = arith.constant dense<0.000000e+00> : vector<16x160xf32>
    %140 = tpu.matmul %80, %139, %cst_115 {dimension_numbers = #tpu.dot_dimension_numbers<[1], [0], [0], [1], [0, 0, 1, 1], [], []>} : vector<16x640xbf16>, vector<640x160xbf16>, vector<16x160xf32> -> vector<16x160xf32>
    %c0_116 = arith.constant 0 : index
    %c2_117 = arith.constant 2 : index
    %c0_118 = arith.constant 0 : index
    %c0_119 = arith.constant 0 : index
    %141 = vector.load %arg4[%c0_116, %c2_117, %c0_118, %c0_119] : memref<1x4x1x160xf32, #tpu.memory_space<vmem>>, vector<1x1x1x160xf32>
    %142 = vector.shape_cast %141 : vector<1x1x1x160xf32> to vector<1x160xf32>
    %143 = vector.broadcast %142 : vector<1x160xf32> to vector<16x160xf32>
    %144 = arith.addf %140, %143 : vector<16x160xf32>
    %145 = vector.shape_cast %144 : vector<16x160xf32> to vector<2x8x160xf32>
    %146 = arith.truncf %145 : vector<2x8x160xf32> to vector<2x8x160xbf16>
    "tpu.trace_start"() <{level = 10 : i32, message = "bqd,bkd->bqk"}> : () -> ()
    %cst_120 = arith.constant dense<0.000000e+00> : vector<2x8x8xf32>
    %147 = tpu.matmul %146, %57, %cst_120 {dimension_numbers = #tpu.dot_dimension_numbers<[2], [2], [1], [1], [0, 0, 0, 1, 1, 1], [0], [0]>} : vector<2x8x160xbf16>, vector<2x8x160xbf16>, vector<2x8x8xf32> -> vector<2x8x8xf32>
    "tpu.trace_stop"() : () -> ()
    %cst_121 = arith.constant dense<0xFF800000> : vector<2x8xf32>
    %148 = vector.multi_reduction <maximumf>, %147, %cst_121 [2] : vector<2x8x8xf32> to vector<2x8xf32>
    %149 = vector.shape_cast %148 : vector<2x8xf32> to vector<2x8x1xf32>
    %150 = vector.broadcast %149 : vector<2x8x1xf32> to vector<2x8x8xf32>
    %151 = arith.subf %147, %150 : vector<2x8x8xf32>
    %152 = math.exp %151 : vector<2x8x8xf32>
    %cst_122 = arith.constant dense<0.000000e+00> : vector<2x8xf32>
    %153 = vector.multi_reduction <add>, %152, %cst_122 [2] : vector<2x8x8xf32> to vector<2x8xf32>
    %154 = vector.shape_cast %153 : vector<2x8xf32> to vector<2x8x1xf32>
    %155 = tpu.reciprocal %154 {approx = true} : vector<2x8x1xf32> -> vector<2x8x1xf32>
    %156 = vector.broadcast %155 : vector<2x8x1xf32> to vector<2x8x8xf32>
    %157 = arith.mulf %152, %156 : vector<2x8x8xf32>
    %158 = arith.truncf %157 : vector<2x8x8xf32> to vector<2x8x8xbf16>
    "tpu.trace_start"() <{level = 10 : i32, message = "bqk,bkd->bqd"}> : () -> ()
    %cst_123 = arith.constant dense<0.000000e+00> : vector<2x8x160xf32>
    %159 = tpu.matmul %158, %59, %cst_123 {dimension_numbers = #tpu.dot_dimension_numbers<[2], [1], [1], [2], [0, 0, 0, 1, 1, 2], [0], [0]>} : vector<2x8x8xbf16>, vector<2x8x160xbf16>, vector<2x8x160xf32> -> vector<2x8x160xf32>
    "tpu.trace_stop"() : () -> ()
    %160 = vector.shape_cast %159 : vector<2x8x160xf32> to vector<16x160xf32>
    %161 = arith.truncf %160 : vector<16x160xf32> to vector<16x160xbf16>
    %c0_124 = arith.constant 0 : index
    %c2_125 = arith.constant 2 : index
    %c0_126 = arith.constant 0 : index
    %c0_127 = arith.constant 0 : index
    %162 = vector.load %arg9[%c0_124, %c2_125, %c0_126, %c0_127] : memref<1x4x160x640xbf16, #tpu.memory_space<vmem>>, vector<1x1x160x640xbf16>
    %163 = vector.shape_cast %162 : vector<1x1x160x640xbf16> to vector<160x640xbf16>
    %cst_128 = arith.constant dense<0.000000e+00> : vector<16x640xf32>
    %164 = tpu.matmul %161, %163, %cst_128 {dimension_numbers = #tpu.dot_dimension_numbers<[1], [0], [0], [1], [0, 0, 1, 1], [], []>} : vector<16x160xbf16>, vector<160x640xbf16>, vector<16x640xf32> -> vector<16x640xf32>
    %165 = arith.addf %137, %164 : vector<16x640xf32>
    %c0_129 = arith.constant 0 : index
    %c3_130 = arith.constant 3 : index
    %c0_131 = arith.constant 0 : index
    %c0_132 = arith.constant 0 : index
    %166 = vector.load %arg3[%c0_129, %c3_130, %c0_131, %c0_132] : memref<1x4x640x160xbf16, #tpu.memory_space<vmem>>, vector<1x1x640x160xbf16>
    %167 = vector.shape_cast %166 : vector<1x1x640x160xbf16> to vector<640x160xbf16>
    %cst_133 = arith.constant dense<0.000000e+00> : vector<16x160xf32>
    %168 = tpu.matmul %80, %167, %cst_133 {dimension_numbers = #tpu.dot_dimension_numbers<[1], [0], [0], [1], [0, 0, 1, 1], [], []>} : vector<16x640xbf16>, vector<640x160xbf16>, vector<16x160xf32> -> vector<16x160xf32>
    %c0_134 = arith.constant 0 : index
    %c3_135 = arith.constant 3 : index
    %c0_136 = arith.constant 0 : index
    %c0_137 = arith.constant 0 : index
    %169 = vector.load %arg4[%c0_134, %c3_135, %c0_136, %c0_137] : memref<1x4x1x160xf32, #tpu.memory_space<vmem>>, vector<1x1x1x160xf32>
    %170 = vector.shape_cast %169 : vector<1x1x1x160xf32> to vector<1x160xf32>
    %171 = vector.broadcast %170 : vector<1x160xf32> to vector<16x160xf32>
    %172 = arith.addf %168, %171 : vector<16x160xf32>
    %173 = vector.shape_cast %172 : vector<16x160xf32> to vector<2x8x160xf32>
    %174 = arith.truncf %173 : vector<2x8x160xf32> to vector<2x8x160xbf16>
    "tpu.trace_start"() <{level = 10 : i32, message = "bqd,bkd->bqk"}> : () -> ()
    %cst_138 = arith.constant dense<0.000000e+00> : vector<2x8x8xf32>
    %175 = tpu.matmul %174, %75, %cst_138 {dimension_numbers = #tpu.dot_dimension_numbers<[2], [2], [1], [1], [0, 0, 0, 1, 1, 1], [0], [0]>} : vector<2x8x160xbf16>, vector<2x8x160xbf16>, vector<2x8x8xf32> -> vector<2x8x8xf32>
    "tpu.trace_stop"() : () -> ()
    %cst_139 = arith.constant dense<0xFF800000> : vector<2x8xf32>
    %176 = vector.multi_reduction <maximumf>, %175, %cst_139 [2] : vector<2x8x8xf32> to vector<2x8xf32>
    %177 = vector.shape_cast %176 : vector<2x8xf32> to vector<2x8x1xf32>
    %178 = vector.broadcast %177 : vector<2x8x1xf32> to vector<2x8x8xf32>
    %179 = arith.subf %175, %178 : vector<2x8x8xf32>
    %180 = math.exp %179 : vector<2x8x8xf32>
    %cst_140 = arith.constant dense<0.000000e+00> : vector<2x8xf32>
    %181 = vector.multi_reduction <add>, %180, %cst_140 [2] : vector<2x8x8xf32> to vector<2x8xf32>
    %182 = vector.shape_cast %181 : vector<2x8xf32> to vector<2x8x1xf32>
    %183 = tpu.reciprocal %182 {approx = true} : vector<2x8x1xf32> -> vector<2x8x1xf32>
    %184 = vector.broadcast %183 : vector<2x8x1xf32> to vector<2x8x8xf32>
    %185 = arith.mulf %180, %184 : vector<2x8x8xf32>
    %186 = arith.truncf %185 : vector<2x8x8xf32> to vector<2x8x8xbf16>
    "tpu.trace_start"() <{level = 10 : i32, message = "bqk,bkd->bqd"}> : () -> ()
    %cst_141 = arith.constant dense<0.000000e+00> : vector<2x8x160xf32>
    %187 = tpu.matmul %186, %77, %cst_141 {dimension_numbers = #tpu.dot_dimension_numbers<[2], [1], [1], [2], [0, 0, 0, 1, 1, 2], [0], [0]>} : vector<2x8x8xbf16>, vector<2x8x160xbf16>, vector<2x8x160xf32> -> vector<2x8x160xf32>
    "tpu.trace_stop"() : () -> ()
    %188 = vector.shape_cast %187 : vector<2x8x160xf32> to vector<16x160xf32>
    %189 = arith.truncf %188 : vector<16x160xf32> to vector<16x160xbf16>
    %c0_142 = arith.constant 0 : index
    %c3_143 = arith.constant 3 : index
    %c0_144 = arith.constant 0 : index
    %c0_145 = arith.constant 0 : index
    %190 = vector.load %arg9[%c0_142, %c3_143, %c0_144, %c0_145] : memref<1x4x160x640xbf16, #tpu.memory_space<vmem>>, vector<1x1x160x640xbf16>
    %191 = vector.shape_cast %190 : vector<1x1x160x640xbf16> to vector<160x640xbf16>
    %cst_146 = arith.constant dense<0.000000e+00> : vector<16x640xf32>
    %192 = tpu.matmul %189, %191, %cst_146 {dimension_numbers = #tpu.dot_dimension_numbers<[1], [0], [0], [1], [0, 0, 1, 1], [], []>} : vector<16x160xbf16>, vector<160x640xbf16>, vector<16x640xf32> -> vector<16x640xf32>
    %193 = arith.addf %165, %192 : vector<16x640xf32>
    %c0_147 = arith.constant 0 : index
    %c0_148 = arith.constant 0 : index
    %c0_149 = arith.constant 0 : index
    %194 = vector.load %arg10[%c0_147, %c0_148, %c0_149] : memref<1x1x640xf32, #tpu.memory_space<vmem>>, vector<1x1x640xf32>
    %195 = vector.shape_cast %194 : vector<1x1x640xf32> to vector<1x640xf32>
    %196 = vector.broadcast %195 : vector<1x640xf32> to vector<16x640xf32>
    %197 = arith.addf %193, %196 : vector<16x640xf32>
    %198 = arith.addf %79, %197 : vector<16x640xf32>
    %c0_150 = arith.constant 0 : index
    %c0_151 = arith.constant 0 : index
    %c0_152 = arith.constant 0 : index
    %199 = vector.load %arg11[%c0_150, %c0_151, %c0_152] : memref<1x1x640xf32, #tpu.memory_space<vmem>>, vector<1x1x640xf32>
    %200 = vector.shape_cast %199 : vector<1x1x640xf32> to vector<1x640xf32>
    %c0_153 = arith.constant 0 : index
    %c0_154 = arith.constant 0 : index
    %c0_155 = arith.constant 0 : index
    %201 = vector.load %arg12[%c0_153, %c0_154, %c0_155] : memref<1x1x640xf32, #tpu.memory_space<vmem>>, vector<1x1x640xf32>
    %202 = vector.shape_cast %201 : vector<1x1x640xf32> to vector<1x640xf32>
    %cst_156 = arith.constant dense<0.000000e+00> : vector<16xf32>
    %203 = vector.multi_reduction <add>, %198, %cst_156 [1] : vector<16x640xf32> to vector<16xf32>
    %204 = vector.shape_cast %203 : vector<16xf32> to vector<16x1xf32>
    %cst_157 = arith.constant 6.400000e+02 : f32
    %205 = vector.broadcast %cst_157 : f32 to vector<16x1xf32>
    %206 = arith.divf %204, %205 : vector<16x1xf32>
    %207 = vector.broadcast %206 : vector<16x1xf32> to vector<16x640xf32>
    %208 = arith.subf %198, %207 : vector<16x640xf32>
    %209 = arith.mulf %208, %208 : vector<16x640xf32>
    %cst_158 = arith.constant dense<0.000000e+00> : vector<16xf32>
    %210 = vector.multi_reduction <add>, %209, %cst_158 [1] : vector<16x640xf32> to vector<16xf32>
    %211 = vector.shape_cast %210 : vector<16xf32> to vector<16x1xf32>
    %cst_159 = arith.constant 6.400000e+02 : f32
    %212 = vector.broadcast %cst_159 : f32 to vector<16x1xf32>
    %213 = arith.divf %211, %212 : vector<16x1xf32>
    %214 = vector.broadcast %206 : vector<16x1xf32> to vector<16x640xf32>
    %215 = arith.subf %198, %214 : vector<16x640xf32>
    %cst_160 = arith.constant 9.99999974E-6 : f32
    %216 = vector.broadcast %cst_160 : f32 to vector<16x1xf32>
    %217 = arith.addf %213, %216 : vector<16x1xf32>
    %218 = math.rsqrt %217 : vector<16x1xf32>
    %219 = vector.broadcast %218 : vector<16x1xf32> to vector<16x640xf32>
    %220 = arith.mulf %215, %219 : vector<16x640xf32>
    %221 = vector.broadcast %200 : vector<1x640xf32> to vector<16x640xf32>
    %222 = arith.mulf %220, %221 : vector<16x640xf32>
    %223 = vector.broadcast %202 : vector<1x640xf32> to vector<16x640xf32>
    %224 = arith.addf %222, %223 : vector<16x640xf32>
    %225 = arith.truncf %224 : vector<16x640xf32> to vector<16x640xbf16>
    %c0_161 = arith.constant 0 : index
    %c0_162 = arith.constant 0 : index
    %c0_163 = arith.constant 0 : index
    %226 = vector.load %arg13[%c0_161, %c0_162, %c0_163] : memref<1x640x256xbf16, #tpu.memory_space<vmem>>, vector<1x640x256xbf16>
    %227 = vector.shape_cast %226 : vector<1x640x256xbf16> to vector<640x256xbf16>
    %cst_164 = arith.constant dense<0.000000e+00> : vector<16x256xf32>
    %228 = tpu.matmul %225, %227, %cst_164 {dimension_numbers = #tpu.dot_dimension_numbers<[1], [0], [0], [1], [0, 0, 1, 1], [], []>} : vector<16x640xbf16>, vector<640x256xbf16>, vector<16x256xf32> -> vector<16x256xf32>
    %c0_165 = arith.constant 0 : index
    %c0_166 = arith.constant 0 : index
    %c0_167 = arith.constant 0 : index
    %229 = vector.load %arg14[%c0_165, %c0_166, %c0_167] : memref<1x1x256xf32, #tpu.memory_space<vmem>>, vector<1x1x256xf32>
    %230 = vector.shape_cast %229 : vector<1x1x256xf32> to vector<1x256xf32>
    %231 = vector.broadcast %230 : vector<1x256xf32> to vector<16x256xf32>
    %232 = arith.addf %228, %231 : vector<16x256xf32>
    %cst_168 = arith.constant 0.000000e+00 : f32
    %233 = vector.broadcast %cst_168 : f32 to vector<16x256xf32>
    %234 = arith.maximumf %232, %233 : vector<16x256xf32>
    %235 = arith.truncf %234 : vector<16x256xf32> to vector<16x256xbf16>
    %c0_169 = arith.constant 0 : index
    %c0_170 = arith.constant 0 : index
    %c0_171 = arith.constant 0 : index
    %236 = vector.load %arg15[%c0_169, %c0_170, %c0_171] : memref<1x256x640xbf16, #tpu.memory_space<vmem>>, vector<1x256x640xbf16>
    %237 = vector.shape_cast %236 : vector<1x256x640xbf16> to vector<256x640xbf16>
    %cst_172 = arith.constant dense<0.000000e+00> : vector<16x640xf32>
    %238 = tpu.matmul %235, %237, %cst_172 {dimension_numbers = #tpu.dot_dimension_numbers<[1], [0], [0], [1], [0, 0, 1, 1], [], []>} : vector<16x256xbf16>, vector<256x640xbf16>, vector<16x640xf32> -> vector<16x640xf32>
    %c0_173 = arith.constant 0 : index
    %c0_174 = arith.constant 0 : index
    %c0_175 = arith.constant 0 : index
    %239 = vector.load %arg16[%c0_173, %c0_174, %c0_175] : memref<1x1x640xf32, #tpu.memory_space<vmem>>, vector<1x1x640xf32>
    %240 = vector.shape_cast %239 : vector<1x1x640xf32> to vector<1x640xf32>
    %241 = vector.broadcast %240 : vector<1x640xf32> to vector<16x640xf32>
    %242 = arith.addf %238, %241 : vector<16x640xf32>
    %243 = arith.addf %224, %242 : vector<16x640xf32>
    %c0_176 = arith.constant 0 : index
    %c0_177 = arith.constant 0 : index
    %c0_178 = arith.constant 0 : index
    %244 = vector.load %arg17[%c0_176, %c0_177, %c0_178] : memref<1x1x640xf32, #tpu.memory_space<vmem>>, vector<1x1x640xf32>
    %245 = vector.shape_cast %244 : vector<1x1x640xf32> to vector<1x640xf32>
    %c0_179 = arith.constant 0 : index
    %c0_180 = arith.constant 0 : index
    %c0_181 = arith.constant 0 : index
    %246 = vector.load %arg18[%c0_179, %c0_180, %c0_181] : memref<1x1x640xf32, #tpu.memory_space<vmem>>, vector<1x1x640xf32>
    %247 = vector.shape_cast %246 : vector<1x1x640xf32> to vector<1x640xf32>
    %cst_182 = arith.constant dense<0.000000e+00> : vector<16xf32>
    %248 = vector.multi_reduction <add>, %243, %cst_182 [1] : vector<16x640xf32> to vector<16xf32>
    %249 = vector.shape_cast %248 : vector<16xf32> to vector<16x1xf32>
    %cst_183 = arith.constant 6.400000e+02 : f32
    %250 = vector.broadcast %cst_183 : f32 to vector<16x1xf32>
    %251 = arith.divf %249, %250 : vector<16x1xf32>
    %252 = vector.broadcast %251 : vector<16x1xf32> to vector<16x640xf32>
    %253 = arith.subf %243, %252 : vector<16x640xf32>
    %254 = arith.mulf %253, %253 : vector<16x640xf32>
    %cst_184 = arith.constant dense<0.000000e+00> : vector<16xf32>
    %255 = vector.multi_reduction <add>, %254, %cst_184 [1] : vector<16x640xf32> to vector<16xf32>
    %256 = vector.shape_cast %255 : vector<16xf32> to vector<16x1xf32>
    %cst_185 = arith.constant 6.400000e+02 : f32
    %257 = vector.broadcast %cst_185 : f32 to vector<16x1xf32>
    %258 = arith.divf %256, %257 : vector<16x1xf32>
    %259 = vector.broadcast %251 : vector<16x1xf32> to vector<16x640xf32>
    %260 = arith.subf %243, %259 : vector<16x640xf32>
    %cst_186 = arith.constant 9.99999974E-6 : f32
    %261 = vector.broadcast %cst_186 : f32 to vector<16x1xf32>
    %262 = arith.addf %258, %261 : vector<16x1xf32>
    %263 = math.rsqrt %262 : vector<16x1xf32>
    %264 = vector.broadcast %263 : vector<16x1xf32> to vector<16x640xf32>
    %265 = arith.mulf %260, %264 : vector<16x640xf32>
    %266 = vector.broadcast %245 : vector<1x640xf32> to vector<16x640xf32>
    %267 = arith.mulf %265, %266 : vector<16x640xf32>
    %268 = vector.broadcast %247 : vector<1x640xf32> to vector<16x640xf32>
    %269 = arith.addf %267, %268 : vector<16x640xf32>
    %270 = vector.shape_cast %269 : vector<16x640xf32> to vector<2x8x640xf32>
    %c0_187 = arith.constant 0 : index
    %c0_188 = arith.constant 0 : index
    %c0_189 = arith.constant 0 : index
    %271 = vector.load %arg20[%c0_187, %c0_188, %c0_189] : memref<2x8x640xf32, #tpu.memory_space<vmem>>, vector<2x8x640xf32>
    tpu.vector_store %arg20[%c0_187, %c0_188, %c0_189], %270 {strides = array<i32>} : memref<2x8x640xf32, #tpu.memory_space<vmem>>, vector<2x8x640xf32>,
    %c1_i32 = arith.constant 1 : i32
    %272 = arith.cmpi eq, %arg1, %c1_i32 : i32
    %273 = arith.extui %272 : i1 to i32
    %c0_i32_190 = arith.constant 0 : i32
    %274 = arith.cmpi ne, %273, %c0_i32_190 : i32
    scf.if %274 {
      %c0_191 = arith.constant 0 : index
      %c0_192 = arith.constant 0 : index
      %c0_193 = arith.constant 0 : index
      %275 = vector.load %arg20[%c0_191, %c0_192, %c0_193] : memref<2x8x640xf32, #tpu.memory_space<vmem>>, vector<2x8x640xf32>
      %cst_194 = arith.constant dense<0.000000e+00> : vector<2x640xf32>
      %276 = vector.multi_reduction <add>, %275, %cst_194 [1] : vector<2x8x640xf32> to vector<2x640xf32>
      %cst_195 = arith.constant 8.000000e+00 : f32
      %277 = vector.broadcast %cst_195 : f32 to vector<2x640xf32>
      %278 = arith.divf %276, %277 : vector<2x640xf32>
      %c0_196 = arith.constant 0 : index
      %c0_197 = arith.constant 0 : index
      %279 = vector.load %arg19[%c0_196, %c0_197] : memref<2x640xf32, #tpu.memory_space<vmem>>, vector<2x640xf32>
      tpu.vector_store %arg19[%c0_196, %c0_197], %278 {strides = array<i32>} : memref<2x640xf32, #tpu.memory_space<vmem>>, vector<2x640xf32>,
    } else {
    }
    return
  }
  func.func @transform_0(%arg0: i32, %arg1: i32) -> (i32, i32, i32) {
    %c0_i32 = arith.constant 0 : i32
    %c0_i32_0 = arith.constant 0 : i32
    %c0_i32_1 = arith.constant 0 : i32
    return %arg0, %c0_i32, %c0_i32_0 : i32, i32, i32
  }
  func.func @transform_1(%arg0: i32, %arg1: i32) -> (i32, i32, i32, i32) {
    %c0_i32 = arith.constant 0 : i32
    %c0_i32_0 = arith.constant 0 : i32
    %c0_i32_1 = arith.constant 0 : i32
    %c0_i32_2 = arith.constant 0 : i32
    return %arg1, %c0_i32, %c0_i32_0, %c0_i32_1 : i32, i32, i32, i32
  }
  func.func @transform_2(%arg0: i32, %arg1: i32) -> (i32, i32, i32, i32) {
    %c0_i32 = arith.constant 0 : i32
    %c0_i32_0 = arith.constant 0 : i32
    %c0_i32_1 = arith.constant 0 : i32
    %c0_i32_2 = arith.constant 0 : i32
    return %arg1, %c0_i32, %c0_i32_0, %c0_i32_1 : i32, i32, i32, i32
  }
  func.func @transform_3(%arg0: i32, %arg1: i32) -> (i32, i32, i32, i32) {
    %c0_i32 = arith.constant 0 : i32
    %c0_i32_0 = arith.constant 0 : i32
    %c0_i32_1 = arith.constant 0 : i32
    %c0_i32_2 = arith.constant 0 : i32
    return %arg1, %c0_i32, %c0_i32_0, %c0_i32_1 : i32, i32, i32, i32
  }
  func.func @transform_4(%arg0: i32, %arg1: i32) -> (i32, i32, i32, i32) {
    %c0_i32 = arith.constant 0 : i32
    %c0_i32_0 = arith.constant 0 : i32
    %c0_i32_1 = arith.constant 0 : i32
    %c0_i32_2 = arith.constant 0 : i32
    return %arg1, %c0_i32, %c0_i32_0, %c0_i32_1 : i32, i32, i32, i32
  }
  func.func @transform_5(%arg0: i32, %arg1: i32) -> (i32, i32, i32, i32) {
    %c0_i32 = arith.constant 0 : i32
    %c0_i32_0 = arith.constant 0 : i32
    %c0_i32_1 = arith.constant 0 : i32
    %c0_i32_2 = arith.constant 0 : i32
    return %arg1, %c0_i32, %c0_i32_0, %c0_i32_1 : i32, i32, i32, i32
  }
  func.func @transform_6(%arg0: i32, %arg1: i32) -> (i32, i32, i32, i32) {
    %c0_i32 = arith.constant 0 : i32
    %c0_i32_0 = arith.constant 0 : i32
    %c0_i32_1 = arith.constant 0 : i32
    %c0_i32_2 = arith.constant 0 : i32
    return %arg1, %c0_i32, %c0_i32_0, %c0_i32_1 : i32, i32, i32, i32
  }
  func.func @transform_7(%arg0: i32, %arg1: i32) -> (i32, i32, i32, i32) {
    %c0_i32 = arith.constant 0 : i32
    %c0_i32_0 = arith.constant 0 : i32
    %c0_i32_1 = arith.constant 0 : i32
    %c0_i32_2 = arith.constant 0 : i32
    return %arg1, %c0_i32, %c0_i32_0, %c0_i32_1 : i32, i32, i32, i32
  }
  func.func @transform_8(%arg0: i32, %arg1: i32) -> (i32, i32, i32) {
    %c0_i32 = arith.constant 0 : i32
    %c0_i32_0 = arith.constant 0 : i32
    %c0_i32_1 = arith.constant 0 : i32
    return %arg1, %c0_i32, %c0_i32_0 : i32, i32, i32
  }
  func.func @transform_9(%arg0: i32, %arg1: i32) -> (i32, i32, i32) {
    %c0_i32 = arith.constant 0 : i32
    %c0_i32_0 = arith.constant 0 : i32
    %c0_i32_1 = arith.constant 0 : i32
    return %arg1, %c0_i32, %c0_i32_0 : i32, i32, i32
  }
  func.func @transform_10(%arg0: i32, %arg1: i32) -> (i32, i32, i32) {
    %c0_i32 = arith.constant 0 : i32
    %c0_i32_0 = arith.constant 0 : i32
    %c0_i32_1 = arith.constant 0 : i32
    return %arg1, %c0_i32, %c0_i32_0 : i32, i32, i32
  }
  func.func @transform_11(%arg0: i32, %arg1: i32) -> (i32, i32, i32) {
    %c0_i32 = arith.constant 0 : i32
    %c0_i32_0 = arith.constant 0 : i32
    %c0_i32_1 = arith.constant 0 : i32
    return %arg1, %c0_i32, %c0_i32_0 : i32, i32, i32
  }
  func.func @transform_12(%arg0: i32, %arg1: i32) -> (i32, i32, i32) {
    %c0_i32 = arith.constant 0 : i32
    %c0_i32_0 = arith.constant 0 : i32
    %c0_i32_1 = arith.constant 0 : i32
    return %arg1, %c0_i32, %c0_i32_0 : i32, i32, i32
  }
  func.func @transform_13(%arg0: i32, %arg1: i32) -> (i32, i32, i32) {
    %c0_i32 = arith.constant 0 : i32
    %c0_i32_0 = arith.constant 0 : i32
    %c0_i32_1 = arith.constant 0 : i32
    return %arg1, %c0_i32, %c0_i32_0 : i32, i32, i32
  }
  func.func @transform_14(%arg0: i32, %arg1: i32) -> (i32, i32, i32) {
    %c0_i32 = arith.constant 0 : i32
    %c0_i32_0 = arith.constant 0 : i32
    %c0_i32_1 = arith.constant 0 : i32
    return %arg1, %c0_i32, %c0_i32_0 : i32, i32, i32
  }
  func.func @transform_15(%arg0: i32, %arg1: i32) -> (i32, i32, i32) {
    %c0_i32 = arith.constant 0 : i32
    %c0_i32_0 = arith.constant 0 : i32
    %c0_i32_1 = arith.constant 0 : i32
    return %arg1, %c0_i32, %c0_i32_0 : i32, i32, i32
  }
  func.func @transform_16(%arg0: i32, %arg1: i32) -> (i32, i32, i32) {
    %c0_i32 = arith.constant 0 : i32
    %c0_i32_0 = arith.constant 0 : i32
    %c0_i32_1 = arith.constant 0 : i32
    return %arg1, %c0_i32, %c0_i32_0 : i32, i32, i32
  }
  func.func @transform_17(%arg0: i32, %arg1: i32) -> (i32, i32) {
    %c0_i32 = arith.constant 0 : i32
    %c0_i32_0 = arith.constant 0 : i32
    return %arg0, %c0_i32 : i32, i32
  }
}

</mosaic_0001>

<bundles_post_ra>
// kernel: tpu_custom_call.1
= control target key start
LH: loop header
LB: loop body
LE: loop exit
PB: predicated region body
PF: predicated region fallthrough
CT: control target
= control target key end

     0   :  { %s19972_s0 = inlined_call_operand.vmem [shape: f32[2,8,640], index: 0, kind: input, shape index: {}]   ;;  %s19973_s1 = inlined_call_operand.vmem [shape: bf16[2,4,640,160], index: 1, kind: input, shape index: {}]   ;;  %s19974_s2 = inlined_call_operand.vmem [shape: f32[2,4,1,160], index: 2, kind: input, shape index: {}]   ;;  %s19975_s3 = inlined_call_operand.vmem [shape: bf16[2,4,640,160], index: 3, kind: input, shape index: {}]   ;;  %s19976_s4 = inlined_call_operand.vmem [shape: f32[2,4,1,160], index: 4, kind: input, shape index: {}]   ;;  %s19977_s5 = inlined_call_operand.vmem [shape: bf16[2,4,640,160], index: 5, kind: input, shape index: {}]   ;;  %s19978_s6 = inlined_call_operand.vmem [shape: f32[2,4,1,160], index: 6, kind: input, shape index: {}]   ;;  %s19979_s7 = inlined_call_operand.vmem [shape: bf16[2,4,160,640], index: 7, kind: input, shape index: {}]   ;;  %s19980_s8 = inlined_call_operand.vmem [shape: f32[2,1,640], index: 8, kind: input, shape index: {}]   ;;  %s19981_s9 = inlined_call_operand.vmem [shape: f32[2,1,640], index: 9, kind: input, shape index: {}]   ;;  %s19982_s10 = inlined_call_operand.vmem [shape: f32[2,1,640], index: 10, kind: input, shape index: {}]   ;;  %s19983_s11 = inlined_call_operand.vmem [shape: bf16[2,640,256], index: 11, kind: input, shape index: {}]   ;;  %s19984_s12 = inlined_call_operand.vmem [shape: f32[2,1,256], index: 12, kind: input, shape index: {}]   ;;  %s19985_s13 = inlined_call_operand.vmem [shape: bf16[2,256,640], index: 13, kind: input, shape index: {}]   ;;  %s19986_s14 = inlined_call_operand.vmem [shape: f32[2,1,640], index: 14, kind: input, shape index: {}]   ;;  %s19987_s15 = inlined_call_operand.vmem [shape: f32[2,1,640], index: 15, kind: input, shape index: {}]   ;;  %s19988_s16 = inlined_call_operand.vmem [shape: f32[2,1,640], index: 16, kind: input, shape index: {}]   ;;  %s19989_s17 = inlined_call_operand.hbm [shape: f32[2,640], index: 17, kind: output, shape index: {}]  }
   0x1   :  { %19996 = sst [smem:[#allocation12_spill]] %s19972_s0 }
   0x2   :  { %19997 = sst [smem:[#allocation13_spill]] %s19973_s1 }
   0x3   :  { %19998 = sst [smem:[#allocation14_spill]] %s19974_s2 }
   0x4   :  { %19999 = sst [smem:[#allocation15_spill]] %s19975_s3 }
   0x5   :  { %20000 = sst [smem:[#allocation16_spill]] %s19976_s4 }
   0x6   :  { %20001 = sst [smem:[#allocation17_spill]] %s19977_s5 }
   0x7   :  { %20002 = sst [smem:[#allocation18_spill]] %s19978_s6 }
   0x8   :  { %20003 = sst [smem:[#allocation19_spill]] %s19979_s7 }
   0x9   :  { %20004 = sst [smem:[#allocation20_spill]] %s19983_s11 }
   0xa   :  { %20005 = sst [smem:[#allocation21_spill]] %s19984_s12 }
   0xb   :  { %20006 = sst [smem:[#allocation22_spill]] %s19987_s15 }
   0xc   :  { %20007 = sst [smem:[#allocation23_spill]] %s19988_s16 }
   0xd   :  { %20008 = sst [smem:[#allocation24_spill]] %s19989_s17 }
   0xe   :  { %22 = vsyncpa [#allocation4], 0  ;;  %s17852_s24 = smov 0   ;;  %s17854_s25 = smov 0  }
   0xf   :  { %s17856_s26 = smov 0  }
  0x10 LB: > { %20009 = sst [smem:[#allocation6_spill]] %s17749_s24  ;;  %s37_s28 = sadd.s32 1, %s17753_s25  ;;  %s17757_s26 = sphi %s17856_s26, %s28_s26   ;;  %s17753_s25 = sphi %s17854_s25, %s20042_s25   ;;  %s17749_s24 = sphi %s17852_s24, %s20041_s24  }
  0x11   : > { %20010 = sst [smem:[#allocation7_spill]] %s17753_s25  ;;  %p38_p0 = scmp.ge.s32.totalorder %s37_s28, 2 }
  0x12   : > { %20011 = sst [smem:[#allocation8_spill]] %s17757_s26  ;;  %p13167_p1 = scmp.ge.s32.totalorder %s17757_s26, 1 }
  0x13   : > { %p652_p2 = scmp.lt.s32.totalorder %s17757_s26, 3  ;;  %s20044_s28 = smov (%p38_p0, %s37_s28), 0 }
  0x14   : > { %20012 = sst [smem:[#allocation9_spill]] %s20044_s28 }
  0x15   : > { %p653_p3 = pnand %p13167_p1, %p652_p2 }
  0x17   : > { %656 = sbr.rel (%p653_p3) target bundleno = 6751 (0x1a5f), region = 88 }
  0x1e   : > { %p777_p4 = scmp.lt.s32.totalorder %s17749_s24, 1  ;;  %s20013_s2 = sld [smem:[#allocation14_spill]] }
  0x1f   : > { %s20015_s4 = sld [smem:[#allocation16_spill]]  ;;  %s20016_s28 = sld [smem:[#allocation13_spill]] }
  0x20   : > { %s778_s29 = scalar_select %p777_p4, %s17749_s24, 1 }
  0x21   : > { %s20017_s3 = sld [smem:[#allocation15_spill]]  ;;  %s20018_s5 = sld [smem:[#allocation17_spill]] }
  0x22   : > { %s15659_s0 = smul.u32 2560, %s778_s29  ;;  %s13169_s30 = sshll.u32 %s778_s29, 3 }
  0x23   : > { %s20019_s6 = sld [smem:[#allocation18_spill]]  ;;  %s15660_s21 = smul.u32 1600, %s778_s29 }
  0x24   : > { %s17878_s1 = scalar_lea.vmem %s20013_s2, %s13169_s30  ;;  %s17905_s27 = smul.u32 5, %s778_s29 }
  0x25   : > { %20014 = sst [smem:[#allocation10_spill]] %s17878_s1  ;;  %s17883_s22 = scalar_lea.vmem %s20015_s4, %s13169_s30 }
  0x26   : > { %s17888_s25 = scalar_lea.vmem %s20016_s28, %s15659_s0  ;;  %s13176_s4 = sshll.u32 %s778_s29, 1 }
  0x27   : > { %s17893_s24 = scalar_lea.vmem %s20017_s3, %s15659_s0  ;;  %s17898_s18 = scalar_lea.vmem %s20018_s5, %s15659_s0 }
  0x28   : > { %s20020_s12 = sld [smem:[#allocation21_spill]]  ;;  %s20022_s7 = sld [smem:[#allocation19_spill]] }
  0x29   : > { %s17903_s20 = scalar_lea.vmem %s20019_s6, %s13169_s30  ;;  %s15662_s26 = smul.u32 640, %s778_s29 }
  0x2a   : > { %s20023_s11 = sld [smem:[#allocation20_spill]]  ;;  %s838_s30 = scalar_lea.vmem %s19986_s14, %s17905_s27 }
  0x2b   : > { %s17937_s29 = scalar_lea.vmem %s19985_s13, %s15662_s26  ;;  %s20024_s23 = sld [smem:[#allocation22_spill]] }
  0x2c   : > { %s20025_s1 = sld [smem:[#allocation23_spill]] }
  0x2e   : > { %s17910_s15 = scalar_lea.vmem %s20020_s12, %s13176_s4  ;;  %s17915_s2 = scalar_lea.vmem %s20022_s7, %s15660_s21 }
  0x2f   : > { %20021 = sst [smem:[#allocation11_spill]] %s17910_s15  ;;  %s20026_s12 = sld [smem:[#allocation6_spill]] }
  0x30   : > { %s17932_s15 = scalar_lea.vmem %s20023_s11, %s15662_s26 }
  0x31   : > { %s842_s19 = scalar_lea.vmem %s20024_s23, %s17905_s27 }
  0x32   : > { %s846_s7 = scalar_lea.vmem %s20025_s1, %s17905_s27 }
  0x35   : > { %p13178_p5 = scmp.ne.s32.totalorder %s20026_s12, 0 }
  0x36   : > { %s20027_s21 = sld [smem:[#allocation12_spill]] (!%p13178_p5) }
  0x37   : > { %851 = sbr.rel (%p13178_p5) target bundleno = 66 (0x42), region = 92 }
  0x3c   : > { %v852_v0 = vld [vmem:[%s20027_s21] sm:$0xff] (!%p13178_p5)  ;;  %v853_v1 = vld [vmem:[%s20027_s21 + $0x8] sm:$0xff] (!%p13178_p5)  ;;  %v854_v2 = vld [vmem:[%s20027_s21 + $0x10] sm:$0xff] (!%p13178_p5) }
  0x3d   : > { %862 = vst [vmem:[#allocation2] sm:$0xff] (!%p13178_p5), %v852_v0  ;;  %863 = vst [vmem:[#allocation2 + $0x8] sm:$0xff] (!%p13178_p5), %v853_v1  ;;  %v855_v3 = vld [vmem:[%s20027_s21 + $0x18] sm:$0xff] (!%p13178_p5)  ;;  %v856_v4 = vld [vmem:[%s20027_s21 + $0x20] sm:$0xff] (!%p13178_p5) }
  0x3e   : > { %864 = vst [vmem:[#allocation2 + $0x10] sm:$0xff] %v854_v2  ;;  %v857_v5 = vld [vmem:[%s20027_s21 + $0x28] sm:$0xff]  ;;  %865 = vst [vmem:[#allocation2 + $0x18] sm:$0xff] %v855_v3  ;;  %v858_v6 = vld [vmem:[%s20027_s21 + $0x30] sm:$0xff] }
  0x3f   : > { %866 = vst [vmem:[#allocation2 + $0x20] sm:$0xff] %v856_v4  ;;  %867 = vst [vmem:[#allocation2 + $0x28] sm:$0xff] %v857_v5  ;;  %v859_v7 = vld [vmem:[%s20027_s21 + $0x38] sm:$0xff]  ;;  %v860_v8 = vld [vmem:[%s20027_s21 + $0x40] sm:$0xff] }
  0x40   : > { %868 = vst [vmem:[#allocation2 + $0x30] sm:$0xff] %v858_v6  ;;  %869 = vst [vmem:[#allocation2 + $0x38] sm:$0xff] %v859_v7  ;;  %v861_v9 = vld [vmem:[%s20027_s21 + $0x48] sm:$0xff] }
  0x41   : > { %870 = vst [vmem:[#allocation2 + $0x40] sm:$0xff] %v860_v8  ;;  %871 = vst [vmem:[#allocation2 + $0x48] sm:$0xff] %v861_v9 }
  0x42 PF: > { %v15696_v10 = vld [vmem:[%s17893_s24 + $0x4] ss:$8 sps:$4 sm:$0xff]   ;;  %v15700_v12 = vld [vmem:[%s17893_s24] ss:$8 sps:$4 sm:$0xff]   ;;  %v15702_v14 = vld [vmem:[%s17893_s24 + $0x14] ss:$8 sps:$4 sm:$0xff]   ;;  %s20030_s1 = scalar_lea.vmem %s19981_s9, %s17905_s27  ;;  %s20031_s11 = scalar_lea.vmem %s19982_s10, %s17905_s27 }
  0x43   : > { %v15698_v11 = vld [vmem:[%s17898_s18 + $0x4] ss:$8 sps:$4 sm:$0xff]   ;;  %1379 = vmatprep.subr.bf16.mxu0 %v15696_v10  ;;  %v15701_v13 = vld [vmem:[%s17898_s18] ss:$8 sps:$4 sm:$0xff]   ;;  %v15704_v15 = vld [vmem:[%s17898_s18 + $0x14] ss:$8 sps:$4 sm:$0xff]  }
  0x44   : > { %2000 = vmatprep.subr.bf16.mxu1 %v15698_v11  ;;  %1380 = vmatpush1.bf16.msra.mxu0 %v15700_v12  ;;  %v15706_v16 = vld [vmem:[%s17893_s24 + $0x10] ss:$8 sps:$4 sm:$0xff]   ;;  %v15708_v18 = vld [vmem:[%s17893_s24 + $0x24] ss:$8 sps:$4 sm:$0xff]   ;;  %v15712_v20 = vld [vmem:[%s17893_s24 + $0x20] ss:$8 sps:$4 sm:$0xff]  }
  0x45   : > { %2001 = vmatpush1.bf16.msra.mxu1 %v15701_v13  ;;  %1381 = vmatprep.subr.bf16.mxu0 %v15702_v14  ;;  %v15707_v17 = vld [vmem:[%s17898_s18 + $0x10] ss:$8 sps:$4 sm:$0xff]   ;;  %v15710_v19 = vld [vmem:[%s17898_s18 + $0x24] ss:$8 sps:$4 sm:$0xff]   ;;  %v15713_v21 = vld [vmem:[%s17898_s18 + $0x20] ss:$8 sps:$4 sm:$0xff]  }
  0x46   : > { %2002 = vmatprep.subr.bf16.mxu1 %v15704_v15  ;;  %v15714_v22 = vld [vmem:[%s17893_s24 + $0x34] ss:$8 sps:$4 sm:$0xff]   ;;  %v15718_v24 = vld [vmem:[%s17893_s24 + $0x30] ss:$8 sps:$4 sm:$0xff]   ;;  %v15720_v26 = vld [vmem:[%s17893_s24 + $0x44] ss:$8 sps:$4 sm:$0xff]  }
  0x47   : > { %v15716_v23 = vld [vmem:[%s17898_s18 + $0x34] ss:$8 sps:$4 sm:$0xff]   ;;  %v15719_v25 = vld [vmem:[%s17898_s18 + $0x30] ss:$8 sps:$4 sm:$0xff]   ;;  %v15722_v27 = vld [vmem:[%s17898_s18 + $0x44] ss:$8 sps:$4 sm:$0xff]  }
  0x48   : > { %1382 = vmatpush1.bf16.msra.mxu0 %v15706_v16  ;;  %v15724_v28 = vld [vmem:[%s17893_s24 + $0x40] ss:$8 sps:$4 sm:$0xff]   ;;  %v15726_v30 = vld [vmem:[%s17893_s24 + $0x54] ss:$8 sps:$4 sm:$0xff]   ;;  %v15730_v32 = vld [vmem:[%s17893_s24 + $0x50] ss:$8 sps:$4 sm:$0xff]  }
  0x49   : > { %2003 = vmatpush1.bf16.msra.mxu1 %v15707_v17  ;;  %1383 = vmatprep.subr.bf16.mxu0 %v15708_v18  ;;  %v15725_v29 = vld [vmem:[%s17898_s18 + $0x40] ss:$8 sps:$4 sm:$0xff]   ;;  %v15728_v31 = vld [vmem:[%s17898_s18 + $0x54] ss:$8 sps:$4 sm:$0xff]   ;;  %v15731_v33 = vld [vmem:[%s17898_s18 + $0x50] ss:$8 sps:$4 sm:$0xff]  }
  0x4a   : > { %2004 = vmatprep.subr.bf16.mxu1 %v15710_v19  ;;  %v15732_v34 = vld [vmem:[%s17893_s24 + $0x64] ss:$8 sps:$4 sm:$0xff]   ;;  %v15736_v36 = vld [vmem:[%s17893_s24 + $0x60] ss:$8 sps:$4 sm:$0xff]   ;;  %v15738_v38 = vld [vmem:[%s17893_s24 + $0x74] ss:$8 sps:$4 sm:$0xff]  }
  0x4b   : > { %v15734_v35 = vld [vmem:[%s17898_s18 + $0x64] ss:$8 sps:$4 sm:$0xff]   ;;  %v15737_v37 = vld [vmem:[%s17898_s18 + $0x60] ss:$8 sps:$4 sm:$0xff]   ;;  %v15740_v39 = vld [vmem:[%s17898_s18 + $0x74] ss:$8 sps:$4 sm:$0xff]  }
  0x4c   : > { %1384 = vmatpush1.bf16.msra.mxu0 %v15712_v20  ;;  %v15742_v40 = vld [vmem:[%s17893_s24 + $0x70] ss:$8 sps:$4 sm:$0xff]   ;;  %v15744_v42 = vld [vmem:[%s17893_s24 + $0x84] ss:$8 sps:$4 sm:$0xff]   ;;  %v15748_v44 = vld [vmem:[%s17893_s24 + $0x80] ss:$8 sps:$4 sm:$0xff]  }
  0x4d   : > { %2005 = vmatpush1.bf16.msra.mxu1 %v15713_v21  ;;  %1385 = vmatprep.subr.bf16.mxu0 %v15714_v22  ;;  %v15743_v41 = vld [vmem:[%s17898_s18 + $0x70] ss:$8 sps:$4 sm:$0xff]   ;;  %v15746_v43 = vld [vmem:[%s17898_s18 + $0x84] ss:$8 sps:$4 sm:$0xff]   ;;  %v15749_v45 = vld [vmem:[%s17898_s18 + $0x80] ss:$8 sps:$4 sm:$0xff]  }
  0x4e   : > { %2006 = vmatprep.subr.bf16.mxu1 %v15716_v23  ;;  %v15750_v46 = vld [vmem:[%s17893_s24 + $0x94] ss:$8 sps:$4 sm:$0xff]   ;;  %v15754_v48 = vld [vmem:[%s17893_s24 + $0x90] ss:$8 sps:$4 sm:$0xff]   ;;  %v15756_v50 = vld [vmem:[%s17893_s24 + $0xa4] ss:$8 sps:$4 sm:$0xff]  }
  0x4f   : > { %v15752_v47 = vld [vmem:[%s17898_s18 + $0x94] ss:$8 sps:$4 sm:$0xff]   ;;  %v15755_v49 = vld [vmem:[%s17898_s18 + $0x90] ss:$8 sps:$4 sm:$0xff]   ;;  %v15758_v51 = vld [vmem:[%s17898_s18 + $0xa4] ss:$8 sps:$4 sm:$0xff]  }
  0x50   : > { %1386 = vmatpush1.bf16.msra.mxu0 %v15718_v24  ;;  %v15760_v52 = vld [vmem:[%s17893_s24 + $0xa0] ss:$8 sps:$4 sm:$0xff]   ;;  %v15762_v54 = vld [vmem:[%s17893_s24 + $0xb4] ss:$8 sps:$4 sm:$0xff]   ;;  %v15766_v58 = vld [vmem:[%s17893_s24 + $0xb0] ss:$8 sps:$4 sm:$0xff]  }
  0x51   : > { %2007 = vmatpush1.bf16.msra.mxu1 %v15719_v25  ;;  %1387 = vmatprep.subr.bf16.mxu0 %v15720_v26  ;;  %v15761_v53 = vld [vmem:[%s17898_s18 + $0xa0] ss:$8 sps:$4 sm:$0xff]   ;;  %v15764_v55 = vld [vmem:[%s17898_s18 + $0xb4] ss:$8 sps:$4 sm:$0xff]   ;;  %v15767_v59 = vld [vmem:[%s17898_s18 + $0xb0] ss:$8 sps:$4 sm:$0xff]  }
  0x52   : > { %2008 = vmatprep.subr.bf16.mxu1 %v15722_v27  ;;  %v873_v56 = vld [vmem:[#allocation2 + $0x8] sm:$0xff]  ;;  %v878_v57 = vld [vmem:[#allocation2 + $0x30] sm:$0xff]  ;;  %v872_v14 = vld [vmem:[#allocation2] sm:$0xff]  ;;  %vm6524_vm0 = vcmask 261120   ;;  %vm6645_vm1 = vcmask 1043456   ;;  %vm6617_vm2 = vcmask 64512  }
  0x53   : > { %v18030_v60 = vpack.c.bf16 %v878_v57, %v873_v56  ;;  %v15768_v61 = vld [vmem:[%s17893_s24 + $0xc4] ss:$8 sps:$4 sm:$0xff]   ;;  %v15772_v63 = vld [vmem:[%s17893_s24 + $0xc0] ss:$8 sps:$4 sm:$0xff]   ;;  %v15774_v1 = vld [vmem:[%s17893_s24 + $0xd4] ss:$8 sps:$4 sm:$0xff]  }
  0x54   : > { %1388 = vmatpush1.bf16.msra.mxu0 %v15724_v28  ;;  %v15770_v62 = vld [vmem:[%s17898_s18 + $0xc4] ss:$8 sps:$4 sm:$0xff]   ;;  %v15773_v0 = vld [vmem:[%s17898_s18 + $0xc0] ss:$8 sps:$4 sm:$0xff]   ;;  %v15776_v2 = vld [vmem:[%s17898_s18 + $0xd4] ss:$8 sps:$4 sm:$0xff]  }
  0x55   : > { %2009 = vmatpush1.bf16.msra.mxu1 %v15725_v29  ;;  %1389 = vmatprep.subr.bf16.mxu0 %v15726_v30  ;;  %v15778_v3 = vld [vmem:[%s17893_s24 + $0xd0] ss:$8 sps:$4 sm:$0xff]   ;;  %v15780_v5 = vld [vmem:[%s17893_s24 + $0xe4] ss:$8 sps:$4 sm:$0xff]   ;;  %v15784_v7 = vld [vmem:[%s17893_s24 + $0xe0] ss:$8 sps:$4 sm:$0xff]  }
  0x56   : > { %2010 = vmatprep.subr.bf16.mxu1 %v15728_v31  ;;  %1411 = vmatprep.mubr.bf16.mxu0 %v18030_v60  ;;  %v15779_v4 = vld [vmem:[%s17898_s18 + $0xd0] ss:$8 sps:$4 sm:$0xff]   ;;  %v15782_v6 = vld [vmem:[%s17898_s18 + $0xe4] ss:$8 sps:$4 sm:$0xff]   ;;  %v15785_v8 = vld [vmem:[%s17898_s18 + $0xe0] ss:$8 sps:$4 sm:$0xff]  }
  0x57   : > { %2032 = vmatprep.mubr.bf16.mxu1 %v18030_v60  ;;  %v15786_v9 = vld [vmem:[%s17893_s24 + $0xf4] ss:$8 sps:$4 sm:$0xff]   ;;  %v15790_v11 = vld [vmem:[%s17893_s24 + $0xf0] ss:$8 sps:$4 sm:$0xff]   ;;  %v15794_v13 = vld [vmem:[%s17893_s24 + $0x104] ss:$8 sps:$4 sm:$0xff]  }
  0x58   : > { %1390 = vmatpush1.bf16.msra.mxu0 %v15730_v32  ;;  %v15788_v10 = vld [vmem:[%s17898_s18 + $0xf4] ss:$8 sps:$4 sm:$0xff]   ;;  %v15791_v12 = vld [vmem:[%s17898_s18 + $0xf0] ss:$8 sps:$4 sm:$0xff]   ;;  %v877_v15 = vld [vmem:[#allocation2 + $0x28] sm:$0xff]  ;;  %s20032_s5 = sld [smem:[#allocation11_spill]] }
  0x59   : > { %2011 = vmatpush1.bf16.msra.mxu1 %v15731_v33  ;;  %1391 = vmatprep.subr.bf16.mxu0 %v15732_v34  ;;  %v15797_v16 = vld [vmem:[%s17898_s18 + $0x104] ss:$8 sps:$4 sm:$0xff]   ;;  %v15792_v17 = vld [vmem:[%s17893_s24 + $0x100] ss:$8 sps:$4 sm:$0xff]   ;;  %v18054_v19 = vpack.c.bf16 %v877_v15, %v872_v14  ;;  %v15800_v20 = vld [vmem:[%s17893_s24 + $0x114] ss:$8 sps:$4 sm:$0xff]  }
  0x5a   : > { %2012 = vmatprep.subr.bf16.mxu1 %v15734_v35  ;;  %v15795_v18 = vld [vmem:[%s17898_s18 + $0x100] ss:$8 sps:$4 sm:$0xff]   ;;  %v15803_v21 = vld [vmem:[%s17898_s18 + $0x114] ss:$8 sps:$4 sm:$0xff]   ;;  %v15798_v22 = vld [vmem:[%s17893_s24 + $0x110] ss:$8 sps:$4 sm:$0xff]  }
  0x5b   : > { %v15801_v23 = vld [vmem:[%s17898_s18 + $0x110] ss:$8 sps:$4 sm:$0xff]   ;;  %v15806_v24 = vld [vmem:[%s17893_s24 + $0x124] ss:$8 sps:$4 sm:$0xff]   ;;  %v15804_v26 = vld [vmem:[%s17893_s24 + $0x120] ss:$8 sps:$4 sm:$0xff]  }
  0x5c   : > { %1392 = vmatpush1.bf16.msra.mxu0 %v15736_v36  ;;  %v15809_v25 = vld [vmem:[%s17898_s18 + $0x124] ss:$8 sps:$4 sm:$0xff]   ;;  %v15807_v27 = vld [vmem:[%s17898_s18 + $0x120] ss:$8 sps:$4 sm:$0xff]   ;;  %v15812_v28 = vld [vmem:[%s17893_s24 + $0x134] ss:$8 sps:$4 sm:$0xff]  }
  0x5d   : > { %2013 = vmatpush1.bf16.msra.mxu1 %v15737_v37  ;;  %1393 = vmatprep.subr.bf16.mxu0 %v15738_v38  ;;  %v15815_v29 = vld [vmem:[%s17898_s18 + $0x134] ss:$8 sps:$4 sm:$0xff]   ;;  %v15810_v30 = vld [vmem:[%s17893_s24 + $0x130] ss:$8 sps:$4 sm:$0xff]   ;;  %v15818_v32 = vld [vmem:[%s17893_s24 + $0x144] ss:$8 sps:$4 sm:$0xff]  }
  0x5e   : > { %2014 = vmatprep.subr.bf16.mxu1 %v15740_v39  ;;  %v15813_v31 = vld [vmem:[%s17898_s18 + $0x130] ss:$8 sps:$4 sm:$0xff]   ;;  %v15821_v33 = vld [vmem:[%s17898_s18 + $0x144] ss:$8 sps:$4 sm:$0xff]   ;;  %v15816_v34 = vld [vmem:[%s17893_s24 + $0x140] ss:$8 sps:$4 sm:$0xff]  }
  0x5f   : > { %v15819_v35 = vld [vmem:[%s17898_s18 + $0x140] ss:$8 sps:$4 sm:$0xff]   ;;  %v15824_v36 = vld [vmem:[%s17893_s24 + $0x154] ss:$8 sps:$4 sm:$0xff]   ;;  %v15822_v38 = vld [vmem:[%s17893_s24 + $0x150] ss:$8 sps:$4 sm:$0xff]  }
  0x60   : > { %1394 = vmatpush1.bf16.msra.mxu0 %v15742_v40  ;;  %v15827_v37 = vld [vmem:[%s17898_s18 + $0x154] ss:$8 sps:$4 sm:$0xff]   ;;  %v15825_v39 = vld [vmem:[%s17898_s18 + $0x150] ss:$8 sps:$4 sm:$0xff]   ;;  %v15830_v40 = vld [vmem:[%s17893_s24 + $0x164] ss:$8 sps:$4 sm:$0xff]  }
  0x61   : > { %2015 = vmatpush1.bf16.msra.mxu1 %v15743_v41  ;;  %1395 = vmatprep.subr.bf16.mxu0 %v15744_v42  ;;  %v15833_v41 = vld [vmem:[%s17898_s18 + $0x164] ss:$8 sps:$4 sm:$0xff]   ;;  %v875_v42 = vld [vmem:[#allocation2 + $0x18] sm:$0xff]  ;;  %v15876_v14 = vld [vmem:[%s17893_s24 + $0x1e0] ss:$8 sps:$4 sm:$0xff]  }
  0x62   : > { %2016 = vmatprep.subr.bf16.mxu1 %v15746_v43  ;;  %v880_v43 = vld [vmem:[#allocation2 + $0x40] sm:$0xff]  ;;  %v15851_v56 = vld [vmem:[%s17898_s18 + $0x194] ss:$8 sps:$4 sm:$0xff]   ;;  %v15846_v57 = vld [vmem:[%s17893_s24 + $0x190] ss:$8 sps:$4 sm:$0xff]  }
  0x63   : > { %v15879_v15 = vld [vmem:[%s17898_s18 + $0x1e0] ss:$8 sps:$4 sm:$0xff]  }
  0x64   : > { %1396 = vmatpush1.bf16.msra.mxu0 %v15748_v44  ;;  %v15828_v44 = vld [vmem:[%s17893_s24 + $0x160] ss:$8 sps:$4 sm:$0xff]  }
  0x65   : > { %2017 = vmatpush1.bf16.msra.mxu1 %v15749_v45  ;;  %1397 = vmatprep.subr.bf16.mxu0 %v15750_v46  ;;  %v15831_v45 = vld [vmem:[%s17898_s18 + $0x160] ss:$8 sps:$4 sm:$0xff]   ;;  %v18082_v46 = vpack.c.bf16 %v880_v43, %v875_v42  ;;  %v15917_v42 = vld [vmem:[%s17898_s18 + $0x244] ss:$8 sps:$4 sm:$0xff]  }
  0x66   : > { %2018 = vmatprep.subr.bf16.mxu1 %v15752_v47  ;;  %v15836_v47 = vld [vmem:[%s17893_s24 + $0x174] ss:$8 sps:$4 sm:$0xff]   ;;  %v15912_v43 = vld [vmem:[%s17893_s24 + $0x240] ss:$8 sps:$4 sm:$0xff]  }
  0x68   : > { %1398 = vmatpush1.bf16.msra.mxu0 %v15754_v48  ;;  %v15839_v48 = vld [vmem:[%s17898_s18 + $0x174] ss:$8 sps:$4 sm:$0xff]  }
  0x69   : > { %2019 = vmatpush1.bf16.msra.mxu1 %v15755_v49  ;;  %1399 = vmatprep.subr.bf16.mxu0 %v15756_v50  ;;  %v15834_v49 = vld [vmem:[%s17893_s24 + $0x170] ss:$8 sps:$4 sm:$0xff]  }
  0x6a   : > { %2020 = vmatprep.subr.bf16.mxu1 %v15758_v51  ;;  %v15837_v50 = vld [vmem:[%s17898_s18 + $0x170] ss:$8 sps:$4 sm:$0xff]   ;;  %v15842_v51 = vld [vmem:[%s17893_s24 + $0x184] ss:$8 sps:$4 sm:$0xff]  }
  0x6c   : > { %1400 = vmatpush1.bf16.msra.mxu0 %v15760_v52  ;;  %v15845_v52 = vld [vmem:[%s17898_s18 + $0x184] ss:$8 sps:$4 sm:$0xff]  }
  0x6d   : > { %2021 = vmatpush1.bf16.msra.mxu1 %v15761_v53  ;;  %1401 = vmatprep.subr.bf16.mxu0 %v15762_v54  ;;  %v15840_v53 = vld [vmem:[%s17893_s24 + $0x180] ss:$8 sps:$4 sm:$0xff]  }
  0x6e   : > { %2022 = vmatprep.subr.bf16.mxu1 %v15764_v55  ;;  %v15843_v54 = vld [vmem:[%s17898_s18 + $0x180] ss:$8 sps:$4 sm:$0xff]   ;;  %v15848_v55 = vld [vmem:[%s17893_s24 + $0x194] ss:$8 sps:$4 sm:$0xff]  }
  0x70   : > { %1402 = vmatpush1.bf16.msra.mxu0 %v15766_v58  ;;  %v15849_v58 = vld [vmem:[%s17898_s18 + $0x190] ss:$8 sps:$4 sm:$0xff]  }
  0x71   : > { %2023 = vmatpush1.bf16.msra.mxu1 %v15767_v59  ;;  %1403 = vmatprep.subr.bf16.mxu0 %v15768_v61  ;;  %v15854_v59 = vld [vmem:[%s17893_s24 + $0x1a4] ss:$8 sps:$4 sm:$0xff]  }
  0x72   : > { %2024 = vmatprep.subr.bf16.mxu1 %v15770_v62  ;;  %v15857_v61 = vld [vmem:[%s17898_s18 + $0x1a4] ss:$8 sps:$4 sm:$0xff]   ;;  %v15852_v62 = vld [vmem:[%s17893_s24 + $0x1a0] ss:$8 sps:$4 sm:$0xff]  }
  0x74   : > { %1404 = vmatpush1.bf16.msra.mxu0 %v15772_v63  ;;  %v15855_v63 = vld [vmem:[%s17898_s18 + $0x1a0] ss:$8 sps:$4 sm:$0xff]  }
  0x75   : > { %2025 = vmatpush1.bf16.msra.mxu1 %v15773_v0  ;;  %1405 = vmatprep.subr.bf16.mxu0 %v15774_v1  ;;  %v15860_v0 = vld [vmem:[%s17893_s24 + $0x1b4] ss:$8 sps:$4 sm:$0xff]  }
  0x76   : > { %2026 = vmatprep.subr.bf16.mxu1 %v15776_v2  ;;  %v15863_v1 = vld [vmem:[%s17898_s18 + $0x1b4] ss:$8 sps:$4 sm:$0xff]   ;;  %v15858_v2 = vld [vmem:[%s17893_s24 + $0x1b0] ss:$8 sps:$4 sm:$0xff]  }
  0x78   : > { %1406 = vmatpush1.bf16.msra.mxu0 %v15778_v3  ;;  %v15861_v3 = vld [vmem:[%s17898_s18 + $0x1b0] ss:$8 sps:$4 sm:$0xff]  }
  0x79   : > { %2027 = vmatpush1.bf16.msra.mxu1 %v15779_v4  ;;  %1407 = vmatprep.subr.bf16.mxu0 %v15780_v5  ;;  %v15866_v4 = vld [vmem:[%s17893_s24 + $0x1c4] ss:$8 sps:$4 sm:$0xff]  }
  0x7a   : > { %2028 = vmatprep.subr.bf16.mxu1 %v15782_v6  ;;  %v15869_v5 = vld [vmem:[%s17898_s18 + $0x1c4] ss:$8 sps:$4 sm:$0xff]   ;;  %v15864_v6 = vld [vmem:[%s17893_s24 + $0x1c0] ss:$8 sps:$4 sm:$0xff]  }
  0x7c   : > { %1408 = vmatpush1.bf16.msra.mxu0 %v15784_v7  ;;  %v15867_v7 = vld [vmem:[%s17898_s18 + $0x1c0] ss:$8 sps:$4 sm:$0xff]  }
  0x7d   : > { %2029 = vmatpush1.bf16.msra.mxu1 %v15785_v8  ;;  %1409 = vmatprep.subr.bf16.mxu0 %v15786_v9  ;;  %v15872_v8 = vld [vmem:[%s17893_s24 + $0x1d4] ss:$8 sps:$4 sm:$0xff]  }
  0x7e   : > { %2030 = vmatprep.subr.bf16.mxu1 %v15788_v10  ;;  %v15875_v9 = vld [vmem:[%s17898_s18 + $0x1d4] ss:$8 sps:$4 sm:$0xff]   ;;  %v15870_v10 = vld [vmem:[%s17893_s24 + $0x1d0] ss:$8 sps:$4 sm:$0xff]  }
  0x80   : > { %1410 = vmatpush1.bf16.msra.mxu0 %v15790_v11  ;;  %v15873_v11 = vld [vmem:[%s17898_s18 + $0x1d0] ss:$8 sps:$4 sm:$0xff]  }
  0x81   : > { %2031 = vmatpush1.bf16.msra.mxu1 %v15791_v12  ;;  %1422 = vmatprep.subr.bf16.mxu0 %v15794_v13  ;;  %v15878_v12 = vld [vmem:[%s17893_s24 + $0x1e4] ss:$8 sps:$4 sm:$0xff]  }
  0x82   : > { %2043 = vmatprep.subr.bf16.mxu1 %v15797_v16  ;;  %v15881_v13 = vld [vmem:[%s17898_s18 + $0x1e4] ss:$8 sps:$4 sm:$0xff]   ;;  %v15884_v16 = vld [vmem:[%s17893_s24 + $0x1f4] ss:$8 sps:$4 sm:$0xff]  }
  0x83   : > { %1412 = vmatmul.mubr.bf16.vlgmr.msra.gmra.mrb[0].mxu0 %v18054_v19 }
  0x84   : > { %2033 = vmatmul.mubr.bf16.vlgmr.msra.gmra.mrb[0].mxu1 %v18054_v19  ;;  %1423 = vmatpush1.bf16.msra.mxu0 %v15792_v17  ;;  %v15887_v17 = vld [vmem:[%s17898_s18 + $0x1f4] ss:$8 sps:$4 sm:$0xff]  }
  0x85   : > { %2044 = vmatpush1.bf16.msra.mxu1 %v15795_v18  ;;  %1424 = vmatprep.subr.bf16.mxu0 %v15800_v20  ;;  %v15882_v18 = vld [vmem:[%s17893_s24 + $0x1f0] ss:$8 sps:$4 sm:$0xff]  }
  0x86   : > { %2045 = vmatprep.subr.bf16.mxu1 %v15803_v21  ;;  %1454 = vmatprep.mubr.bf16.mxu0 %v18082_v46  ;;  %v15885_v20 = vld [vmem:[%s17898_s18 + $0x1f0] ss:$8 sps:$4 sm:$0xff]  }
  0x87   : > { %2075 = vmatprep.mubr.bf16.mxu1 %v18082_v46  ;;  %v874_v21 = vld [vmem:[#allocation2 + $0x10] sm:$0xff] }
  0x88   : > { %1425 = vmatpush1.bf16.msra.mxu0 %v15798_v22  ;;  %v879_v22 = vld [vmem:[#allocation2 + $0x38] sm:$0xff] }
  0x89   : > { %2046 = vmatpush1.bf16.msra.mxu1 %v15801_v23  ;;  %1426 = vmatprep.subr.bf16.mxu0 %v15806_v24  ;;  %v15890_v23 = vld [vmem:[%s17893_s24 + $0x204] ss:$8 sps:$4 sm:$0xff]  }
  0x8a   : > { %2047 = vmatprep.subr.bf16.mxu1 %v15809_v25  ;;  %v15893_v24 = vld [vmem:[%s17898_s18 + $0x204] ss:$8 sps:$4 sm:$0xff]   ;;  %v18124_v25 = vpack.c.bf16 %v879_v22, %v874_v21  ;;  %v15966_v21 = vld [vmem:[%s17893_s24 + $0x2d0] ss:$8 sps:$4 sm:$0xff]  }
  0x8b   : > { %v15969_v22 = vld [vmem:[%s17898_s18 + $0x2d0] ss:$8 sps:$4 sm:$0xff]  }
  0x8c   : > { %1427 = vmatpush1.bf16.msra.mxu0 %v15804_v26  ;;  %v15888_v26 = vld [vmem:[%s17893_s24 + $0x200] ss:$8 sps:$4 sm:$0xff]  }
  0x8d   : > { %2048 = vmatpush1.bf16.msra.mxu1 %v15807_v27  ;;  %1428 = vmatprep.subr.bf16.mxu0 %v15812_v28  ;;  %v15891_v27 = vld [vmem:[%s17898_s18 + $0x200] ss:$8 sps:$4 sm:$0xff]   ;;  %v15896_v28 = vld [vmem:[%s17893_s24 + $0x214] ss:$8 sps:$4 sm:$0xff]  }
  0x8e   : > { %2049 = vmatprep.subr.bf16.mxu1 %v15815_v29  ;;  %v15899_v29 = vld [vmem:[%s17898_s18 + $0x214] ss:$8 sps:$4 sm:$0xff]  }
  0x90   : > { %1429 = vmatpush1.bf16.msra.mxu0 %v15810_v30  ;;  %v15894_v30 = vld [vmem:[%s17893_s24 + $0x210] ss:$8 sps:$4 sm:$0xff]  }
  0x91   : > { %2050 = vmatpush1.bf16.msra.mxu1 %v15813_v31  ;;  %1430 = vmatprep.subr.bf16.mxu0 %v15818_v32  ;;  %v15897_v31 = vld [vmem:[%s17898_s18 + $0x210] ss:$8 sps:$4 sm:$0xff]   ;;  %v15902_v32 = vld [vmem:[%s17893_s24 + $0x224] ss:$8 sps:$4 sm:$0xff]  }
  0x92   : > { %2051 = vmatprep.subr.bf16.mxu1 %v15821_v33  ;;  %v15905_v33 = vld [vmem:[%s17898_s18 + $0x224] ss:$8 sps:$4 sm:$0xff]  }
  0x94   : > { %1431 = vmatpush1.bf16.msra.mxu0 %v15816_v34  ;;  %v17759_v34 = vmov 0  }
  0x95   : > { %2052 = vmatpush1.bf16.msra.mxu1 %v15819_v35  ;;  %1432 = vmatprep.subr.bf16.mxu0 %v15824_v36  ;;  %v15900_v35 = vld [vmem:[%s17893_s24 + $0x220] ss:$8 sps:$4 sm:$0xff]  }
  0x96   : > { %2053 = vmatprep.subr.bf16.mxu1 %v15827_v37  ;;  %v15903_v36 = vld [vmem:[%s17898_s18 + $0x220] ss:$8 sps:$4 sm:$0xff]   ;;  %v15908_v37 = vld [vmem:[%s17893_s24 + $0x234] ss:$8 sps:$4 sm:$0xff]  }
  0x98   : > { %1433 = vmatpush1.bf16.msra.mxu0 %v15822_v38  ;;  %v15911_v38 = vld [vmem:[%s17898_s18 + $0x234] ss:$8 sps:$4 sm:$0xff]  }
  0x99   : > { %2054 = vmatpush1.bf16.msra.mxu1 %v15825_v39  ;;  %1434 = vmatprep.subr.bf16.mxu0 %v15830_v40  ;;  %v15906_v39 = vld [vmem:[%s17893_s24 + $0x230] ss:$8 sps:$4 sm:$0xff]  }
  0x9a   : > { %2055 = vmatprep.subr.bf16.mxu1 %v15833_v41  ;;  %v15909_v40 = vld [vmem:[%s17898_s18 + $0x230] ss:$8 sps:$4 sm:$0xff]   ;;  %v15914_v41 = vld [vmem:[%s17893_s24 + $0x244] ss:$8 sps:$4 sm:$0xff]  }
  0x9c   : > { %1435 = vmatpush1.bf16.msra.mxu0 %v15828_v44  ;;  %v15915_v44 = vld [vmem:[%s17898_s18 + $0x240] ss:$8 sps:$4 sm:$0xff]  }
  0x9d   : > { %2056 = vmatpush1.bf16.msra.mxu1 %v15831_v45  ;;  %1436 = vmatprep.subr.bf16.mxu0 %v15836_v47  ;;  %v15920_v45 = vld [vmem:[%s17893_s24 + $0x254] ss:$8 sps:$4 sm:$0xff]  }
  0x9e   : > { %2057 = vmatprep.subr.bf16.mxu1 %v15839_v48  ;;  %v15923_v47 = vld [vmem:[%s17898_s18 + $0x254] ss:$8 sps:$4 sm:$0xff]   ;;  %v15918_v48 = vld [vmem:[%s17893_s24 + $0x250] ss:$8 sps:$4 sm:$0xff]  }
  0xa0   : > { %1437 = vmatpush1.bf16.msra.mxu0 %v15834_v49  ;;  %v15921_v49 = vld [vmem:[%s17898_s18 + $0x250] ss:$8 sps:$4 sm:$0xff]  }
  0xa1   : > { %2058 = vmatpush1.bf16.msra.mxu1 %v15837_v50  ;;  %1438 = vmatprep.subr.bf16.mxu0 %v15842_v51  ;;  %v15926_v50 = vld [vmem:[%s17893_s24 + $0x264] ss:$8 sps:$4 sm:$0xff]  }
  0xa2   : > { %2059 = vmatprep.subr.bf16.mxu1 %v15845_v52  ;;  %v15929_v51 = vld [vmem:[%s17898_s18 + $0x264] ss:$8 sps:$4 sm:$0xff]   ;;  %v15924_v52 = vld [vmem:[%s17893_s24 + $0x260] ss:$8 sps:$4 sm:$0xff]  }
  0xa4   : > { %1439 = vmatpush1.bf16.msra.mxu0 %v15840_v53  ;;  %v15927_v53 = vld [vmem:[%s17898_s18 + $0x260] ss:$8 sps:$4 sm:$0xff]  }
  0xa5   : > { %2060 = vmatpush1.bf16.msra.mxu1 %v15843_v54  ;;  %1440 = vmatprep.subr.bf16.mxu0 %v15848_v55  ;;  %v15932_v54 = vld [vmem:[%s17893_s24 + $0x274] ss:$8 sps:$4 sm:$0xff]  }
  0xa6   : > { %2061 = vmatprep.subr.bf16.mxu1 %v15851_v56  ;;  %v15935_v55 = vld [vmem:[%s17898_s18 + $0x274] ss:$8 sps:$4 sm:$0xff]   ;;  %v15930_v56 = vld [vmem:[%s17893_s24 + $0x270] ss:$8 sps:$4 sm:$0xff]  }
  0xa8   : > { %1441 = vmatpush1.bf16.msra.mxu0 %v15846_v57  ;;  %v15933_v57 = vld [vmem:[%s17898_s18 + $0x270] ss:$8 sps:$4 sm:$0xff]  }
  0xa9   : > { %2062 = vmatpush1.bf16.msra.mxu1 %v15849_v58  ;;  %1442 = vmatprep.subr.bf16.mxu0 %v15854_v59  ;;  %v876_v58 = vld [vmem:[#allocation2 + $0x20] sm:$0xff]  ;;  %v881_v59 = vld [vmem:[#allocation2 + $0x48] sm:$0xff] }
  0xaa   : > { %2063 = vmatprep.subr.bf16.mxu1 %v15857_v61  ;;  %v15938_v61 = vld [vmem:[%s17893_s24 + $0x284] ss:$8 sps:$4 sm:$0xff]  }
  0xac   : > { %1443 = vmatpush1.bf16.msra.mxu0 %v15852_v62  ;;  %v15941_v62 = vld [vmem:[%s17898_s18 + $0x284] ss:$8 sps:$4 sm:$0xff]  }
  0xad   : > { %2064 = vmatpush1.bf16.msra.mxu1 %v15855_v63  ;;  %1444 = vmatprep.subr.bf16.mxu0 %v15860_v0  ;;  %v18162_v63 = vpack.c.bf16 %v881_v59, %v876_v58  ;;  %v15936_v0 = vld [vmem:[%s17893_s24 + $0x280] ss:$8 sps:$4 sm:$0xff]   ;;  %v16022_v58 = vld [vmem:[%s17893_s24 + $0x364] ss:$8 sps:$4 sm:$0xff]  }
  0xae   : > { %2065 = vmatprep.subr.bf16.mxu1 %v15863_v1  ;;  %v15939_v1 = vld [vmem:[%s17898_s18 + $0x280] ss:$8 sps:$4 sm:$0xff]   ;;  %v16025_v59 = vld [vmem:[%s17898_s18 + $0x364] ss:$8 sps:$4 sm:$0xff]  }
  0xb0   : > { %1445 = vmatpush1.bf16.msra.mxu0 %v15858_v2  ;;  %v15944_v2 = vld [vmem:[%s17893_s24 + $0x294] ss:$8 sps:$4 sm:$0xff]  }
  0xb1   : > { %2066 = vmatpush1.bf16.msra.mxu1 %v15861_v3  ;;  %1446 = vmatprep.subr.bf16.mxu0 %v15866_v4  ;;  %v15947_v3 = vld [vmem:[%s17898_s18 + $0x294] ss:$8 sps:$4 sm:$0xff]   ;;  %v15942_v4 = vld [vmem:[%s17893_s24 + $0x290] ss:$8 sps:$4 sm:$0xff]  }
  0xb2   : > { %2067 = vmatprep.subr.bf16.mxu1 %v15869_v5  ;;  %v15945_v5 = vld [vmem:[%s17898_s18 + $0x290] ss:$8 sps:$4 sm:$0xff]  }
  0xb4   : > { %1447 = vmatpush1.bf16.msra.mxu0 %v15864_v6  ;;  %v15950_v6 = vld [vmem:[%s17893_s24 + $0x2a4] ss:$8 sps:$4 sm:$0xff]  }
  0xb5   : > { %2068 = vmatpush1.bf16.msra.mxu1 %v15867_v7  ;;  %1448 = vmatprep.subr.bf16.mxu0 %v15872_v8  ;;  %v15953_v7 = vld [vmem:[%s17898_s18 + $0x2a4] ss:$8 sps:$4 sm:$0xff]   ;;  %v15948_v8 = vld [vmem:[%s17893_s24 + $0x2a0] ss:$8 sps:$4 sm:$0xff]  }
  0xb6   : > { %2069 = vmatprep.subr.bf16.mxu1 %v15875_v9  ;;  %v15951_v9 = vld [vmem:[%s17898_s18 + $0x2a0] ss:$8 sps:$4 sm:$0xff]  }
  0xb8   : > { %1449 = vmatpush1.bf16.msra.mxu0 %v15870_v10  ;;  %v15956_v10 = vld [vmem:[%s17893_s24 + $0x2b4] ss:$8 sps:$4 sm:$0xff]  }
  0xb9   : > { %2070 = vmatpush1.bf16.msra.mxu1 %v15873_v11  ;;  %1450 = vmatprep.subr.bf16.mxu0 %v15878_v12  ;;  %v15959_v11 = vld [vmem:[%s17898_s18 + $0x2b4] ss:$8 sps:$4 sm:$0xff]   ;;  %v15954_v12 = vld [vmem:[%s17893_s24 + $0x2b0] ss:$8 sps:$4 sm:$0xff]  }
  0xba   : > { %2071 = vmatprep.subr.bf16.mxu1 %v15881_v13  ;;  %v15957_v13 = vld [vmem:[%s17898_s18 + $0x2b0] ss:$8 sps:$4 sm:$0xff]  }
  0xbc   : > { %1451 = vmatpush1.bf16.msra.mxu0 %v15876_v14  ;;  %v15962_v14 = vld [vmem:[%s17893_s24 + $0x2c4] ss:$8 sps:$4 sm:$0xff]  }
  0xbd   : > { %2072 = vmatpush1.bf16.msra.mxu1 %v15879_v15  ;;  %1452 = vmatprep.subr.bf16.mxu0 %v15884_v16  ;;  %v15965_v15 = vld [vmem:[%s17898_s18 + $0x2c4] ss:$8 sps:$4 sm:$0xff]   ;;  %v15960_v16 = vld [vmem:[%s17893_s24 + $0x2c0] ss:$8 sps:$4 sm:$0xff]  }
  0xbe   : > { %2073 = vmatprep.subr.bf16.mxu1 %v15887_v17  ;;  %v15963_v17 = vld [vmem:[%s17898_s18 + $0x2c0] ss:$8 sps:$4 sm:$0xff]  }
  0xc0   : > { %1453 = vmatpush1.bf16.msra.mxu0 %v15882_v18  ;;  %v15968_v18 = vld [vmem:[%s17893_s24 + $0x2d4] ss:$8 sps:$4 sm:$0xff]  }
  0xc1   : > { %2074 = vmatpush1.bf16.msra.mxu1 %v15885_v20  ;;  %1465 = vmatprep.subr.bf16.mxu0 %v15890_v23  ;;  %v15971_v20 = vld [vmem:[%s17898_s18 + $0x2d4] ss:$8 sps:$4 sm:$0xff]   ;;  %v15974_v23 = vld [vmem:[%s17893_s24 + $0x2e4] ss:$8 sps:$4 sm:$0xff]  }
  0xc2   : > { %2086 = vmatprep.subr.bf16.mxu1 %v15893_v24  ;;  %v15977_v24 = vld [vmem:[%s17898_s18 + $0x2e4] ss:$8 sps:$4 sm:$0xff]  }
  0xc3   : > { %1455 = vmatmul.mubr.bf16.vlgmr.msra.gmra.mrb[0].mxu0 %v18124_v25 }
  0xc4   : > { %2076 = vmatmul.mubr.bf16.vlgmr.msra.gmra.mrb[0].mxu1 %v18124_v25  ;;  %1466 = vmatpush1.bf16.msra.mxu0 %v15888_v26  ;;  %v15972_v26 = vld [vmem:[%s17893_s24 + $0x2e0] ss:$8 sps:$4 sm:$0xff]  }
  0xc5   : > { %2087 = vmatpush1.bf16.msra.mxu1 %v15891_v27  ;;  %1467 = vmatprep.subr.bf16.mxu0 %v15896_v28  ;;  %v15975_v27 = vld [vmem:[%s17898_s18 + $0x2e0] ss:$8 sps:$4 sm:$0xff]   ;;  %v15980_v28 = vld [vmem:[%s17893_s24 + $0x2f4] ss:$8 sps:$4 sm:$0xff]  }
  0xc6   : > { %2088 = vmatprep.subr.bf16.mxu1 %v15899_v29  ;;  %1497 = vmatprep.mubr.bf16.mxu0 %v17759_v34  ;;  %v15983_v29 = vld [vmem:[%s17898_s18 + $0x2f4] ss:$8 sps:$4 sm:$0xff]  }
  0xc7   : > { %2118 = vmatprep.mubr.bf16.mxu1 %v17759_v34 }
  0xc8   : > { %1468 = vmatpush1.bf16.msra.mxu0 %v15894_v30  ;;  %v15978_v30 = vld [vmem:[%s17893_s24 + $0x2f0] ss:$8 sps:$4 sm:$0xff]  }
  0xc9   : > { %2089 = vmatpush1.bf16.msra.mxu1 %v15897_v31  ;;  %1469 = vmatprep.subr.bf16.mxu0 %v15902_v32  ;;  %v15981_v31 = vld [vmem:[%s17898_s18 + $0x2f0] ss:$8 sps:$4 sm:$0xff]   ;;  %v15986_v32 = vld [vmem:[%s17893_s24 + $0x304] ss:$8 sps:$4 sm:$0xff]  }
  0xca   : > { %2090 = vmatprep.subr.bf16.mxu1 %v15905_v33  ;;  %v15989_v33 = vld [vmem:[%s17898_s18 + $0x304] ss:$8 sps:$4 sm:$0xff]  }
  0xcc   : > { %1470 = vmatpush1.bf16.msra.mxu0 %v15900_v35  ;;  %v15984_v35 = vld [vmem:[%s17893_s24 + $0x300] ss:$8 sps:$4 sm:$0xff]  }
  0xcd   : > { %2091 = vmatpush1.bf16.msra.mxu1 %v15903_v36  ;;  %1471 = vmatprep.subr.bf16.mxu0 %v15908_v37  ;;  %v15987_v36 = vld [vmem:[%s17898_s18 + $0x300] ss:$8 sps:$4 sm:$0xff]   ;;  %v15992_v37 = vld [vmem:[%s17893_s24 + $0x314] ss:$8 sps:$4 sm:$0xff]  }
  0xce   : > { %2092 = vmatprep.subr.bf16.mxu1 %v15911_v38  ;;  %v15995_v38 = vld [vmem:[%s17898_s18 + $0x314] ss:$8 sps:$4 sm:$0xff]  }
  0xd0   : > { %1472 = vmatpush1.bf16.msra.mxu0 %v15906_v39  ;;  %v15990_v39 = vld [vmem:[%s17893_s24 + $0x310] ss:$8 sps:$4 sm:$0xff]  }
  0xd1   : > { %2093 = vmatpush1.bf16.msra.mxu1 %v15909_v40  ;;  %1473 = vmatprep.subr.bf16.mxu0 %v15914_v41  ;;  %v15993_v40 = vld [vmem:[%s17898_s18 + $0x310] ss:$8 sps:$4 sm:$0xff]   ;;  %v15998_v41 = vld [vmem:[%s17893_s24 + $0x324] ss:$8 sps:$4 sm:$0xff]  }
  0xd2   : > { %2094 = vmatprep.subr.bf16.mxu1 %v15917_v42  ;;  %v16001_v42 = vld [vmem:[%s17898_s18 + $0x324] ss:$8 sps:$4 sm:$0xff]  }
  0xd4   : > { %1474 = vmatpush1.bf16.msra.mxu0 %v15912_v43  ;;  %v15996_v43 = vld [vmem:[%s17893_s24 + $0x320] ss:$8 sps:$4 sm:$0xff]  }
  0xd5   : > { %2095 = vmatpush1.bf16.msra.mxu1 %v15915_v44  ;;  %1475 = vmatprep.subr.bf16.mxu0 %v15920_v45  ;;  %v15999_v44 = vld [vmem:[%s17898_s18 + $0x320] ss:$8 sps:$4 sm:$0xff]   ;;  %v16004_v45 = vld [vmem:[%s17893_s24 + $0x334] ss:$8 sps:$4 sm:$0xff]  }
  0xd6   : > { %2096 = vmatprep.subr.bf16.mxu1 %v15923_v47  ;;  %v16007_v47 = vld [vmem:[%s17898_s18 + $0x334] ss:$8 sps:$4 sm:$0xff]  }
  0xd8   : > { %1476 = vmatpush1.bf16.msra.mxu0 %v15918_v48  ;;  %v16002_v48 = vld [vmem:[%s17893_s24 + $0x330] ss:$8 sps:$4 sm:$0xff]  }
  0xd9   : > { %2097 = vmatpush1.bf16.msra.mxu1 %v15921_v49  ;;  %1477 = vmatprep.subr.bf16.mxu0 %v15926_v50  ;;  %v16005_v49 = vld [vmem:[%s17898_s18 + $0x330] ss:$8 sps:$4 sm:$0xff]   ;;  %v16010_v50 = vld [vmem:[%s17893_s24 + $0x344] ss:$8 sps:$4 sm:$0xff]  }
  0xda   : > { %2098 = vmatprep.subr.bf16.mxu1 %v15929_v51  ;;  %v16013_v51 = vld [vmem:[%s17898_s18 + $0x344] ss:$8 sps:$4 sm:$0xff]  }
  0xdc   : > { %1478 = vmatpush1.bf16.msra.mxu0 %v15924_v52  ;;  %v16008_v52 = vld [vmem:[%s17893_s24 + $0x340] ss:$8 sps:$4 sm:$0xff]  }
  0xdd   : > { %2099 = vmatpush1.bf16.msra.mxu1 %v15927_v53  ;;  %1479 = vmatprep.subr.bf16.mxu0 %v15932_v54  ;;  %v16011_v53 = vld [vmem:[%s17898_s18 + $0x340] ss:$8 sps:$4 sm:$0xff]   ;;  %v16016_v54 = vld [vmem:[%s17893_s24 + $0x354] ss:$8 sps:$4 sm:$0xff]  }
  0xde   : > { %2100 = vmatprep.subr.bf16.mxu1 %v15935_v55  ;;  %v16019_v55 = vld [vmem:[%s17898_s18 + $0x354] ss:$8 sps:$4 sm:$0xff]  }
  0xe0   : > { %1480 = vmatpush1.bf16.msra.mxu0 %v15930_v56  ;;  %v16014_v56 = vld [vmem:[%s17893_s24 + $0x350] ss:$8 sps:$4 sm:$0xff]  }
  0xe1   : > { %2101 = vmatpush1.bf16.msra.mxu1 %v15933_v57  ;;  %2631 = vmatprep.subr.bf16.mxu0 %v15938_v61  ;;  %v16017_v57 = vld [vmem:[%s17898_s18 + $0x350] ss:$8 sps:$4 sm:$0xff]   ;;  %v16020_v61 = vld [vmem:[%s17893_s24 + $0x360] ss:$8 sps:$4 sm:$0xff]  }
  0xe2   : > { %3254 = vmatprep.subr.bf16.mxu1 %v15941_v62  ;;  %v16023_v62 = vld [vmem:[%s17898_s18 + $0x360] ss:$8 sps:$4 sm:$0xff]  }
  0xe3   : > { %1498 = vmatmul.mubr.bf16.vlgmr.msra.gmra.mrb[0].mxu0 %v18162_v63 }
  0xe4   : > { %2119 = vmatmul.mubr.bf16.vlgmr.msra.gmra.mrb[0].mxu1 %v18162_v63  ;;  %2632 = vmatpush1.bf16.msra.mxu0 %v15936_v0  ;;  %v16028_v0 = vld [vmem:[%s17893_s24 + $0x374] ss:$8 sps:$4 sm:$0xff]  }
  0xe5   : > { %3255 = vmatpush1.bf16.msra.mxu1 %v15939_v1  ;;  %2633 = vmatprep.subr.bf16.mxu0 %v15944_v2  ;;  %v16031_v1 = vld [vmem:[%s17898_s18 + $0x374] ss:$8 sps:$4 sm:$0xff]   ;;  %v16026_v2 = vld [vmem:[%s17893_s24 + $0x370] ss:$8 sps:$4 sm:$0xff]  }
  0xe6   : > { %3256 = vmatprep.subr.bf16.mxu1 %v15947_v3  ;;  %2663 = vmatprep.mubr.bf16.mxu0 %v18030_v60  ;;  %v16029_v3 = vld [vmem:[%s17898_s18 + $0x370] ss:$8 sps:$4 sm:$0xff]  }
  0xe7   : > { %3286 = vmatprep.mubr.bf16.mxu1 %v18030_v60 }
  0xe8   : > { %2634 = vmatpush1.bf16.msra.mxu0 %v15942_v4  ;;  %v16034_v4 = vld [vmem:[%s17893_s24 + $0x384] ss:$8 sps:$4 sm:$0xff]  }
  0xe9   : > { %3257 = vmatpush1.bf16.msra.mxu1 %v15945_v5  ;;  %2635 = vmatprep.subr.bf16.mxu0 %v15950_v6  ;;  %v16037_v5 = vld [vmem:[%s17898_s18 + $0x384] ss:$8 sps:$4 sm:$0xff]   ;;  %v16032_v6 = vld [vmem:[%s17893_s24 + $0x380] ss:$8 sps:$4 sm:$0xff]  }
  0xea   : > { %3258 = vmatprep.subr.bf16.mxu1 %v15953_v7  ;;  %v16035_v7 = vld [vmem:[%s17898_s18 + $0x380] ss:$8 sps:$4 sm:$0xff]  }
  0xec   : > { %2636 = vmatpush1.bf16.msra.mxu0 %v15948_v8  ;;  %v16040_v8 = vld [vmem:[%s17893_s24 + $0x394] ss:$8 sps:$4 sm:$0xff]  }
  0xed   : > { %3259 = vmatpush1.bf16.msra.mxu1 %v15951_v9  ;;  %2637 = vmatprep.subr.bf16.mxu0 %v15956_v10  ;;  %v16043_v9 = vld [vmem:[%s17898_s18 + $0x394] ss:$8 sps:$4 sm:$0xff]   ;;  %v16038_v10 = vld [vmem:[%s17893_s24 + $0x390] ss:$8 sps:$4 sm:$0xff]  }
  0xee   : > { %3260 = vmatprep.subr.bf16.mxu1 %v15959_v11  ;;  %v16041_v11 = vld [vmem:[%s17898_s18 + $0x390] ss:$8 sps:$4 sm:$0xff]  }
  0xf0   : > { %2638 = vmatpush1.bf16.msra.mxu0 %v15954_v12  ;;  %v16046_v12 = vld [vmem:[%s17893_s24 + $0x3a4] ss:$8 sps:$4 sm:$0xff]  }
  0xf1   : > { %3261 = vmatpush1.bf16.msra.mxu1 %v15957_v13  ;;  %2639 = vmatprep.subr.bf16.mxu0 %v15962_v14  ;;  %v16049_v13 = vld [vmem:[%s17898_s18 + $0x3a4] ss:$8 sps:$4 sm:$0xff]   ;;  %v16044_v14 = vld [vmem:[%s17893_s24 + $0x3a0] ss:$8 sps:$4 sm:$0xff]  }
  0xf2   : > { %3262 = vmatprep.subr.bf16.mxu1 %v15965_v15  ;;  %v16047_v15 = vld [vmem:[%s17898_s18 + $0x3a0] ss:$8 sps:$4 sm:$0xff]  }
  0xf4   : > { %2640 = vmatpush1.bf16.msra.mxu0 %v15960_v16  ;;  %v16052_v16 = vld [vmem:[%s17893_s24 + $0x3b4] ss:$8 sps:$4 sm:$0xff]  }
  0xf5   : > { %3263 = vmatpush1.bf16.msra.mxu1 %v15963_v17  ;;  %2641 = vmatprep.subr.bf16.mxu0 %v15968_v18  ;;  %v16055_v17 = vld [vmem:[%s17898_s18 + $0x3b4] ss:$8 sps:$4 sm:$0xff]   ;;  %v16050_v18 = vld [vmem:[%s17893_s24 + $0x3b0] ss:$8 sps:$4 sm:$0xff]  }
  0xf6   : > { %3264 = vmatprep.subr.bf16.mxu1 %v15971_v20  ;;  %v16053_v20 = vld [vmem:[%s17898_s18 + $0x3b0] ss:$8 sps:$4 sm:$0xff]  }
  0xf8   : > { %2642 = vmatpush1.bf16.msra.mxu0 %v15966_v21  ;;  %v16058_v21 = vld [vmem:[%s17893_s24 + $0x3c4] ss:$8 sps:$4 sm:$0xff]  }
  0xf9   : > { %3265 = vmatpush1.bf16.msra.mxu1 %v15969_v22  ;;  %2643 = vmatprep.subr.bf16.mxu0 %v15974_v23  ;;  %v16061_v22 = vld [vmem:[%s17898_s18 + $0x3c4] ss:$8 sps:$4 sm:$0xff]   ;;  %v16056_v23 = vld [vmem:[%s17893_s24 + $0x3c0] ss:$8 sps:$4 sm:$0xff]  }
  0xfa   : > { %3266 = vmatprep.subr.bf16.mxu1 %v15977_v24  ;;  %v16059_v24 = vld [vmem:[%s17898_s18 + $0x3c0] ss:$8 sps:$4 sm:$0xff]  }
  0xfc   : > { %2644 = vmatpush1.bf16.msra.mxu0 %v15972_v26  ;;  %v16064_v26 = vld [vmem:[%s17893_s24 + $0x3d4] ss:$8 sps:$4 sm:$0xff]  }
  0xfd   : > { %3267 = vmatpush1.bf16.msra.mxu1 %v15975_v27  ;;  %2645 = vmatprep.subr.bf16.mxu0 %v15980_v28  ;;  %v16067_v27 = vld [vmem:[%s17898_s18 + $0x3d4] ss:$8 sps:$4 sm:$0xff]   ;;  %v16062_v28 = vld [vmem:[%s17893_s24 + $0x3d0] ss:$8 sps:$4 sm:$0xff]  }
  0xfe   : > { %3268 = vmatprep.subr.bf16.mxu1 %v15983_v29  ;;  %v16065_v29 = vld [vmem:[%s17898_s18 + $0x3d0] ss:$8 sps:$4 sm:$0xff]  }
 0x100   : > { %2646 = vmatpush1.bf16.msra.mxu0 %v15978_v30  ;;  %v16070_v30 = vld [vmem:[%s17893_s24 + $0x3e4] ss:$8 sps:$4 sm:$0xff]  }
 0x101   : > { %3269 = vmatpush1.bf16.msra.mxu1 %v15981_v31  ;;  %2647 = vmatprep.subr.bf16.mxu0 %v15986_v32  ;;  %v16073_v31 = vld [vmem:[%s17898_s18 + $0x3e4] ss:$8 sps:$4 sm:$0xff]   ;;  %v16068_v32 = vld [vmem:[%s17893_s24 + $0x3e0] ss:$8 sps:$4 sm:$0xff]  }
 0x102   : > { %3270 = vmatprep.subr.bf16.mxu1 %v15989_v33  ;;  %v16071_v33 = vld [vmem:[%s17898_s18 + $0x3e0] ss:$8 sps:$4 sm:$0xff]  }
 0x104   : > { %2648 = vmatpush1.bf16.msra.mxu0 %v15984_v35  ;;  %v16076_v35 = vld [vmem:[%s17893_s24 + $0x3f4] ss:$8 sps:$4 sm:$0xff]  }
 0x105   : > { %3271 = vmatpush1.bf16.msra.mxu1 %v15987_v36  ;;  %2649 = vmatprep.subr.bf16.mxu0 %v15992_v37  ;;  %v16079_v36 = vld [vmem:[%s17898_s18 + $0x3f4] ss:$8 sps:$4 sm:$0xff]   ;;  %v16074_v37 = vld [vmem:[%s17893_s24 + $0x3f0] ss:$8 sps:$4 sm:$0xff]  }
 0x106   : > { %3272 = vmatprep.subr.bf16.mxu1 %v15995_v38  ;;  %v16077_v38 = vld [vmem:[%s17898_s18 + $0x3f0] ss:$8 sps:$4 sm:$0xff]  }
 0x108   : > { %2650 = vmatpush1.bf16.msra.mxu0 %v15990_v39  ;;  %v16082_v39 = vld [vmem:[%s17893_s24 + $0x404] ss:$8 sps:$4 sm:$0xff]  }
 0x109   : > { %3273 = vmatpush1.bf16.msra.mxu1 %v15993_v40  ;;  %2651 = vmatprep.subr.bf16.mxu0 %v15998_v41  ;;  %v16085_v40 = vld [vmem:[%s17898_s18 + $0x404] ss:$8 sps:$4 sm:$0xff]   ;;  %v16080_v41 = vld [vmem:[%s17893_s24 + $0x400] ss:$8 sps:$4 sm:$0xff]  }
 0x10a   : > { %3274 = vmatprep.subr.bf16.mxu1 %v16001_v42  ;;  %v16083_v42 = vld [vmem:[%s17898_s18 + $0x400] ss:$8 sps:$4 sm:$0xff]  }
 0x10c   : > { %2652 = vmatpush1.bf16.msra.mxu0 %v15996_v43  ;;  %v16088_v43 = vld [vmem:[%s17893_s24 + $0x414] ss:$8 sps:$4 sm:$0xff]  }
 0x10d   : > { %3275 = vmatpush1.bf16.msra.mxu1 %v15999_v44  ;;  %2653 = vmatprep.subr.bf16.mxu0 %v16004_v45  ;;  %v16091_v44 = vld [vmem:[%s17898_s18 + $0x414] ss:$8 sps:$4 sm:$0xff]   ;;  %v16086_v45 = vld [vmem:[%s17893_s24 + $0x410] ss:$8 sps:$4 sm:$0xff]  }
 0x10e   : > { %3276 = vmatprep.subr.bf16.mxu1 %v16007_v47  ;;  %v16089_v47 = vld [vmem:[%s17898_s18 + $0x410] ss:$8 sps:$4 sm:$0xff]  }
 0x110   : > { %2654 = vmatpush1.bf16.msra.mxu0 %v16002_v48  ;;  %v16094_v48 = vld [vmem:[%s17893_s24 + $0x424] ss:$8 sps:$4 sm:$0xff]  }
 0x111   : > { %3277 = vmatpush1.bf16.msra.mxu1 %v16005_v49  ;;  %2655 = vmatprep.subr.bf16.mxu0 %v16010_v50  ;;  %v16097_v49 = vld [vmem:[%s17898_s18 + $0x424] ss:$8 sps:$4 sm:$0xff]   ;;  %v16092_v50 = vld [vmem:[%s17893_s24 + $0x420] ss:$8 sps:$4 sm:$0xff]  }
 0x112   : > { %3278 = vmatprep.subr.bf16.mxu1 %v16013_v51  ;;  %v16095_v51 = vld [vmem:[%s17898_s18 + $0x420] ss:$8 sps:$4 sm:$0xff]  }
 0x114   : > { %2656 = vmatpush1.bf16.msra.mxu0 %v16008_v52  ;;  %v16100_v52 = vld [vmem:[%s17893_s24 + $0x434] ss:$8 sps:$4 sm:$0xff]  }
 0x115   : > { %3279 = vmatpush1.bf16.msra.mxu1 %v16011_v53  ;;  %2657 = vmatprep.subr.bf16.mxu0 %v16016_v54  ;;  %v16103_v53 = vld [vmem:[%s17898_s18 + $0x434] ss:$8 sps:$4 sm:$0xff]   ;;  %v16098_v54 = vld [vmem:[%s17893_s24 + $0x430] ss:$8 sps:$4 sm:$0xff]  }
 0x116   : > { %3280 = vmatprep.subr.bf16.mxu1 %v16019_v55  ;;  %v16101_v55 = vld [vmem:[%s17898_s18 + $0x430] ss:$8 sps:$4 sm:$0xff]  }
 0x118   : > { %2658 = vmatpush1.bf16.msra.mxu0 %v16014_v56  ;;  %v16106_v56 = vld [vmem:[%s17893_s24 + $0x444] ss:$8 sps:$4 sm:$0xff]  }
 0x119   : > { %3281 = vmatpush1.bf16.msra.mxu1 %v16017_v57  ;;  %2659 = vmatprep.subr.bf16.mxu0 %v16022_v58  ;;  %v16109_v57 = vld [vmem:[%s17898_s18 + $0x444] ss:$8 sps:$4 sm:$0xff]   ;;  %v16104_v58 = vld [vmem:[%s17893_s24 + $0x440] ss:$8 sps:$4 sm:$0xff]  }
 0x11a   : > { %3282 = vmatprep.subr.bf16.mxu1 %v16025_v59  ;;  %v16107_v59 = vld [vmem:[%s17898_s18 + $0x440] ss:$8 sps:$4 sm:$0xff]  }
 0x11c   : > { %2660 = vmatpush1.bf16.msra.mxu0 %v16020_v61  ;;  %v16112_v61 = vld [vmem:[%s17893_s24 + $0x454] ss:$8 sps:$4 sm:$0xff]  }
 0x11d   : > { %3283 = vmatpush1.bf16.msra.mxu1 %v16023_v62  ;;  %2661 = vmatprep.subr.bf16.mxu0 %v16028_v0  ;;  %v16115_v62 = vld [vmem:[%s17898_s18 + $0x454] ss:$8 sps:$4 sm:$0xff]   ;;  %v16110_v0 = vld [vmem:[%s17893_s24 + $0x450] ss:$8 sps:$4 sm:$0xff]  }
 0x11e   : > { %3284 = vmatprep.subr.bf16.mxu1 %v16031_v1  ;;  %v16113_v1 = vld [vmem:[%s17898_s18 + $0x450] ss:$8 sps:$4 sm:$0xff]  }
 0x120   : > { %2662 = vmatpush1.bf16.msra.mxu0 %v16026_v2  ;;  %v16118_v2 = vld [vmem:[%s17893_s24 + $0x464] ss:$8 sps:$4 sm:$0xff]  }
 0x121   : > { %3285 = vmatpush1.bf16.msra.mxu1 %v16029_v3  ;;  %2674 = vmatprep.subr.bf16.mxu0 %v16034_v4  ;;  %v16121_v3 = vld [vmem:[%s17898_s18 + $0x464] ss:$8 sps:$4 sm:$0xff]   ;;  %v16116_v4 = vld [vmem:[%s17893_s24 + $0x460] ss:$8 sps:$4 sm:$0xff]  }
 0x122   : > { %3297 = vmatprep.subr.bf16.mxu1 %v16037_v5  ;;  %v16119_v5 = vld [vmem:[%s17898_s18 + $0x460] ss:$8 sps:$4 sm:$0xff]  }
 0x123   : > { %2664 = vmatmul.mubr.bf16.vlgmr.msra.gmra.mrb[4].mxu0 %v18054_v19 }
 0x124   : > { %3287 = vmatmul.mubr.bf16.vlgmr.msra.gmra.mrb[4].mxu1 %v18054_v19  ;;  %2675 = vmatpush1.bf16.msra.mxu0 %v16032_v6  ;;  %v16124_v6 = vld [vmem:[%s17893_s24 + $0x474] ss:$8 sps:$4 sm:$0xff]  }
 0x125   : > { %3298 = vmatpush1.bf16.msra.mxu1 %v16035_v7  ;;  %2676 = vmatprep.subr.bf16.mxu0 %v16040_v8  ;;  %v16127_v7 = vld [vmem:[%s17898_s18 + $0x474] ss:$8 sps:$4 sm:$0xff]   ;;  %v16122_v8 = vld [vmem:[%s17893_s24 + $0x470] ss:$8 sps:$4 sm:$0xff]  }
 0x126   : > { %3299 = vmatprep.subr.bf16.mxu1 %v16043_v9  ;;  %2706 = vmatprep.mubr.bf16.mxu0 %v18082_v46  ;;  %v16125_v9 = vld [vmem:[%s17898_s18 + $0x470] ss:$8 sps:$4 sm:$0xff]  }
 0x127   : > { %3329 = vmatprep.mubr.bf16.mxu1 %v18082_v46 }
 0x128   : > { %2677 = vmatpush1.bf16.msra.mxu0 %v16038_v10  ;;  %v16130_v10 = vld [vmem:[%s17893_s24 + $0x484] ss:$8 sps:$4 sm:$0xff]  }
 0x129   : > { %3300 = vmatpush1.bf16.msra.mxu1 %v16041_v11  ;;  %2678 = vmatprep.subr.bf16.mxu0 %v16046_v12  ;;  %v16133_v11 = vld [vmem:[%s17898_s18 + $0x484] ss:$8 sps:$4 sm:$0xff]   ;;  %v16128_v12 = vld [vmem:[%s17893_s24 + $0x480] ss:$8 sps:$4 sm:$0xff]  }
 0x12a   : > { %3301 = vmatprep.subr.bf16.mxu1 %v16049_v13  ;;  %v16131_v13 = vld [vmem:[%s17898_s18 + $0x480] ss:$8 sps:$4 sm:$0xff]  }
 0x12c   : > { %2679 = vmatpush1.bf16.msra.mxu0 %v16044_v14  ;;  %v16136_v14 = vld [vmem:[%s17893_s24 + $0x494] ss:$8 sps:$4 sm:$0xff]  }
 0x12d   : > { %3302 = vmatpush1.bf16.msra.mxu1 %v16047_v15  ;;  %2680 = vmatprep.subr.bf16.mxu0 %v16052_v16  ;;  %v16139_v15 = vld [vmem:[%s17898_s18 + $0x494] ss:$8 sps:$4 sm:$0xff]   ;;  %v16134_v16 = vld [vmem:[%s17893_s24 + $0x490] ss:$8 sps:$4 sm:$0xff]  }
 0x12e   : > { %3303 = vmatprep.subr.bf16.mxu1 %v16055_v17  ;;  %v16137_v17 = vld [vmem:[%s17898_s18 + $0x490] ss:$8 sps:$4 sm:$0xff]  }
 0x130   : > { %2681 = vmatpush1.bf16.msra.mxu0 %v16050_v18  ;;  %v16142_v18 = vld [vmem:[%s17893_s24 + $0x4a4] ss:$8 sps:$4 sm:$0xff]  }
 0x131   : > { %3304 = vmatpush1.bf16.msra.mxu1 %v16053_v20  ;;  %2682 = vmatprep.subr.bf16.mxu0 %v16058_v21  ;;  %v16145_v20 = vld [vmem:[%s17898_s18 + $0x4a4] ss:$8 sps:$4 sm:$0xff]   ;;  %v16140_v21 = vld [vmem:[%s17893_s24 + $0x4a0] ss:$8 sps:$4 sm:$0xff]  }
 0x132   : > { %3305 = vmatprep.subr.bf16.mxu1 %v16061_v22  ;;  %v16143_v22 = vld [vmem:[%s17898_s18 + $0x4a0] ss:$8 sps:$4 sm:$0xff]  }
 0x134   : > { %2683 = vmatpush1.bf16.msra.mxu0 %v16056_v23  ;;  %v16148_v23 = vld [vmem:[%s17893_s24 + $0x4b4] ss:$8 sps:$4 sm:$0xff]  }
 0x135   : > { %3306 = vmatpush1.bf16.msra.mxu1 %v16059_v24  ;;  %2684 = vmatprep.subr.bf16.mxu0 %v16064_v26  ;;  %v16151_v24 = vld [vmem:[%s17898_s18 + $0x4b4] ss:$8 sps:$4 sm:$0xff]   ;;  %v16146_v26 = vld [vmem:[%s17893_s24 + $0x4b0] ss:$8 sps:$4 sm:$0xff]  }
 0x136   : > { %3307 = vmatprep.subr.bf16.mxu1 %v16067_v27  ;;  %v16149_v27 = vld [vmem:[%s17898_s18 + $0x4b0] ss:$8 sps:$4 sm:$0xff]  }
 0x138   : > { %2685 = vmatpush1.bf16.msra.mxu0 %v16062_v28  ;;  %v16154_v28 = vld [vmem:[%s17893_s24 + $0x4c4] ss:$8 sps:$4 sm:$0xff]  }
 0x139   : > { %3308 = vmatpush1.bf16.msra.mxu1 %v16065_v29  ;;  %2686 = vmatprep.subr.bf16.mxu0 %v16070_v30  ;;  %v16157_v29 = vld [vmem:[%s17898_s18 + $0x4c4] ss:$8 sps:$4 sm:$0xff]   ;;  %v16152_v30 = vld [vmem:[%s17893_s24 + $0x4c0] ss:$8 sps:$4 sm:$0xff]  }
 0x13a   : > { %3309 = vmatprep.subr.bf16.mxu1 %v16073_v31  ;;  %v16155_v31 = vld [vmem:[%s17898_s18 + $0x4c0] ss:$8 sps:$4 sm:$0xff]  }
 0x13c   : > { %2687 = vmatpush1.bf16.msra.mxu0 %v16068_v32  ;;  %v16160_v32 = vld [vmem:[%s17893_s24 + $0x4d4] ss:$8 sps:$4 sm:$0xff]  }
 0x13d   : > { %3310 = vmatpush1.bf16.msra.mxu1 %v16071_v33  ;;  %2688 = vmatprep.subr.bf16.mxu0 %v16076_v35  ;;  %v16163_v33 = vld [vmem:[%s17898_s18 + $0x4d4] ss:$8 sps:$4 sm:$0xff]   ;;  %v16158_v35 = vld [vmem:[%s17893_s24 + $0x4d0] ss:$8 sps:$4 sm:$0xff]  }
 0x13e   : > { %3311 = vmatprep.subr.bf16.mxu1 %v16079_v36  ;;  %v16161_v36 = vld [vmem:[%s17898_s18 + $0x4d0] ss:$8 sps:$4 sm:$0xff]  }
 0x140   : > { %2689 = vmatpush1.bf16.msra.mxu0 %v16074_v37  ;;  %v16166_v37 = vld [vmem:[%s17893_s24 + $0x4e4] ss:$8 sps:$4 sm:$0xff]  }
 0x141   : > { %3312 = vmatpush1.bf16.msra.mxu1 %v16077_v38  ;;  %2690 = vmatprep.subr.bf16.mxu0 %v16082_v39  ;;  %v16169_v38 = vld [vmem:[%s17898_s18 + $0x4e4] ss:$8 sps:$4 sm:$0xff]   ;;  %v16164_v39 = vld [vmem:[%s17893_s24 + $0x4e0] ss:$8 sps:$4 sm:$0xff]  }
 0x142   : > { %3313 = vmatprep.subr.bf16.mxu1 %v16085_v40  ;;  %v16167_v40 = vld [vmem:[%s17898_s18 + $0x4e0] ss:$8 sps:$4 sm:$0xff]  }
 0x144   : > { %2691 = vmatpush1.bf16.msra.mxu0 %v16080_v41  ;;  %v16172_v41 = vld [vmem:[%s17893_s24 + $0x4f4] ss:$8 sps:$4 sm:$0xff]  }
 0x145   : > { %3314 = vmatpush1.bf16.msra.mxu1 %v16083_v42  ;;  %2692 = vmatprep.subr.bf16.mxu0 %v16088_v43  ;;  %v16175_v42 = vld [vmem:[%s17898_s18 + $0x4f4] ss:$8 sps:$4 sm:$0xff]   ;;  %v16170_v43 = vld [vmem:[%s17893_s24 + $0x4f0] ss:$8 sps:$4 sm:$0xff]  }
 0x146   : > { %3315 = vmatprep.subr.bf16.mxu1 %v16091_v44  ;;  %v16173_v44 = vld [vmem:[%s17898_s18 + $0x4f0] ss:$8 sps:$4 sm:$0xff]  }
 0x148   : > { %2693 = vmatpush1.bf16.msra.mxu0 %v16086_v45  ;;  %v16178_v45 = vld [vmem:[%s17893_s24 + $0x504] ss:$8 sps:$4 sm:$0xff]  }
 0x149   : > { %3316 = vmatpush1.bf16.msra.mxu1 %v16089_v47  ;;  %2694 = vmatprep.subr.bf16.mxu0 %v16094_v48  ;;  %v16181_v47 = vld [vmem:[%s17898_s18 + $0x504] ss:$8 sps:$4 sm:$0xff]   ;;  %v16176_v48 = vld [vmem:[%s17893_s24 + $0x500] ss:$8 sps:$4 sm:$0xff]  }
 0x14a   : > { %3317 = vmatprep.subr.bf16.mxu1 %v16097_v49  ;;  %v16179_v49 = vld [vmem:[%s17898_s18 + $0x500] ss:$8 sps:$4 sm:$0xff]  }
 0x14c   : > { %2695 = vmatpush1.bf16.msra.mxu0 %v16092_v50  ;;  %v16184_v50 = vld [vmem:[%s17893_s24 + $0x514] ss:$8 sps:$4 sm:$0xff]  }
 0x14d   : > { %3318 = vmatpush1.bf16.msra.mxu1 %v16095_v51  ;;  %2696 = vmatprep.subr.bf16.mxu0 %v16100_v52  ;;  %v16187_v51 = vld [vmem:[%s17898_s18 + $0x514] ss:$8 sps:$4 sm:$0xff]   ;;  %v16182_v52 = vld [vmem:[%s17893_s24 + $0x510] ss:$8 sps:$4 sm:$0xff]  }
 0x14e   : > { %3319 = vmatprep.subr.bf16.mxu1 %v16103_v53  ;;  %v16185_v53 = vld [vmem:[%s17898_s18 + $0x510] ss:$8 sps:$4 sm:$0xff]  }
 0x150   : > { %2697 = vmatpush1.bf16.msra.mxu0 %v16098_v54  ;;  %v16190_v54 = vld [vmem:[%s17893_s24 + $0x524] ss:$8 sps:$4 sm:$0xff]  }
 0x151   : > { %3320 = vmatpush1.bf16.msra.mxu1 %v16101_v55  ;;  %2698 = vmatprep.subr.bf16.mxu0 %v16106_v56  ;;  %v16193_v55 = vld [vmem:[%s17898_s18 + $0x524] ss:$8 sps:$4 sm:$0xff]   ;;  %v16188_v56 = vld [vmem:[%s17893_s24 + $0x520] ss:$8 sps:$4 sm:$0xff]  }
 0x152   : > { %3321 = vmatprep.subr.bf16.mxu1 %v16109_v57  ;;  %v16191_v57 = vld [vmem:[%s17898_s18 + $0x520] ss:$8 sps:$4 sm:$0xff]  }
 0x154   : > { %2699 = vmatpush1.bf16.msra.mxu0 %v16104_v58  ;;  %v16196_v58 = vld [vmem:[%s17893_s24 + $0x534] ss:$8 sps:$4 sm:$0xff]  }
 0x155   : > { %3322 = vmatpush1.bf16.msra.mxu1 %v16107_v59  ;;  %2700 = vmatprep.subr.bf16.mxu0 %v16112_v61  ;;  %v16199_v59 = vld [vmem:[%s17898_s18 + $0x534] ss:$8 sps:$4 sm:$0xff]   ;;  %v16194_v61 = vld [vmem:[%s17893_s24 + $0x530] ss:$8 sps:$4 sm:$0xff]  }
 0x156   : > { %3323 = vmatprep.subr.bf16.mxu1 %v16115_v62  ;;  %v16197_v62 = vld [vmem:[%s17898_s18 + $0x530] ss:$8 sps:$4 sm:$0xff]  }
 0x158   : > { %2701 = vmatpush1.bf16.msra.mxu0 %v16110_v0  ;;  %v16202_v0 = vld [vmem:[%s17893_s24 + $0x544] ss:$8 sps:$4 sm:$0xff]  }
 0x159   : > { %3324 = vmatpush1.bf16.msra.mxu1 %v16113_v1  ;;  %2702 = vmatprep.subr.bf16.mxu0 %v16118_v2  ;;  %v16205_v1 = vld [vmem:[%s17898_s18 + $0x544] ss:$8 sps:$4 sm:$0xff]   ;;  %v16200_v2 = vld [vmem:[%s17893_s24 + $0x540] ss:$8 sps:$4 sm:$0xff]  }
 0x15a   : > { %3325 = vmatprep.subr.bf16.mxu1 %v16121_v3  ;;  %v16203_v3 = vld [vmem:[%s17898_s18 + $0x540] ss:$8 sps:$4 sm:$0xff]  }
 0x15c   : > { %2703 = vmatpush1.bf16.msra.mxu0 %v16116_v4  ;;  %v16208_v4 = vld [vmem:[%s17893_s24 + $0x554] ss:$8 sps:$4 sm:$0xff]  }
 0x15d   : > { %3326 = vmatpush1.bf16.msra.mxu1 %v16119_v5  ;;  %2704 = vmatprep.subr.bf16.mxu0 %v16124_v6  ;;  %v16211_v5 = vld [vmem:[%s17898_s18 + $0x554] ss:$8 sps:$4 sm:$0xff]   ;;  %v16206_v6 = vld [vmem:[%s17893_s24 + $0x550] ss:$8 sps:$4 sm:$0xff]  }
 0x15e   : > { %3327 = vmatprep.subr.bf16.mxu1 %v16127_v7  ;;  %v16209_v7 = vld [vmem:[%s17898_s18 + $0x550] ss:$8 sps:$4 sm:$0xff]  }
 0x160   : > { %2705 = vmatpush1.bf16.msra.mxu0 %v16122_v8  ;;  %v16214_v8 = vld [vmem:[%s17893_s24 + $0x564] ss:$8 sps:$4 sm:$0xff]  }
 0x161   : > { %3328 = vmatpush1.bf16.msra.mxu1 %v16125_v9  ;;  %2717 = vmatprep.subr.bf16.mxu0 %v16130_v10  ;;  %v16217_v9 = vld [vmem:[%s17898_s18 + $0x564] ss:$8 sps:$4 sm:$0xff]   ;;  %v16212_v10 = vld [vmem:[%s17893_s24 + $0x560] ss:$8 sps:$4 sm:$0xff]  }
 0x162   : > { %3340 = vmatprep.subr.bf16.mxu1 %v16133_v11  ;;  %v16215_v11 = vld [vmem:[%s17898_s18 + $0x560] ss:$8 sps:$4 sm:$0xff]  }
 0x163   : > { %2707 = vmatmul.mubr.bf16.vlgmr.msra.gmra.mrb[4].mxu0 %v18124_v25 }
 0x164   : > { %3330 = vmatmul.mubr.bf16.vlgmr.msra.gmra.mrb[4].mxu1 %v18124_v25  ;;  %2718 = vmatpush1.bf16.msra.mxu0 %v16128_v12  ;;  %v16220_v12 = vld [vmem:[%s17893_s24 + $0x574] ss:$8 sps:$4 sm:$0xff]  }
 0x165   : > { %3341 = vmatpush1.bf16.msra.mxu1 %v16131_v13  ;;  %2719 = vmatprep.subr.bf16.mxu0 %v16136_v14  ;;  %v16223_v13 = vld [vmem:[%s17898_s18 + $0x574] ss:$8 sps:$4 sm:$0xff]   ;;  %v16218_v14 = vld [vmem:[%s17893_s24 + $0x570] ss:$8 sps:$4 sm:$0xff]  }
 0x166   : > { %3342 = vmatprep.subr.bf16.mxu1 %v16139_v15  ;;  %2749 = vmatprep.mubr.bf16.mxu0 %v17759_v34  ;;  %v16221_v15 = vld [vmem:[%s17898_s18 + $0x570] ss:$8 sps:$4 sm:$0xff]  }
 0x167   : > { %3372 = vmatprep.mubr.bf16.mxu1 %v17759_v34 }
 0x168   : > { %2720 = vmatpush1.bf16.msra.mxu0 %v16134_v16  ;;  %v16226_v16 = vld [vmem:[%s17893_s24 + $0x584] ss:$8 sps:$4 sm:$0xff]  }
 0x169   : > { %3343 = vmatpush1.bf16.msra.mxu1 %v16137_v17  ;;  %2721 = vmatprep.subr.bf16.mxu0 %v16142_v18  ;;  %v16229_v17 = vld [vmem:[%s17898_s18 + $0x584] ss:$8 sps:$4 sm:$0xff]   ;;  %v16224_v18 = vld [vmem:[%s17893_s24 + $0x580] ss:$8 sps:$4 sm:$0xff]  }
 0x16a   : > { %3344 = vmatprep.subr.bf16.mxu1 %v16145_v20  ;;  %v16227_v20 = vld [vmem:[%s17898_s18 + $0x580] ss:$8 sps:$4 sm:$0xff]  }
 0x16c   : > { %2722 = vmatpush1.bf16.msra.mxu0 %v16140_v21  ;;  %v16232_v21 = vld [vmem:[%s17893_s24 + $0x594] ss:$8 sps:$4 sm:$0xff]  }
 0x16d   : > { %3345 = vmatpush1.bf16.msra.mxu1 %v16143_v22  ;;  %2723 = vmatprep.subr.bf16.mxu0 %v16148_v23  ;;  %v16235_v22 = vld [vmem:[%s17898_s18 + $0x594] ss:$8 sps:$4 sm:$0xff]   ;;  %v16230_v23 = vld [vmem:[%s17893_s24 + $0x590] ss:$8 sps:$4 sm:$0xff]  }
 0x16e   : > { %3346 = vmatprep.subr.bf16.mxu1 %v16151_v24  ;;  %v16233_v24 = vld [vmem:[%s17898_s18 + $0x590] ss:$8 sps:$4 sm:$0xff]  }
 0x170   : > { %2724 = vmatpush1.bf16.msra.mxu0 %v16146_v26  ;;  %v16238_v26 = vld [vmem:[%s17893_s24 + $0x5a4] ss:$8 sps:$4 sm:$0xff]  }
 0x171   : > { %3347 = vmatpush1.bf16.msra.mxu1 %v16149_v27  ;;  %2725 = vmatprep.subr.bf16.mxu0 %v16154_v28  ;;  %v16241_v27 = vld [vmem:[%s17898_s18 + $0x5a4] ss:$8 sps:$4 sm:$0xff]   ;;  %v16236_v28 = vld [vmem:[%s17893_s24 + $0x5a0] ss:$8 sps:$4 sm:$0xff]  }
 0x172   : > { %3348 = vmatprep.subr.bf16.mxu1 %v16157_v29  ;;  %v16239_v29 = vld [vmem:[%s17898_s18 + $0x5a0] ss:$8 sps:$4 sm:$0xff]  }
 0x174   : > { %2726 = vmatpush1.bf16.msra.mxu0 %v16152_v30  ;;  %v16244_v30 = vld [vmem:[%s17893_s24 + $0x5b4] ss:$8 sps:$4 sm:$0xff]  }
 0x175   : > { %3349 = vmatpush1.bf16.msra.mxu1 %v16155_v31  ;;  %2727 = vmatprep.subr.bf16.mxu0 %v16160_v32  ;;  %v16247_v31 = vld [vmem:[%s17898_s18 + $0x5b4] ss:$8 sps:$4 sm:$0xff]   ;;  %v969_v32 = vlaneseq }
 0x176   : > { %3350 = vmatprep.subr.bf16.mxu1 %v16163_v33  ;;  %v16242_v33 = vld [vmem:[%s17893_s24 + $0x5b0] ss:$8 sps:$4 sm:$0xff]  }
 0x178   : > { %2728 = vmatpush1.bf16.msra.mxu0 %v16158_v35  ;;  %v16245_v35 = vld [vmem:[%s17898_s18 + $0x5b0] ss:$8 sps:$4 sm:$0xff]  }
 0x179   : > { %3351 = vmatpush1.bf16.msra.mxu1 %v16161_v36  ;;  %2729 = vmatprep.subr.bf16.mxu0 %v16166_v37  ;;  %v16250_v36 = vld [vmem:[%s17893_s24 + $0x5c4] ss:$8 sps:$4 sm:$0xff]  }
 0x17a   : > { %3352 = vmatprep.subr.bf16.mxu1 %v16169_v38  ;;  %v16253_v37 = vld [vmem:[%s17898_s18 + $0x5c4] ss:$8 sps:$4 sm:$0xff]   ;;  %v18388_v38 = vshrl.u32 %v969_v32, 7  ;;  %v16314_v32 = vld [vmem:[%s17893_s24 + $0x670] ss:$8 sps:$4 sm:$0xff]  }
 0x17c   : > { %2730 = vmatpush1.bf16.msra.mxu0 %v16164_v39  ;;  %v16248_v39 = vld [vmem:[%s17893_s24 + $0x5c0] ss:$8 sps:$4 sm:$0xff]  }
 0x17d   : > { %3353 = vmatpush1.bf16.msra.mxu1 %v16167_v40  ;;  %2731 = vmatprep.subr.bf16.mxu0 %v16172_v41  ;;  %v16251_v40 = vld [vmem:[%s17898_s18 + $0x5c0] ss:$8 sps:$4 sm:$0xff]   ;;  %v16256_v41 = vld [vmem:[%s17893_s24 + $0x5d4] ss:$8 sps:$4 sm:$0xff]  }
 0x17e   : > { %3354 = vmatprep.subr.bf16.mxu1 %v16175_v42  ;;  %v16259_v42 = vld [vmem:[%s17898_s18 + $0x5d4] ss:$8 sps:$4 sm:$0xff]  }
 0x180   : > { %2732 = vmatpush1.bf16.msra.mxu0 %v16170_v43  ;;  %v967_v43 = vld [vmem:[%s17883_s22] sm:$0x3] }
 0x181   : > { %3355 = vmatpush1.bf16.msra.mxu1 %v16173_v44  ;;  %3885 = vmatprep.subr.bf16.mxu0 %v16178_v45  ;;  %v18396_v44 = vsub.s32 0, %v18388_v38  ;;  %v16254_v45 = vld [vmem:[%s17893_s24 + $0x5d0] ss:$8 sps:$4 sm:$0xff]  }
 0x182   : > { %4508 = vmatprep.subr.bf16.mxu1 %v16181_v47  ;;  %v16257_v47 = vld [vmem:[%s17898_s18 + $0x5d0] ss:$8 sps:$4 sm:$0xff]  }
 0x183   : > { %2750 = vmatmul.mubr.bf16.vlgmr.msra.gmra.mrb[4].mxu0 %v18162_v63 }
 0x184   : > { %3373 = vmatmul.mubr.bf16.vlgmr.msra.gmra.mrb[4].mxu1 %v18162_v63  ;;  %3886 = vmatpush1.bf16.msra.mxu0 %v16176_v48  ;;  %v16262_v48 = vld [vmem:[%s17893_s24 + $0x5e4] ss:$8 sps:$4 sm:$0xff]  }
 0x185   : > { %4509 = vmatpush1.bf16.msra.mxu1 %v16179_v49  ;;  %3887 = vmatprep.subr.bf16.mxu0 %v16184_v50  ;;  %v16265_v49 = vld [vmem:[%s17898_s18 + $0x5e4] ss:$8 sps:$4 sm:$0xff]  }
 0x186   : > { %4510 = vmatprep.subr.bf16.mxu1 %v16187_v51  ;;  %3917 = vmatprep.mubr.bf16.mxu0 %v18030_v60  ;;  %v18405_v51 = vrot.slane %v967_v43, %v18396_v44  ;;  %v16329_v43 = vld [vmem:[%s17898_s18 + $0x690] ss:$8 sps:$4 sm:$0xff]  }
 0x187   : > { %4540 = vmatprep.mubr.bf16.mxu1 %v18030_v60 }
 0x188   : > { %3888 = vmatpush1.bf16.msra.mxu0 %v16182_v52 }
 0x189   : > { %4511 = vmatpush1.bf16.msra.mxu1 %v16185_v53  ;;  %3889 = vmatprep.subr.bf16.mxu0 %v16190_v54  ;;  %v16260_v54 = vld [vmem:[%s17893_s24 + $0x5e0] ss:$8 sps:$4 sm:$0xff]  }
 0x18a   : > { %4512 = vmatprep.subr.bf16.mxu1 %v16193_v55  ;;  %v16263_v55 = vld [vmem:[%s17898_s18 + $0x5e0] ss:$8 sps:$4 sm:$0xff]  }
 0x18c   : > { %3890 = vmatpush1.bf16.msra.mxu0 %v16188_v56 }
 0x18d   : > { %4513 = vmatpush1.bf16.msra.mxu1 %v16191_v57  ;;  %3891 = vmatprep.subr.bf16.mxu0 %v16196_v58  ;;  %v16268_v58 = vld [vmem:[%s17893_s24 + $0x5f4] ss:$8 sps:$4 sm:$0xff]  }
 0x18e   : > { %4514 = vmatprep.subr.bf16.mxu1 %v16199_v59  ;;  %v16271_v59 = vld [vmem:[%s17898_s18 + $0x5f4] ss:$8 sps:$4 sm:$0xff]  }
 0x190   : > { %3892 = vmatpush1.bf16.msra.mxu0 %v16194_v61  ;;  %v16266_v61 = vld [vmem:[%s17893_s24 + $0x5f0] ss:$8 sps:$4 sm:$0xff]  }
 0x191   : > { %4515 = vmatpush1.bf16.msra.mxu1 %v16197_v62  ;;  %3893 = vmatprep.subr.bf16.mxu0 %v16202_v0  ;;  %v16269_v62 = vld [vmem:[%s17898_s18 + $0x5f0] ss:$8 sps:$4 sm:$0xff]   ;;  %v16274_v0 = vld [vmem:[%s17893_s24 + $0x604] ss:$8 sps:$4 sm:$0xff]  }
 0x192   : > { %4516 = vmatprep.subr.bf16.mxu1 %v16205_v1  ;;  %v16277_v1 = vld [vmem:[%s17898_s18 + $0x604] ss:$8 sps:$4 sm:$0xff]  }
 0x194   : > { %3894 = vmatpush1.bf16.msra.mxu0 %v16200_v2  ;;  %v16272_v2 = vld [vmem:[%s17893_s24 + $0x600] ss:$8 sps:$4 sm:$0xff]  }
 0x195   : > { %4517 = vmatpush1.bf16.msra.mxu1 %v16203_v3  ;;  %3895 = vmatprep.subr.bf16.mxu0 %v16208_v4  ;;  %v16275_v3 = vld [vmem:[%s17898_s18 + $0x600] ss:$8 sps:$4 sm:$0xff]   ;;  %v16280_v4 = vld [vmem:[%s17893_s24 + $0x614] ss:$8 sps:$4 sm:$0xff]  }
 0x196   : > { %4518 = vmatprep.subr.bf16.mxu1 %v16211_v5  ;;  %v16283_v5 = vld [vmem:[%s17898_s18 + $0x614] ss:$8 sps:$4 sm:$0xff]  }
 0x198   : > { %3896 = vmatpush1.bf16.msra.mxu0 %v16206_v6  ;;  %v16278_v6 = vld [vmem:[%s17893_s24 + $0x610] ss:$8 sps:$4 sm:$0xff]  }
 0x199   : > { %4519 = vmatpush1.bf16.msra.mxu1 %v16209_v7  ;;  %3897 = vmatprep.subr.bf16.mxu0 %v16214_v8  ;;  %v16281_v7 = vld [vmem:[%s17898_s18 + $0x610] ss:$8 sps:$4 sm:$0xff]   ;;  %v16286_v8 = vld [vmem:[%s17893_s24 + $0x624] ss:$8 sps:$4 sm:$0xff]  }
 0x19a   : > { %4520 = vmatprep.subr.bf16.mxu1 %v16217_v9  ;;  %v16289_v9 = vld [vmem:[%s17898_s18 + $0x624] ss:$8 sps:$4 sm:$0xff]  }
 0x19c   : > { %3898 = vmatpush1.bf16.msra.mxu0 %v16212_v10  ;;  %v16284_v10 = vld [vmem:[%s17893_s24 + $0x620] ss:$8 sps:$4 sm:$0xff]  }
 0x19d   : > { %4521 = vmatpush1.bf16.msra.mxu1 %v16215_v11  ;;  %3899 = vmatprep.subr.bf16.mxu0 %v16220_v12  ;;  %v16287_v11 = vld [vmem:[%s17898_s18 + $0x620] ss:$8 sps:$4 sm:$0xff]   ;;  %v16292_v12 = vld [vmem:[%s17893_s24 + $0x634] ss:$8 sps:$4 sm:$0xff]  }
 0x19e   : > { %4522 = vmatprep.subr.bf16.mxu1 %v16223_v13  ;;  %v16295_v13 = vld [vmem:[%s17898_s18 + $0x634] ss:$8 sps:$4 sm:$0xff]  }
 0x1a0   : > { %3900 = vmatpush1.bf16.msra.mxu0 %v16218_v14  ;;  %v16290_v14 = vld [vmem:[%s17893_s24 + $0x630] ss:$8 sps:$4 sm:$0xff]  }
 0x1a1   : > { %4523 = vmatpush1.bf16.msra.mxu1 %v16221_v15  ;;  %3901 = vmatprep.subr.bf16.mxu0 %v16226_v16  ;;  %v16293_v15 = vld [vmem:[%s17898_s18 + $0x630] ss:$8 sps:$4 sm:$0xff]   ;;  %v16298_v16 = vld [vmem:[%s17893_s24 + $0x644] ss:$8 sps:$4 sm:$0xff]  }
 0x1a2   : > { %4524 = vmatprep.subr.bf16.mxu1 %v16229_v17  ;;  %v16301_v17 = vld [vmem:[%s17898_s18 + $0x644] ss:$8 sps:$4 sm:$0xff]  }
 0x1a4   : > { %3902 = vmatpush1.bf16.msra.mxu0 %v16224_v18  ;;  %v16296_v18 = vld [vmem:[%s17893_s24 + $0x640] ss:$8 sps:$4 sm:$0xff]  }
 0x1a5   : > { %4525 = vmatpush1.bf16.msra.mxu1 %v16227_v20  ;;  %3903 = vmatprep.subr.bf16.mxu0 %v16232_v21  ;;  %v16299_v20 = vld [vmem:[%s17898_s18 + $0x640] ss:$8 sps:$4 sm:$0xff]   ;;  %v16304_v21 = vld [vmem:[%s17893_s24 + $0x654] ss:$8 sps:$4 sm:$0xff]  }
 0x1a6   : > { %4526 = vmatprep.subr.bf16.mxu1 %v16235_v22  ;;  %v16307_v22 = vld [vmem:[%s17898_s18 + $0x654] ss:$8 sps:$4 sm:$0xff]  }
 0x1a8   : > { %3904 = vmatpush1.bf16.msra.mxu0 %v16230_v23  ;;  %v16302_v23 = vld [vmem:[%s17893_s24 + $0x650] ss:$8 sps:$4 sm:$0xff]  }
 0x1a9   : > { %4527 = vmatpush1.bf16.msra.mxu1 %v16233_v24  ;;  %3905 = vmatprep.subr.bf16.mxu0 %v16238_v26  ;;  %v16305_v24 = vld [vmem:[%s17898_s18 + $0x650] ss:$8 sps:$4 sm:$0xff]   ;;  %v16310_v26 = vld [vmem:[%s17893_s24 + $0x664] ss:$8 sps:$4 sm:$0xff]  }
 0x1aa   : > { %4528 = vmatprep.subr.bf16.mxu1 %v16241_v27  ;;  %v16313_v27 = vld [vmem:[%s17898_s18 + $0x664] ss:$8 sps:$4 sm:$0xff]  }
 0x1ac   : > { %3906 = vmatpush1.bf16.msra.mxu0 %v16236_v28  ;;  %v16308_v28 = vld [vmem:[%s17893_s24 + $0x660] ss:$8 sps:$4 sm:$0xff]  }
 0x1ad   : > { %4529 = vmatpush1.bf16.msra.mxu1 %v16239_v29  ;;  %3907 = vmatprep.subr.bf16.mxu0 %v16244_v30  ;;  %v16311_v29 = vld [vmem:[%s17898_s18 + $0x660] ss:$8 sps:$4 sm:$0xff]   ;;  %v16316_v30 = vld [vmem:[%s17893_s24 + $0x674] ss:$8 sps:$4 sm:$0xff]  }
 0x1ae   : > { %4530 = vmatprep.subr.bf16.mxu1 %v16247_v31  ;;  %v16319_v31 = vld [vmem:[%s17898_s18 + $0x674] ss:$8 sps:$4 sm:$0xff]  }
 0x1b0   : > { %3908 = vmatpush1.bf16.msra.mxu0 %v16242_v33  ;;  %v16317_v33 = vld [vmem:[%s17898_s18 + $0x670] ss:$8 sps:$4 sm:$0xff]  }
 0x1b1   : > { %4531 = vmatpush1.bf16.msra.mxu1 %v16245_v35  ;;  %3909 = vmatprep.subr.bf16.mxu0 %v16250_v36  ;;  %v16322_v35 = vld [vmem:[%s17893_s24 + $0x684] ss:$8 sps:$4 sm:$0xff]  }
 0x1b2   : > { %4532 = vmatprep.subr.bf16.mxu1 %v16253_v37  ;;  %v16325_v36 = vld [vmem:[%s17898_s18 + $0x684] ss:$8 sps:$4 sm:$0xff]   ;;  %v16320_v37 = vld [vmem:[%s17893_s24 + $0x680] ss:$8 sps:$4 sm:$0xff]  }
 0x1b4   : > { %3910 = vmatpush1.bf16.msra.mxu0 %v16248_v39  ;;  %v16323_v39 = vld [vmem:[%s17898_s18 + $0x680] ss:$8 sps:$4 sm:$0xff]  }
 0x1b5   : > { %4533 = vmatpush1.bf16.msra.mxu1 %v16251_v40  ;;  %3911 = vmatprep.subr.bf16.mxu0 %v16256_v41  ;;  %v16328_v40 = vld [vmem:[%s17893_s24 + $0x694] ss:$8 sps:$4 sm:$0xff]  }
 0x1b6   : > { %4534 = vmatprep.subr.bf16.mxu1 %v16259_v42  ;;  %v18402_v50 = vpop.f32.mrb[0].mxu0  ;;  %v16331_v41 = vld [vmem:[%s17898_s18 + $0x694] ss:$8 sps:$4 sm:$0xff]   ;;  %v16326_v42 = vld [vmem:[%s17893_s24 + $0x690] ss:$8 sps:$4 sm:$0xff]  }
 0x1b7   : > { %v18407_v52 = vpop.f32.mrb[1].mxu0 }
 0x1b8   : > { %v1503_v53 = vpop.f32.mrb[2].mxu0  ;;  %3912 = vmatpush1.bf16.msra.mxu0 %v16254_v45  ;;  %v16334_v45 = vld [vmem:[%s17893_s24 + $0x6a4] ss:$8 sps:$4 sm:$0xff]  }
 0x1b9   : > { %4535 = vmatpush1.bf16.msra.mxu1 %v16257_v47  ;;  %v18412_v56 = vadd.f32 %v1503_v53, %v18405_v51  ;;  %v18414_v57 = vpop.f32.mrb[3].mxu0  ;;  %3913 = vmatprep.subr.bf16.mxu0 %v16262_v48  ;;  %v16337_v47 = vld [vmem:[%s17898_s18 + $0x6a4] ss:$8 sps:$4 sm:$0xff]   ;;  %v16332_v48 = vld [vmem:[%s17893_s24 + $0x6a0] ss:$8 sps:$4 sm:$0xff]  }
 0x1ba   : > { %4536 = vmatprep.subr.bf16.mxu1 %v16265_v49  ;;  %v16335_v49 = vld [vmem:[%s17898_s18 + $0x6a0] ss:$8 sps:$4 sm:$0xff]   ;;  %v16340_v53 = vld [vmem:[%s17893_s24 + $0x6b4] ss:$8 sps:$4 sm:$0xff]  }
 0x1bc   : > { %3914 = vmatpush1.bf16.msra.mxu0 %v16260_v54  ;;  %v16343_v54 = vld [vmem:[%s17898_s18 + $0x6b4] ss:$8 sps:$4 sm:$0xff]  }
 0x1bd   : > { %4537 = vmatpush1.bf16.msra.mxu1 %v16263_v55  ;;  %3915 = vmatprep.subr.bf16.mxu0 %v16268_v58  ;;  %v16338_v55 = vld [vmem:[%s17893_s24 + $0x6b0] ss:$8 sps:$4 sm:$0xff]  }
 0x1be   : > { %4538 = vmatprep.subr.bf16.mxu1 %v16271_v59  ;;  %v16341_v58 = vld [vmem:[%s17898_s18 + $0x6b0] ss:$8 sps:$4 sm:$0xff]   ;;  %v16346_v59 = vld [vmem:[%s17893_s24 + $0x6c4] ss:$8 sps:$4 sm:$0xff]  }
 0x1c0   : > { %3916 = vmatpush1.bf16.msra.mxu0 %v16266_v61  ;;  %v16349_v61 = vld [vmem:[%s17898_s18 + $0x6c4] ss:$8 sps:$4 sm:$0xff]  }
 0x1c1   : > { %4539 = vmatpush1.bf16.msra.mxu1 %v16269_v62  ;;  %3928 = vmatprep.subr.bf16.mxu0 %v16274_v0  ;;  %v16344_v62 = vld [vmem:[%s17893_s24 + $0x6c0] ss:$8 sps:$4 sm:$0xff]  }
 0x1c2   : > { %4551 = vmatprep.subr.bf16.mxu1 %v16277_v1  ;;  %v16347_v0 = vld [vmem:[%s17898_s18 + $0x6c0] ss:$8 sps:$4 sm:$0xff]   ;;  %v16352_v1 = vld [vmem:[%s17893_s24 + $0x6d4] ss:$8 sps:$4 sm:$0xff]  }
 0x1c3   : > { %3918 = vmatmul.mubr.bf16.vlgmr.msra.gmra.mrb[8].mxu0 %v18054_v19 }
 0x1c4   : > { %4541 = vmatmul.mubr.bf16.vlgmr.msra.gmra.mrb[8].mxu1 %v18054_v19  ;;  %3929 = vmatpush1.bf16.msra.mxu0 %v16272_v2  ;;  %v16355_v2 = vld [vmem:[%s17898_s18 + $0x6d4] ss:$8 sps:$4 sm:$0xff]  }
 0x1c5   : > { %4552 = vmatpush1.bf16.msra.mxu1 %v16275_v3  ;;  %3930 = vmatprep.subr.bf16.mxu0 %v16280_v4  ;;  %v16350_v3 = vld [vmem:[%s17893_s24 + $0x6d0] ss:$8 sps:$4 sm:$0xff]  }
 0x1c6   : > { %4553 = vmatprep.subr.bf16.mxu1 %v16283_v5  ;;  %3960 = vmatprep.mubr.bf16.mxu0 %v18082_v46  ;;  %v16353_v4 = vld [vmem:[%s17898_s18 + $0x6d0] ss:$8 sps:$4 sm:$0xff]   ;;  %v16358_v5 = vld [vmem:[%s17893_s24 + $0x6e4] ss:$8 sps:$4 sm:$0xff]  }
 0x1c7   : > { %4583 = vmatprep.mubr.bf16.mxu1 %v18082_v46 }
 0x1c8   : > { %3931 = vmatpush1.bf16.msra.mxu0 %v16278_v6  ;;  %v16361_v6 = vld [vmem:[%s17898_s18 + $0x6e4] ss:$8 sps:$4 sm:$0xff]  }
 0x1c9   : > { %4554 = vmatpush1.bf16.msra.mxu1 %v16281_v7  ;;  %3932 = vmatprep.subr.bf16.mxu0 %v16286_v8  ;;  %v16356_v7 = vld [vmem:[%s17893_s24 + $0x6e0] ss:$8 sps:$4 sm:$0xff]  }
 0x1ca   : > { %4555 = vmatprep.subr.bf16.mxu1 %v16289_v9  ;;  %v16359_v8 = vld [vmem:[%s17898_s18 + $0x6e0] ss:$8 sps:$4 sm:$0xff]   ;;  %v16364_v9 = vld [vmem:[%s17893_s24 + $0x6f4] ss:$8 sps:$4 sm:$0xff]  }
 0x1cc   : > { %3933 = vmatpush1.bf16.msra.mxu0 %v16284_v10  ;;  %v16367_v10 = vld [vmem:[%s17898_s18 + $0x6f4] ss:$8 sps:$4 sm:$0xff]  }
 0x1cd   : > { %4556 = vmatpush1.bf16.msra.mxu1 %v16287_v11  ;;  %3934 = vmatprep.subr.bf16.mxu0 %v16292_v12  ;;  %v16362_v11 = vld [vmem:[%s17893_s24 + $0x6f0] ss:$8 sps:$4 sm:$0xff]  }
 0x1ce   : > { %4557 = vmatprep.subr.bf16.mxu1 %v16295_v13  ;;  %v16365_v12 = vld [vmem:[%s17898_s18 + $0x6f0] ss:$8 sps:$4 sm:$0xff]   ;;  %v16370_v13 = vld [vmem:[%s17893_s24 + $0x704] ss:$8 sps:$4 sm:$0xff]  }
 0x1d0   : > { %3935 = vmatpush1.bf16.msra.mxu0 %v16290_v14  ;;  %v16373_v14 = vld [vmem:[%s17898_s18 + $0x704] ss:$8 sps:$4 sm:$0xff]  }
 0x1d1   : > { %4558 = vmatpush1.bf16.msra.mxu1 %v16293_v15  ;;  %3936 = vmatprep.subr.bf16.mxu0 %v16298_v16  ;;  %v16368_v15 = vld [vmem:[%s17893_s24 + $0x700] ss:$8 sps:$4 sm:$0xff]  }
 0x1d2   : > { %4559 = vmatprep.subr.bf16.mxu1 %v16301_v17  ;;  %v16371_v16 = vld [vmem:[%s17898_s18 + $0x700] ss:$8 sps:$4 sm:$0xff]   ;;  %v16376_v17 = vld [vmem:[%s17893_s24 + $0x714] ss:$8 sps:$4 sm:$0xff]  }
 0x1d4   : > { %3937 = vmatpush1.bf16.msra.mxu0 %v16296_v18  ;;  %v16379_v18 = vld [vmem:[%s17898_s18 + $0x714] ss:$8 sps:$4 sm:$0xff]  }
 0x1d5   : > { %4560 = vmatpush1.bf16.msra.mxu1 %v16299_v20  ;;  %3938 = vmatprep.subr.bf16.mxu0 %v16304_v21  ;;  %v16374_v20 = vld [vmem:[%s17893_s24 + $0x710] ss:$8 sps:$4 sm:$0xff]  }
 0x1d6   : > { %4561 = vmatprep.subr.bf16.mxu1 %v16307_v22  ;;  %v16377_v21 = vld [vmem:[%s17898_s18 + $0x710] ss:$8 sps:$4 sm:$0xff]   ;;  %v16382_v22 = vld [vmem:[%s17893_s24 + $0x724] ss:$8 sps:$4 sm:$0xff]  }
 0x1d8   : > { %3939 = vmatpush1.bf16.msra.mxu0 %v16302_v23  ;;  %v16385_v23 = vld [vmem:[%s17898_s18 + $0x724] ss:$8 sps:$4 sm:$0xff]  }
 0x1d9   : > { %4562 = vmatpush1.bf16.msra.mxu1 %v16305_v24  ;;  %3940 = vmatprep.subr.bf16.mxu0 %v16310_v26  ;;  %v16380_v24 = vld [vmem:[%s17893_s24 + $0x720] ss:$8 sps:$4 sm:$0xff]  }
 0x1da   : > { %4563 = vmatprep.subr.bf16.mxu1 %v16313_v27  ;;  %v16383_v26 = vld [vmem:[%s17898_s18 + $0x720] ss:$8 sps:$4 sm:$0xff]   ;;  %v16388_v27 = vld [vmem:[%s17893_s24 + $0x734] ss:$8 sps:$4 sm:$0xff]  }
 0x1dc   : > { %3941 = vmatpush1.bf16.msra.mxu0 %v16308_v28  ;;  %v16391_v28 = vld [vmem:[%s17898_s18 + $0x734] ss:$8 sps:$4 sm:$0xff]  }
 0x1dd   : > { %4564 = vmatpush1.bf16.msra.mxu1 %v16311_v29  ;;  %3942 = vmatprep.subr.bf16.mxu0 %v16316_v30  ;;  %v16386_v29 = vld [vmem:[%s17893_s24 + $0x730] ss:$8 sps:$4 sm:$0xff]  }
 0x1de   : > { %4565 = vmatprep.subr.bf16.mxu1 %v16319_v31  ;;  %v16389_v30 = vld [vmem:[%s17898_s18 + $0x730] ss:$8 sps:$4 sm:$0xff]   ;;  %v16394_v31 = vld [vmem:[%s17893_s24 + $0x744] ss:$8 sps:$4 sm:$0xff]  }
 0x1e0   : > { %3943 = vmatpush1.bf16.msra.mxu0 %v16314_v32  ;;  %v16397_v32 = vld [vmem:[%s17898_s18 + $0x744] ss:$8 sps:$4 sm:$0xff]  }
 0x1e1   : > { %4566 = vmatpush1.bf16.msra.mxu1 %v16317_v33  ;;  %3944 = vmatprep.subr.bf16.mxu0 %v16322_v35  ;;  %v16392_v33 = vld [vmem:[%s17893_s24 + $0x740] ss:$8 sps:$4 sm:$0xff]  }
 0x1e2   : > { %4567 = vmatprep.subr.bf16.mxu1 %v16325_v36  ;;  %v16395_v35 = vld [vmem:[%s17898_s18 + $0x740] ss:$8 sps:$4 sm:$0xff]   ;;  %v16400_v36 = vld [vmem:[%s17893_s24 + $0x754] ss:$8 sps:$4 sm:$0xff]  }
 0x1e4   : > { %3945 = vmatpush1.bf16.msra.mxu0 %v16320_v37  ;;  %v16403_v37 = vld [vmem:[%s17898_s18 + $0x754] ss:$8 sps:$4 sm:$0xff]  }
 0x1e5   : > { %4568 = vmatpush1.bf16.msra.mxu1 %v16323_v39  ;;  %3946 = vmatprep.subr.bf16.mxu0 %v16328_v40  ;;  %v16398_v39 = vld [vmem:[%s17893_s24 + $0x750] ss:$8 sps:$4 sm:$0xff]  }
 0x1e6   : > { %4569 = vmatprep.subr.bf16.mxu1 %v16331_v41  ;;  %v16401_v40 = vld [vmem:[%s17898_s18 + $0x750] ss:$8 sps:$4 sm:$0xff]   ;;  %v16406_v41 = vld [vmem:[%s17893_s24 + $0x764] ss:$8 sps:$4 sm:$0xff]  }
 0x1e8   : > { %3947 = vmatpush1.bf16.msra.mxu0 %v16326_v42  ;;  %v16409_v42 = vld [vmem:[%s17898_s18 + $0x764] ss:$8 sps:$4 sm:$0xff]  }
 0x1e9   : > { %4570 = vmatpush1.bf16.msra.mxu1 %v16329_v43  ;;  %3948 = vmatprep.subr.bf16.mxu0 %v16334_v45  ;;  %v16404_v43 = vld [vmem:[%s17893_s24 + $0x760] ss:$8 sps:$4 sm:$0xff]  }
 0x1ea   : > { %4571 = vmatprep.subr.bf16.mxu1 %v16337_v47  ;;  %v16407_v45 = vld [vmem:[%s17898_s18 + $0x760] ss:$8 sps:$4 sm:$0xff]   ;;  %v16412_v47 = vld [vmem:[%s17893_s24 + $0x774] ss:$8 sps:$4 sm:$0xff]  }
 0x1ec   : > { %3949 = vmatpush1.bf16.msra.mxu0 %v16332_v48  ;;  %v16415_v48 = vld [vmem:[%s17898_s18 + $0x774] ss:$8 sps:$4 sm:$0xff]  }
 0x1ed   : > { %4572 = vmatpush1.bf16.msra.mxu1 %v16335_v49  ;;  %3950 = vmatprep.subr.bf16.mxu0 %v16340_v53  ;;  %v16410_v49 = vld [vmem:[%s17893_s24 + $0x770] ss:$8 sps:$4 sm:$0xff]  }
 0x1ee   : > { %4573 = vmatprep.subr.bf16.mxu1 %v16343_v54  ;;  %v16413_v53 = vld [vmem:[%s17898_s18 + $0x770] ss:$8 sps:$4 sm:$0xff]   ;;  %v16418_v54 = vld [vmem:[%s17893_s24 + $0x784] ss:$8 sps:$4 sm:$0xff]  }
 0x1f0   : > { %3951 = vmatpush1.bf16.msra.mxu0 %v16338_v55  ;;  %v16421_v55 = vld [vmem:[%s17898_s18 + $0x784] ss:$8 sps:$4 sm:$0xff]  }
 0x1f1   : > { %4574 = vmatpush1.bf16.msra.mxu1 %v16341_v58  ;;  %3952 = vmatprep.subr.bf16.mxu0 %v16346_v59  ;;  %v16416_v58 = vld [vmem:[%s17893_s24 + $0x780] ss:$8 sps:$4 sm:$0xff]  }
 0x1f2   : > { %4575 = vmatprep.subr.bf16.mxu1 %v16349_v61  ;;  %v16419_v59 = vld [vmem:[%s17898_s18 + $0x780] ss:$8 sps:$4 sm:$0xff]   ;;  %v16424_v61 = vld [vmem:[%s17893_s24 + $0x794] ss:$8 sps:$4 sm:$0xff]  }
 0x1f4   : > { %3953 = vmatpush1.bf16.msra.mxu0 %v16344_v62  ;;  %v16427_v62 = vld [vmem:[%s17898_s18 + $0x794] ss:$8 sps:$4 sm:$0xff]  }
 0x1f5   : > { %4576 = vmatpush1.bf16.msra.mxu1 %v16347_v0  ;;  %3954 = vmatprep.subr.bf16.mxu0 %v16352_v1  ;;  %v16422_v0 = vld [vmem:[%s17893_s24 + $0x790] ss:$8 sps:$4 sm:$0xff]  }
 0x1f6   : > { %4577 = vmatprep.subr.bf16.mxu1 %v16355_v2  ;;  %v16425_v1 = vld [vmem:[%s17898_s18 + $0x790] ss:$8 sps:$4 sm:$0xff]   ;;  %v16430_v2 = vld [vmem:[%s17893_s24 + $0x7a4] ss:$8 sps:$4 sm:$0xff]  }
 0x1f8   : > { %3955 = vmatpush1.bf16.msra.mxu0 %v16350_v3  ;;  %v16433_v3 = vld [vmem:[%s17898_s18 + $0x7a4] ss:$8 sps:$4 sm:$0xff]  }
 0x1f9   : > { %4578 = vmatpush1.bf16.msra.mxu1 %v16353_v4  ;;  %3956 = vmatprep.subr.bf16.mxu0 %v16358_v5  ;;  %v16428_v4 = vld [vmem:[%s17893_s24 + $0x7a0] ss:$8 sps:$4 sm:$0xff]  }
 0x1fa   : > { %4579 = vmatprep.subr.bf16.mxu1 %v16361_v6  ;;  %v16431_v5 = vld [vmem:[%s17898_s18 + $0x7a0] ss:$8 sps:$4 sm:$0xff]   ;;  %v16436_v6 = vld [vmem:[%s17893_s24 + $0x7b4] ss:$8 sps:$4 sm:$0xff]  }
 0x1fc   : > { %3957 = vmatpush1.bf16.msra.mxu0 %v16356_v7  ;;  %v16439_v7 = vld [vmem:[%s17898_s18 + $0x7b4] ss:$8 sps:$4 sm:$0xff]  }
 0x1fd   : > { %4580 = vmatpush1.bf16.msra.mxu1 %v16359_v8  ;;  %3958 = vmatprep.subr.bf16.mxu0 %v16364_v9  ;;  %v16434_v8 = vld [vmem:[%s17893_s24 + $0x7b0] ss:$8 sps:$4 sm:$0xff]  }
 0x1fe   : > { %4581 = vmatprep.subr.bf16.mxu1 %v16367_v10  ;;  %v16437_v9 = vld [vmem:[%s17898_s18 + $0x7b0] ss:$8 sps:$4 sm:$0xff]   ;;  %v16442_v10 = vld [vmem:[%s17893_s24 + $0x7c4] ss:$8 sps:$4 sm:$0xff]  }
 0x200   : > { %3959 = vmatpush1.bf16.msra.mxu0 %v16362_v11  ;;  %v16445_v11 = vld [vmem:[%s17898_s18 + $0x7c4] ss:$8 sps:$4 sm:$0xff]  }
 0x201   : > { %4582 = vmatpush1.bf16.msra.mxu1 %v16365_v12  ;;  %3971 = vmatprep.subr.bf16.mxu0 %v16370_v13  ;;  %v16440_v12 = vld [vmem:[%s17893_s24 + $0x7c0] ss:$8 sps:$4 sm:$0xff]  }
 0x202   : > { %4594 = vmatprep.subr.bf16.mxu1 %v16373_v14  ;;  %v16443_v13 = vld [vmem:[%s17898_s18 + $0x7c0] ss:$8 sps:$4 sm:$0xff]   ;;  %v16448_v14 = vld [vmem:[%s17893_s24 + $0x7d4] ss:$8 sps:$4 sm:$0xff]  }
 0x203   : > { %3961 = vmatmul.mubr.bf16.vlgmr.msra.gmra.mrb[8].mxu0 %v18124_v25 }
 0x204   : > { %4584 = vmatmul.mubr.bf16.vlgmr.msra.gmra.mrb[8].mxu1 %v18124_v25  ;;  %3972 = vmatpush1.bf16.msra.mxu0 %v16368_v15  ;;  %v16451_v15 = vld [vmem:[%s17898_s18 + $0x7d4] ss:$8 sps:$4 sm:$0xff]  }
 0x205   : > { %4595 = vmatpush1.bf16.msra.mxu1 %v16371_v16  ;;  %3973 = vmatprep.subr.bf16.mxu0 %v16376_v17  ;;  %v16446_v16 = vld [vmem:[%s17893_s24 + $0x7d0] ss:$8 sps:$4 sm:$0xff]  }
 0x206   : > { %4596 = vmatprep.subr.bf16.mxu1 %v16379_v18  ;;  %4003 = vmatprep.mubr.bf16.mxu0 %v17759_v34  ;;  %v16449_v17 = vld [vmem:[%s17898_s18 + $0x7d0] ss:$8 sps:$4 sm:$0xff]   ;;  %v16454_v18 = vld [vmem:[%s17893_s24 + $0x7e4] ss:$8 sps:$4 sm:$0xff]  }
 0x207   : > { %4626 = vmatprep.mubr.bf16.mxu1 %v17759_v34 }
 0x208   : > { %3974 = vmatpush1.bf16.msra.mxu0 %v16374_v20  ;;  %v16457_v20 = vld [vmem:[%s17898_s18 + $0x7e4] ss:$8 sps:$4 sm:$0xff]  }
 0x209   : > { %4597 = vmatpush1.bf16.msra.mxu1 %v16377_v21  ;;  %3975 = vmatprep.subr.bf16.mxu0 %v16382_v22  ;;  %v16452_v21 = vld [vmem:[%s17893_s24 + $0x7e0] ss:$8 sps:$4 sm:$0xff]  }
 0x20a   : > { %4598 = vmatprep.subr.bf16.mxu1 %v16385_v23  ;;  %v16455_v22 = vld [vmem:[%s17898_s18 + $0x7e0] ss:$8 sps:$4 sm:$0xff]   ;;  %v16460_v23 = vld [vmem:[%s17893_s24 + $0x7f4] ss:$8 sps:$4 sm:$0xff]  }
 0x20c   : > { %3976 = vmatpush1.bf16.msra.mxu0 %v16380_v24  ;;  %v16463_v24 = vld [vmem:[%s17898_s18 + $0x7f4] ss:$8 sps:$4 sm:$0xff]  }
 0x20d   : > { %4599 = vmatpush1.bf16.msra.mxu1 %v16383_v26  ;;  %3977 = vmatprep.subr.bf16.mxu0 %v16388_v27  ;;  %v16458_v26 = vld [vmem:[%s17893_s24 + $0x7f0] ss:$8 sps:$4 sm:$0xff]  }
 0x20e   : > { %4600 = vmatprep.subr.bf16.mxu1 %v16391_v28  ;;  %v16461_v27 = vld [vmem:[%s17898_s18 + $0x7f0] ss:$8 sps:$4 sm:$0xff]   ;;  %v16466_v28 = vld [vmem:[%s17893_s24 + $0x804] ss:$8 sps:$4 sm:$0xff]  }
 0x210   : > { %3978 = vmatpush1.bf16.msra.mxu0 %v16386_v29  ;;  %v16469_v29 = vld [vmem:[%s17898_s18 + $0x804] ss:$8 sps:$4 sm:$0xff]  }
 0x211   : > { %4601 = vmatpush1.bf16.msra.mxu1 %v16389_v30  ;;  %3979 = vmatprep.subr.bf16.mxu0 %v16394_v31  ;;  %v1588_v30 = vld [vmem:[%s17903_s20] sm:$0x3] }
 0x212   : > { %4602 = vmatprep.subr.bf16.mxu1 %v16397_v32  ;;  %v16464_v31 = vld [vmem:[%s17893_s24 + $0x800] ss:$8 sps:$4 sm:$0xff]  }
 0x213   : > { %v16467_v32 = vld [vmem:[%s17898_s18 + $0x800] ss:$8 sps:$4 sm:$0xff]  }
 0x214   : > { %3980 = vmatpush1.bf16.msra.mxu0 %v16392_v33  ;;  %v18566_v33 = vrot.slane %v1588_v30, %v18396_v44  ;;  %v16521_v30 = vld [vmem:[%s17898_s18 + $0x890] ss:$8 sps:$4 sm:$0xff]  }
 0x215   : > { %4603 = vmatpush1.bf16.msra.mxu1 %v16395_v35  ;;  %3981 = vmatprep.subr.bf16.mxu0 %v16400_v36  ;;  %v18568_v35 = vpop.f32.mrb[0].mxu1  ;;  %v16472_v36 = vld [vmem:[%s17893_s24 + $0x814] ss:$8 sps:$4 sm:$0xff]  }
 0x216   : > { %4604 = vmatprep.subr.bf16.mxu1 %v16403_v37  ;;  %v18571_v37 = vpop.f32.mrb[1].mxu1 }
 0x218   : > { %3982 = vmatpush1.bf16.msra.mxu0 %v16398_v39  ;;  %v16475_v39 = vld [vmem:[%s17898_s18 + $0x814] ss:$8 sps:$4 sm:$0xff]  }
 0x219   : > { %4605 = vmatpush1.bf16.msra.mxu1 %v16401_v40  ;;  %3983 = vmatprep.subr.bf16.mxu0 %v16406_v41  ;;  %v2124_v40 = vpop.f32.mrb[2].mxu1  ;;  %v16470_v41 = vld [vmem:[%s17893_s24 + $0x810] ss:$8 sps:$4 sm:$0xff]  }
 0x21a   : > { %4606 = vmatprep.subr.bf16.mxu1 %v16409_v42  ;;  %v16473_v42 = vld [vmem:[%s17898_s18 + $0x810] ss:$8 sps:$4 sm:$0xff]  }
 0x21c   : > { %3984 = vmatpush1.bf16.msra.mxu0 %v16404_v43  ;;  %v18577_v43 = vadd.f32 %v2124_v40, %v18566_v33  ;;  %v16532_v40 = vld [vmem:[%s17893_s24 + $0x8b4] ss:$8 sps:$4 sm:$0xff]  }
 0x21d   : > { %4607 = vmatpush1.bf16.msra.mxu1 %v16407_v45  ;;  %3985 = vmatprep.subr.bf16.mxu0 %v16412_v47  ;;  %v18579_v45 = vpop.f32.mrb[3].mxu1  ;;  %v16478_v47 = vld [vmem:[%s17893_s24 + $0x824] ss:$8 sps:$4 sm:$0xff]  }
 0x21e   : > { %4608 = vmatprep.subr.bf16.mxu1 %v16415_v48  ;;  %v16481_v48 = vld [vmem:[%s17898_s18 + $0x824] ss:$8 sps:$4 sm:$0xff]  }
 0x220   : > { %3986 = vmatpush1.bf16.msra.mxu0 %v16410_v49  ;;  %v16476_v49 = vld [vmem:[%s17893_s24 + $0x820] ss:$8 sps:$4 sm:$0xff]  }
 0x221   : > { %4609 = vmatpush1.bf16.msra.mxu1 %v16413_v53  ;;  %5139 = vmatprep.subr.bf16.mxu0 %v16418_v54  ;;  %v16479_v53 = vld [vmem:[%s17898_s18 + $0x820] ss:$8 sps:$4 sm:$0xff]   ;;  %v16484_v54 = vld [vmem:[%s17893_s24 + $0x834] ss:$8 sps:$4 sm:$0xff]  }
 0x222   : > { %5762 = vmatprep.subr.bf16.mxu1 %v16421_v55  ;;  %v16487_v55 = vld [vmem:[%s17898_s18 + $0x834] ss:$8 sps:$4 sm:$0xff]  }
 0x223   : > { %4004 = vmatmul.mubr.bf16.vlgmr.msra.gmra.mrb[8].mxu0 %v18162_v63 }
 0x224   : > { %4627 = vmatmul.mubr.bf16.vlgmr.msra.gmra.mrb[8].mxu1 %v18162_v63  ;;  %5140 = vmatpush1.bf16.msra.mxu0 %v16416_v58  ;;  %v16482_v58 = vld [vmem:[%s17893_s24 + $0x830] ss:$8 sps:$4 sm:$0xff]  }
 0x225   : > { %5763 = vmatpush1.bf16.msra.mxu1 %v16419_v59  ;;  %5141 = vmatprep.subr.bf16.mxu0 %v16424_v61  ;;  %v16485_v59 = vld [vmem:[%s17898_s18 + $0x830] ss:$8 sps:$4 sm:$0xff]   ;;  %v16490_v61 = vld [vmem:[%s17893_s24 + $0x844] ss:$8 sps:$4 sm:$0xff]  }
 0x226   : > { %5764 = vmatprep.subr.bf16.mxu1 %v16427_v62  ;;  %5171 = vmatprep.mubr.bf16.mxu0 %v18030_v60  ;;  %v16493_v62 = vld [vmem:[%s17898_s18 + $0x844] ss:$8 sps:$4 sm:$0xff]  }
 0x227   : > { %5794 = vmatprep.mubr.bf16.mxu1 %v18030_v60 }
 0x228   : > { %5142 = vmatpush1.bf16.msra.mxu0 %v16422_v0  ;;  %v16488_v0 = vld [vmem:[%s17893_s24 + $0x840] ss:$8 sps:$4 sm:$0xff]  }
 0x229   : > { %5765 = vmatpush1.bf16.msra.mxu1 %v16425_v1  ;;  %5143 = vmatprep.subr.bf16.mxu0 %v16430_v2  ;;  %v16491_v1 = vld [vmem:[%s17898_s18 + $0x840] ss:$8 sps:$4 sm:$0xff]   ;;  %v16496_v2 = vld [vmem:[%s17893_s24 + $0x854] ss:$8 sps:$4 sm:$0xff]  }
 0x22a   : > { %5766 = vmatprep.subr.bf16.mxu1 %v16433_v3  ;;  %v16499_v3 = vld [vmem:[%s17898_s18 + $0x854] ss:$8 sps:$4 sm:$0xff]  }
 0x22c   : > { %5144 = vmatpush1.bf16.msra.mxu0 %v16428_v4  ;;  %v13419_v4 = vld [vmem:[%s17883_s22 + $0x2] sm:$0x3] }
 0x22d   : > { %5767 = vmatpush1.bf16.msra.mxu1 %v16431_v5  ;;  %5145 = vmatprep.subr.bf16.mxu0 %v16436_v6  ;;  %v16494_v5 = vld [vmem:[%s17893_s24 + $0x850] ss:$8 sps:$4 sm:$0xff]  }
 0x22e   : > { %5768 = vmatprep.subr.bf16.mxu1 %v16439_v7  ;;  %v16497_v6 = vld [vmem:[%s17898_s18 + $0x850] ss:$8 sps:$4 sm:$0xff]   ;;  %v16502_v7 = vld [vmem:[%s17893_s24 + $0x864] ss:$8 sps:$4 sm:$0xff]  }
 0x230   : > { %5146 = vmatpush1.bf16.msra.mxu0 %v16434_v8  ;;  %v16505_v8 = vld [vmem:[%s17898_s18 + $0x864] ss:$8 sps:$4 sm:$0xff]  }
 0x231   : > { %5769 = vmatpush1.bf16.msra.mxu1 %v16437_v9  ;;  %5147 = vmatprep.subr.bf16.mxu0 %v16442_v10  ;;  %v16500_v10 = vld [vmem:[%s17893_s24 + $0x860] ss:$8 sps:$4 sm:$0xff]  }
 0x232   : > { %5770 = vmatprep.subr.bf16.mxu1 %v16445_v11  ;;  %v16503_v11 = vld [vmem:[%s17898_s18 + $0x860] ss:$8 sps:$4 sm:$0xff]  }
 0x234   : > { %5148 = vmatpush1.bf16.msra.mxu0 %v16440_v12  ;;  %v18605_v12 = vrot.slane %v13419_v4, %v18396_v44  ;;  %v16559_v4 = vld [vmem:[%s17898_s18 + $0x8f4] ss:$8 sps:$4 sm:$0xff]  }
 0x235   : > { %5771 = vmatpush1.bf16.msra.mxu1 %v16443_v13  ;;  %5149 = vmatprep.subr.bf16.mxu0 %v16448_v14 }
 0x236   : > { %5772 = vmatprep.subr.bf16.mxu1 %v16451_v15  ;;  %v16508_v15 = vld [vmem:[%s17893_s24 + $0x874] ss:$8 sps:$4 sm:$0xff]  }
 0x238   : > { %5150 = vmatpush1.bf16.msra.mxu0 %v16446_v16  ;;  %v16511_v16 = vld [vmem:[%s17898_s18 + $0x874] ss:$8 sps:$4 sm:$0xff]  }
 0x239   : > { %5773 = vmatpush1.bf16.msra.mxu1 %v16449_v17  ;;  %5151 = vmatprep.subr.bf16.mxu0 %v16454_v18 }
 0x23a   : > { %5774 = vmatprep.subr.bf16.mxu1 %v16457_v20  ;;  %v16506_v20 = vld [vmem:[%s17893_s24 + $0x870] ss:$8 sps:$4 sm:$0xff]  }
 0x23c   : > { %5152 = vmatpush1.bf16.msra.mxu0 %v16452_v21  ;;  %v16509_v21 = vld [vmem:[%s17898_s18 + $0x870] ss:$8 sps:$4 sm:$0xff]  }
 0x23d   : > { %5775 = vmatpush1.bf16.msra.mxu1 %v16455_v22  ;;  %5153 = vmatprep.subr.bf16.mxu0 %v16460_v23  ;;  %v16514_v22 = vld [vmem:[%s17893_s24 + $0x884] ss:$8 sps:$4 sm:$0xff]  }
 0x23e   : > { %5776 = vmatprep.subr.bf16.mxu1 %v16463_v24  ;;  %v16517_v23 = vld [vmem:[%s17898_s18 + $0x884] ss:$8 sps:$4 sm:$0xff]   ;;  %v16512_v24 = vld [vmem:[%s17893_s24 + $0x880] ss:$8 sps:$4 sm:$0xff]  }
 0x240   : > { %5154 = vmatpush1.bf16.msra.mxu0 %v16458_v26  ;;  %v16515_v26 = vld [vmem:[%s17898_s18 + $0x880] ss:$8 sps:$4 sm:$0xff]  }
 0x241   : > { %5777 = vmatpush1.bf16.msra.mxu1 %v16461_v27  ;;  %5155 = vmatprep.subr.bf16.mxu0 %v16466_v28  ;;  %v16520_v27 = vld [vmem:[%s17893_s24 + $0x894] ss:$8 sps:$4 sm:$0xff]  }
 0x242   : > { %5778 = vmatprep.subr.bf16.mxu1 %v16469_v29  ;;  %v16523_v28 = vld [vmem:[%s17898_s18 + $0x894] ss:$8 sps:$4 sm:$0xff]   ;;  %v16518_v29 = vld [vmem:[%s17893_s24 + $0x890] ss:$8 sps:$4 sm:$0xff]  }
 0x244   : > { %5156 = vmatpush1.bf16.msra.mxu0 %v16464_v31  ;;  %v16526_v31 = vld [vmem:[%s17893_s24 + $0x8a4] ss:$8 sps:$4 sm:$0xff]  }
 0x245   : > { %5779 = vmatpush1.bf16.msra.mxu1 %v16467_v32  ;;  %5157 = vmatprep.subr.bf16.mxu0 %v16472_v36  ;;  %v16529_v32 = vld [vmem:[%s17898_s18 + $0x8a4] ss:$8 sps:$4 sm:$0xff]   ;;  %v16524_v36 = vld [vmem:[%s17893_s24 + $0x8a0] ss:$8 sps:$4 sm:$0xff]  }
 0x246   : > { %5780 = vmatprep.subr.bf16.mxu1 %v16475_v39  ;;  %v16527_v39 = vld [vmem:[%s17898_s18 + $0x8a0] ss:$8 sps:$4 sm:$0xff]  }
 0x248   : > { %5158 = vmatpush1.bf16.msra.mxu0 %v16470_v41  ;;  %v16535_v41 = vld [vmem:[%s17898_s18 + $0x8b4] ss:$8 sps:$4 sm:$0xff]  }
 0x249   : > { %5781 = vmatpush1.bf16.msra.mxu1 %v16473_v42  ;;  %5159 = vmatprep.subr.bf16.mxu0 %v16478_v47  ;;  %v16530_v42 = vld [vmem:[%s17893_s24 + $0x8b0] ss:$8 sps:$4 sm:$0xff]  }
 0x24a   : > { %5782 = vmatprep.subr.bf16.mxu1 %v16481_v48  ;;  %v16533_v47 = vld [vmem:[%s17898_s18 + $0x8b0] ss:$8 sps:$4 sm:$0xff]   ;;  %v16538_v48 = vld [vmem:[%s17893_s24 + $0x8c4] ss:$8 sps:$4 sm:$0xff]  }
 0x24c   : > { %5160 = vmatpush1.bf16.msra.mxu0 %v16476_v49  ;;  %v16541_v49 = vld [vmem:[%s17898_s18 + $0x8c4] ss:$8 sps:$4 sm:$0xff]  }
 0x24d   : > { %5783 = vmatpush1.bf16.msra.mxu1 %v16479_v53  ;;  %5161 = vmatprep.subr.bf16.mxu0 %v16484_v54  ;;  %v16536_v53 = vld [vmem:[%s17893_s24 + $0x8c0] ss:$8 sps:$4 sm:$0xff]  }
 0x24e   : > { %5784 = vmatprep.subr.bf16.mxu1 %v16487_v55  ;;  %v16539_v54 = vld [vmem:[%s17898_s18 + $0x8c0] ss:$8 sps:$4 sm:$0xff]   ;;  %v16544_v55 = vld [vmem:[%s17893_s24 + $0x8d4] ss:$8 sps:$4 sm:$0xff]  }
 0x250   : > { %5162 = vmatpush1.bf16.msra.mxu0 %v16482_v58  ;;  %v16547_v58 = vld [vmem:[%s17898_s18 + $0x8d4] ss:$8 sps:$4 sm:$0xff]  }
 0x251   : > { %5785 = vmatpush1.bf16.msra.mxu1 %v16485_v59  ;;  %5163 = vmatprep.subr.bf16.mxu0 %v16490_v61  ;;  %v16542_v59 = vld [vmem:[%s17893_s24 + $0x8d0] ss:$8 sps:$4 sm:$0xff]  }
 0x252   : > { %5786 = vmatprep.subr.bf16.mxu1 %v16493_v62  ;;  %v16545_v61 = vld [vmem:[%s17898_s18 + $0x8d0] ss:$8 sps:$4 sm:$0xff]   ;;  %v16550_v62 = vld [vmem:[%s17893_s24 + $0x8e4] ss:$8 sps:$4 sm:$0xff]  }
 0x254   : > { %5164 = vmatpush1.bf16.msra.mxu0 %v16488_v0  ;;  %v16553_v0 = vld [vmem:[%s17898_s18 + $0x8e4] ss:$8 sps:$4 sm:$0xff]  }
 0x255   : > { %5787 = vmatpush1.bf16.msra.mxu1 %v16491_v1  ;;  %5165 = vmatprep.subr.bf16.mxu0 %v16496_v2  ;;  %v16548_v1 = vld [vmem:[%s17893_s24 + $0x8e0] ss:$8 sps:$4 sm:$0xff]  }
 0x256   : > { %5788 = vmatprep.subr.bf16.mxu1 %v16499_v3  ;;  %v18600_v9 = vpop.f32.mrb[4].mxu0  ;;  %v16551_v2 = vld [vmem:[%s17898_s18 + $0x8e0] ss:$8 sps:$4 sm:$0xff]   ;;  %v16556_v3 = vld [vmem:[%s17893_s24 + $0x8f4] ss:$8 sps:$4 sm:$0xff]  }
 0x257   : > { %v18607_v13 = vpop.f32.mrb[5].mxu0 }
 0x258   : > { %v2755_v14 = vpop.f32.mrb[6].mxu0  ;;  %5166 = vmatpush1.bf16.msra.mxu0 %v16494_v5  ;;  %v16554_v5 = vld [vmem:[%s17893_s24 + $0x8f0] ss:$8 sps:$4 sm:$0xff]  }
 0x259   : > { %5789 = vmatpush1.bf16.msra.mxu1 %v16497_v6  ;;  %v18612_v17 = vadd.f32 %v2755_v14, %v18605_v12  ;;  %v18614_v18 = vpop.f32.mrb[7].mxu0  ;;  %5167 = vmatprep.subr.bf16.mxu0 %v16502_v7  ;;  %v16557_v6 = vld [vmem:[%s17898_s18 + $0x8f0] ss:$8 sps:$4 sm:$0xff]   ;;  %v16562_v7 = vld [vmem:[%s17893_s24 + $0x904] ss:$8 sps:$4 sm:$0xff]  }
 0x25a   : > { %5790 = vmatprep.subr.bf16.mxu1 %v16505_v8  ;;  %v16565_v8 = vld [vmem:[%s17898_s18 + $0x904] ss:$8 sps:$4 sm:$0xff]   ;;  %v16568_v14 = vld [vmem:[%s17893_s24 + $0x914] ss:$8 sps:$4 sm:$0xff]  }
 0x25c   : > { %5168 = vmatpush1.bf16.msra.mxu0 %v16500_v10  ;;  %v16560_v10 = vld [vmem:[%s17893_s24 + $0x900] ss:$8 sps:$4 sm:$0xff]  }
 0x25d   : > { %5791 = vmatpush1.bf16.msra.mxu1 %v16503_v11  ;;  %5169 = vmatprep.subr.bf16.mxu0 %v16508_v15  ;;  %v16563_v11 = vld [vmem:[%s17898_s18 + $0x900] ss:$8 sps:$4 sm:$0xff]   ;;  %v16571_v15 = vld [vmem:[%s17898_s18 + $0x914] ss:$8 sps:$4 sm:$0xff]  }
 0x25e   : > { %5792 = vmatprep.subr.bf16.mxu1 %v16511_v16  ;;  %v16566_v16 = vld [vmem:[%s17893_s24 + $0x910] ss:$8 sps:$4 sm:$0xff]  }
 0x260   : > { %5170 = vmatpush1.bf16.msra.mxu0 %v16506_v20  ;;  %v16569_v20 = vld [vmem:[%s17898_s18 + $0x910] ss:$8 sps:$4 sm:$0xff]  }
 0x261   : > { %5793 = vmatpush1.bf16.msra.mxu1 %v16509_v21  ;;  %5182 = vmatprep.subr.bf16.mxu0 %v16514_v22  ;;  %v16574_v21 = vld [vmem:[%s17893_s24 + $0x924] ss:$8 sps:$4 sm:$0xff]  }
 0x262   : > { %5805 = vmatprep.subr.bf16.mxu1 %v16517_v23  ;;  %v16577_v22 = vld [vmem:[%s17898_s18 + $0x924] ss:$8 sps:$4 sm:$0xff]   ;;  %v16572_v23 = vld [vmem:[%s17893_s24 + $0x920] ss:$8 sps:$4 sm:$0xff]  }
 0x263   : > { %5172 = vmatmul.mubr.bf16.vlgmr.msra.gmra.mrb[12].mxu0 %v18054_v19 }
 0x264   : > { %5795 = vmatmul.mubr.bf16.vlgmr.msra.gmra.mrb[12].mxu1 %v18054_v19  ;;  %5183 = vmatpush1.bf16.msra.mxu0 %v16512_v24  ;;  %v16575_v24 = vld [vmem:[%s17898_s18 + $0x920] ss:$8 sps:$4 sm:$0xff]  }
 0x265   : > { %5806 = vmatpush1.bf16.msra.mxu1 %v16515_v26  ;;  %5184 = vmatprep.subr.bf16.mxu0 %v16520_v27  ;;  %v16580_v26 = vld [vmem:[%s17893_s24 + $0x934] ss:$8 sps:$4 sm:$0xff]  }
 0x266   : > { %5807 = vmatprep.subr.bf16.mxu1 %v16523_v28  ;;  %5214 = vmatprep.mubr.bf16.mxu0 %v18082_v46  ;;  %v16583_v27 = vld [vmem:[%s17898_s18 + $0x934] ss:$8 sps:$4 sm:$0xff]   ;;  %v16578_v28 = vld [vmem:[%s17893_s24 + $0x930] ss:$8 sps:$4 sm:$0xff]  }
 0x267   : > { %5837 = vmatprep.mubr.bf16.mxu1 %v18082_v46 }
 0x268   : > { %5185 = vmatpush1.bf16.msra.mxu0 %v16518_v29  ;;  %v16581_v29 = vld [vmem:[%s17898_s18 + $0x930] ss:$8 sps:$4 sm:$0xff]  }
 0x269   : > { %5808 = vmatpush1.bf16.msra.mxu1 %v16521_v30  ;;  %5186 = vmatprep.subr.bf16.mxu0 %v16526_v31  ;;  %v16586_v30 = vld [vmem:[%s17893_s24 + $0x944] ss:$8 sps:$4 sm:$0xff]  }
 0x26a   : > { %5809 = vmatprep.subr.bf16.mxu1 %v16529_v32  ;;  %v16589_v31 = vld [vmem:[%s17898_s18 + $0x944] ss:$8 sps:$4 sm:$0xff]   ;;  %v16584_v32 = vld [vmem:[%s17893_s24 + $0x940] ss:$8 sps:$4 sm:$0xff]  }
 0x26c   : > { %5187 = vmatpush1.bf16.msra.mxu0 %v16524_v36  ;;  %v16587_v36 = vld [vmem:[%s17898_s18 + $0x940] ss:$8 sps:$4 sm:$0xff]  }
 0x26d   : > { %5810 = vmatpush1.bf16.msra.mxu1 %v16527_v39  ;;  %5188 = vmatprep.subr.bf16.mxu0 %v16532_v40  ;;  %v16592_v39 = vld [vmem:[%s17893_s24 + $0x954] ss:$8 sps:$4 sm:$0xff]  }
 0x26e   : > { %5811 = vmatprep.subr.bf16.mxu1 %v16535_v41  ;;  %v16595_v40 = vld [vmem:[%s17898_s18 + $0x954] ss:$8 sps:$4 sm:$0xff]   ;;  %v16590_v41 = vld [vmem:[%s17893_s24 + $0x950] ss:$8 sps:$4 sm:$0xff]  }
 0x270   : > { %5189 = vmatpush1.bf16.msra.mxu0 %v16530_v42  ;;  %v16593_v42 = vld [vmem:[%s17898_s18 + $0x950] ss:$8 sps:$4 sm:$0xff]  }
 0x271   : > { %5812 = vmatpush1.bf16.msra.mxu1 %v16533_v47  ;;  %5190 = vmatprep.subr.bf16.mxu0 %v16538_v48  ;;  %v16598_v47 = vld [vmem:[%s17893_s24 + $0x964] ss:$8 sps:$4 sm:$0xff]  }
 0x272   : > { %5813 = vmatprep.subr.bf16.mxu1 %v16541_v49  ;;  %v16601_v48 = vld [vmem:[%s17898_s18 + $0x964] ss:$8 sps:$4 sm:$0xff]   ;;  %v16596_v49 = vld [vmem:[%s17893_s24 + $0x960] ss:$8 sps:$4 sm:$0xff]  }
 0x274   : > { %5191 = vmatpush1.bf16.msra.mxu0 %v16536_v53  ;;  %v16599_v53 = vld [vmem:[%s17898_s18 + $0x960] ss:$8 sps:$4 sm:$0xff]  }
 0x275   : > { %5814 = vmatpush1.bf16.msra.mxu1 %v16539_v54  ;;  %5192 = vmatprep.subr.bf16.mxu0 %v16544_v55  ;;  %v16604_v54 = vld [vmem:[%s17893_s24 + $0x974] ss:$8 sps:$4 sm:$0xff]  }
 0x276   : > { %5815 = vmatprep.subr.bf16.mxu1 %v16547_v58  ;;  %v16607_v55 = vld [vmem:[%s17898_s18 + $0x974] ss:$8 sps:$4 sm:$0xff]   ;;  %v16602_v58 = vld [vmem:[%s17893_s24 + $0x970] ss:$8 sps:$4 sm:$0xff]  }
 0x278   : > { %5193 = vmatpush1.bf16.msra.mxu0 %v16542_v59  ;;  %v16605_v59 = vld [vmem:[%s17898_s18 + $0x970] ss:$8 sps:$4 sm:$0xff]  }
 0x279   : > { %5816 = vmatpush1.bf16.msra.mxu1 %v16545_v61  ;;  %5194 = vmatprep.subr.bf16.mxu0 %v16550_v62  ;;  %v16610_v61 = vld [vmem:[%s17893_s24 + $0x984] ss:$8 sps:$4 sm:$0xff]  }
 0x27a   : > { %5817 = vmatprep.subr.bf16.mxu1 %v16553_v0  ;;  %v16613_v62 = vld [vmem:[%s17898_s18 + $0x984] ss:$8 sps:$4 sm:$0xff]   ;;  %v16608_v0 = vld [vmem:[%s17893_s24 + $0x980] ss:$8 sps:$4 sm:$0xff]  }
 0x27c   : > { %5195 = vmatpush1.bf16.msra.mxu0 %v16548_v1  ;;  %v16611_v1 = vld [vmem:[%s17898_s18 + $0x980] ss:$8 sps:$4 sm:$0xff]  }
 0x27d   : > { %5818 = vmatpush1.bf16.msra.mxu1 %v16551_v2  ;;  %5196 = vmatprep.subr.bf16.mxu0 %v16556_v3  ;;  %v16616_v2 = vld [vmem:[%s17893_s24 + $0x994] ss:$8 sps:$4 sm:$0xff]  }
 0x27e   : > { %5819 = vmatprep.subr.bf16.mxu1 %v16559_v4  ;;  %v16619_v3 = vld [vmem:[%s17898_s18 + $0x994] ss:$8 sps:$4 sm:$0xff]   ;;  %v16614_v4 = vld [vmem:[%s17893_s24 + $0x990] ss:$8 sps:$4 sm:$0xff]  }
 0x280   : > { %5197 = vmatpush1.bf16.msra.mxu0 %v16554_v5  ;;  %v16617_v5 = vld [vmem:[%s17898_s18 + $0x990] ss:$8 sps:$4 sm:$0xff]  }
 0x281   : > { %5820 = vmatpush1.bf16.msra.mxu1 %v16557_v6  ;;  %5198 = vmatprep.subr.bf16.mxu0 %v16562_v7  ;;  %v16622_v6 = vld [vmem:[%s17893_s24 + $0x9a4] ss:$8 sps:$4 sm:$0xff]  }
 0x282   : > { %5821 = vmatprep.subr.bf16.mxu1 %v16565_v8  ;;  %v16625_v7 = vld [vmem:[%s17898_s18 + $0x9a4] ss:$8 sps:$4 sm:$0xff]   ;;  %v16620_v8 = vld [vmem:[%s17893_s24 + $0x9a0] ss:$8 sps:$4 sm:$0xff]  }
 0x284   : > { %5199 = vmatpush1.bf16.msra.mxu0 %v16560_v10  ;;  %v16623_v10 = vld [vmem:[%s17898_s18 + $0x9a0] ss:$8 sps:$4 sm:$0xff]  }
 0x285   : > { %5822 = vmatpush1.bf16.msra.mxu1 %v16563_v11  ;;  %5200 = vmatprep.subr.bf16.mxu0 %v16568_v14  ;;  %v16628_v11 = vld [vmem:[%s17893_s24 + $0x9b4] ss:$8 sps:$4 sm:$0xff]  }
 0x286   : > { %5823 = vmatprep.subr.bf16.mxu1 %v16571_v15  ;;  %v16631_v14 = vld [vmem:[%s17898_s18 + $0x9b4] ss:$8 sps:$4 sm:$0xff]   ;;  %v16626_v15 = vld [vmem:[%s17893_s24 + $0x9b0] ss:$8 sps:$4 sm:$0xff]  }
 0x288   : > { %5201 = vmatpush1.bf16.msra.mxu0 %v16566_v16  ;;  %v16629_v16 = vld [vmem:[%s17898_s18 + $0x9b0] ss:$8 sps:$4 sm:$0xff]  }
 0x289   : > { %5824 = vmatpush1.bf16.msra.mxu1 %v16569_v20  ;;  %5202 = vmatprep.subr.bf16.mxu0 %v16574_v21  ;;  %v16634_v20 = vld [vmem:[%s17893_s24 + $0x9c4] ss:$8 sps:$4 sm:$0xff]  }
 0x28a   : > { %5825 = vmatprep.subr.bf16.mxu1 %v16577_v22  ;;  %v16637_v21 = vld [vmem:[%s17898_s18 + $0x9c4] ss:$8 sps:$4 sm:$0xff]   ;;  %v16632_v22 = vld [vmem:[%s17893_s24 + $0x9c0] ss:$8 sps:$4 sm:$0xff]  }
 0x28c   : > { %5203 = vmatpush1.bf16.msra.mxu0 %v16572_v23  ;;  %v16635_v23 = vld [vmem:[%s17898_s18 + $0x9c0] ss:$8 sps:$4 sm:$0xff]  }
 0x28d   : > { %5826 = vmatpush1.bf16.msra.mxu1 %v16575_v24  ;;  %5204 = vmatprep.subr.bf16.mxu0 %v16580_v26  ;;  %v16640_v24 = vld [vmem:[%s17893_s24 + $0x9d4] ss:$8 sps:$4 sm:$0xff]  }
 0x28e   : > { %5827 = vmatprep.subr.bf16.mxu1 %v16583_v27  ;;  %v16643_v26 = vld [vmem:[%s17898_s18 + $0x9d4] ss:$8 sps:$4 sm:$0xff]   ;;  %v16638_v27 = vld [vmem:[%s17893_s24 + $0x9d0] ss:$8 sps:$4 sm:$0xff]  }
 0x290   : > { %5205 = vmatpush1.bf16.msra.mxu0 %v16578_v28  ;;  %v16641_v28 = vld [vmem:[%s17898_s18 + $0x9d0] ss:$8 sps:$4 sm:$0xff]  }
 0x291   : > { %5828 = vmatpush1.bf16.msra.mxu1 %v16581_v29  ;;  %5206 = vmatprep.subr.bf16.mxu0 %v16586_v30  ;;  %v18715_v29 = vsub.s32 1, %v18388_v38  ;;  %v16646_v30 = vld [vmem:[%s17893_s24 + $0x9e4] ss:$8 sps:$4 sm:$0xff]  }
 0x292   : > { %5829 = vmatprep.subr.bf16.mxu1 %v16589_v31  ;;  %v16649_v31 = vld [vmem:[%s17898_s18 + $0x9e4] ss:$8 sps:$4 sm:$0xff]  }
 0x294   : > { %5207 = vmatpush1.bf16.msra.mxu0 %v16584_v32  ;;  %v16644_v32 = vld [vmem:[%s17893_s24 + $0x9e0] ss:$8 sps:$4 sm:$0xff]  }
 0x295   : > { %5830 = vmatpush1.bf16.msra.mxu1 %v16587_v36  ;;  %5208 = vmatprep.subr.bf16.mxu0 %v16592_v39  ;;  %v16647_v36 = vld [vmem:[%s17898_s18 + $0x9e0] ss:$8 sps:$4 sm:$0xff]  }
 0x296   : > { %5831 = vmatprep.subr.bf16.mxu1 %v16595_v40  ;;  %v17688_v39 = vld [vmem:[%s17883_s22] sm:$0x3] }
 0x297   : > { %v976_v40 = vrot.slane %v17688_v39, %v18715_v29  ;;  %v16692_v39 = vld [vmem:[%s17888_s25 + $0xc0] ss:$8 sps:$4 sm:$0xff]  }
 0x298   : > { %5209 = vmatpush1.bf16.msra.mxu0 %v16590_v41  ;;  %v16652_v41 = vld [vmem:[%s17893_s24 + $0x9f4] ss:$8 sps:$4 sm:$0xff]  }
 0x299   : > { %5832 = vmatpush1.bf16.msra.mxu1 %v16593_v42  ;;  %5210 = vmatprep.subr.bf16.mxu0 %v16598_v47  ;;  %v16655_v42 = vld [vmem:[%s17898_s18 + $0x9f4] ss:$8 sps:$4 sm:$0xff]   ;;  %v16650_v47 = vld [vmem:[%s17893_s24 + $0x9f0] ss:$8 sps:$4 sm:$0xff]   ;;  %s20028_s24 = sld [smem:[#allocation10_spill]] }
 0x29a   : > { %5833 = vmatprep.subr.bf16.mxu1 %v16601_v48  ;;  %v16653_v48 = vld [vmem:[%s17898_s18 + $0x9f0] ss:$8 sps:$4 sm:$0xff]   ;;  %s20029_s18 = scalar_lea.vmem %s19980_s8, %s17905_s27 }
 0x29c   : > { %5211 = vmatpush1.bf16.msra.mxu0 %v16596_v49  ;;  %v15480_v49 = vadd.f32 %v18407_v52, %v976_v40  ;;  %v15479_v52 = vadd.f32 %v18402_v50, %v18405_v51  ;;  %v16662_v50 = vld [vmem:[%s17888_s25 + $0x20] ss:$8 sps:$4 sm:$0xff]   ;;  %v16667_v51 = vld [vmem:[%s17888_s25 + $0x34] ss:$8 sps:$4 sm:$0xff]  }
 0x29d   : > { %5834 = vmatpush1.bf16.msra.mxu1 %v16599_v53  ;;  %5212 = vmatprep.subr.bf16.mxu0 %v16604_v54  ;;  %v16658_v53 = vld [vmem:[%s17888_s25 + $0x4] ss:$8 sps:$4 sm:$0xff]  }
 0x29e   : > { %5835 = vmatprep.subr.bf16.mxu1 %v16607_v55  ;;  %v2130_v54 = vpack.c.bf16 %v15480_v49, %v15480_v49  ;;  %v16656_v55 = vld [vmem:[%s17888_s25] ss:$8 sps:$4 sm:$0xff]  }
 0x29f   : > { %v16698_v49 = vld [vmem:[%s17888_s25 + $0xe0] ss:$8 sps:$4 sm:$0xff]  }
 0x2a0   : > { %5213 = vmatpush1.bf16.msra.mxu0 %v16602_v58  ;;  %v16661_v58 = vld [vmem:[%s17888_s25 + $0x14] ss:$8 sps:$4 sm:$0xff]  }
 0x2a1   : > { %5836 = vmatpush1.bf16.msra.mxu1 %v16605_v59  ;;  %5225 = vmatprep.subr.bf16.mxu0 %v16610_v61  ;;  %v15482_v59 = vadd.f32 %v18414_v57, %v976_v40  ;;  %v16659_v61 = vld [vmem:[%s17888_s25 + $0x10] ss:$8 sps:$4 sm:$0xff]   ;;  %v16697_v40 = vld [vmem:[%s17888_s25 + $0xd4] ss:$8 sps:$4 sm:$0xff]  }
 0x2a2   : > { %5848 = vmatprep.subr.bf16.mxu1 %v16613_v62  ;;  %v16664_v62 = vld [vmem:[%s17888_s25 + $0x24] ss:$8 sps:$4 sm:$0xff]   ;;  %v16665_v57 = vld [vmem:[%s17888_s25 + $0x30] ss:$8 sps:$4 sm:$0xff]  }
 0x2a3   : > { %5215 = vmatmul.mubr.bf16.vlgmr.msra.gmra.mrb[12].mxu0 %v18124_v25 }
 0x2a4   : > { %5838 = vmatmul.mubr.bf16.vlgmr.msra.gmra.mrb[12].mxu1 %v18124_v25  ;;  %5226 = vmatpush1.bf16.msra.mxu0 %v16608_v0  ;;  %v2129_v0 = vpack.c.bf16 %v15479_v52, %v15479_v52 }
 0x2a5   : > { %5849 = vmatpush1.bf16.msra.mxu1 %v16611_v1  ;;  %5227 = vmatprep.subr.bf16.mxu0 %v16616_v2  ;;  %v2132_v1 = vpack.c.bf16 %v15482_v59, %v15482_v59  ;;  %v16670_v2 = vld [vmem:[%s17888_s25 + $0x44] ss:$8 sps:$4 sm:$0xff]  }
 0x2a6   : > { %5850 = vmatprep.subr.bf16.mxu1 %v16619_v3  ;;  %5257 = vmatprep.mubr.bf16.mxu0 %v17759_v34  ;;  %v16668_v3 = vld [vmem:[%s17888_s25 + $0x40] ss:$8 sps:$4 sm:$0xff]  }
 0x2a7   : > { %5880 = vmatprep.mubr.bf16.mxu1 %v17759_v34 }
 0x2a8   : > { %5228 = vmatpush1.bf16.msra.mxu0 %v16614_v4  ;;  %v16673_v4 = vld [vmem:[%s17888_s25 + $0x54] ss:$8 sps:$4 sm:$0xff]  }
 0x2a9   : > { %5851 = vmatpush1.bf16.msra.mxu1 %v16617_v5  ;;  %5229 = vmatprep.subr.bf16.mxu0 %v16622_v6  ;;  %v16671_v5 = vld [vmem:[%s17888_s25 + $0x50] ss:$8 sps:$4 sm:$0xff]   ;;  %v16676_v6 = vld [vmem:[%s17888_s25 + $0x64] ss:$8 sps:$4 sm:$0xff]  }
 0x2aa   : > { %5852 = vmatprep.subr.bf16.mxu1 %v16625_v7  ;;  %v16674_v7 = vld [vmem:[%s17888_s25 + $0x60] ss:$8 sps:$4 sm:$0xff]  }
 0x2ac   : > { %5230 = vmatpush1.bf16.msra.mxu0 %v16620_v8  ;;  %v16679_v8 = vld [vmem:[%s17888_s25 + $0x74] ss:$8 sps:$4 sm:$0xff]  }
 0x2ad   : > { %5853 = vmatpush1.bf16.msra.mxu1 %v16623_v10  ;;  %5231 = vmatprep.subr.bf16.mxu0 %v16628_v11  ;;  %v16677_v10 = vld [vmem:[%s17888_s25 + $0x70] ss:$8 sps:$4 sm:$0xff]   ;;  %v16682_v11 = vld [vmem:[%s17888_s25 + $0x84] ss:$8 sps:$4 sm:$0xff]  }
 0x2ae   : > { %5854 = vmatprep.subr.bf16.mxu1 %v16631_v14  ;;  %v13580_v14 = vld [vmem:[%s17903_s20 + $0x2] sm:$0x3] }
 0x2b0   : > { %5232 = vmatpush1.bf16.msra.mxu0 %v16626_v15  ;;  %v18754_v15 = vpop.f32.mrb[4].mxu1 }
 0x2b1   : > { %5855 = vmatpush1.bf16.msra.mxu1 %v16629_v16  ;;  %5233 = vmatprep.subr.bf16.mxu0 %v16634_v20  ;;  %v16680_v16 = vld [vmem:[%s17888_s25 + $0x80] ss:$8 sps:$4 sm:$0xff]   ;;  %v18758_v20 = vrot.slane %v13580_v14, %v18396_v44  ;;  %v16725_v14 = vld [vmem:[%s17888_s25 + $0x170] ss:$8 sps:$4 sm:$0xff]  }
 0x2b2   : > { %5856 = vmatprep.subr.bf16.mxu1 %v16637_v21  ;;  %v16685_v21 = vld [vmem:[%s17888_s25 + $0x94] ss:$8 sps:$4 sm:$0xff]  }
 0x2b4   : > { %5234 = vmatpush1.bf16.msra.mxu0 %v16632_v22  ;;  %v18761_v22 = vpop.f32.mrb[5].mxu1 }
 0x2b5   : > { %5857 = vmatpush1.bf16.msra.mxu1 %v16635_v23  ;;  %5235 = vmatprep.subr.bf16.mxu0 %v16640_v24  ;;  %v3378_v23 = vpop.f32.mrb[6].mxu1  ;;  %v16683_v24 = vld [vmem:[%s17888_s25 + $0x90] ss:$8 sps:$4 sm:$0xff]  }
 0x2b6   : > { %5858 = vmatprep.subr.bf16.mxu1 %v16643_v26  ;;  %v18765_v26 = vadd.f32 %v3378_v23, %v18758_v20  ;;  %v16730_v23 = vld [vmem:[%s17888_s25 + $0x184] ss:$8 sps:$4 sm:$0xff]  }
 0x2b8   : > { %5236 = vmatpush1.bf16.msra.mxu0 %v16638_v27  ;;  %v18767_v27 = vpop.f32.mrb[7].mxu1 }
 0x2b9   : > { %5859 = vmatpush1.bf16.msra.mxu1 %v16641_v28  ;;  %5237 = vmatprep.subr.bf16.mxu0 %v16646_v30  ;;  %v16688_v28 = vld [vmem:[%s17888_s25 + $0xa4] ss:$8 sps:$4 sm:$0xff]   ;;  %v16686_v30 = vld [vmem:[%s17888_s25 + $0xa0] ss:$8 sps:$4 sm:$0xff]  }
 0x2ba   : > { %5860 = vmatprep.subr.bf16.mxu1 %v16649_v31  ;;  %v16691_v31 = vld [vmem:[%s17888_s25 + $0xb4] ss:$8 sps:$4 sm:$0xff]  }
 0x2bc   : > { %5238 = vmatpush1.bf16.msra.mxu0 %v16644_v32  ;;  %v16689_v32 = vld [vmem:[%s17888_s25 + $0xb0] ss:$8 sps:$4 sm:$0xff]  }
 0x2bd   : > { %5861 = vmatpush1.bf16.msra.mxu1 %v16647_v36  ;;  %5239 = vmatprep.subr.bf16.mxu0 %v16652_v41  ;;  %v16694_v36 = vld [vmem:[%s17888_s25 + $0xc4] ss:$8 sps:$4 sm:$0xff]  }
 0x2be   : > { %5862 = vmatprep.subr.bf16.mxu1 %v16655_v42  ;;  %v13741_v41 = vld [vmem:[%s17883_s22 + $0x4] sm:$0x3]  ;;  %v16695_v42 = vld [vmem:[%s17888_s25 + $0xd0] ss:$8 sps:$4 sm:$0xff]  }
 0x2c0   : > { %5240 = vmatpush1.bf16.msra.mxu0 %v16650_v47  ;;  %v16700_v47 = vld [vmem:[%s17888_s25 + $0xe4] ss:$8 sps:$4 sm:$0xff]  }
 0x2c1   : > { %5863 = vmatpush1.bf16.msra.mxu1 %v16653_v48  ;;  %6391 = vmatprep.subr.bf16.mxu0 %v16658_v53  ;;  %v18783_v53 = vrot.slane %v13741_v41, %v18396_v44  ;;  %v16736_v41 = vld [vmem:[%s17888_s25 + $0x1a4] ss:$8 sps:$4 sm:$0xff]  }
 0x2c2   : > { %14385 = vmatprep.subr.msk.bf16.mxu1 %vm6524_vm0, %v2130_v54 }
 0x2c3   : > { %5258 = vmatmul.mubr.bf16.vlgmr.msra.gmra.mrb[12].mxu0 %v18162_v63 }
 0x2c4   : > { %5881 = vmatmul.mubr.bf16.vlgmr.msra.gmra.mrb[12].mxu1 %v18162_v63  ;;  %6392 = vmatpush1.bf16.msra.mxu0 %v16656_v55  ;;  %v16703_v55 = vld [vmem:[%s17888_s25 + $0xf4] ss:$8 sps:$4 sm:$0xff]  }
 0x2c5   : > { %6423 = vmatprep.mubr.bf16.mxu0 %v18030_v60  ;;  %6393 = vmatprep.subr.bf16.mxu0 %v16661_v58 }
 0x2c8   : > { %6394 = vmatpush1.bf16.msra.mxu0 %v16659_v61  ;;  %v16701_v61 = vld [vmem:[%s17888_s25 + $0xf0] ss:$8 sps:$4 sm:$0xff]  }
 0x2c9   : > { %6395 = vmatprep.subr.bf16.mxu0 %v16664_v62  ;;  %v16706_v62 = vld [vmem:[%s17888_s25 + $0x104] ss:$8 sps:$4 sm:$0xff]  }
 0x2ca   : > { %6532 = vmatpush1.bf16.xpose.msra.mxu1 %v2129_v0  ;;  %v16704_v0 = vld [vmem:[%s17888_s25 + $0x100] ss:$8 sps:$4 sm:$0xff]  }
 0x2cb   : > { %14387 = vmatprep.subr.msk.bf16.mxu1 %vm6524_vm0, %v2132_v1  ;;  %v16709_v1 = vld [vmem:[%s17888_s25 + $0x114] ss:$8 sps:$4 sm:$0xff]  }
 0x2cc   : > { %6396 = vmatpush1.bf16.msra.mxu0 %v16662_v50  ;;  %v16707_v50 = vld [vmem:[%s17888_s25 + $0x110] ss:$8 sps:$4 sm:$0xff]  }
 0x2cd   : > { %6397 = vmatprep.subr.bf16.mxu0 %v16667_v51  ;;  %v16712_v51 = vld [vmem:[%s17888_s25 + $0x124] ss:$8 sps:$4 sm:$0xff]  }
 0x2d0   : > { %6398 = vmatpush1.bf16.msra.mxu0 %v16665_v57  ;;  %v16710_v57 = vld [vmem:[%s17888_s25 + $0x120] ss:$8 sps:$4 sm:$0xff]  }
 0x2d1   : > { %6399 = vmatprep.subr.bf16.mxu0 %v16670_v2  ;;  %v16715_v2 = vld [vmem:[%s17888_s25 + $0x134] ss:$8 sps:$4 sm:$0xff]  }
 0x2d4   : > { %6400 = vmatpush1.bf16.msra.mxu0 %v16668_v3  ;;  %v16713_v3 = vld [vmem:[%s17888_s25 + $0x130] ss:$8 sps:$4 sm:$0xff]  }
 0x2d5   : > { %6401 = vmatprep.subr.bf16.mxu0 %v16673_v4  ;;  %v16718_v4 = vld [vmem:[%s17888_s25 + $0x144] ss:$8 sps:$4 sm:$0xff]  }
 0x2d8   : > { %6402 = vmatpush1.bf16.msra.mxu0 %v16671_v5  ;;  %v16716_v5 = vld [vmem:[%s17888_s25 + $0x140] ss:$8 sps:$4 sm:$0xff]  }
 0x2d9   : > { %6403 = vmatprep.subr.bf16.mxu0 %v16676_v6  ;;  %v16721_v6 = vld [vmem:[%s17888_s25 + $0x154] ss:$8 sps:$4 sm:$0xff]  }
 0x2dc   : > { %6404 = vmatpush1.bf16.msra.mxu0 %v16674_v7  ;;  %v16719_v7 = vld [vmem:[%s17888_s25 + $0x150] ss:$8 sps:$4 sm:$0xff]  }
 0x2dd   : > { %6405 = vmatprep.subr.bf16.mxu0 %v16679_v8  ;;  %v16724_v8 = vld [vmem:[%s17888_s25 + $0x164] ss:$8 sps:$4 sm:$0xff]  }
 0x2e0   : > { %6406 = vmatpush1.bf16.msra.mxu0 %v16677_v10  ;;  %v16722_v10 = vld [vmem:[%s17888_s25 + $0x160] ss:$8 sps:$4 sm:$0xff]  }
 0x2e1   : > { %6407 = vmatprep.subr.bf16.mxu0 %v16682_v11  ;;  %v16727_v11 = vld [vmem:[%s17888_s25 + $0x174] ss:$8 sps:$4 sm:$0xff]  }
 0x2e4   : > { %6408 = vmatpush1.bf16.msra.mxu0 %v16680_v16  ;;  %v13902_v16 = vld [vmem:[%s17903_s20 + $0x4] sm:$0x3] }
 0x2e5   : > { %6409 = vmatprep.subr.bf16.mxu0 %v16685_v21 }
 0x2e8   : > { %6410 = vmatpush1.bf16.msra.mxu0 %v16683_v24  ;;  %v18817_v24 = vrot.slane %v13902_v16, %v18396_v44  ;;  %v16767_v16 = vld [vmem:[%s17888_s25 + $0x250] ss:$8 sps:$4 sm:$0xff]  }
 0x2e9   : > { %6411 = vmatprep.subr.bf16.mxu0 %v16688_v28 }
 0x2ec   : > { %6412 = vmatpush1.bf16.msra.mxu0 %v16686_v30 }
 0x2ed   : > { %6413 = vmatprep.subr.bf16.mxu0 %v16691_v31 }
 0x2f0   : > { %6414 = vmatpush1.bf16.msra.mxu0 %v16689_v32 }
 0x2f1   : > { %6415 = vmatprep.subr.bf16.mxu0 %v16694_v36  ;;  %v16728_v36 = vld [vmem:[%s17888_s25 + $0x180] ss:$8 sps:$4 sm:$0xff]  }
 0x2f4   : > { %6416 = vmatpush1.bf16.msra.mxu0 %v16692_v39  ;;  %v16733_v39 = vld [vmem:[%s17888_s25 + $0x194] ss:$8 sps:$4 sm:$0xff]  }
 0x2f5   : > { %6417 = vmatprep.subr.bf16.mxu0 %v16697_v40  ;;  %v16731_v40 = vld [vmem:[%s17888_s25 + $0x190] ss:$8 sps:$4 sm:$0xff]  }
 0x2f6   : > { %v18779_v48 = vpop.f32.mrb[8].mxu0 }
 0x2f7   : > { %v18785_v54 = vpop.f32.mrb[9].mxu0  ;;  %v18813_v21 = vpop.f32.mrb[8].mxu1 }
 0x2f8   : > { %v4009_v58 = vpop.f32.mrb[10].mxu0  ;;  %6418 = vmatpush1.bf16.msra.mxu0 %v16695_v42  ;;  %v18819_v28 = vpop.f32.mrb[9].mxu1  ;;  %v16734_v42 = vld [vmem:[%s17888_s25 + $0x1a0] ss:$8 sps:$4 sm:$0xff]  }
 0x2f9   : > { %v18789_v52 = vadd.f32 %v4009_v58, %v18783_v53  ;;  %v18791_v59 = vpop.f32.mrb[11].mxu0  ;;  %6419 = vmatprep.subr.bf16.mxu0 %v16700_v47  ;;  %v4632_v30 = vpop.f32.mrb[10].mxu1  ;;  %v16739_v47 = vld [vmem:[%s17888_s25 + $0x1b4] ss:$8 sps:$4 sm:$0xff]   ;;  %v16740_v58 = vld [vmem:[%s17888_s25 + $0x1c0] ss:$8 sps:$4 sm:$0xff]  }
 0x2fa   : > { %v18822_v31 = vadd.f32 %v4632_v30, %v18817_v24  ;;  %v18824_v32 = vpop.f32.mrb[11].mxu1  ;;  %v17689_v30 = vld [vmem:[%s17883_s22 + $0x2] sm:$0x3] }
 0x2fc   : > { %6420 = vmatpush1.bf16.msra.mxu0 %v16698_v49  ;;  %v16737_v49 = vld [vmem:[%s17888_s25 + $0x1b0] ss:$8 sps:$4 sm:$0xff]  }
 0x2fd   : > { %6421 = vmatprep.subr.bf16.mxu0 %v16703_v55  ;;  %v16742_v55 = vld [vmem:[%s17888_s25 + $0x1c4] ss:$8 sps:$4 sm:$0xff]  }
 0x300   : > { %6422 = vmatpush1.bf16.msra.mxu0 %v16701_v61  ;;  %v16745_v61 = vld [vmem:[%s17888_s25 + $0x1d4] ss:$8 sps:$4 sm:$0xff]  }
 0x301   : > { %6434 = vmatprep.subr.bf16.mxu0 %v16706_v62  ;;  %v16743_v62 = vld [vmem:[%s17888_s25 + $0x1d0] ss:$8 sps:$4 sm:$0xff]  }
 0x303   : > { %6424 = vmatmul.mubr.bf16.vlgmr.msra.gmra.mrb[16].mxu0 %v18054_v19 }
 0x304   : > { %6435 = vmatpush1.bf16.msra.mxu0 %v16704_v0  ;;  %6466 = vmatprep.mubr.bf16.mxu0 %v18082_v46  ;;  %v16748_v0 = vld [vmem:[%s17888_s25 + $0x1e4] ss:$8 sps:$4 sm:$0xff]  }
 0x305   : > { %6436 = vmatprep.subr.bf16.mxu0 %v16709_v1  ;;  %v16746_v1 = vld [vmem:[%s17888_s25 + $0x1e0] ss:$8 sps:$4 sm:$0xff]  }
 0x308   : > { %6437 = vmatpush1.bf16.msra.mxu0 %v16707_v50  ;;  %v16751_v50 = vld [vmem:[%s17888_s25 + $0x1f4] ss:$8 sps:$4 sm:$0xff]  }
 0x309   : > { %6438 = vmatprep.subr.bf16.mxu0 %v16712_v51  ;;  %v16749_v51 = vld [vmem:[%s17888_s25 + $0x1f0] ss:$8 sps:$4 sm:$0xff]  }
 0x30c   : > { %6439 = vmatpush1.bf16.msra.mxu0 %v16710_v57  ;;  %v16754_v57 = vld [vmem:[%s17888_s25 + $0x204] ss:$8 sps:$4 sm:$0xff]  }
 0x30d   : > { %6440 = vmatprep.subr.bf16.mxu0 %v16715_v2  ;;  %v16752_v2 = vld [vmem:[%s17888_s25 + $0x200] ss:$8 sps:$4 sm:$0xff]  }
 0x310   : > { %6441 = vmatpush1.bf16.msra.mxu0 %v16713_v3  ;;  %v16757_v3 = vld [vmem:[%s17888_s25 + $0x214] ss:$8 sps:$4 sm:$0xff]  }
 0x311   : > { %6442 = vmatprep.subr.bf16.mxu0 %v16718_v4  ;;  %v16755_v4 = vld [vmem:[%s17888_s25 + $0x210] ss:$8 sps:$4 sm:$0xff]  }
 0x314   : > { %6443 = vmatpush1.bf16.msra.mxu0 %v16716_v5  ;;  %v16760_v5 = vld [vmem:[%s17888_s25 + $0x224] ss:$8 sps:$4 sm:$0xff]  }
 0x315   : > { %6444 = vmatprep.subr.bf16.mxu0 %v16721_v6  ;;  %v16758_v6 = vld [vmem:[%s17888_s25 + $0x220] ss:$8 sps:$4 sm:$0xff]  }
 0x318   : > { %6445 = vmatpush1.bf16.msra.mxu0 %v16719_v7  ;;  %v16763_v7 = vld [vmem:[%s17888_s25 + $0x234] ss:$8 sps:$4 sm:$0xff]  }
 0x319   : > { %6446 = vmatprep.subr.bf16.mxu0 %v16724_v8  ;;  %v16761_v8 = vld [vmem:[%s17888_s25 + $0x230] ss:$8 sps:$4 sm:$0xff]  }
 0x31c   : > { %6447 = vmatpush1.bf16.msra.mxu0 %v16722_v10  ;;  %v16766_v10 = vld [vmem:[%s17888_s25 + $0x244] ss:$8 sps:$4 sm:$0xff]  }
 0x31d   : > { %6448 = vmatprep.subr.bf16.mxu0 %v16727_v11  ;;  %v16764_v11 = vld [vmem:[%s17888_s25 + $0x240] ss:$8 sps:$4 sm:$0xff]  }
 0x320   : > { %6449 = vmatpush1.bf16.msra.mxu0 %v16725_v14  ;;  %v16769_v14 = vld [vmem:[%s17888_s25 + $0x254] ss:$8 sps:$4 sm:$0xff]  }
 0x321   : > { %6450 = vmatprep.subr.bf16.mxu0 %v16730_v23  ;;  %v16772_v23 = vld [vmem:[%s17888_s25 + $0x264] ss:$8 sps:$4 sm:$0xff]  }
 0x324   : > { %6451 = vmatpush1.bf16.msra.mxu0 %v16728_v36  ;;  %v2228_v36 = vrot.slane %v17689_v30, %v18715_v29 }
 0x325   : > { %6452 = vmatprep.subr.bf16.mxu0 %v16733_v39  ;;  %v16770_v39 = vld [vmem:[%s17888_s25 + $0x260] ss:$8 sps:$4 sm:$0xff]  }
 0x328   : > { %6453 = vmatpush1.bf16.msra.mxu0 %v16731_v40  ;;  %v16775_v40 = vld [vmem:[%s17888_s25 + $0x274] ss:$8 sps:$4 sm:$0xff]  }
 0x329   : > { %6454 = vmatprep.subr.bf16.mxu0 %v16736_v41  ;;  %v15488_v41 = vadd.f32 %v18607_v13, %v2228_v36  ;;  %v14063_v13 = vld [vmem:[%s17883_s22 + $0x6] sm:$0x3] }
 0x32c   : > { %6455 = vmatpush1.bf16.msra.mxu0 %v16734_v42  ;;  %v16773_v42 = vld [vmem:[%s17888_s25 + $0x270] ss:$8 sps:$4 sm:$0xff]  }
 0x32d   : > { %6456 = vmatprep.subr.bf16.mxu0 %v16739_v47  ;;  %v3384_v47 = vpack.c.bf16 %v15488_v41, %v15488_v41 }
 0x330   : > { %6457 = vmatpush1.bf16.msra.mxu0 %v16737_v49  ;;  %v15487_v49 = vadd.f32 %v18600_v9, %v18605_v12  ;;  %v18875_v9 = vrot.slane %v14063_v13, %v18715_v29 }
 0x331   : > { %6458 = vmatprep.subr.bf16.mxu0 %v16742_v55  ;;  %v15490_v55 = vadd.f32 %v18614_v18, %v2228_v36 }
 0x334   : > { %6459 = vmatpush1.bf16.msra.mxu0 %v16740_v58  ;;  %v3383_v58 = vpack.c.bf16 %v15487_v49, %v15487_v49 }
 0x335   : > { %6460 = vmatprep.subr.bf16.mxu0 %v16745_v61  ;;  %v3386_v61 = vpack.c.bf16 %v15490_v55, %v15490_v55 }
 0x338   : > { %6461 = vmatpush1.bf16.msra.mxu0 %v16743_v62  ;;  %v4732_v62 = vrot.slane %v14063_v13, %v18396_v44 }
 0x339   : > { %6462 = vmatprep.subr.bf16.mxu0 %v16748_v0 }
 0x33c   : > { %6463 = vmatpush1.bf16.msra.mxu0 %v16746_v1 }
 0x33d   : > { %6464 = vmatprep.subr.bf16.mxu0 %v16751_v50 }
 0x340   : > { %6465 = vmatpush1.bf16.msra.mxu0 %v16749_v51 }
 0x341   : > { %6477 = vmatprep.subr.bf16.mxu0 %v16754_v57 }
 0x343   : > { %6467 = vmatmul.mubr.bf16.vlgmr.msra.gmra.mrb[16].mxu0 %v18124_v25 }
 0x344   : > { %6478 = vmatpush1.bf16.msra.mxu0 %v16752_v2  ;;  %6509 = vmatprep.mubr.bf16.mxu0 %v17759_v34  ;;  %v14224_v2 = vld [vmem:[%s17903_s20 + $0x6] sm:$0x3] }
 0x345   : > { %6479 = vmatprep.subr.bf16.mxu0 %v16757_v3 }
 0x348   : > { %6480 = vmatpush1.bf16.msra.mxu0 %v16755_v4  ;;  %v18886_v4 = vrot.slane %v14224_v2, %v18396_v44 }
 0x349   : > { %6481 = vmatprep.subr.bf16.mxu0 %v16760_v5 }
 0x34c   : > { %6482 = vmatpush1.bf16.msra.mxu0 %v16758_v6 }
 0x34d   : > { %6483 = vmatprep.subr.bf16.mxu0 %v16763_v7 }
 0x350   : > { %6484 = vmatpush1.bf16.msra.mxu0 %v16761_v8 }
 0x351   : > { %6485 = vmatprep.subr.bf16.mxu0 %v16766_v10  ;;  %v5979_v10 = vld [vmem:[%s20028_s24] sm:$0x3] }
 0x354   : > { %6486 = vmatpush1.bf16.msra.mxu0 %v16764_v11  ;;  %v5984_v11 = vrot.slane %v5979_v10, %v18396_v44 }
 0x355   : > { %6487 = vmatprep.subr.bf16.mxu0 %v16769_v14  ;;  %v5988_v14 = vrot.slane %v5979_v10, %v18715_v29 }
 0x358   : > { %6488 = vmatpush1.bf16.msra.mxu0 %v16767_v16  ;;  %v17690_v16 = vld [vmem:[%s17903_s20] sm:$0x3] }
 0x359   : > { %6489 = vmatprep.subr.bf16.mxu0 %v16772_v23  ;;  %v1597_v23 = vrot.slane %v17690_v16, %v18715_v29 }
 0x35c   : > { %6490 = vmatpush1.bf16.msra.mxu0 %v16770_v39 }
 0x35d   : > { %6491 = vmatprep.subr.bf16.mxu0 %v16775_v40 }
 0x360   : > { %6492 = vmatpush1.bf16.msra.mxu0 %v16773_v42  ;;  %v15484_v42 = vadd.f32 %v18571_v37, %v1597_v23 }
 0x361   : > { %14554 = vmatprep.subr.msk.bf16.mxu0 %vm6524_vm0, %v3384_v47 }
 0x363   : > { %6510 = vmatmul.mubr.bf16.vlgmr.msra.gmra.mrb[16].mxu0 %v18162_v63 }
 0x369   : > { %7439 = vmatpush1.bf16.xpose.msra.mxu0 %v3383_v58 }
 0x36a   : > { %14556 = vmatprep.subr.msk.bf16.mxu0 %vm6524_vm0, %v3386_v61  ;;  %v2131_v61 = vpack.c.bf16 %v18412_v56, %v18412_v56 }
 0x396   : > { %v5259_v0 = vpop.f32.mrb[12].mxu0 }
 0x397   : > { %v18870_v1 = vadd.f32 %v5259_v0, %v4732_v62  ;;  %v18872_v50 = vpop.f32.mrb[13].mxu0  ;;  %v18883_v3 = vpop.f32.mrb[12].mxu1  ;;  %v2134_v0 = vpack.c.bf16 %v15484_v42, %v15484_v42 }
 0x398   : > { %v5263_v12 = vpop.f32.mrb[14].mxu0  ;;  %v18888_v5 = vpop.f32.mrb[13].mxu1 }
 0x399   : > { %v18877_v18 = vadd.f32 %v5263_v12, %v4732_v62  ;;  %v5265_v51 = vpop.f32.mrb[15].mxu0  ;;  %v5886_v6 = vpop.f32.mrb[14].mxu1  ;;  %v15483_v62 = vadd.f32 %v18568_v35, %v18566_v33 }
 0x39a   : > { %v18880_v57 = vadd.f32 %v5265_v51, %v18875_v9  ;;  %v18891_v7 = vadd.f32 %v5886_v6, %v18886_v4  ;;  %v18893_v8 = vpop.f32.mrb[15].mxu1  ;;  %v15486_v51 = vadd.f32 %v18579_v45, %v1597_v23 }
 0x39b   : > { %v2133_v12 = vpack.c.bf16 %v15483_v62, %v15483_v62 }
 0x39c   : > { %v2136_v6 = vpack.c.bf16 %v15486_v51, %v15486_v51 }
 0x39d   : > { %v6647_v56 = vsel %vm6645_vm1, %v2133_v12, 0  ;;  %v2135_v12 = vpack.c.bf16 %v18577_v43, %v18577_v43 }
 0x436   : > { %v6511_v30 = vpop.f32.mrb[16].mxu0 }
 0x437   : > { %v15511_v36 = vadd.f32 %v6511_v30, %v5984_v11  ;;  %v6513_v39 = vpop.f32.mrb[17].mxu0 }
 0x438   : > { %v15512_v40 = vadd.f32 %v6513_v39, %v5988_v14  ;;  %v6515_v41 = vpop.f32.mrb[18].mxu0 }
 0x439   : > { %v6517_v47 = vpop.f32.mrb[19].mxu0  ;;  %v6520_v58 = vpack.c.bf16 %v15511_v36, %v15511_v36  ;;  %v15513_v37 = vadd.f32 %v6515_v41, %v5984_v11 }
 0x43a   : > { %v6521_v49 = vpack.c.bf16 %v15512_v40, %v15512_v40  ;;  %v15514_v55 = vadd.f32 %v6517_v47, %v5988_v14 }
 0x43b   : > { %v6522_v2 = vpack.c.bf16 %v15513_v37, %v15513_v37 }
 0x43c   : > { %v6523_v13 = vpack.c.bf16 %v15514_v55, %v15514_v55  ;;  %14386 = vmatprep.mubr.msk.bf16.mxu1 %vm6524_vm0, %v6521_v49 }
 0x43d   : > { %6564 = vmatmul.mubr.bf16.vlgmr.msra.gmra.mrb[16].mxu1 %v6520_v58 }
 0x43e   : > { %6578 = vmatpush1.bf16.xpose.msra.mxu1 %v2131_v61  ;;  %14388 = vmatprep.mubr.msk.bf16.mxu1 %vm6524_vm0, %v6523_v13 }
 0x43f   : > { %14389 = vmatprep.subr.msk.bf16.mxu1 %vm6645_vm1, %v2134_v0 }
 0x445   : > { %6610 = vmatmul.mubr.bf16.vlgmr.msra.gmra.mrb[20].mxu1 %v6522_v2 }
 0x446   : > { %6653 = vmatpush1.bf16.msra.mxu1 %v6647_v56  ;;  %6684 = vmatprep.mubr.bf16.mxu1 %v17759_v34  ;;  %v16778_v56 = vld [vmem:[%s17888_s25 + $0x284] ss:$8 sps:$4 sm:$0xff]  }
 0x447   : > { %14391 = vmatprep.subr.msk.bf16.mxu1 %vm6645_vm1, %v2136_v6  ;;  %v6697_v6 = vsel %vm6645_vm1, %v2135_v12, 0  ;;  %v16811_v12 = vld [vmem:[%s17888_s25 + $0x334] ss:$8 sps:$4 sm:$0xff]  }
 0x510   : > { %v6565_v33 = vpop.f32.mrb[16].mxu1 }
 0x511   : > { %v6567_v35 = vpop.f32.mrb[17].mxu1  ;;  %v6618_v10 = vsel %vm6617_vm2, %v6565_v33, -inf }
 0x512   : > { %6619 = vmax.xlane.f32.xlu0 %v6618_v10  ;;  %v6568_v11 = vpop.f32.mrb[18].mxu1  ;;  %v16776_v10 = vld [vmem:[%s17888_s25 + $0x280] ss:$8 sps:$4 sm:$0xff]  }
 0x513   : > { %v6569_v14 = vpop.f32.mrb[19].mxu1  ;;  %v16781_v11 = vld [vmem:[%s17888_s25 + $0x294] ss:$8 sps:$4 sm:$0xff]  }
 0x514   : > { %v16779_v14 = vld [vmem:[%s17888_s25 + $0x290] ss:$8 sps:$4 sm:$0xff]  }
 0x518   : > { %v6611_v16 = vpop.f32.mrb[20].mxu1 }
 0x519   : > { %v6613_v45 = vpop.f32.mrb[21].mxu1  ;;  %v6621_v23 = vsel %vm6617_vm2, %v6611_v16, -inf }
 0x51a   : > { %6622 = vmax.xlane.f32.xlu0 %v6621_v23  ;;  %v6614_v30 = vpop.f32.mrb[22].mxu1  ;;  %v16782_v45 = vld [vmem:[%s17888_s25 + $0x2a0] ss:$8 sps:$4 sm:$0xff]   ;;  %v16787_v23 = vld [vmem:[%s17888_s25 + $0x2b4] ss:$8 sps:$4 sm:$0xff]  }
 0x51b   : > { %v6615_v36 = vpop.f32.mrb[23].mxu1  ;;  %v16785_v30 = vld [vmem:[%s17888_s25 + $0x2b0] ss:$8 sps:$4 sm:$0xff]  }
 0x51c   : > { %v16790_v36 = vld [vmem:[%s17888_s25 + $0x2c4] ss:$8 sps:$4 sm:$0xff]  }
 0x59f   : > { %v6620_v39 = vpop.xlane.xlu0 %6619 }
 0x5a0   : > { %v6624_v40 = vsub.f32 %v6565_v33, %v6620_v39  ;;  %v16788_v39 = vld [vmem:[%s17888_s25 + $0x2c0] ss:$8 sps:$4 sm:$0xff]  }
 0x5a2   : > { %v6626_v41 = vmul.f32 1.442695, %v6624_v40  ;;  %v16793_v40 = vld [vmem:[%s17888_s25 + $0x2d4] ss:$8 sps:$4 sm:$0xff]  }
 0x5a4   : > { %17648 = vpow2.f32 %v6626_v41  ;;  %v16791_v41 = vld [vmem:[%s17888_s25 + $0x2d0] ss:$8 sps:$4 sm:$0xff]  }
 0x5a7   : > { %v6623_v42 = vpop.xlane.xlu0 %6622 }
 0x5a8   : > { %v6625_v47 = vsub.f32 %v6611_v16, %v6623_v42  ;;  %v16784_v16 = vld [vmem:[%s17888_s25 + $0x2a4] ss:$8 sps:$4 sm:$0xff]  }
 0x5a9   : > { %v16796_v42 = vld [vmem:[%s17888_s25 + $0x2e4] ss:$8 sps:$4 sm:$0xff]  }
 0x5aa   : > { %v6628_v49 = vmul.f32 1.442695, %v6625_v47  ;;  %v16794_v47 = vld [vmem:[%s17888_s25 + $0x2e0] ss:$8 sps:$4 sm:$0xff]  }
 0x5ac   : > { %17650 = vpow2.f32 %v6628_v49  ;;  %v16799_v49 = vld [vmem:[%s17888_s25 + $0x2f4] ss:$8 sps:$4 sm:$0xff]  }
 0x5ae   : > { %v17649_v55 = vpop.eup %17648 }
 0x5af   : > { %v6630_v58 = vsel %vm6617_vm2, %v17649_v55, 0.0 }
 0x5b0   : > { %6631 = vadd.xlane.f32.xlu1 %v6630_v58  ;;  %v16802_v58 = vld [vmem:[%s17888_s25 + $0x304] ss:$8 sps:$4 sm:$0xff]  }
 0x5b6   : > { %v17651_v61 = vpop.eup %17650 }
 0x5b7   : > { %v6633_v13 = vsel %vm6617_vm2, %v17651_v61, 0.0 }
 0x5b8   : > { %6634 = vadd.xlane.f32.xlu1 %v6633_v13  ;;  %v16805_v13 = vld [vmem:[%s17888_s25 + $0x314] ss:$8 sps:$4 sm:$0xff]  }
 0x63d   : > { %v6632_v62 = vpop.xlane.xlu1 %6631 }
 0x63e   : > { %17652 = vrcp.f32 %v6632_v62  ;;  %v16803_v62 = vld [vmem:[%s17888_s25 + $0x310] ss:$8 sps:$4 sm:$0xff]  }
 0x645   : > { %v6635_v0 = vpop.xlane.xlu1 %6634 }
 0x646   : > { %17654 = vrcp.f32 %v6635_v0  ;;  %v16808_v0 = vld [vmem:[%s17888_s25 + $0x324] ss:$8 sps:$4 sm:$0xff]  }
 0x648   : > { %v17653_v37 = vpop.eup %17652 }
 0x649   : > { %v6638_v51 = vmul.f32 %v17653_v37, %v17649_v55  ;;  %v16797_v55 = vld [vmem:[%s17888_s25 + $0x2f0] ss:$8 sps:$4 sm:$0xff]   ;;  %v16806_v37 = vld [vmem:[%s17888_s25 + $0x320] ss:$8 sps:$4 sm:$0xff]  }
 0x64b   : > { %v6640_v2 = vpack.c.bf16 %v6638_v51, %v6638_v51  ;;  %v16809_v51 = vld [vmem:[%s17888_s25 + $0x330] ss:$8 sps:$4 sm:$0xff]  }
 0x64d   : > { %14390 = vmatmul.mubr.msk.bf16.vlgmr.msra.gmra.mrb[24].mxu1 %vm6617_vm2, %v6640_v2  ;;  %v16814_v2 = vld [vmem:[%s17888_s25 + $0x344] ss:$8 sps:$4 sm:$0xff]  }
 0x64e   : > { %6703 = vmatpush1.bf16.msra.mxu1 %v6697_v6  ;;  %6734 = vmatprep.mubr.bf16.mxu1 %v17759_v34  ;;  %v16817_v6 = vld [vmem:[%s17888_s25 + $0x354] ss:$8 sps:$4 sm:$0xff]  }
 0x64f   : > { %7299 = vmatprep.subr.bf16.mxu1 %v16778_v56  ;;  %v16812_v56 = vld [vmem:[%s17888_s25 + $0x340] ss:$8 sps:$4 sm:$0xff]  }
 0x650   : > { %v17655_v33 = vpop.eup %17654 }
 0x651   : > { %v6639_v35 = vmul.f32 %v17655_v33, %v17651_v61  ;;  %v16800_v61 = vld [vmem:[%s17888_s25 + $0x300] ss:$8 sps:$4 sm:$0xff]   ;;  %v16815_v33 = vld [vmem:[%s17888_s25 + $0x350] ss:$8 sps:$4 sm:$0xff]  }
 0x653   : > { %v6641_v43 = vpack.c.bf16 %v6639_v35, %v6639_v35  ;;  %v16820_v35 = vld [vmem:[%s17888_s25 + $0x364] ss:$8 sps:$4 sm:$0xff]  }
 0x655   : > { %14392 = vmatmul.mubr.msk.bf16.vlgmr.msra.gmra.mrb[28].mxu1 %vm6617_vm2, %v6641_v43  ;;  %v16823_v43 = vld [vmem:[%s17888_s25 + $0x374] ss:$8 sps:$4 sm:$0xff]  }
 0x656   : > { %7300 = vmatpush1.bf16.msra.mxu1 %v16776_v10  ;;  %7331 = vmatprep.mubr.bf16.mxu1 %v18030_v60  ;;  %v16818_v10 = vld [vmem:[%s17888_s25 + $0x360] ss:$8 sps:$4 sm:$0xff]  }
 0x657   : > { %7301 = vmatprep.subr.bf16.mxu1 %v16781_v11  ;;  %v16821_v11 = vld [vmem:[%s17888_s25 + $0x370] ss:$8 sps:$4 sm:$0xff]  }
 0x65a   : > { %7302 = vmatpush1.bf16.msra.mxu1 %v16779_v14  ;;  %v16826_v14 = vld [vmem:[%s17888_s25 + $0x384] ss:$8 sps:$4 sm:$0xff]  }
 0x65b   : > { %7303 = vmatprep.subr.bf16.mxu1 %v16784_v16  ;;  %v16824_v16 = vld [vmem:[%s17888_s25 + $0x380] ss:$8 sps:$4 sm:$0xff]  }
 0x65e   : > { %7304 = vmatpush1.bf16.msra.mxu1 %v16782_v45  ;;  %v16829_v45 = vld [vmem:[%s17888_s25 + $0x394] ss:$8 sps:$4 sm:$0xff]  }
 0x65f   : > { %7305 = vmatprep.subr.bf16.mxu1 %v16787_v23  ;;  %v16827_v23 = vld [vmem:[%s17888_s25 + $0x390] ss:$8 sps:$4 sm:$0xff]  }
 0x662   : > { %7306 = vmatpush1.bf16.msra.mxu1 %v16785_v30  ;;  %v16832_v30 = vld [vmem:[%s17888_s25 + $0x3a4] ss:$8 sps:$4 sm:$0xff]  }
 0x663   : > { %7307 = vmatprep.subr.bf16.mxu1 %v16790_v36  ;;  %v16830_v36 = vld [vmem:[%s17888_s25 + $0x3a0] ss:$8 sps:$4 sm:$0xff]  }
 0x666   : > { %7308 = vmatpush1.bf16.msra.mxu1 %v16788_v39  ;;  %v16835_v39 = vld [vmem:[%s17888_s25 + $0x3b4] ss:$8 sps:$4 sm:$0xff]  }
 0x667   : > { %7309 = vmatprep.subr.bf16.mxu1 %v16793_v40  ;;  %v16833_v40 = vld [vmem:[%s17888_s25 + $0x3b0] ss:$8 sps:$4 sm:$0xff]  }
 0x66a   : > { %7310 = vmatpush1.bf16.msra.mxu1 %v16791_v41  ;;  %v16838_v41 = vld [vmem:[%s17888_s25 + $0x3c4] ss:$8 sps:$4 sm:$0xff]  }
 0x66b   : > { %7311 = vmatprep.subr.bf16.mxu1 %v16796_v42  ;;  %v16836_v42 = vld [vmem:[%s17888_s25 + $0x3c0] ss:$8 sps:$4 sm:$0xff]  }
 0x66e   : > { %7312 = vmatpush1.bf16.msra.mxu1 %v16794_v47  ;;  %v16841_v47 = vld [vmem:[%s17888_s25 + $0x3d4] ss:$8 sps:$4 sm:$0xff]  }
 0x66f   : > { %7313 = vmatprep.subr.bf16.mxu1 %v16799_v49  ;;  %v16839_v49 = vld [vmem:[%s17888_s25 + $0x3d0] ss:$8 sps:$4 sm:$0xff]  }
 0x672   : > { %7314 = vmatpush1.bf16.msra.mxu1 %v16797_v55  ;;  %v16844_v55 = vld [vmem:[%s17888_s25 + $0x3e4] ss:$8 sps:$4 sm:$0xff]  }
 0x673   : > { %7315 = vmatprep.subr.bf16.mxu1 %v16802_v58  ;;  %v16842_v58 = vld [vmem:[%s17888_s25 + $0x3e0] ss:$8 sps:$4 sm:$0xff]  }
 0x676   : > { %7316 = vmatpush1.bf16.msra.mxu1 %v16800_v61  ;;  %v16847_v61 = vld [vmem:[%s17888_s25 + $0x3f4] ss:$8 sps:$4 sm:$0xff]  }
 0x677   : > { %7317 = vmatprep.subr.bf16.mxu1 %v16805_v13  ;;  %v16845_v13 = vld [vmem:[%s17888_s25 + $0x3f0] ss:$8 sps:$4 sm:$0xff]  }
 0x67a   : > { %7318 = vmatpush1.bf16.msra.mxu1 %v16803_v62  ;;  %v16850_v62 = vld [vmem:[%s17888_s25 + $0x404] ss:$8 sps:$4 sm:$0xff]  }
 0x67b   : > { %7319 = vmatprep.subr.bf16.mxu1 %v16808_v0  ;;  %v16848_v0 = vld [vmem:[%s17888_s25 + $0x400] ss:$8 sps:$4 sm:$0xff]  }
 0x67e   : > { %7320 = vmatpush1.bf16.msra.mxu1 %v16806_v37  ;;  %v16853_v37 = vld [vmem:[%s17888_s25 + $0x414] ss:$8 sps:$4 sm:$0xff]  }
 0x67f   : > { %7321 = vmatprep.subr.bf16.mxu1 %v16811_v12  ;;  %v16851_v12 = vld [vmem:[%s17888_s25 + $0x410] ss:$8 sps:$4 sm:$0xff]  }
 0x682   : > { %7322 = vmatpush1.bf16.msra.mxu1 %v16809_v51  ;;  %v16856_v51 = vld [vmem:[%s17888_s25 + $0x424] ss:$8 sps:$4 sm:$0xff]  }
 0x683   : > { %7323 = vmatprep.subr.bf16.mxu1 %v16814_v2  ;;  %v16854_v2 = vld [vmem:[%s17888_s25 + $0x420] ss:$8 sps:$4 sm:$0xff]  }
 0x686   : > { %7324 = vmatpush1.bf16.msra.mxu1 %v16812_v56  ;;  %v16859_v56 = vld [vmem:[%s17888_s25 + $0x434] ss:$8 sps:$4 sm:$0xff]  }
 0x687   : > { %7325 = vmatprep.subr.bf16.mxu1 %v16817_v6  ;;  %v16857_v6 = vld [vmem:[%s17888_s25 + $0x430] ss:$8 sps:$4 sm:$0xff]  }
 0x68a   : > { %7326 = vmatpush1.bf16.msra.mxu1 %v16815_v33  ;;  %v16862_v33 = vld [vmem:[%s17888_s25 + $0x444] ss:$8 sps:$4 sm:$0xff]  }
 0x68b   : > { %7327 = vmatprep.subr.bf16.mxu1 %v16820_v35  ;;  %v16860_v35 = vld [vmem:[%s17888_s25 + $0x440] ss:$8 sps:$4 sm:$0xff]  }
 0x68e   : > { %7328 = vmatpush1.bf16.msra.mxu1 %v16818_v10  ;;  %v16865_v10 = vld [vmem:[%s17888_s25 + $0x454] ss:$8 sps:$4 sm:$0xff]  }
 0x68f   : > { %7329 = vmatprep.subr.bf16.mxu1 %v16823_v43  ;;  %v16863_v43 = vld [vmem:[%s17888_s25 + $0x450] ss:$8 sps:$4 sm:$0xff]  }
 0x692   : > { %7330 = vmatpush1.bf16.msra.mxu1 %v16821_v11  ;;  %v16868_v11 = vld [vmem:[%s17888_s25 + $0x464] ss:$8 sps:$4 sm:$0xff]  }
 0x693   : > { %7342 = vmatprep.subr.bf16.mxu1 %v16826_v14  ;;  %v16866_v14 = vld [vmem:[%s17888_s25 + $0x460] ss:$8 sps:$4 sm:$0xff]  }
 0x695   : > { %7332 = vmatmul.mubr.bf16.vlgmr.msra.gmra.mrb[32].mxu1 %v18054_v19 }
 0x696   : > { %7343 = vmatpush1.bf16.msra.mxu1 %v16824_v16  ;;  %7374 = vmatprep.mubr.bf16.mxu1 %v18082_v46  ;;  %v16871_v16 = vld [vmem:[%s17888_s25 + $0x474] ss:$8 sps:$4 sm:$0xff]  }
 0x697   : > { %7344 = vmatprep.subr.bf16.mxu1 %v16829_v45  ;;  %v16869_v45 = vld [vmem:[%s17888_s25 + $0x470] ss:$8 sps:$4 sm:$0xff]  }
 0x69a   : > { %7345 = vmatpush1.bf16.msra.mxu1 %v16827_v23  ;;  %v16874_v23 = vld [vmem:[%s17888_s25 + $0x484] ss:$8 sps:$4 sm:$0xff]  }
 0x69b   : > { %7346 = vmatprep.subr.bf16.mxu1 %v16832_v30  ;;  %v16872_v30 = vld [vmem:[%s17888_s25 + $0x480] ss:$8 sps:$4 sm:$0xff]  }
 0x69e   : > { %7347 = vmatpush1.bf16.msra.mxu1 %v16830_v36  ;;  %v16877_v36 = vld [vmem:[%s17888_s25 + $0x494] ss:$8 sps:$4 sm:$0xff]  }
 0x69f   : > { %7348 = vmatprep.subr.bf16.mxu1 %v16835_v39  ;;  %v16875_v39 = vld [vmem:[%s17888_s25 + $0x490] ss:$8 sps:$4 sm:$0xff]  }
 0x6a2   : > { %7349 = vmatpush1.bf16.msra.mxu1 %v16833_v40  ;;  %v16880_v40 = vld [vmem:[%s17888_s25 + $0x4a4] ss:$8 sps:$4 sm:$0xff]  }
 0x6a3   : > { %7350 = vmatprep.subr.bf16.mxu1 %v16838_v41  ;;  %v16878_v41 = vld [vmem:[%s17888_s25 + $0x4a0] ss:$8 sps:$4 sm:$0xff]  }
 0x6a6   : > { %7351 = vmatpush1.bf16.msra.mxu1 %v16836_v42  ;;  %v16883_v42 = vld [vmem:[%s17888_s25 + $0x4b4] ss:$8 sps:$4 sm:$0xff]  }
 0x6a7   : > { %7352 = vmatprep.subr.bf16.mxu1 %v16841_v47  ;;  %v16881_v47 = vld [vmem:[%s17888_s25 + $0x4b0] ss:$8 sps:$4 sm:$0xff]  }
 0x6aa   : > { %7353 = vmatpush1.bf16.msra.mxu1 %v16839_v49  ;;  %v16886_v49 = vld [vmem:[%s17888_s25 + $0x4c4] ss:$8 sps:$4 sm:$0xff]  }
 0x6ab   : > { %7354 = vmatprep.subr.bf16.mxu1 %v16844_v55  ;;  %v16884_v55 = vld [vmem:[%s17888_s25 + $0x4c0] ss:$8 sps:$4 sm:$0xff]  }
 0x6ae   : > { %7355 = vmatpush1.bf16.msra.mxu1 %v16842_v58  ;;  %v16889_v58 = vld [vmem:[%s17888_s25 + $0x4d4] ss:$8 sps:$4 sm:$0xff]  }
 0x6af   : > { %7356 = vmatprep.subr.bf16.mxu1 %v16847_v61  ;;  %v16887_v61 = vld [vmem:[%s17888_s25 + $0x4d0] ss:$8 sps:$4 sm:$0xff]  }
 0x6b2   : > { %7357 = vmatpush1.bf16.msra.mxu1 %v16845_v13  ;;  %v16892_v13 = vld [vmem:[%s17888_s25 + $0x4e4] ss:$8 sps:$4 sm:$0xff]  }
 0x6b3   : > { %7358 = vmatprep.subr.bf16.mxu1 %v16850_v62  ;;  %v16890_v62 = vld [vmem:[%s17888_s25 + $0x4e0] ss:$8 sps:$4 sm:$0xff]  }
 0x6b6   : > { %7359 = vmatpush1.bf16.msra.mxu1 %v16848_v0  ;;  %v16895_v0 = vld [vmem:[%s17888_s25 + $0x4f4] ss:$8 sps:$4 sm:$0xff]  }
 0x6b7   : > { %7360 = vmatprep.subr.bf16.mxu1 %v16853_v37  ;;  %v16893_v37 = vld [vmem:[%s17888_s25 + $0x4f0] ss:$8 sps:$4 sm:$0xff]  }
 0x6ba   : > { %7361 = vmatpush1.bf16.msra.mxu1 %v16851_v12 }
 0x6bb   : > { %7362 = vmatprep.subr.bf16.mxu1 %v16856_v51 }
 0x6be   : > { %7363 = vmatpush1.bf16.msra.mxu1 %v16854_v2 }
 0x6bf   : > { %7364 = vmatprep.subr.bf16.mxu1 %v16859_v56 }
 0x6c2   : > { %7365 = vmatpush1.bf16.msra.mxu1 %v16857_v6 }
 0x6c3   : > { %7366 = vmatprep.subr.bf16.mxu1 %v16862_v33 }
 0x6c6   : > { %7367 = vmatpush1.bf16.msra.mxu1 %v16860_v35 }
 0x6c7   : > { %7368 = vmatprep.subr.bf16.mxu1 %v16865_v10 }
 0x6ca   : > { %7369 = vmatpush1.bf16.msra.mxu1 %v16863_v43 }
 0x6cb   : > { %7370 = vmatprep.subr.bf16.mxu1 %v16868_v11 }
 0x6ce   : > { %7371 = vmatpush1.bf16.msra.mxu1 %v16866_v14  ;;  %v14473_v14 = vld [vmem:[%s20028_s24 + $0x2] sm:$0x3] }
 0x6cf   : > { %7372 = vmatprep.subr.bf16.mxu1 %v16871_v16  ;;  %v6892_v16 = vrot.slane %v14473_v14, %v18396_v44 }
 0x6d2   : > { %7373 = vmatpush1.bf16.msra.mxu1 %v16869_v45  ;;  %v6896_v45 = vrot.slane %v14473_v14, %v18715_v29 }
 0x6d3   : > { %7385 = vmatprep.subr.bf16.mxu1 %v16874_v23  ;;  %v17691_v23 = vld [vmem:[%s17903_s20 + $0x2] sm:$0x3] }
 0x6d5   : > { %7375 = vmatmul.mubr.bf16.vlgmr.msra.gmra.mrb[32].mxu1 %v18124_v25 }
 0x6d6   : > { %7386 = vmatpush1.bf16.msra.mxu1 %v16872_v30  ;;  %7417 = vmatprep.mubr.bf16.mxu1 %v17759_v34  ;;  %v2851_v30 = vrot.slane %v17691_v23, %v18715_v29 }
 0x6d7   : > { %7387 = vmatprep.subr.bf16.mxu1 %v16877_v36 }
 0x6da   : > { %7388 = vmatpush1.bf16.msra.mxu1 %v16875_v39 }
 0x6db   : > { %7389 = vmatprep.subr.bf16.mxu1 %v16880_v40 }
 0x6de   : > { %7390 = vmatpush1.bf16.msra.mxu1 %v16878_v41 }
 0x6df   : > { %7391 = vmatprep.subr.bf16.mxu1 %v16883_v42 }
 0x6e2   : > { %7392 = vmatpush1.bf16.msra.mxu1 %v16881_v47  ;;  %v15492_v47 = vadd.f32 %v18761_v22, %v2851_v30 }
 0x6e3   : > { %7393 = vmatprep.subr.bf16.mxu1 %v16886_v49 }
 0x6e6   : > { %7394 = vmatpush1.bf16.msra.mxu1 %v16884_v55 }
 0x6e7   : > { %7395 = vmatprep.subr.bf16.mxu1 %v16889_v58 }
 0x6ea   : > { %7396 = vmatpush1.bf16.msra.mxu1 %v16887_v61 }
 0x6eb   : > { %7397 = vmatprep.subr.bf16.mxu1 %v16892_v13  ;;  %v3385_v13 = vpack.c.bf16 %v18612_v17, %v18612_v17 }
 0x6ee   : > { %7398 = vmatpush1.bf16.msra.mxu1 %v16890_v62 }
 0x6ef   : > { %7399 = vmatprep.subr.bf16.mxu1 %v16895_v0  ;;  %v15491_v0 = vadd.f32 %v18754_v15, %v18758_v20 }
 0x6f1   : > { %v3387_v22 = vpack.c.bf16 %v15491_v0, %v15491_v0  ;;  %v16913_v0 = vld [vmem:[%s17915_s2 + $0x1ec] ss:$20 sps:$4 sm:$0xff]  }
 0x6f2   : > { %7400 = vmatpush1.bf16.msra.mxu1 %v16893_v37  ;;  %v3388_v37 = vpack.c.bf16 %v15492_v47, %v15492_v47 }
 0x6f3   : > { %v7552_v17 = vsel %vm6645_vm1, %v3387_v22, 0  ;;  %v16917_v22 = vld [vmem:[%s17915_s2 + $0x210] ss:$20 sps:$4 sm:$0xff]  }
 0x6f5   : > { %7418 = vmatmul.mubr.bf16.vlgmr.msra.gmra.mrb[32].mxu1 %v18162_v63 }
 0x720   : > { %v6686_v12 = vpop.f32.mrb[24].mxu1 }
 0x721   : > { %v6688_v51 = vpop.f32.mrb[25].mxu1 }
 0x722   : > { %v6690_v2 = vpop.f32.mrb[26].mxu1 }
 0x723   : > { %v6691_v56 = vpop.f32.mrb[27].mxu1 }
 0x728   : > { %v6736_v6 = vpop.f32.mrb[28].mxu1 }
 0x729   : > { %v19008_v33 = vpack.c.bf16 %v6736_v6, %v6686_v12  ;;  %v6738_v35 = vpop.f32.mrb[29].mxu1 }
 0x72a   : > { %v19010_v10 = vpack.c.bf16 %v6738_v35, %v6688_v51  ;;  %v6740_v43 = vpop.f32.mrb[30].mxu1  ;;  %v15494_v51 = vadd.f32 %v18767_v27, %v2851_v30 }
 0x72b   : > { %v6741_v11 = vpop.f32.mrb[31].mxu1 }
 0x72c   : > { %v3390_v56 = vpack.c.bf16 %v15494_v51, %v15494_v51  ;;  %v16925_v51 = vld [vmem:[%s17915_s2 + $0x23c] ss:$20 sps:$4 sm:$0xff]  }
 0x7c8   : > { %v7419_v36 = vpop.f32.mrb[32].mxu1 }
 0x7c9   : > { %v15515_v39 = vadd.f32 %v7419_v36, %v6892_v16  ;;  %v7421_v40 = vpop.f32.mrb[33].mxu1 }
 0x7ca   : > { %v15516_v41 = vadd.f32 %v7421_v40, %v6896_v45  ;;  %v7423_v42 = vpop.f32.mrb[34].mxu1 }
 0x7cb   : > { %v7425_v49 = vpop.f32.mrb[35].mxu1  ;;  %v7428_v61 = vpack.c.bf16 %v15515_v39, %v15515_v39  ;;  %v15517_v12 = vadd.f32 %v7423_v42, %v6892_v16 }
 0x7cc   : > { %v7429_v55 = vpack.c.bf16 %v15516_v41, %v15516_v41  ;;  %v15518_v58 = vadd.f32 %v7425_v49, %v6896_v45 }
 0x7cd   : > { %v7430_v2 = vpack.c.bf16 %v15517_v12, %v15517_v12  ;;  %v16919_v12 = vld [vmem:[%s17915_s2 + $0x214] ss:$20 sps:$4 sm:$0xff]  }
 0x7ce   : > { %v7431_v62 = vpack.c.bf16 %v15518_v58, %v15518_v58  ;;  %14555 = vmatprep.mubr.msk.bf16.mxu0 %vm6524_vm0, %v7429_v55  ;;  %v16899_v58 = vld [vmem:[%s17915_s2 + $0x198] ss:$20 sps:$4 sm:$0xff]  }
 0x7cf   : > { %7471 = vmatmul.mubr.bf16.vlgmr.msra.gmra.mrb[20].mxu0 %v7428_v61  ;;  %v16901_v61 = vld [vmem:[%s17915_s2 + $0x19c] ss:$20 sps:$4 sm:$0xff]  }
 0x7d0   : > { %7485 = vmatpush1.bf16.xpose.msra.mxu0 %v3385_v13  ;;  %14557 = vmatprep.mubr.msk.bf16.mxu0 %vm6524_vm0, %v7431_v62  ;;  %v16907_v13 = vld [vmem:[%s17915_s2 + $0x1c4] ss:$20 sps:$4 sm:$0xff]   ;;  %v16905_v62 = vld [vmem:[%s17915_s2 + $0x1c0] ss:$20 sps:$4 sm:$0xff]  }
 0x7d1   : > { %14558 = vmatprep.subr.msk.bf16.mxu0 %vm6645_vm1, %v3388_v37  ;;  %8017 = vmatprep.subr.bf16.mxu1 %v16901_v61  ;;  %v16911_v37 = vld [vmem:[%s17915_s2 + $0x1e8] ss:$20 sps:$4 sm:$0xff]  }
 0x7d2   : > { %8018 = vmatpush1.bf16.msra.mxu1 %v16899_v58  ;;  %v16920_v58 = vld [vmem:[%s17915_s2 + $0x230] ss:$20 sps:$4 sm:$0xff]  }
 0x7d3   : > { %8019 = vmatprep.subr.bf16.mxu1 %v16907_v13  ;;  %v16928_v61 = vld [vmem:[%s17915_s2 + $0x25c] ss:$20 sps:$4 sm:$0xff]   ;;  %v16926_v13 = vld [vmem:[%s17915_s2 + $0x258] ss:$20 sps:$4 sm:$0xff]  }
 0x7d6   : > { %8020 = vmatpush1.bf16.msra.mxu1 %v16905_v62  ;;  %v16934_v62 = vld [vmem:[%s17915_s2 + $0x284] ss:$20 sps:$4 sm:$0xff]  }
 0x7d7   : > { %7517 = vmatmul.mubr.bf16.vlgmr.msra.gmra.mrb[24].mxu0 %v7430_v2  ;;  %8021 = vmatprep.subr.bf16.mxu1 %v16913_v0  ;;  %v16923_v2 = vld [vmem:[%s17915_s2 + $0x238] ss:$20 sps:$4 sm:$0xff]   ;;  %v16932_v0 = vld [vmem:[%s17915_s2 + $0x280] ss:$20 sps:$4 sm:$0xff]  }
 0x7d8   : > { %7558 = vmatpush1.bf16.msra.mxu0 %v7552_v17  ;;  %7589 = vmatprep.mubr.bf16.mxu0 %v17759_v34  ;;  %v16931_v17 = vld [vmem:[%s17915_s2 + $0x264] ss:$20 sps:$4 sm:$0xff]  }
 0x7d9   : > { %14560 = vmatprep.subr.msk.bf16.mxu0 %vm6645_vm1, %v3390_v56  ;;  %v16929_v56 = vld [vmem:[%s17915_s2 + $0x260] ss:$20 sps:$4 sm:$0xff]  }
 0x7da   : > { %8022 = vmatpush1.bf16.msra.mxu1 %v16911_v37  ;;  %v16940_v37 = vld [vmem:[%s17915_s2 + $0x2ac] ss:$20 sps:$4 sm:$0xff]  }
 0x7db   : > { %8023 = vmatprep.subr.bf16.mxu1 %v16919_v12  ;;  %v16943_v12 = vld [vmem:[%s17915_s2 + $0x2b4] ss:$20 sps:$4 sm:$0xff]  }
 0x7de   : > { %8024 = vmatpush1.bf16.msra.mxu1 %v16917_v22  ;;  %v16938_v22 = vld [vmem:[%s17915_s2 + $0x2a8] ss:$20 sps:$4 sm:$0xff]  }
 0x7df   : > { %8025 = vmatprep.subr.bf16.mxu1 %v16925_v51  ;;  %v16941_v51 = vld [vmem:[%s17915_s2 + $0x2b0] ss:$20 sps:$4 sm:$0xff]  }
 0x7e2   : > { %8026 = vmatpush1.bf16.msra.mxu1 %v16923_v2  ;;  %v16944_v2 = vld [vmem:[%s17915_s2 + $0x2d0] ss:$20 sps:$4 sm:$0xff]  }
 0x7e3   : > { %8027 = vmatprep.subr.bf16.mxu1 %v16931_v17  ;;  %v16946_v17 = vld [vmem:[%s17915_s2 + $0x2d4] ss:$20 sps:$4 sm:$0xff]  }
 0x7e6   : > { %8028 = vmatpush1.bf16.msra.mxu1 %v16929_v56  ;;  %v16947_v56 = vld [vmem:[%s17915_s2 + $0x2d8] ss:$20 sps:$4 sm:$0xff]  }
 0x8a2   : > { %v7472_v15 = vpop.f32.mrb[20].mxu0 }
 0x8a3   : > { %v7474_v20 = vpop.f32.mrb[21].mxu0  ;;  %v7524_v6 = vsel %vm6617_vm2, %v7472_v15, -inf }
 0x8a4   : > { %7525 = vmax.xlane.f32.xlu0 %v7524_v6  ;;  %v7475_v35 = vpop.f32.mrb[22].mxu0  ;;  %v16935_v20 = vld [vmem:[%s17915_s2 + $0x288] ss:$20 sps:$4 sm:$0xff]  }
 0x8a5   : > { %v7476_v43 = vpop.f32.mrb[23].mxu0 }
 0x8aa   : > { %v7518_v11 = vpop.f32.mrb[24].mxu0 }
 0x8ab   : > { %v7520_v14 = vpop.f32.mrb[25].mxu0  ;;  %v7527_v27 = vsel %vm6617_vm2, %v7518_v11, -inf }
 0x8ac   : > { %7528 = vmax.xlane.f32.xlu1 %v7527_v27  ;;  %v7521_v16 = vpop.f32.mrb[26].mxu0 }
 0x8ad   : > { %v7522_v45 = vpop.f32.mrb[27].mxu0  ;;  %v16898_v16 = vld [vmem:[%s17915_s2 + $0x194] ss:$20 sps:$4 sm:$0xff]  }
 0x931   : > { %v7526_v23 = vpop.xlane.xlu0 %7525 }
 0x932   : > { %v7530_v30 = vsub.f32 %v7472_v15, %v7526_v23  ;;  %v16937_v15 = vld [vmem:[%s17915_s2 + $0x28c] ss:$20 sps:$4 sm:$0xff]  }
 0x933   : > { %8029 = vmatprep.subr.bf16.mxu1 %v16937_v15  ;;  %v16949_v15 = vld [vmem:[%s17915_s2 + $0x2dc] ss:$20 sps:$4 sm:$0xff]  }
 0x934   : > { %v7532_v36 = vmul.f32 1.442695, %v7530_v30  ;;  %8030 = vmatpush1.bf16.msra.mxu1 %v16935_v20  ;;  %v16952_v20 = vld [vmem:[%s17915_s2 + $0x2fc] ss:$20 sps:$4 sm:$0xff]  }
 0x935   : > { %8031 = vmatprep.subr.bf16.mxu1 %v16943_v12  ;;  %v16974_v12 = vld [vmem:[%s17915_s2 + $0xac] ss:$20 sps:$4 sm:$0xff]  }
 0x936   : > { %17656 = vpow2.f32 %v7532_v36 }
 0x938   : > { %8032 = vmatpush1.bf16.msra.mxu1 %v16941_v51  ;;  %v16975_v51 = vld [vmem:[%s17915_s2 + $0x240] ss:$20 sps:$4 sm:$0xff]  }
 0x939   : > { %v7529_v39 = vpop.xlane.xlu1 %7528  ;;  %8033 = vmatprep.subr.bf16.mxu1 %v16949_v15  ;;  %v16982_v15 = vld [vmem:[%s17915_s2 + $0xfc] ss:$20 sps:$4 sm:$0xff]  }
 0x93a   : > { %v7531_v40 = vsub.f32 %v7518_v11, %v7529_v39  ;;  %v3389_v11 = vpack.c.bf16 %v18765_v26, %v18765_v26  ;;  %v16896_v26 = vld [vmem:[%s17915_s2 + $0x190] ss:$20 sps:$4 sm:$0xff]  }
 0x93b   : > { %v16904_v39 = vld [vmem:[%s17915_s2 + $0x1bc] ss:$20 sps:$4 sm:$0xff]  }
 0x93c   : > { %v7534_v41 = vmul.f32 1.442695, %v7531_v40  ;;  %v7602_v45 = vsel %vm6645_vm1, %v3389_v11, 0  ;;  %v16902_v40 = vld [vmem:[%s17915_s2 + $0x1b8] ss:$20 sps:$4 sm:$0xff]   ;;  %8034 = vmatpush1.bf16.msra.mxu1 %v16947_v56 }
 0x93d   : > { %v16958_v11 = vld [vmem:[%s17915_s2 + $0xc] ss:$20 sps:$4 sm:$0xff]   ;;  %v16979_v56 = vld [vmem:[%s17915_s2 + $0x268] ss:$20 sps:$4 sm:$0xff]  }
 0x93e   : > { %17658 = vpow2.f32 %v7534_v41  ;;  %v16910_v41 = vld [vmem:[%s17915_s2 + $0x1e4] ss:$20 sps:$4 sm:$0xff]  }
 0x940   : > { %v17657_v42 = vpop.eup %17656 }
 0x941   : > { %v7536_v47 = vsel %vm6617_vm2, %v17657_v42, 0.0 }
 0x942   : > { %7537 = vadd.xlane.f32.xlu0 %v7536_v47  ;;  %v16916_v47 = vld [vmem:[%s17915_s2 + $0x20c] ss:$20 sps:$4 sm:$0xff]  }
 0x948   : > { %v17659_v49 = vpop.eup %17658 }
 0x949   : > { %v7539_v55 = vsel %vm6617_vm2, %v17659_v49, 0.0 }
 0x94a   : > { %7540 = vadd.xlane.f32.xlu1 %v7539_v55  ;;  %v16922_v55 = vld [vmem:[%s17915_s2 + $0x234] ss:$20 sps:$4 sm:$0xff]  }
 0x9cf   : > { %v7538_v6 = vpop.xlane.xlu0 %7537 }
 0x9d0   : > { %17660 = vrcp.f32 %v7538_v6  ;;  %v16955_v6 = vld [vmem:[%s17915_s2 + $0x304] ss:$20 sps:$4 sm:$0xff]  }
 0x9d1   : > { %8035 = vmatprep.subr.bf16.mxu1 %v16955_v6  ;;  %v16983_v6 = vld [vmem:[%s17915_s2 + $0x290] ss:$20 sps:$4 sm:$0xff]  }
 0x9d7   : > { %v7541_v35 = vpop.xlane.xlu1 %7540 }
 0x9d8   : > { %17662 = vrcp.f32 %v7541_v35  ;;  %v16950_v35 = vld [vmem:[%s17915_s2 + $0x2f8] ss:$20 sps:$4 sm:$0xff]  }
 0x9da   : > { %v17661_v43 = vpop.eup %17660 }
 0x9db   : > { %v7544_v14 = vmul.f32 %v17661_v43, %v17657_v42  ;;  %v16908_v42 = vld [vmem:[%s17915_s2 + $0x1e0] ss:$20 sps:$4 sm:$0xff]  }
 0x9dc   : > { %v16953_v43 = vld [vmem:[%s17915_s2 + $0x300] ss:$20 sps:$4 sm:$0xff]  }
 0x9dd   : > { %v7546_v27 = vpack.c.bf16 %v7544_v14, %v7544_v14  ;;  %8036 = vmatpush1.bf16.msra.mxu1 %v16953_v43  ;;  %v16984_v43 = vld [vmem:[%s17915_s2 + $0x120] ss:$20 sps:$4 sm:$0xff]  }
 0x9de   : > { %8407 = vmatprep.subr.bf16.mxu1 %v16958_v11  ;;  %v16987_v11 = vld [vmem:[%s17915_s2 + $0x2b8] ss:$20 sps:$4 sm:$0xff]  }
 0x9df   : > { %14559 = vmatmul.mubr.msk.bf16.vlgmr.msra.gmra.mrb[28].mxu0 %vm6617_vm2, %v7546_v27 }
 0x9e0   : > { %7608 = vmatpush1.bf16.msra.mxu0 %v7602_v45  ;;  %7639 = vmatprep.mubr.bf16.mxu0 %v17759_v34 }
 0x9e1   : > { %7974 = vmatprep.subr.bf16.mxu0 %v16898_v16 }
 0x9e2   : > { %v17663_v23 = vpop.eup %17662 }
 0x9e3   : > { %v7545_v30 = vmul.f32 %v17663_v23, %v17659_v49  ;;  %v16914_v49 = vld [vmem:[%s17915_s2 + $0x208] ss:$20 sps:$4 sm:$0xff]  }
 0x9e5   : > { %v7547_v36 = vpack.c.bf16 %v7545_v30, %v7545_v30 }
 0x9e7   : > { %14561 = vmatmul.mubr.msk.bf16.vlgmr.msra.gmra.mrb[32].mxu0 %vm6617_vm2, %v7547_v36 }
 0x9e8   : > { %7975 = vmatpush1.bf16.msra.mxu0 %v16896_v26 }
 0x9e9   : > { %7976 = vmatprep.subr.bf16.mxu0 %v16904_v39 }
 0x9ec   : > { %7977 = vmatpush1.bf16.msra.mxu0 %v16902_v40  ;;  %v16956_v40 = vld [vmem:[%s17915_s2 + $0x8] ss:$20 sps:$4 sm:$0xff]  }
 0x9ed   : > { %7978 = vmatprep.subr.bf16.mxu0 %v16910_v41  ;;  %v16959_v41 = vld [vmem:[%s17915_s2 + $0x1a0] ss:$20 sps:$4 sm:$0xff]  }
 0x9f0   : > { %7979 = vmatpush1.bf16.msra.mxu0 %v16908_v42 }
 0x9f1   : > { %7980 = vmatprep.subr.bf16.mxu0 %v16916_v47  ;;  %v16962_v47 = vld [vmem:[%s17915_s2 + $0x34] ss:$20 sps:$4 sm:$0xff]  }
 0x9f4   : > { %7981 = vmatpush1.bf16.msra.mxu0 %v16914_v49  ;;  %v16960_v49 = vld [vmem:[%s17915_s2 + $0x30] ss:$20 sps:$4 sm:$0xff]  }
 0x9f5   : > { %7982 = vmatprep.subr.bf16.mxu0 %v16922_v55  ;;  %v16963_v55 = vld [vmem:[%s17915_s2 + $0x1c8] ss:$20 sps:$4 sm:$0xff]  }
 0x9f8   : > { %7983 = vmatpush1.bf16.msra.mxu0 %v16920_v58  ;;  %v16966_v58 = vld [vmem:[%s17915_s2 + $0x5c] ss:$20 sps:$4 sm:$0xff]  }
 0x9f9   : > { %7984 = vmatprep.subr.bf16.mxu0 %v16928_v61  ;;  %v16964_v61 = vld [vmem:[%s17915_s2 + $0x58] ss:$20 sps:$4 sm:$0xff]  }
 0x9fc   : > { %7985 = vmatpush1.bf16.msra.mxu0 %v16926_v13  ;;  %v16967_v13 = vld [vmem:[%s17915_s2 + $0x1f0] ss:$20 sps:$4 sm:$0xff]  }
 0x9fd   : > { %7986 = vmatprep.subr.bf16.mxu0 %v16934_v62  ;;  %v16970_v62 = vld [vmem:[%s17915_s2 + $0x84] ss:$20 sps:$4 sm:$0xff]  }
 0xa00   : > { %7987 = vmatpush1.bf16.msra.mxu0 %v16932_v0  ;;  %v16968_v0 = vld [vmem:[%s17915_s2 + $0x80] ss:$20 sps:$4 sm:$0xff]  }
 0xa01   : > { %7988 = vmatprep.subr.bf16.mxu0 %v16940_v37  ;;  %v16971_v37 = vld [vmem:[%s17915_s2 + $0x218] ss:$20 sps:$4 sm:$0xff]  }
 0xa04   : > { %7989 = vmatpush1.bf16.msra.mxu0 %v16938_v22  ;;  %v16972_v22 = vld [vmem:[%s17915_s2 + $0xa8] ss:$20 sps:$4 sm:$0xff]  }
 0xa05   : > { %7990 = vmatprep.subr.bf16.mxu0 %v16946_v17  ;;  %v16976_v17 = vld [vmem:[%s17915_s2 + $0xd0] ss:$20 sps:$4 sm:$0xff]  }
 0xa08   : > { %7991 = vmatpush1.bf16.msra.mxu0 %v16944_v2  ;;  %v16978_v2 = vld [vmem:[%s17915_s2 + $0xd4] ss:$20 sps:$4 sm:$0xff]  }
 0xa09   : > { %7992 = vmatprep.subr.bf16.mxu0 %v16952_v20  ;;  %v16980_v20 = vld [vmem:[%s17915_s2 + $0xf8] ss:$20 sps:$4 sm:$0xff]  }
 0xa0c   : > { %7993 = vmatpush1.bf16.msra.mxu0 %v16950_v35  ;;  %v16986_v35 = vld [vmem:[%s17915_s2 + $0x124] ss:$20 sps:$4 sm:$0xff]  }
 0xa0d   : > { %8060 = vmatprep.subr.bf16.mxu0 %v17759_v34 }
 0xab2   : > { %v7591_v14 = vpop.f32.mrb[28].mxu0 }
 0xab3   : > { %v7593_v27 = vpop.f32.mrb[29].mxu0 }
 0xab4   : > { %v7595_v16 = vpop.f32.mrb[30].mxu0 }
 0xab5   : > { %v7596_v45 = vpop.f32.mrb[31].mxu0  ;;  %v16991_v16 = vld [vmem:[%s17915_s2 + $0x2e0] ss:$20 sps:$4 sm:$0xff]  }
 0xab6   : > { %v16994_v45 = vld [vmem:[%s17915_s2 + $0x174] ss:$20 sps:$4 sm:$0xff]  }
 0xaba   : > { %v7641_v23 = vpop.f32.mrb[32].mxu0 }
 0xabb   : > { %v19081_v30 = vpack.c.bf16 %v7641_v23, %v7591_v14  ;;  %v7643_v26 = vpop.f32.mrb[33].mxu0  ;;  %v16990_v14 = vld [vmem:[%s17915_s2 + $0x14c] ss:$20 sps:$4 sm:$0xff]   ;;  %v16992_v23 = vld [vmem:[%s17915_s2 + $0x170] ss:$20 sps:$4 sm:$0xff]  }
 0xabc   : > { %v7649_v36 = vpack.c.bf16 %v7643_v26, %v7593_v27  ;;  %v7645_v39 = vpop.f32.mrb[34].mxu0  ;;  %v16988_v27 = vld [vmem:[%s17915_s2 + $0x148] ss:$20 sps:$4 sm:$0xff]  }
 0xabd   : > { %v7646_v42 = vpop.f32.mrb[35].mxu0  ;;  %v16995_v26 = vld [vmem:[%s17915_s2 + $0x308] ss:$20 sps:$4 sm:$0xff]   ;;  %v16996_v39 = vld [vmem:[%s17915_s2] ss:$20 sps:$4 sm:$0xff]  }
 0xabe   : > { %14672 = vmatprep.mubr.msk.bf16.mxu0 %vm6524_vm0, %v7649_v36  ;;  %14673 = vmatprep.mubr.msk.bf16.mxu1 %vm6524_vm0, %v7649_v36  ;;  %v17000_v42 = vld [vmem:[%s17915_s2 + $0x28] ss:$20 sps:$4 sm:$0xff]  }
 0xabf   : > { %8007 = vmatmul.mubr.bf16.vlgmr.msra.gmra.mrb[36].mxu0 %v19081_v30  ;;  %8050 = vmatmul.mubr.bf16.vlgmr.msra.gmra.mrb[36].mxu1 %v19081_v30 }
 0xac0   : > { %8061 = vmatpush1.bf16.msra.mxu0 %v16959_v41  ;;  %8408 = vmatpush1.bf16.msra.mxu1 %v16956_v40  ;;  %v16999_v40 = vld [vmem:[%s17915_s2 + $0x10] ss:$20 sps:$4 sm:$0xff]   ;;  %v17002_v41 = vld [vmem:[%s17915_s2 + $0x2c] ss:$20 sps:$4 sm:$0xff]  }
 0xac1   : > { %14674 = vmatprep.mubr.msk.bf16.mxu0 %vm6524_vm0, %v7649_v36  ;;  %14726 = vmatprep.mubr.msk.bf16.mxu1 %vm6524_vm0, %v19010_v10  ;;  %v16998_v36 = vld [vmem:[%s17915_s2 + $0x4] ss:$20 sps:$4 sm:$0xff]  }
 0xac2   : > { %8062 = vmatprep.subr.bf16.mxu0 %v17759_v34  ;;  %8409 = vmatprep.subr.bf16.mxu1 %v16962_v47  ;;  %v17003_v47 = vld [vmem:[%s17915_s2 + $0x38] ss:$20 sps:$4 sm:$0xff]  }
 0xac4   : > { %8063 = vmatpush1.bf16.msra.mxu0 %v16963_v55  ;;  %8410 = vmatpush1.bf16.msra.mxu1 %v16960_v49  ;;  %v17006_v49 = vld [vmem:[%s17915_s2 + $0x54] ss:$20 sps:$4 sm:$0xff]  }
 0xac5   : > { %8064 = vmatprep.subr.bf16.mxu0 %v17759_v34  ;;  %8411 = vmatprep.subr.bf16.mxu1 %v16966_v58  ;;  %v17007_v55 = vld [vmem:[%s17915_s2 + $0x60] ss:$20 sps:$4 sm:$0xff]   ;;  %v17010_v58 = vld [vmem:[%s17915_s2 + $0x7c] ss:$20 sps:$4 sm:$0xff]  }
 0xac8   : > { %8065 = vmatpush1.bf16.msra.mxu0 %v16967_v13  ;;  %8412 = vmatpush1.bf16.msra.mxu1 %v16964_v61  ;;  %v17011_v61 = vld [vmem:[%s17915_s2 + $0x88] ss:$20 sps:$4 sm:$0xff]   ;;  %v17014_v13 = vld [vmem:[%s17915_s2 + $0xa4] ss:$20 sps:$4 sm:$0xff]  }
 0xac9   : > { %8066 = vmatprep.subr.bf16.mxu0 %v17759_v34  ;;  %8413 = vmatprep.subr.bf16.mxu1 %v16970_v62  ;;  %v17012_v62 = vld [vmem:[%s17915_s2 + $0xa0] ss:$20 sps:$4 sm:$0xff]  }
 0xacc   : > { %8067 = vmatpush1.bf16.msra.mxu0 %v16971_v37  ;;  %8414 = vmatpush1.bf16.msra.mxu1 %v16968_v0  ;;  %v17015_v0 = vld [vmem:[%s17915_s2 + $0xb0] ss:$20 sps:$4 sm:$0xff]   ;;  %v17018_v37 = vld [vmem:[%s17915_s2 + $0xcc] ss:$20 sps:$4 sm:$0xff]  }
 0xacd   : > { %8068 = vmatprep.subr.bf16.mxu0 %v17759_v34  ;;  %8415 = vmatprep.subr.bf16.mxu1 %v16974_v12  ;;  %v17016_v12 = vld [vmem:[%s17915_s2 + $0xc8] ss:$20 sps:$4 sm:$0xff]  }
 0xad0   : > { %8069 = vmatpush1.bf16.msra.mxu0 %v16975_v51  ;;  %8416 = vmatpush1.bf16.msra.mxu1 %v16972_v22  ;;  %v17019_v22 = vld [vmem:[%s17915_s2 + $0xd8] ss:$20 sps:$4 sm:$0xff]   ;;  %v17022_v51 = vld [vmem:[%s17915_s2 + $0xf4] ss:$20 sps:$4 sm:$0xff]  }
 0xad1   : > { %8070 = vmatprep.subr.bf16.mxu0 %v17759_v34  ;;  %8417 = vmatprep.subr.bf16.mxu1 %v16978_v2  ;;  %v17020_v2 = vld [vmem:[%s17915_s2 + $0xf0] ss:$20 sps:$4 sm:$0xff]  }
 0xad4   : > { %8071 = vmatpush1.bf16.msra.mxu0 %v16979_v56  ;;  %8418 = vmatpush1.bf16.msra.mxu1 %v16976_v17  ;;  %v17023_v17 = vld [vmem:[%s17915_s2 + $0x100] ss:$20 sps:$4 sm:$0xff]   ;;  %v17026_v56 = vld [vmem:[%s17915_s2 + $0x11c] ss:$20 sps:$4 sm:$0xff]  }
 0xad5   : > { %8072 = vmatprep.subr.bf16.mxu0 %v17759_v34  ;;  %8419 = vmatprep.subr.bf16.mxu1 %v16982_v15  ;;  %v17024_v15 = vld [vmem:[%s17915_s2 + $0x118] ss:$20 sps:$4 sm:$0xff]  }
 0xad8   : > { %8073 = vmatpush1.bf16.msra.mxu0 %v16983_v6  ;;  %8420 = vmatpush1.bf16.msra.mxu1 %v16980_v20  ;;  %v17027_v20 = vld [vmem:[%s17915_s2 + $0x128] ss:$20 sps:$4 sm:$0xff]   ;;  %v17030_v6 = vld [vmem:[%s17915_s2 + $0x144] ss:$20 sps:$4 sm:$0xff]  }
 0xad9   : > { %8074 = vmatprep.subr.bf16.mxu0 %v17759_v34  ;;  %8421 = vmatprep.subr.bf16.mxu1 %v16986_v35  ;;  %v17692_v35 = vld [vmem:[%s17883_s22 + $0x4] sm:$0x3] }
 0xadc   : > { %8075 = vmatpush1.bf16.msra.mxu0 %v16987_v11  ;;  %8422 = vmatpush1.bf16.msra.mxu1 %v16984_v43  ;;  %v3482_v43 = vrot.slane %v17692_v35, %v18715_v29  ;;  %v17028_v11 = vld [vmem:[%s17915_s2 + $0x140] ss:$20 sps:$4 sm:$0xff]  }
 0xadd   : > { %8076 = vmatprep.subr.bf16.mxu0 %v17759_v34  ;;  %8423 = vmatprep.subr.bf16.mxu1 %v16990_v14  ;;  %v17031_v14 = vld [vmem:[%s17915_s2 + $0x150] ss:$20 sps:$4 sm:$0xff]   ;;  %v17077_v35 = vld [vmem:[%s17888_s25 + $0x5d4] ss:$8 sps:$4 sm:$0xff]  }
 0xae0   : > { %8077 = vmatpush1.bf16.msra.mxu0 %v16991_v16  ;;  %8424 = vmatpush1.bf16.msra.mxu1 %v16988_v27  ;;  %v17034_v27 = vld [vmem:[%s17915_s2 + $0x16c] ss:$20 sps:$4 sm:$0xff]   ;;  %v15496_v16 = vadd.f32 %v18785_v54, %v3482_v43  ;;  %v15495_v54 = vadd.f32 %v18779_v48, %v18783_v53  ;;  %v17047_v48 = vld [vmem:[%s17888_s25 + $0x534] ss:$8 sps:$4 sm:$0xff]   ;;  %v17045_v53 = vld [vmem:[%s17888_s25 + $0x530] ss:$8 sps:$4 sm:$0xff]  }
 0xae1   : > { %8078 = vmatprep.subr.bf16.mxu0 %v17759_v34  ;;  %8425 = vmatprep.subr.bf16.mxu1 %v16994_v45  ;;  %v17032_v45 = vld [vmem:[%s17915_s2 + $0x168] ss:$20 sps:$4 sm:$0xff]  }
 0xae4   : > { %8079 = vmatpush1.bf16.msra.mxu0 %v16995_v26  ;;  %8426 = vmatpush1.bf16.msra.mxu1 %v16992_v23  ;;  %v17035_v23 = vld [vmem:[%s17915_s2 + $0x178] ss:$20 sps:$4 sm:$0xff]  }
 0xae5   : > { %8364 = vmatprep.subr.bf16.mxu0 %v16998_v36  ;;  %8450 = vmatprep.subr.bf16.mxu1 %v17759_v34  ;;  %v17038_v26 = vld [vmem:[%s17888_s25 + $0x504] ss:$8 sps:$4 sm:$0xff]   ;;  %v4638_v36 = vpack.c.bf16 %v15496_v16, %v15496_v16  ;;  %v17081_v16 = vld [vmem:[%s17888_s25 + $0x5f0] ss:$8 sps:$4 sm:$0xff]  }
 0xae7   : > { %8093 = vmatmul.mubr.bf16.vlgmr.msra.gmra.mrb[40].mxu0 %v19081_v30  ;;  %8440 = vmatmul.mubr.bf16.vlgmr.msra.gmra.mrb[36].mxu1 %v19008_v33  ;;  %v17004_v30 = vld [vmem:[%s17915_s2 + $0x50] ss:$20 sps:$4 sm:$0xff]  }
 0xae8   : > { %8365 = vmatpush1.bf16.msra.mxu0 %v16996_v39  ;;  %14725 = vmatprep.mubr.msk.bf16.mxu0 %vm6524_vm0, %v19010_v10  ;;  %v17036_v39 = vld [vmem:[%s17888_s25 + $0x500] ss:$8 sps:$4 sm:$0xff]  }
 0xae9   : > { %8451 = vmatpush1.bf16.msra.mxu1 %v16999_v40  ;;  %14727 = vmatprep.mubr.msk.bf16.mxu1 %vm6524_vm0, %v19010_v10  ;;  %v17008_v10 = vld [vmem:[%s17915_s2 + $0x78] ss:$20 sps:$4 sm:$0xff]   ;;  %v17041_v40 = vld [vmem:[%s17888_s25 + $0x514] ss:$8 sps:$4 sm:$0xff]  }
 0xaea   : > { %8366 = vmatprep.subr.bf16.mxu0 %v17002_v41  ;;  %8452 = vmatprep.subr.bf16.mxu1 %v17759_v34  ;;  %v17039_v41 = vld [vmem:[%s17888_s25 + $0x510] ss:$8 sps:$4 sm:$0xff]  }
 0xaec   : > { %8367 = vmatpush1.bf16.msra.mxu0 %v17000_v42  ;;  %v15498_v42 = vadd.f32 %v18791_v59, %v3482_v43  ;;  %v17050_v59 = vld [vmem:[%s17888_s25 + $0x544] ss:$8 sps:$4 sm:$0xff]   ;;  %v17075_v43 = vld [vmem:[%s17888_s25 + $0x5d0] ss:$8 sps:$4 sm:$0xff]  }
 0xaed   : > { %8453 = vmatpush1.bf16.msra.mxu1 %v17003_v47  ;;  %8368 = vmatprep.subr.bf16.mxu0 %v17006_v49  ;;  %v17044_v47 = vld [vmem:[%s17888_s25 + $0x524] ss:$8 sps:$4 sm:$0xff]   ;;  %v4637_v49 = vpack.c.bf16 %v15495_v54, %v15495_v54  ;;  %v17095_v54 = vld [vmem:[%s17888_s25 + $0x634] ss:$8 sps:$4 sm:$0xff]  }
 0xaee   : > { %8454 = vmatprep.subr.bf16.mxu1 %v17759_v34 }
 0xaf0   : > { %8369 = vmatpush1.bf16.msra.mxu0 %v17004_v30  ;;  %v17042_v30 = vld [vmem:[%s17888_s25 + $0x520] ss:$8 sps:$4 sm:$0xff]  }
 0xaf1   : > { %8455 = vmatpush1.bf16.msra.mxu1 %v17007_v55  ;;  %8370 = vmatprep.subr.bf16.mxu0 %v17010_v58  ;;  %v4640_v55 = vpack.c.bf16 %v15498_v42, %v15498_v42  ;;  %v17053_v58 = vld [vmem:[%s17888_s25 + $0x554] ss:$8 sps:$4 sm:$0xff]   ;;  %v17098_v42 = vld [vmem:[%s17888_s25 + $0x644] ss:$8 sps:$4 sm:$0xff]  }
 0xaf2   : > { %8456 = vmatprep.subr.bf16.mxu1 %v17759_v34 }
 0xaf4   : > { %8371 = vmatpush1.bf16.msra.mxu0 %v17008_v10  ;;  %v17051_v10 = vld [vmem:[%s17888_s25 + $0x550] ss:$8 sps:$4 sm:$0xff]  }
 0xaf5   : > { %8457 = vmatpush1.bf16.msra.mxu1 %v17011_v61  ;;  %8372 = vmatprep.subr.bf16.mxu0 %v17014_v13  ;;  %v17056_v61 = vld [vmem:[%s17888_s25 + $0x564] ss:$8 sps:$4 sm:$0xff]   ;;  %v17054_v13 = vld [vmem:[%s17888_s25 + $0x560] ss:$8 sps:$4 sm:$0xff]  }
 0xaf6   : > { %8458 = vmatprep.subr.bf16.mxu1 %v17759_v34 }
 0xaf8   : > { %8373 = vmatpush1.bf16.msra.mxu0 %v17012_v62  ;;  %v17059_v62 = vld [vmem:[%s17888_s25 + $0x574] ss:$8 sps:$4 sm:$0xff]  }
 0xaf9   : > { %8459 = vmatpush1.bf16.msra.mxu1 %v17015_v0  ;;  %8374 = vmatprep.subr.bf16.mxu0 %v17018_v37  ;;  %v17057_v0 = vld [vmem:[%s17888_s25 + $0x570] ss:$8 sps:$4 sm:$0xff]   ;;  %v17062_v37 = vld [vmem:[%s17888_s25 + $0x584] ss:$8 sps:$4 sm:$0xff]  }
 0xafa   : > { %8460 = vmatprep.subr.bf16.mxu1 %v17759_v34 }
 0xafc   : > { %8375 = vmatpush1.bf16.msra.mxu0 %v17016_v12  ;;  %v17060_v12 = vld [vmem:[%s17888_s25 + $0x580] ss:$8 sps:$4 sm:$0xff]  }
 0xafd   : > { %8461 = vmatpush1.bf16.msra.mxu1 %v17019_v22  ;;  %8376 = vmatprep.subr.bf16.mxu0 %v17022_v51  ;;  %v17065_v22 = vld [vmem:[%s17888_s25 + $0x594] ss:$8 sps:$4 sm:$0xff]   ;;  %v17063_v51 = vld [vmem:[%s17888_s25 + $0x590] ss:$8 sps:$4 sm:$0xff]  }
 0xafe   : > { %8462 = vmatprep.subr.bf16.mxu1 %v17759_v34 }
 0xb00   : > { %8377 = vmatpush1.bf16.msra.mxu0 %v17020_v2  ;;  %v17068_v2 = vld [vmem:[%s17888_s25 + $0x5a4] ss:$8 sps:$4 sm:$0xff]  }
 0xb01   : > { %8463 = vmatpush1.bf16.msra.mxu1 %v17023_v17  ;;  %8378 = vmatprep.subr.bf16.mxu0 %v17026_v56  ;;  %v17066_v17 = vld [vmem:[%s17888_s25 + $0x5a0] ss:$8 sps:$4 sm:$0xff]   ;;  %v17071_v56 = vld [vmem:[%s17888_s25 + $0x5b4] ss:$8 sps:$4 sm:$0xff]  }
 0xb02   : > { %8464 = vmatprep.subr.bf16.mxu1 %v17759_v34 }
 0xb04   : > { %8379 = vmatpush1.bf16.msra.mxu0 %v17024_v15  ;;  %v17069_v15 = vld [vmem:[%s17888_s25 + $0x5b0] ss:$8 sps:$4 sm:$0xff]  }
 0xb05   : > { %8465 = vmatpush1.bf16.msra.mxu1 %v17027_v20  ;;  %8380 = vmatprep.subr.bf16.mxu0 %v17030_v6  ;;  %v17074_v20 = vld [vmem:[%s17888_s25 + $0x5c4] ss:$8 sps:$4 sm:$0xff]   ;;  %v17072_v6 = vld [vmem:[%s17888_s25 + $0x5c0] ss:$8 sps:$4 sm:$0xff]  }
 0xb06   : > { %8466 = vmatprep.subr.bf16.mxu1 %v17759_v34 }
 0xb08   : > { %8381 = vmatpush1.bf16.msra.mxu0 %v17028_v11  ;;  %v17080_v11 = vld [vmem:[%s17888_s25 + $0x5e4] ss:$8 sps:$4 sm:$0xff]  }
 0xb09   : > { %8467 = vmatpush1.bf16.msra.mxu1 %v17031_v14  ;;  %8382 = vmatprep.subr.bf16.mxu0 %v17034_v27  ;;  %v17078_v14 = vld [vmem:[%s17888_s25 + $0x5e0] ss:$8 sps:$4 sm:$0xff]   ;;  %v17083_v27 = vld [vmem:[%s17888_s25 + $0x5f4] ss:$8 sps:$4 sm:$0xff]  }
 0xb0a   : > { %8468 = vmatprep.subr.bf16.mxu1 %v17759_v34 }
 0xb0c   : > { %8383 = vmatpush1.bf16.msra.mxu0 %v17032_v45  ;;  %v17086_v45 = vld [vmem:[%s17888_s25 + $0x604] ss:$8 sps:$4 sm:$0xff]  }
 0xb0d   : > { %8469 = vmatpush1.bf16.msra.mxu1 %v17035_v23  ;;  %8985 = vmatprep.subr.bf16.mxu0 %v17038_v26  ;;  %v17084_v23 = vld [vmem:[%s17888_s25 + $0x600] ss:$8 sps:$4 sm:$0xff]   ;;  %v17089_v26 = vld [vmem:[%s17888_s25 + $0x614] ss:$8 sps:$4 sm:$0xff]  }
 0xb0e   : > { %14889 = vmatprep.subr.msk.bf16.mxu1 %vm6524_vm0, %v4638_v36  ;;  %v17087_v36 = vld [vmem:[%s17888_s25 + $0x610] ss:$8 sps:$4 sm:$0xff]  }
 0xb0f   : > { %8397 = vmatmul.mubr.bf16.vlgmr.msra.gmra.mrb[36].mxu0 %v19008_v33 }
 0xb10   : > { %8483 = vmatmul.mubr.bf16.vlgmr.msra.gmra.mrb[40].mxu1 %v19008_v33  ;;  %8986 = vmatpush1.bf16.msra.mxu0 %v17036_v39  ;;  %v17048_v33 = vld [vmem:[%s17888_s25 + $0x540] ss:$8 sps:$4 sm:$0xff]   ;;  %v17092_v39 = vld [vmem:[%s17888_s25 + $0x624] ss:$8 sps:$4 sm:$0xff]  }
 0xb11   : > { %8987 = vmatprep.subr.bf16.mxu0 %v17041_v40  ;;  %9017 = vmatprep.mubr.bf16.mxu0 %v18030_v60  ;;  %v17090_v40 = vld [vmem:[%s17888_s25 + $0x620] ss:$8 sps:$4 sm:$0xff]  }
 0xb14   : > { %8988 = vmatpush1.bf16.msra.mxu0 %v17039_v41  ;;  %v17093_v41 = vld [vmem:[%s17888_s25 + $0x630] ss:$8 sps:$4 sm:$0xff]  }
 0xb15   : > { %8989 = vmatprep.subr.bf16.mxu0 %v17044_v47  ;;  %v17096_v47 = vld [vmem:[%s17888_s25 + $0x640] ss:$8 sps:$4 sm:$0xff]  }
 0xb16   : > { %9125 = vmatpush1.bf16.xpose.msra.mxu1 %v4637_v49  ;;  %v17101_v49 = vld [vmem:[%s17888_s25 + $0x654] ss:$8 sps:$4 sm:$0xff]  }
 0xb17   : > { %14891 = vmatprep.subr.msk.bf16.mxu1 %vm6524_vm0, %v4640_v55  ;;  %v17104_v55 = vld [vmem:[%s17888_s25 + $0x664] ss:$8 sps:$4 sm:$0xff]  }
 0xb18   : > { %8990 = vmatpush1.bf16.msra.mxu0 %v17042_v30  ;;  %v17099_v30 = vld [vmem:[%s17888_s25 + $0x650] ss:$8 sps:$4 sm:$0xff]  }
 0xb19   : > { %8991 = vmatprep.subr.bf16.mxu0 %v17047_v48  ;;  %v17102_v48 = vld [vmem:[%s17888_s25 + $0x660] ss:$8 sps:$4 sm:$0xff]  }
 0xb1c   : > { %8992 = vmatpush1.bf16.msra.mxu0 %v17045_v53  ;;  %v17107_v53 = vld [vmem:[%s17888_s25 + $0x674] ss:$8 sps:$4 sm:$0xff]  }
 0xb1d   : > { %8993 = vmatprep.subr.bf16.mxu0 %v17050_v59  ;;  %v17105_v59 = vld [vmem:[%s17888_s25 + $0x670] ss:$8 sps:$4 sm:$0xff]  }
 0xb20   : > { %8994 = vmatpush1.bf16.msra.mxu0 %v17048_v33  ;;  %v17110_v33 = vld [vmem:[%s17888_s25 + $0x684] ss:$8 sps:$4 sm:$0xff]  }
 0xb21   : > { %8995 = vmatprep.subr.bf16.mxu0 %v17053_v58  ;;  %v17108_v58 = vld [vmem:[%s17888_s25 + $0x680] ss:$8 sps:$4 sm:$0xff]  }
 0xb24   : > { %8996 = vmatpush1.bf16.msra.mxu0 %v17051_v10  ;;  %v17113_v10 = vld [vmem:[%s17888_s25 + $0x694] ss:$8 sps:$4 sm:$0xff]  }
 0xb25   : > { %8997 = vmatprep.subr.bf16.mxu0 %v17056_v61  ;;  %v17111_v61 = vld [vmem:[%s17888_s25 + $0x690] ss:$8 sps:$4 sm:$0xff]  }
 0xb28   : > { %8998 = vmatpush1.bf16.msra.mxu0 %v17054_v13  ;;  %v17116_v13 = vld [vmem:[%s17888_s25 + $0x6a4] ss:$8 sps:$4 sm:$0xff]  }
 0xb29   : > { %8999 = vmatprep.subr.bf16.mxu0 %v17059_v62  ;;  %v17114_v62 = vld [vmem:[%s17888_s25 + $0x6a0] ss:$8 sps:$4 sm:$0xff]  }
 0xb2c   : > { %9000 = vmatpush1.bf16.msra.mxu0 %v17057_v0  ;;  %v17119_v0 = vld [vmem:[%s17888_s25 + $0x6b4] ss:$8 sps:$4 sm:$0xff]  }
 0xb2d   : > { %9001 = vmatprep.subr.bf16.mxu0 %v17062_v37  ;;  %v17117_v37 = vld [vmem:[%s17888_s25 + $0x6b0] ss:$8 sps:$4 sm:$0xff]  }
 0xb30   : > { %9002 = vmatpush1.bf16.msra.mxu0 %v17060_v12  ;;  %v17122_v12 = vld [vmem:[%s17888_s25 + $0x6c4] ss:$8 sps:$4 sm:$0xff]  }
 0xb31   : > { %9003 = vmatprep.subr.bf16.mxu0 %v17065_v22  ;;  %v17120_v22 = vld [vmem:[%s17888_s25 + $0x6c0] ss:$8 sps:$4 sm:$0xff]  }
 0xb34   : > { %9004 = vmatpush1.bf16.msra.mxu0 %v17063_v51  ;;  %v17125_v51 = vld [vmem:[%s17888_s25 + $0x6d4] ss:$8 sps:$4 sm:$0xff]  }
 0xb35   : > { %9005 = vmatprep.subr.bf16.mxu0 %v17068_v2  ;;  %v17123_v2 = vld [vmem:[%s17888_s25 + $0x6d0] ss:$8 sps:$4 sm:$0xff]  }
 0xb38   : > { %9006 = vmatpush1.bf16.msra.mxu0 %v17066_v17  ;;  %v17128_v17 = vld [vmem:[%s17888_s25 + $0x6e4] ss:$8 sps:$4 sm:$0xff]  }
 0xb39   : > { %9007 = vmatprep.subr.bf16.mxu0 %v17071_v56  ;;  %v17126_v56 = vld [vmem:[%s17888_s25 + $0x6e0] ss:$8 sps:$4 sm:$0xff]  }
 0xb3c   : > { %9008 = vmatpush1.bf16.msra.mxu0 %v17069_v15  ;;  %v17131_v15 = vld [vmem:[%s17888_s25 + $0x6f4] ss:$8 sps:$4 sm:$0xff]  }
 0xb3d   : > { %9009 = vmatprep.subr.bf16.mxu0 %v17074_v20  ;;  %v17129_v20 = vld [vmem:[%s17888_s25 + $0x6f0] ss:$8 sps:$4 sm:$0xff]  }
 0xb40   : > { %9010 = vmatpush1.bf16.msra.mxu0 %v17072_v6  ;;  %v17134_v6 = vld [vmem:[%s17888_s25 + $0x704] ss:$8 sps:$4 sm:$0xff]  }
 0xb41   : > { %9011 = vmatprep.subr.bf16.mxu0 %v17077_v35  ;;  %v17132_v35 = vld [vmem:[%s17888_s25 + $0x700] ss:$8 sps:$4 sm:$0xff]  }
 0xb44   : > { %9012 = vmatpush1.bf16.msra.mxu0 %v17075_v43  ;;  %v17137_v43 = vld [vmem:[%s17888_s25 + $0x714] ss:$8 sps:$4 sm:$0xff]  }
 0xb45   : > { %9013 = vmatprep.subr.bf16.mxu0 %v17080_v11  ;;  %v17135_v11 = vld [vmem:[%s17888_s25 + $0x710] ss:$8 sps:$4 sm:$0xff]  }
 0xb48   : > { %9014 = vmatpush1.bf16.msra.mxu0 %v17078_v14  ;;  %v17140_v14 = vld [vmem:[%s17888_s25 + $0x724] ss:$8 sps:$4 sm:$0xff]  }
 0xb49   : > { %9015 = vmatprep.subr.bf16.mxu0 %v17083_v27  ;;  %v17138_v27 = vld [vmem:[%s17888_s25 + $0x720] ss:$8 sps:$4 sm:$0xff]  }
 0xb4c   : > { %9016 = vmatpush1.bf16.msra.mxu0 %v17081_v16  ;;  %v17143_v16 = vld [vmem:[%s17888_s25 + $0x734] ss:$8 sps:$4 sm:$0xff]  }
 0xb4d   : > { %9028 = vmatprep.subr.bf16.mxu0 %v17086_v45  ;;  %v17141_v45 = vld [vmem:[%s17888_s25 + $0x730] ss:$8 sps:$4 sm:$0xff]  }
 0xb4f   : > { %9018 = vmatmul.mubr.bf16.vlgmr.msra.gmra.mrb[44].mxu0 %v18054_v19 }
 0xb50   : > { %9029 = vmatpush1.bf16.msra.mxu0 %v17084_v23  ;;  %9060 = vmatprep.mubr.bf16.mxu0 %v18082_v46  ;;  %v17146_v23 = vld [vmem:[%s17888_s25 + $0x744] ss:$8 sps:$4 sm:$0xff]  }
 0xb51   : > { %9030 = vmatprep.subr.bf16.mxu0 %v17089_v26  ;;  %v17144_v26 = vld [vmem:[%s17888_s25 + $0x740] ss:$8 sps:$4 sm:$0xff]  }
 0xb54   : > { %9031 = vmatpush1.bf16.msra.mxu0 %v17087_v36  ;;  %v17149_v36 = vld [vmem:[%s17888_s25 + $0x754] ss:$8 sps:$4 sm:$0xff]  }
 0xb55   : > { %9032 = vmatprep.subr.bf16.mxu0 %v17092_v39  ;;  %v17147_v39 = vld [vmem:[%s17888_s25 + $0x750] ss:$8 sps:$4 sm:$0xff]  }
 0xb58   : > { %9033 = vmatpush1.bf16.msra.mxu0 %v17090_v40  ;;  %v17152_v40 = vld [vmem:[%s17888_s25 + $0x764] ss:$8 sps:$4 sm:$0xff]  }
 0xb59   : > { %9034 = vmatprep.subr.bf16.mxu0 %v17095_v54  ;;  %v17150_v54 = vld [vmem:[%s17888_s25 + $0x760] ss:$8 sps:$4 sm:$0xff]  }
 0xb5c   : > { %9035 = vmatpush1.bf16.msra.mxu0 %v17093_v41  ;;  %v17155_v41 = vld [vmem:[%s17888_s25 + $0x774] ss:$8 sps:$4 sm:$0xff]  }
 0xb5d   : > { %9036 = vmatprep.subr.bf16.mxu0 %v17098_v42  ;;  %v17153_v42 = vld [vmem:[%s17888_s25 + $0x770] ss:$8 sps:$4 sm:$0xff]  }
 0xb60   : > { %9037 = vmatpush1.bf16.msra.mxu0 %v17096_v47  ;;  %v17158_v47 = vld [vmem:[%s17915_s2 + $0x324] ss:$20 sps:$4 sm:$0xff]  }
 0xb61   : > { %9038 = vmatprep.subr.bf16.mxu0 %v17101_v49  ;;  %v17156_v49 = vld [vmem:[%s17915_s2 + $0x320] ss:$20 sps:$4 sm:$0xff]  }
 0xb64   : > { %9039 = vmatpush1.bf16.msra.mxu0 %v17099_v30  ;;  %v17161_v30 = vld [vmem:[%s17915_s2 + $0x34c] ss:$20 sps:$4 sm:$0xff]  }
 0xb65   : > { %9040 = vmatprep.subr.bf16.mxu0 %v17104_v55  ;;  %v17159_v55 = vld [vmem:[%s17915_s2 + $0x348] ss:$20 sps:$4 sm:$0xff]  }
 0xb68   : > { %9041 = vmatpush1.bf16.msra.mxu0 %v17102_v48  ;;  %v17164_v48 = vld [vmem:[%s17915_s2 + $0x374] ss:$20 sps:$4 sm:$0xff]  }
 0xb69   : > { %9042 = vmatprep.subr.bf16.mxu0 %v17107_v53  ;;  %v17162_v53 = vld [vmem:[%s17915_s2 + $0x370] ss:$20 sps:$4 sm:$0xff]  }
 0xb6c   : > { %9043 = vmatpush1.bf16.msra.mxu0 %v17105_v59  ;;  %v17167_v59 = vld [vmem:[%s17915_s2 + $0x39c] ss:$20 sps:$4 sm:$0xff]  }
 0xb6d   : > { %9044 = vmatprep.subr.bf16.mxu0 %v17110_v33  ;;  %v17165_v33 = vld [vmem:[%s17915_s2 + $0x398] ss:$20 sps:$4 sm:$0xff]  }
 0xb70   : > { %9045 = vmatpush1.bf16.msra.mxu0 %v17108_v58  ;;  %v17170_v58 = vld [vmem:[%s17915_s2 + $0x3c4] ss:$20 sps:$4 sm:$0xff]  }
 0xb71   : > { %9046 = vmatprep.subr.bf16.mxu0 %v17113_v10 }
 0xb74   : > { %9047 = vmatpush1.bf16.msra.mxu0 %v17111_v61 }
 0xb75   : > { %9048 = vmatprep.subr.bf16.mxu0 %v17116_v13 }
 0xb78   : > { %9049 = vmatpush1.bf16.msra.mxu0 %v17114_v62  ;;  %v17168_v62 = vld [vmem:[%s17915_s2 + $0x3c0] ss:$20 sps:$4 sm:$0xff]  }
 0xb79   : > { %9050 = vmatprep.subr.bf16.mxu0 %v17119_v0 }
 0xb7c   : > { %9051 = vmatpush1.bf16.msra.mxu0 %v17117_v37  ;;  %v17173_v37 = vld [vmem:[%s17915_s2 + $0x3ec] ss:$20 sps:$4 sm:$0xff]  }
 0xb7d   : > { %9052 = vmatprep.subr.bf16.mxu0 %v17122_v12  ;;  %v17171_v12 = vld [vmem:[%s17915_s2 + $0x3e8] ss:$20 sps:$4 sm:$0xff]  }
 0xb80   : > { %9053 = vmatpush1.bf16.msra.mxu0 %v17120_v22  ;;  %v17176_v22 = vld [vmem:[%s17915_s2 + $0x414] ss:$20 sps:$4 sm:$0xff]  }
 0xb81   : > { %9054 = vmatprep.subr.bf16.mxu0 %v17125_v51  ;;  %v17174_v51 = vld [vmem:[%s17915_s2 + $0x410] ss:$20 sps:$4 sm:$0xff]  }
 0xb84   : > { %9055 = vmatpush1.bf16.msra.mxu0 %v17123_v2  ;;  %v17179_v2 = vld [vmem:[%s17915_s2 + $0x43c] ss:$20 sps:$4 sm:$0xff]  }
 0xb85   : > { %9056 = vmatprep.subr.bf16.mxu0 %v17128_v17  ;;  %v17177_v17 = vld [vmem:[%s17915_s2 + $0x438] ss:$20 sps:$4 sm:$0xff]  }
 0xb88   : > { %9057 = vmatpush1.bf16.msra.mxu0 %v17126_v56  ;;  %v17182_v56 = vld [vmem:[%s17915_s2 + $0x464] ss:$20 sps:$4 sm:$0xff]  }
 0xb89   : > { %9058 = vmatprep.subr.bf16.mxu0 %v17131_v15  ;;  %v17180_v15 = vld [vmem:[%s17915_s2 + $0x460] ss:$20 sps:$4 sm:$0xff]  }
 0xb8c   : > { %9059 = vmatpush1.bf16.msra.mxu0 %v17129_v20  ;;  %v17185_v20 = vld [vmem:[%s17915_s2 + $0x48c] ss:$20 sps:$4 sm:$0xff]  }
 0xb8d   : > { %9071 = vmatprep.subr.bf16.mxu0 %v17134_v6  ;;  %v15504_v6 = vadd.f32 %v18872_v50, %v18875_v9  ;;  %v17693_v9 = vld [vmem:[%s17903_s20 + $0x4] sm:$0x3] }
 0xb8f   : > { %9061 = vmatmul.mubr.bf16.vlgmr.msra.gmra.mrb[44].mxu0 %v18124_v25 }
 0xb90   : > { %9072 = vmatpush1.bf16.msra.mxu0 %v17132_v35  ;;  %9103 = vmatprep.mubr.bf16.mxu0 %v17759_v34  ;;  %v17183_v35 = vld [vmem:[%s17915_s2 + $0x488] ss:$20 sps:$4 sm:$0xff]  }
 0xb91   : > { %9073 = vmatprep.subr.bf16.mxu0 %v17137_v43  ;;  %v5892_v43 = vpack.c.bf16 %v15504_v6, %v15504_v6 }
 0xb94   : > { %9074 = vmatpush1.bf16.msra.mxu0 %v17135_v11 }
 0xb95   : > { %9075 = vmatprep.subr.bf16.mxu0 %v17140_v14 }
 0xb98   : > { %9076 = vmatpush1.bf16.msra.mxu0 %v17138_v27 }
 0xb99   : > { %9077 = vmatprep.subr.bf16.mxu0 %v17143_v16 }
 0xb9c   : > { %9078 = vmatpush1.bf16.msra.mxu0 %v17141_v45 }
 0xb9d   : > { %9079 = vmatprep.subr.bf16.mxu0 %v17146_v23 }
 0xba0   : > { %9080 = vmatpush1.bf16.msra.mxu0 %v17144_v26  ;;  %v14808_v26 = vld [vmem:[%s20028_s24 + $0x4] sm:$0x3] }
 0xba1   : > { %9081 = vmatprep.subr.bf16.mxu0 %v17149_v36  ;;  %v8578_v36 = vrot.slane %v14808_v26, %v18396_v44  ;;  %v8582_v50 = vrot.slane %v14808_v26, %v18715_v29 }
 0xba4   : > { %9082 = vmatpush1.bf16.msra.mxu0 %v17147_v39  ;;  %v4105_v39 = vrot.slane %v17693_v9, %v18715_v29 }
 0xba5   : > { %9083 = vmatprep.subr.bf16.mxu0 %v17152_v40 }
 0xba8   : > { %9084 = vmatpush1.bf16.msra.mxu0 %v17150_v54 }
 0xba9   : > { %9085 = vmatprep.subr.bf16.mxu0 %v17155_v41 }
 0xbac   : > { %9086 = vmatpush1.bf16.msra.mxu0 %v17153_v42 }
 0xbad   : > { %9660 = vmatprep.subr.bf16.mxu0 %v17158_v47 }
 0xbaf   : > { %9104 = vmatmul.mubr.bf16.vlgmr.msra.gmra.mrb[44].mxu0 %v18162_v63 }
 0xbb0   : > { %9661 = vmatpush1.bf16.msra.mxu0 %v17156_v49  ;;  %v15500_v49 = vadd.f32 %v18819_v28, %v4105_v39 }
 0xbb1   : > { %9662 = vmatprep.subr.bf16.mxu0 %v17161_v30 }
 0xbb4   : > { %9663 = vmatpush1.bf16.msra.mxu0 %v17159_v55 }
 0xbb5   : > { %9664 = vmatprep.subr.bf16.mxu0 %v17164_v48 }
 0xbb8   : > { %9665 = vmatpush1.bf16.msra.mxu0 %v17162_v53 }
 0xbb9   : > { %9666 = vmatprep.subr.bf16.mxu0 %v17167_v59  ;;  %v4639_v59 = vpack.c.bf16 %v18789_v52, %v18789_v52 }
 0xbba   : > { %v8094_v10 = vpop.f32.mrb[40].mxu0 }
 0xbbb   : > { %v8096_v61 = vpop.f32.mrb[41].mxu0 }
 0xbbc   : > { %v8097_v13 = vpop.f32.mrb[42].mxu0  ;;  %9667 = vmatpush1.bf16.msra.mxu0 %v17165_v33 }
 0xbbd   : > { %v8099_v0 = vpop.f32.mrb[43].mxu0  ;;  %9668 = vmatprep.subr.bf16.mxu0 %v17170_v58  ;;  %v15499_v58 = vadd.f32 %v18813_v21, %v18817_v24 }
 0xbbf   : > { %v4641_v28 = vpack.c.bf16 %v15499_v58, %v15499_v58  ;;  %v17195_v58 = vld [vmem:[%s17915_s2 + $0x3a0] ss:$20 sps:$4 sm:$0xff]  }
 0xbc0   : > { %9669 = vmatpush1.bf16.msra.mxu0 %v17168_v62 }
 0xbc1   : > { %9670 = vmatprep.subr.bf16.mxu0 %v17173_v37  ;;  %v9238_v52 = vsel %vm6645_vm1, %v4641_v28, 0  ;;  %v17203_v28 = vld [vmem:[%s17915_s2 + $0x3f4] ss:$20 sps:$4 sm:$0xff]  }
 0xbc4   : > { %9671 = vmatpush1.bf16.msra.mxu0 %v17171_v12 }
 0xbc5   : > { %9672 = vmatprep.subr.bf16.mxu0 %v17176_v22 }
 0xbc8   : > { %9673 = vmatpush1.bf16.msra.mxu0 %v17174_v51 }
 0xbc9   : > { %9674 = vmatprep.subr.bf16.mxu0 %v17179_v2 }
 0xbcc   : > { %9675 = vmatpush1.bf16.msra.mxu0 %v17177_v17 }
 0xbcd   : > { %9676 = vmatprep.subr.bf16.mxu0 %v17182_v56 }
 0xbd0   : > { %9677 = vmatpush1.bf16.msra.mxu0 %v17180_v15 }
 0xbd1   : > { %9678 = vmatprep.subr.bf16.mxu0 %v17185_v20 }
 0xbd4   : > { %9679 = vmatpush1.bf16.msra.mxu0 %v17183_v35 }
 0xbd5   : > { %15171 = vmatprep.subr.msk.bf16.mxu0 %vm6524_vm0, %v5892_v43 }
 0xbe3   : > { %v8484_v11 = vpop.f32.mrb[40].mxu1 }
 0xbe4   : > { %v19293_v14 = vadd.f32 %v8484_v11, %v8094_v10  ;;  %v8486_v27 = vpop.f32.mrb[41].mxu1  ;;  %v4642_v10 = vpack.c.bf16 %v15500_v49, %v15500_v49 }
 0xbe5   : > { %v8487_v16 = vpop.f32.mrb[42].mxu1 }
 0xbe6   : > { %v19295_v45 = vadd.f32 %v8487_v16, %v8097_v13  ;;  %v8489_v23 = vpop.f32.mrb[43].mxu1  ;;  %v15502_v13 = vadd.f32 %v18824_v32, %v4105_v39  ;;  %v4643_v39 = vpack.c.bf16 %v18822_v31, %v18822_v31  ;;  %v17186_v31 = vld [vmem:[%s17915_s2 + $0x328] ss:$20 sps:$4 sm:$0xff]  }
 0xbe8   : > { %v4644_v0 = vpack.c.bf16 %v15502_v13, %v15502_v13  ;;  %v17201_v13 = vld [vmem:[%s17915_s2 + $0x3f0] ss:$20 sps:$4 sm:$0xff]  }
 0xc82   : > { %v9105_v40 = vpop.f32.mrb[44].mxu0 }
 0xc83   : > { %v15519_v54 = vadd.f32 %v9105_v40, %v8578_v36  ;;  %v9107_v41 = vpop.f32.mrb[45].mxu0 }
 0xc84   : > { %v15520_v42 = vadd.f32 %v9107_v41, %v8582_v50  ;;  %v9109_v47 = vpop.f32.mrb[46].mxu0  ;;  %v17188_v41 = vld [vmem:[%s17915_s2 + $0x32c] ss:$20 sps:$4 sm:$0xff]  }
 0xc85   : > { %v9111_v30 = vpop.f32.mrb[47].mxu0  ;;  %v9114_v53 = vpack.c.bf16 %v15519_v54, %v15519_v54  ;;  %v15521_v61 = vadd.f32 %v9109_v47, %v8578_v36 }
 0xc86   : > { %v9115_v55 = vpack.c.bf16 %v15520_v42, %v15520_v42  ;;  %v15522_v48 = vadd.f32 %v9111_v30, %v8582_v50  ;;  %v9288_v42 = vsel %vm6645_vm1, %v4643_v39, 0  ;;  %v17224_v39 = vld [vmem:[%s17915_s2 + $0x470] ss:$20 sps:$4 sm:$0xff]  }
 0xc87   : > { %v9116_v62 = vpack.c.bf16 %v15521_v61, %v15521_v61  ;;  %v17198_v61 = vld [vmem:[%s17915_s2 + $0x3c8] ss:$20 sps:$4 sm:$0xff]  }
 0xc88   : > { %v9117_v33 = vpack.c.bf16 %v15522_v48, %v15522_v48  ;;  %14890 = vmatprep.mubr.msk.bf16.mxu1 %vm6524_vm0, %v9115_v55  ;;  %v17191_v55 = vld [vmem:[%s17915_s2 + $0x354] ss:$20 sps:$4 sm:$0xff]   ;;  %v17189_v48 = vld [vmem:[%s17915_s2 + $0x350] ss:$20 sps:$4 sm:$0xff]  }
 0xc89   : > { %9157 = vmatmul.mubr.bf16.vlgmr.msra.gmra.mrb[44].mxu1 %v9114_v53  ;;  %v17194_v53 = vld [vmem:[%s17915_s2 + $0x37c] ss:$20 sps:$4 sm:$0xff]  }
 0xc8a   : > { %9171 = vmatpush1.bf16.xpose.msra.mxu1 %v4639_v59  ;;  %14892 = vmatprep.mubr.msk.bf16.mxu1 %vm6524_vm0, %v9117_v33  ;;  %v17192_v59 = vld [vmem:[%s17915_s2 + $0x378] ss:$20 sps:$4 sm:$0xff]  }
 0xc8b   : > { %14893 = vmatprep.subr.msk.bf16.mxu1 %vm6645_vm1, %v4642_v10  ;;  %v17197_v33 = vld [vmem:[%s17915_s2 + $0x3a4] ss:$20 sps:$4 sm:$0xff]   ;;  %v17200_v10 = vld [vmem:[%s17915_s2 + $0x3cc] ss:$20 sps:$4 sm:$0xff]  }
 0xc91   : > { %9203 = vmatmul.mubr.bf16.vlgmr.msra.gmra.mrb[48].mxu1 %v9116_v62  ;;  %v17206_v62 = vld [vmem:[%s17915_s2 + $0x41c] ss:$20 sps:$4 sm:$0xff]  }
 0xc92   : > { %9244 = vmatpush1.bf16.msra.mxu1 %v9238_v52  ;;  %9275 = vmatprep.mubr.bf16.mxu1 %v17759_v34  ;;  %v17204_v52 = vld [vmem:[%s17915_s2 + $0x418] ss:$20 sps:$4 sm:$0xff]  }
 0xc93   : > { %14895 = vmatprep.subr.msk.bf16.mxu1 %vm6645_vm1, %v4644_v0  ;;  %v17209_v0 = vld [vmem:[%s17915_s2 + $0x444] ss:$20 sps:$4 sm:$0xff]  }
 0xd5c   : > { %v9158_v21 = vpop.f32.mrb[44].mxu1 }
 0xd5d   : > { %v9160_v24 = vpop.f32.mrb[45].mxu1  ;;  %v9210_v37 = vsel %vm6617_vm2, %v9158_v21, -inf }
 0xd5e   : > { %9211 = vmax.xlane.f32.xlu0 %v9210_v37  ;;  %v9161_v12 = vpop.f32.mrb[46].mxu1  ;;  %v17210_v24 = vld [vmem:[%s17915_s2 + $0x468] ss:$20 sps:$4 sm:$0xff]   ;;  %v17212_v37 = vld [vmem:[%s17915_s2 + $0x46c] ss:$20 sps:$4 sm:$0xff]  }
 0xd5f   : > { %v9162_v22 = vpop.f32.mrb[47].mxu1  ;;  %v17215_v12 = vld [vmem:[%s17915_s2 + $0x494] ss:$20 sps:$4 sm:$0xff]  }
 0xd60   : > { %v17213_v22 = vld [vmem:[%s17915_s2 + $0x490] ss:$20 sps:$4 sm:$0xff]  }
 0xd64   : > { %v9204_v51 = vpop.f32.mrb[48].mxu1 }
 0xd65   : > { %v9206_v2 = vpop.f32.mrb[49].mxu1  ;;  %v9213_v32 = vsel %vm6617_vm2, %v9204_v51, -inf }
 0xd66   : > { %9214 = vmax.xlane.f32.xlu1 %v9213_v32  ;;  %v9207_v17 = vpop.f32.mrb[50].mxu1 }
 0xd67   : > { %v9208_v56 = vpop.f32.mrb[51].mxu1 }
 0xdeb   : > { %v9212_v15 = vpop.xlane.xlu0 %9211 }
 0xdec   : > { %v9216_v20 = vsub.f32 %v9158_v21, %v9212_v15  ;;  %v17207_v21 = vld [vmem:[%s17915_s2 + $0x440] ss:$20 sps:$4 sm:$0xff]  }
 0xdee   : > { %v9218_v6 = vmul.f32 1.442695, %v9216_v20 }
 0xdf0   : > { %17664 = vpow2.f32 %v9218_v6 }
 0xdf3   : > { %v9215_v35 = vpop.xlane.xlu1 %9214 }
 0xdf4   : > { %v9217_v43 = vsub.f32 %v9204_v51, %v9215_v35 }
 0xdf6   : > { %v9220_v11 = vmul.f32 1.442695, %v9217_v43  ;;  %v17216_v43 = vld [vmem:[%s17915_s2 + $0x330] ss:$20 sps:$4 sm:$0xff]  }
 0xdf8   : > { %17666 = vpow2.f32 %v9220_v11 }
 0xdfa   : > { %v17665_v27 = vpop.eup %17664 }
 0xdfb   : > { %v9222_v16 = vsel %vm6617_vm2, %v17665_v27, 0.0 }
 0xdfc   : > { %9223 = vadd.xlane.f32.xlu0 %v9222_v16  ;;  %v5894_v16 = vpack.c.bf16 %v18880_v57, %v18880_v57  ;;  %v17219_v57 = vld [vmem:[%s17915_s2 + $0x3a8] ss:$20 sps:$4 sm:$0xff]  }
 0xe02   : > { %v17667_v23 = vpop.eup %17666 }
 0xe03   : > { %v9225_v26 = vsel %vm6617_vm2, %v17667_v23, 0.0 }
 0xe04   : > { %9226 = vadd.xlane.f32.xlu1 %v9225_v26  ;;  %v17220_v26 = vld [vmem:[%s17915_s2 + $0x3d0] ss:$20 sps:$4 sm:$0xff]  }
 0xe89   : > { %v9224_v36 = vpop.xlane.xlu0 %9223 }
 0xe8a   : > { %17668 = vrcp.f32 %v9224_v36  ;;  %v17221_v36 = vld [vmem:[%s17915_s2 + $0x3f8] ss:$20 sps:$4 sm:$0xff]  }
 0xe91   : > { %v9227_v50 = vpop.xlane.xlu1 %9226 }
 0xe92   : > { %17670 = vrcp.f32 %v9227_v50  ;;  %v17222_v50 = vld [vmem:[%s17915_s2 + $0x420] ss:$20 sps:$4 sm:$0xff]  }
 0xe94   : > { %v17669_v9 = vpop.eup %17668 }
 0xe95   : > { %v9230_v40 = vmul.f32 %v17669_v9, %v17665_v27  ;;  %v5891_v27 = vpack.c.bf16 %v18870_v1, %v18870_v1  ;;  %v17218_v1 = vld [vmem:[%s17915_s2 + $0x380] ss:$20 sps:$4 sm:$0xff]   ;;  %v17223_v9 = vld [vmem:[%s17915_s2 + $0x448] ss:$20 sps:$4 sm:$0xff]  }
 0xe97   : > { %v9232_v54 = vpack.c.bf16 %v9230_v40, %v9230_v40  ;;  %v17225_v40 = vld [vmem:[%s17915_s2 + $0x498] ss:$20 sps:$4 sm:$0xff]  }
 0xe99   : > { %14894 = vmatmul.mubr.msk.bf16.vlgmr.msra.gmra.mrb[52].mxu1 %vm6617_vm2, %v9232_v54  ;;  %v17228_v54 = vld [vmem:[%s17888_s25 + $0x784] ss:$8 sps:$4 sm:$0xff]  }
 0xe9a   : > { %9294 = vmatpush1.bf16.msra.mxu1 %v9288_v42  ;;  %9325 = vmatprep.mubr.bf16.mxu1 %v17759_v34  ;;  %v17231_v42 = vld [vmem:[%s17888_s25 + $0x794] ss:$8 sps:$4 sm:$0xff]  }
 0xe9b   : > { %9703 = vmatprep.subr.bf16.mxu1 %v17188_v41  ;;  %v17226_v41 = vld [vmem:[%s17888_s25 + $0x780] ss:$8 sps:$4 sm:$0xff]  }
 0xe9c   : > { %v17671_v47 = vpop.eup %17670 }
 0xe9d   : > { %v9231_v49 = vmul.f32 %v17671_v47, %v17667_v23  ;;  %v17217_v23 = vld [vmem:[%s17915_s2 + $0x358] ss:$20 sps:$4 sm:$0xff]  }
 0xe9e   : > { %v17229_v47 = vld [vmem:[%s17888_s25 + $0x790] ss:$8 sps:$4 sm:$0xff]  }
 0xe9f   : > { %v9233_v30 = vpack.c.bf16 %v9231_v49, %v9231_v49  ;;  %v17234_v49 = vld [vmem:[%s17888_s25 + $0x7a4] ss:$8 sps:$4 sm:$0xff]  }
 0xea1   : > { %14896 = vmatmul.mubr.msk.bf16.vlgmr.msra.gmra.mrb[56].mxu1 %vm6617_vm2, %v9233_v30  ;;  %v17237_v30 = vld [vmem:[%s17888_s25 + $0x7b4] ss:$8 sps:$4 sm:$0xff]  }
 0xea2   : > { %9704 = vmatpush1.bf16.msra.mxu1 %v17186_v31  ;;  %v17232_v31 = vld [vmem:[%s17888_s25 + $0x7a0] ss:$8 sps:$4 sm:$0xff]  }
 0xea3   : > { %9705 = vmatprep.subr.bf16.mxu1 %v17191_v55  ;;  %v17235_v55 = vld [vmem:[%s17888_s25 + $0x7b0] ss:$8 sps:$4 sm:$0xff]  }
 0xea6   : > { %9706 = vmatpush1.bf16.msra.mxu1 %v17189_v48  ;;  %v17240_v48 = vld [vmem:[%s17888_s25 + $0x7c4] ss:$8 sps:$4 sm:$0xff]  }
 0xea7   : > { %9707 = vmatprep.subr.bf16.mxu1 %v17194_v53  ;;  %v17238_v53 = vld [vmem:[%s17888_s25 + $0x7c0] ss:$8 sps:$4 sm:$0xff]  }
 0xeaa   : > { %9708 = vmatpush1.bf16.msra.mxu1 %v17192_v59  ;;  %v17241_v59 = vld [vmem:[%s17888_s25 + $0x7d0] ss:$8 sps:$4 sm:$0xff]  }
 0xeab   : > { %9709 = vmatprep.subr.bf16.mxu1 %v17197_v33  ;;  %v17246_v33 = vld [vmem:[%s17888_s25 + $0x7e4] ss:$8 sps:$4 sm:$0xff]  }
 0xeae   : > { %9710 = vmatpush1.bf16.msra.mxu1 %v17195_v58  ;;  %v17244_v58 = vld [vmem:[%s17888_s25 + $0x7e0] ss:$8 sps:$4 sm:$0xff]  }
 0xeaf   : > { %9711 = vmatprep.subr.bf16.mxu1 %v17200_v10  ;;  %v17249_v10 = vld [vmem:[%s17888_s25 + $0x7f4] ss:$8 sps:$4 sm:$0xff]  }
 0xeb2   : > { %9712 = vmatpush1.bf16.msra.mxu1 %v17198_v61  ;;  %v17247_v61 = vld [vmem:[%s17888_s25 + $0x7f0] ss:$8 sps:$4 sm:$0xff]  }
 0xeb3   : > { %9713 = vmatprep.subr.bf16.mxu1 %v17203_v28  ;;  %v17252_v28 = vld [vmem:[%s17888_s25 + $0x804] ss:$8 sps:$4 sm:$0xff]  }
 0xeb6   : > { %9714 = vmatpush1.bf16.msra.mxu1 %v17201_v13  ;;  %v17250_v13 = vld [vmem:[%s17888_s25 + $0x800] ss:$8 sps:$4 sm:$0xff]  }
 0xeb7   : > { %9715 = vmatprep.subr.bf16.mxu1 %v17206_v62  ;;  %v17255_v62 = vld [vmem:[%s17888_s25 + $0x814] ss:$8 sps:$4 sm:$0xff]  }
 0xeba   : > { %9716 = vmatpush1.bf16.msra.mxu1 %v17204_v52  ;;  %v17253_v52 = vld [vmem:[%s17888_s25 + $0x810] ss:$8 sps:$4 sm:$0xff]  }
 0xebb   : > { %9717 = vmatprep.subr.bf16.mxu1 %v17209_v0  ;;  %v17258_v0 = vld [vmem:[%s17888_s25 + $0x824] ss:$8 sps:$4 sm:$0xff]  }
 0xebe   : > { %9718 = vmatpush1.bf16.msra.mxu1 %v17207_v21  ;;  %v17256_v21 = vld [vmem:[%s17888_s25 + $0x820] ss:$8 sps:$4 sm:$0xff]  }
 0xebf   : > { %9719 = vmatprep.subr.bf16.mxu1 %v17212_v37  ;;  %v17259_v37 = vld [vmem:[%s17888_s25 + $0x830] ss:$8 sps:$4 sm:$0xff]  }
 0xec2   : > { %9720 = vmatpush1.bf16.msra.mxu1 %v17210_v24  ;;  %v17261_v24 = vld [vmem:[%s17888_s25 + $0x834] ss:$8 sps:$4 sm:$0xff]  }
 0xec3   : > { %9721 = vmatprep.subr.bf16.mxu1 %v17215_v12  ;;  %v17264_v12 = vld [vmem:[%s17888_s25 + $0x844] ss:$8 sps:$4 sm:$0xff]  }
 0xec6   : > { %9722 = vmatpush1.bf16.msra.mxu1 %v17213_v22  ;;  %v17262_v22 = vld [vmem:[%s17888_s25 + $0x840] ss:$8 sps:$4 sm:$0xff]  }
 0xec7   : > { %9746 = vmatprep.subr.bf16.mxu1 %v17759_v34 }
 0xf6c   : > { %v9277_v51 = vpop.f32.mrb[52].mxu1 }
 0xf6d   : > { %v9279_v2 = vpop.f32.mrb[53].mxu1 }
 0xf6e   : > { %v9281_v32 = vpop.f32.mrb[54].mxu1 }
 0xf6f   : > { %v9282_v17 = vpop.f32.mrb[55].mxu1  ;;  %v17270_v32 = vld [vmem:[%s17888_s25 + $0x864] ss:$8 sps:$4 sm:$0xff]  }
 0xf70   : > { %v17268_v17 = vld [vmem:[%s17888_s25 + $0x860] ss:$8 sps:$4 sm:$0xff]  }
 0xf74   : > { %v9327_v56 = vpop.f32.mrb[56].mxu1 }
 0xf75   : > { %v9334_v15 = vpack.c.bf16 %v9327_v56, %v9277_v51  ;;  %v9329_v20 = vpop.f32.mrb[57].mxu1  ;;  %v17267_v51 = vld [vmem:[%s17888_s25 + $0x854] ss:$8 sps:$4 sm:$0xff]  }
 0xf76   : > { %v9335_v6 = vpack.c.bf16 %v9329_v20, %v9279_v2  ;;  %v9331_v35 = vpop.f32.mrb[58].mxu1  ;;  %v17265_v2 = vld [vmem:[%s17888_s25 + $0x850] ss:$8 sps:$4 sm:$0xff]   ;;  %v17273_v56 = vld [vmem:[%s17888_s25 + $0x874] ss:$8 sps:$4 sm:$0xff]  }
 0xf77   : > { %v9332_v11 = vpop.f32.mrb[59].mxu1  ;;  %v17276_v20 = vld [vmem:[%s17888_s25 + $0x884] ss:$8 sps:$4 sm:$0xff]   ;;  %v17279_v35 = vld [vmem:[%s17888_s25 + $0x894] ss:$8 sps:$4 sm:$0xff]  }
 0xf78   : > { %15007 = vmatprep.mubr.msk.bf16.mxu0 %vm6524_vm0, %v9335_v6  ;;  %15008 = vmatprep.mubr.msk.bf16.mxu1 %vm6524_vm0, %v9335_v6  ;;  %v17282_v11 = vld [vmem:[%s17888_s25 + $0x8a4] ss:$8 sps:$4 sm:$0xff]  }
 0xf79   : > { %9693 = vmatmul.mubr.bf16.vlgmr.msra.gmra.mrb[36].mxu0 %v9334_v15  ;;  %9736 = vmatmul.mubr.bf16.vlgmr.msra.gmra.mrb[36].mxu1 %v9334_v15 }
 0xf7a   : > { %9747 = vmatpush1.bf16.msra.mxu1 %v17216_v43  ;;  %10431 = vmatpush1.bf16.xpose.msra.mxu0 %v5891_v27  ;;  %v17277_v43 = vld [vmem:[%s17888_s25 + $0x890] ss:$8 sps:$4 sm:$0xff]   ;;  %v17280_v27 = vld [vmem:[%s17888_s25 + $0x8a0] ss:$8 sps:$4 sm:$0xff]  }
 0xf7b   : > { %15009 = vmatprep.mubr.msk.bf16.mxu1 %vm6524_vm0, %v9335_v6  ;;  %15173 = vmatprep.subr.msk.bf16.mxu0 %vm6524_vm0, %v5894_v16  ;;  %v17274_v6 = vld [vmem:[%s17888_s25 + $0x880] ss:$8 sps:$4 sm:$0xff]   ;;  %v17285_v16 = vld [vmem:[%s17888_s25 + $0x8b4] ss:$8 sps:$4 sm:$0xff]  }
 0xf7c   : > { %9748 = vmatprep.subr.bf16.mxu1 %v17759_v34 }
 0xf7e   : > { %9749 = vmatpush1.bf16.msra.mxu1 %v17217_v23  ;;  %v17283_v23 = vld [vmem:[%s17888_s25 + $0x8b0] ss:$8 sps:$4 sm:$0xff]  }
 0xf7f   : > { %9750 = vmatprep.subr.bf16.mxu1 %v17759_v34 }
 0xf82   : > { %9751 = vmatpush1.bf16.msra.mxu1 %v17218_v1  ;;  %v17286_v1 = vld [vmem:[%s17888_s25 + $0x8c0] ss:$8 sps:$4 sm:$0xff]  }
 0xf83   : > { %9752 = vmatprep.subr.bf16.mxu1 %v17759_v34 }
 0xf86   : > { %9753 = vmatpush1.bf16.msra.mxu1 %v17219_v57  ;;  %v17289_v57 = vld [vmem:[%s17888_s25 + $0x8d0] ss:$8 sps:$4 sm:$0xff]  }
 0xf87   : > { %9754 = vmatprep.subr.bf16.mxu1 %v17759_v34 }
 0xf8a   : > { %9755 = vmatpush1.bf16.msra.mxu1 %v17220_v26  ;;  %v17294_v26 = vld [vmem:[%s17888_s25 + $0x8e4] ss:$8 sps:$4 sm:$0xff]  }
 0xf8b   : > { %9756 = vmatprep.subr.bf16.mxu1 %v17759_v34 }
 0xf8e   : > { %9757 = vmatpush1.bf16.msra.mxu1 %v17221_v36  ;;  %v17292_v36 = vld [vmem:[%s17888_s25 + $0x8e0] ss:$8 sps:$4 sm:$0xff]  }
 0xf8f   : > { %9758 = vmatprep.subr.bf16.mxu1 %v17759_v34 }
 0xf92   : > { %9759 = vmatpush1.bf16.msra.mxu1 %v17222_v50  ;;  %v17297_v50 = vld [vmem:[%s17888_s25 + $0x8f4] ss:$8 sps:$4 sm:$0xff]  }
 0xf93   : > { %9760 = vmatprep.subr.bf16.mxu1 %v17759_v34 }
 0xf96   : > { %9761 = vmatpush1.bf16.msra.mxu1 %v17223_v9  ;;  %v17295_v9 = vld [vmem:[%s17888_s25 + $0x8f0] ss:$8 sps:$4 sm:$0xff]  }
 0xf97   : > { %9762 = vmatprep.subr.bf16.mxu1 %v17759_v34 }
 0xf9a   : > { %9763 = vmatpush1.bf16.msra.mxu1 %v17224_v39  ;;  %v17300_v39 = vld [vmem:[%s17888_s25 + $0x904] ss:$8 sps:$4 sm:$0xff]  }
 0xf9b   : > { %9764 = vmatprep.subr.bf16.mxu1 %v17759_v34 }
 0xf9e   : > { %9765 = vmatpush1.bf16.msra.mxu1 %v17225_v40  ;;  %v17298_v40 = vld [vmem:[%s17888_s25 + $0x900] ss:$8 sps:$4 sm:$0xff]  }
 0xf9f   : > { %10291 = vmatprep.subr.bf16.mxu1 %v17228_v54  ;;  %v17303_v54 = vld [vmem:[%s17888_s25 + $0x914] ss:$8 sps:$4 sm:$0xff]  }
 0xfa1   : > { %9779 = vmatmul.mubr.bf16.vlgmr.msra.gmra.mrb[60].mxu1 %v9334_v15  ;;  %v17271_v15 = vld [vmem:[%s17888_s25 + $0x870] ss:$8 sps:$4 sm:$0xff]  }
 0xfa2   : > { %10292 = vmatpush1.bf16.msra.mxu1 %v17226_v41  ;;  %10323 = vmatprep.mubr.bf16.mxu1 %v18030_v60  ;;  %v17243_v60 = vld [vmem:[%s17888_s25 + $0x7d4] ss:$8 sps:$4 sm:$0xff]   ;;  %v17301_v41 = vld [vmem:[%s17888_s25 + $0x910] ss:$8 sps:$4 sm:$0xff]  }
 0xfa3   : > { %10293 = vmatprep.subr.bf16.mxu1 %v17231_v42  ;;  %v17306_v42 = vld [vmem:[%s17888_s25 + $0x924] ss:$8 sps:$4 sm:$0xff]  }
 0xfa6   : > { %10294 = vmatpush1.bf16.msra.mxu1 %v17229_v47  ;;  %v17304_v47 = vld [vmem:[%s17888_s25 + $0x920] ss:$8 sps:$4 sm:$0xff]  }
 0xfa7   : > { %10295 = vmatprep.subr.bf16.mxu1 %v17234_v49  ;;  %v17309_v49 = vld [vmem:[%s17888_s25 + $0x934] ss:$8 sps:$4 sm:$0xff]  }
 0xfaa   : > { %10296 = vmatpush1.bf16.msra.mxu1 %v17232_v31  ;;  %v17307_v31 = vld [vmem:[%s17888_s25 + $0x930] ss:$8 sps:$4 sm:$0xff]  }
 0xfab   : > { %10297 = vmatprep.subr.bf16.mxu1 %v17237_v30  ;;  %v17312_v30 = vld [vmem:[%s17888_s25 + $0x944] ss:$8 sps:$4 sm:$0xff]  }
 0xfae   : > { %10298 = vmatpush1.bf16.msra.mxu1 %v17235_v55  ;;  %v17310_v55 = vld [vmem:[%s17888_s25 + $0x940] ss:$8 sps:$4 sm:$0xff]  }
 0xfaf   : > { %10299 = vmatprep.subr.bf16.mxu1 %v17240_v48  ;;  %v17315_v48 = vld [vmem:[%s17888_s25 + $0x954] ss:$8 sps:$4 sm:$0xff]  }
 0xfb2   : > { %10300 = vmatpush1.bf16.msra.mxu1 %v17238_v53  ;;  %v17313_v53 = vld [vmem:[%s17888_s25 + $0x950] ss:$8 sps:$4 sm:$0xff]  }
 0xfb3   : > { %10301 = vmatprep.subr.bf16.mxu1 %v17243_v60  ;;  %v17318_v60 = vld [vmem:[%s17888_s25 + $0x964] ss:$8 sps:$4 sm:$0xff]  }
 0xfb6   : > { %10302 = vmatpush1.bf16.msra.mxu1 %v17241_v59  ;;  %v17316_v59 = vld [vmem:[%s17888_s25 + $0x960] ss:$8 sps:$4 sm:$0xff]  }
 0xfb7   : > { %10303 = vmatprep.subr.bf16.mxu1 %v17246_v33  ;;  %v17321_v33 = vld [vmem:[%s17888_s25 + $0x974] ss:$8 sps:$4 sm:$0xff]  }
 0xfba   : > { %10304 = vmatpush1.bf16.msra.mxu1 %v17244_v58  ;;  %v17319_v58 = vld [vmem:[%s17888_s25 + $0x970] ss:$8 sps:$4 sm:$0xff]  }
 0xfbb   : > { %10305 = vmatprep.subr.bf16.mxu1 %v17249_v10  ;;  %v17324_v10 = vld [vmem:[%s17888_s25 + $0x984] ss:$8 sps:$4 sm:$0xff]  }
 0xfbe   : > { %10306 = vmatpush1.bf16.msra.mxu1 %v17247_v61  ;;  %v17322_v61 = vld [vmem:[%s17888_s25 + $0x980] ss:$8 sps:$4 sm:$0xff]  }
 0xfbf   : > { %10307 = vmatprep.subr.bf16.mxu1 %v17252_v28  ;;  %v17327_v28 = vld [vmem:[%s17888_s25 + $0x994] ss:$8 sps:$4 sm:$0xff]  }
 0xfc2   : > { %10308 = vmatpush1.bf16.msra.mxu1 %v17250_v13  ;;  %v17325_v13 = vld [vmem:[%s17888_s25 + $0x990] ss:$8 sps:$4 sm:$0xff]  }
 0xfc3   : > { %10309 = vmatprep.subr.bf16.mxu1 %v17255_v62  ;;  %v17330_v62 = vld [vmem:[%s17888_s25 + $0x9a4] ss:$8 sps:$4 sm:$0xff]  }
 0xfc6   : > { %10310 = vmatpush1.bf16.msra.mxu1 %v17253_v52  ;;  %v17328_v52 = vld [vmem:[%s17888_s25 + $0x9a0] ss:$8 sps:$4 sm:$0xff]  }
 0xfc7   : > { %10311 = vmatprep.subr.bf16.mxu1 %v17258_v0  ;;  %v17333_v0 = vld [vmem:[%s17888_s25 + $0x9b4] ss:$8 sps:$4 sm:$0xff]  }
 0xfca   : > { %10312 = vmatpush1.bf16.msra.mxu1 %v17256_v21  ;;  %v17331_v21 = vld [vmem:[%s17888_s25 + $0x9b0] ss:$8 sps:$4 sm:$0xff]  }
 0xfcb   : > { %10313 = vmatprep.subr.bf16.mxu1 %v17261_v24  ;;  %v17334_v24 = vld [vmem:[%s17888_s25 + $0x9c0] ss:$8 sps:$4 sm:$0xff]  }
 0xfce   : > { %10314 = vmatpush1.bf16.msra.mxu1 %v17259_v37  ;;  %v17339_v37 = vld [vmem:[%s17888_s25 + $0x9d4] ss:$8 sps:$4 sm:$0xff]  }
 0xfcf   : > { %10315 = vmatprep.subr.bf16.mxu1 %v17264_v12  ;;  %v17337_v12 = vld [vmem:[%s17888_s25 + $0x9d0] ss:$8 sps:$4 sm:$0xff]  }
 0xfd2   : > { %10316 = vmatpush1.bf16.msra.mxu1 %v17262_v22  ;;  %v17342_v22 = vld [vmem:[%s17888_s25 + $0x9e4] ss:$8 sps:$4 sm:$0xff]  }
 0xfd3   : > { %10317 = vmatprep.subr.bf16.mxu1 %v17267_v51  ;;  %v17340_v51 = vld [vmem:[%s17888_s25 + $0x9e0] ss:$8 sps:$4 sm:$0xff]  }
 0xfd6   : > { %10318 = vmatpush1.bf16.msra.mxu1 %v17265_v2  ;;  %v17345_v2 = vld [vmem:[%s17888_s25 + $0x9f4] ss:$8 sps:$4 sm:$0xff]  }
 0xfd7   : > { %10319 = vmatprep.subr.bf16.mxu1 %v17270_v32  ;;  %v17343_v32 = vld [vmem:[%s17888_s25 + $0x9f0] ss:$8 sps:$4 sm:$0xff]  }
 0xfda   : > { %10320 = vmatpush1.bf16.msra.mxu1 %v17268_v17 }
 0xfdb   : > { %10321 = vmatprep.subr.bf16.mxu1 %v17273_v56 }
 0xfde   : > { %10322 = vmatpush1.bf16.msra.mxu1 %v17271_v15 }
 0xfdf   : > { %10334 = vmatprep.subr.bf16.mxu1 %v17276_v20 }
 0xfe1   : > { %10324 = vmatmul.mubr.bf16.vlgmr.msra.gmra.mrb[64].mxu1 %v18054_v19  ;;  %v17288_v19 = vld [vmem:[%s17888_s25 + $0x8c4] ss:$8 sps:$4 sm:$0xff]  }
 0xfe2   : > { %10335 = vmatpush1.bf16.msra.mxu1 %v17274_v6  ;;  %10366 = vmatprep.mubr.bf16.mxu1 %v18082_v46  ;;  %v17291_v46 = vld [vmem:[%s17888_s25 + $0x8d4] ss:$8 sps:$4 sm:$0xff]  }
 0xfe3   : > { %10336 = vmatprep.subr.bf16.mxu1 %v17279_v35 }
 0xfe6   : > { %10337 = vmatpush1.bf16.msra.mxu1 %v17277_v43  ;;  %v15090_v43 = vld [vmem:[%s20028_s24 + $0x6] sm:$0x3] }
 0xfe7   : > { %10338 = vmatprep.subr.bf16.mxu1 %v17282_v11  ;;  %v9884_v11 = vrot.slane %v15090_v43, %v18396_v44 }
 0xfea   : > { %10339 = vmatpush1.bf16.msra.mxu1 %v17280_v27  ;;  %v9888_v27 = vrot.slane %v15090_v43, %v18715_v29  ;;  %v17385_v43 = vld [vmem:[%s17915_s2 + $0x5a8] ss:$20 sps:$4 sm:$0xff]  }
 0xfeb   : > { %10340 = vmatprep.subr.bf16.mxu1 %v17285_v16  ;;  %v17694_v16 = vld [vmem:[%s17903_s20 + $0x6] sm:$0x3] }
 0xfee   : > { %10341 = vmatpush1.bf16.msra.mxu1 %v17283_v23  ;;  %v5359_v23 = vrot.slane %v17694_v16, %v18715_v29 }
 0xfef   : > { %10342 = vmatprep.subr.bf16.mxu1 %v17288_v19 }
 0xff2   : > { %10343 = vmatpush1.bf16.msra.mxu1 %v17286_v1 }
 0xff3   : > { %10344 = vmatprep.subr.bf16.mxu1 %v17291_v46 }
 0xff6   : > { %10345 = vmatpush1.bf16.msra.mxu1 %v17289_v57  ;;  %v15508_v57 = vadd.f32 %v18888_v5, %v5359_v23 }
 0xff7   : > { %10346 = vmatprep.subr.bf16.mxu1 %v17294_v26 }
 0xffa   : > { %10347 = vmatpush1.bf16.msra.mxu1 %v17292_v36 }
 0xffb   : > { %10348 = vmatprep.subr.bf16.mxu1 %v17297_v50 }
 0xffe   : > { %10349 = vmatpush1.bf16.msra.mxu1 %v17295_v9  ;;  %v5893_v9 = vpack.c.bf16 %v18877_v18, %v18877_v18 }
 0xfff   : > { %10350 = vmatprep.subr.bf16.mxu1 %v17300_v39 }
0x1002   : > { %10351 = vmatpush1.bf16.msra.mxu1 %v17298_v40  ;;  %v15507_v40 = vadd.f32 %v18883_v3, %v18886_v4 }
0x1003   : > { %10352 = vmatprep.subr.bf16.mxu1 %v17303_v54  ;;  %v5896_v54 = vpack.c.bf16 %v15508_v57, %v15508_v57 }
0x1004   : > { %v5895_v5 = vpack.c.bf16 %v15507_v40, %v15507_v40  ;;  %v17366_v40 = vld [vmem:[%s17915_s2 + $0x52c] ss:$20 sps:$4 sm:$0xff]  }
0x1006   : > { %10353 = vmatpush1.bf16.msra.mxu1 %v17301_v41  ;;  %v10544_v18 = vsel %vm6645_vm1, %v5895_v5, 0  ;;  %v17370_v5 = vld [vmem:[%s17915_s2 + $0x550] ss:$20 sps:$4 sm:$0xff]  }
0x1007   : > { %10354 = vmatprep.subr.bf16.mxu1 %v17306_v42  ;;  %v15510_v42 = vadd.f32 %v18893_v8, %v5359_v23 }
0x100a   : > { %10355 = vmatpush1.bf16.msra.mxu1 %v17304_v47 }
0x100b   : > { %10356 = vmatprep.subr.bf16.mxu1 %v17309_v49  ;;  %v5898_v49 = vpack.c.bf16 %v15510_v42, %v15510_v42  ;;  %v17378_v42 = vld [vmem:[%s17915_s2 + $0x57c] ss:$20 sps:$4 sm:$0xff]  }
0x100e   : > { %10357 = vmatpush1.bf16.msra.mxu1 %v17307_v31 }
0x100f   : > { %10358 = vmatprep.subr.bf16.mxu1 %v17312_v30 }
0x1012   : > { %10359 = vmatpush1.bf16.msra.mxu1 %v17310_v55 }
0x1013   : > { %10360 = vmatprep.subr.bf16.mxu1 %v17315_v48 }
0x1016   : > { %10361 = vmatpush1.bf16.msra.mxu1 %v17313_v53 }
0x1017   : > { %10362 = vmatprep.subr.bf16.mxu1 %v17318_v60 }
0x101a   : > { %10363 = vmatpush1.bf16.msra.mxu1 %v17316_v59 }
0x101b   : > { %10364 = vmatprep.subr.bf16.mxu1 %v17321_v33 }
0x101e   : > { %10365 = vmatpush1.bf16.msra.mxu1 %v17319_v58 }
0x101f   : > { %10377 = vmatprep.subr.bf16.mxu1 %v17324_v10 }
0x1021   : > { %10367 = vmatmul.mubr.bf16.vlgmr.msra.gmra.mrb[64].mxu1 %v18124_v25  ;;  %v17336_v25 = vld [vmem:[%s17888_s25 + $0x9c4] ss:$8 sps:$4 sm:$0xff]  }
0x1022   : > { %10378 = vmatpush1.bf16.msra.mxu1 %v17322_v61  ;;  %10409 = vmatprep.mubr.bf16.mxu1 %v17759_v34 }
0x1023   : > { %10379 = vmatprep.subr.bf16.mxu1 %v17327_v28 }
0x1026   : > { %10380 = vmatpush1.bf16.msra.mxu1 %v17325_v13 }
0x1027   : > { %10381 = vmatprep.subr.bf16.mxu1 %v17330_v62 }
0x102a   : > { %10382 = vmatpush1.bf16.msra.mxu1 %v17328_v52 }
0x102b   : > { %10383 = vmatprep.subr.bf16.mxu1 %v17333_v0 }
0x102e   : > { %10384 = vmatpush1.bf16.msra.mxu1 %v17331_v21 }
0x102f   : > { %10385 = vmatprep.subr.bf16.mxu1 %v17336_v25  ;;  %v17349_v25 = vld [vmem:[%s17915_s2 + $0x4b8] ss:$20 sps:$4 sm:$0xff]  }
0x1032   : > { %10386 = vmatpush1.bf16.msra.mxu1 %v17334_v24  ;;  %v17351_v24 = vld [vmem:[%s17915_s2 + $0x4bc] ss:$20 sps:$4 sm:$0xff]  }
0x1033   : > { %10387 = vmatprep.subr.bf16.mxu1 %v17339_v37  ;;  %v17355_v37 = vld [vmem:[%s17915_s2 + $0x4e0] ss:$20 sps:$4 sm:$0xff]  }
0x1036   : > { %10388 = vmatpush1.bf16.msra.mxu1 %v17337_v12  ;;  %v17357_v12 = vld [vmem:[%s17915_s2 + $0x4e4] ss:$20 sps:$4 sm:$0xff]  }
0x1037   : > { %10389 = vmatprep.subr.bf16.mxu1 %v17342_v22  ;;  %v17361_v22 = vld [vmem:[%s17915_s2 + $0x508] ss:$20 sps:$4 sm:$0xff]  }
0x103a   : > { %10390 = vmatpush1.bf16.msra.mxu1 %v17340_v51  ;;  %v17363_v51 = vld [vmem:[%s17915_s2 + $0x50c] ss:$20 sps:$4 sm:$0xff]  }
0x103b   : > { %10391 = vmatprep.subr.bf16.mxu1 %v17345_v2  ;;  %v17367_v2 = vld [vmem:[%s17915_s2 + $0x530] ss:$20 sps:$4 sm:$0xff]  }
0x103e   : > { %10392 = vmatpush1.bf16.msra.mxu1 %v17343_v32  ;;  %v17369_v32 = vld [vmem:[%s17915_s2 + $0x534] ss:$20 sps:$4 sm:$0xff]  }
0x103f   : > { %11009 = vmatprep.subr.bf16.mxu1 %v17351_v24  ;;  %v17406_v24 = vld [vmem:[%s17915_s2 + $0x4c0] ss:$20 sps:$4 sm:$0xff]  }
0x1041   : > { %10410 = vmatmul.mubr.bf16.vlgmr.msra.gmra.mrb[64].mxu1 %v18162_v63 }
0x1042   : > { %11010 = vmatpush1.bf16.msra.mxu1 %v17349_v25 }
0x1043   : > { %11011 = vmatprep.subr.bf16.mxu1 %v17357_v12  ;;  %v17407_v12 = vld [vmem:[%s17915_s2 + $0x4e8] ss:$20 sps:$4 sm:$0xff]  }
0x1046   : > { %11012 = vmatpush1.bf16.msra.mxu1 %v17355_v37 }
0x1047   : > { %11013 = vmatprep.subr.bf16.mxu1 %v17363_v51  ;;  %v17409_v51 = vld [vmem:[%s17915_s2 + $0x538] ss:$20 sps:$4 sm:$0xff]  }
0x104a   : > { %11014 = vmatpush1.bf16.msra.mxu1 %v17361_v22  ;;  %v17408_v22 = vld [vmem:[%s17915_s2 + $0x510] ss:$20 sps:$4 sm:$0xff]  }
0x104b   : > { %11015 = vmatprep.subr.bf16.mxu1 %v17369_v32  ;;  %v17411_v32 = vld [vmem:[%s17915_s2 + $0x588] ss:$20 sps:$4 sm:$0xff]  }
0x104e   : > { %11016 = vmatpush1.bf16.msra.mxu1 %v17367_v2  ;;  %v17410_v2 = vld [vmem:[%s17915_s2 + $0x560] ss:$20 sps:$4 sm:$0xff]  }
0x1074   : > { %v9780_v17 = vpop.f32.mrb[60].mxu1 }
0x1075   : > { %v19459_v56 = vadd.f32 %v9780_v17, %v19293_v14  ;;  %v9782_v15 = vpop.f32.mrb[61].mxu1  ;;  %v17373_v17 = vld [vmem:[%s17915_s2 + $0x558] ss:$20 sps:$4 sm:$0xff]  }
0x1076   : > { %v9783_v20 = vpop.f32.mrb[62].mxu1  ;;  %v17375_v15 = vld [vmem:[%s17915_s2 + $0x55c] ss:$20 sps:$4 sm:$0xff]  }
0x1077   : > { %v19462_v6 = vadd.f32 %v9783_v20, %v19295_v45  ;;  %v9785_v35 = vpop.f32.mrb[63].mxu1  ;;  %11017 = vmatprep.subr.bf16.mxu1 %v17375_v15  ;;  %v17379_v20 = vld [vmem:[%s17915_s2 + $0x580] ss:$20 sps:$4 sm:$0xff]   ;;  %v17413_v15 = vld [vmem:[%s17915_s2 + $0x5d8] ss:$20 sps:$4 sm:$0xff]  }
0x1078   : > { %11018 = vmatpush1.bf16.msra.mxu1 %v17373_v17  ;;  %v17381_v35 = vld [vmem:[%s17915_s2 + $0x584] ss:$20 sps:$4 sm:$0xff]  }
0x1079   : > { %11019 = vmatprep.subr.bf16.mxu1 %v17381_v35  ;;  %v17412_v17 = vld [vmem:[%s17915_s2 + $0x5b0] ss:$20 sps:$4 sm:$0xff]   ;;  %v17415_v35 = vld [vmem:[%s17915_s2 + $0x628] ss:$20 sps:$4 sm:$0xff]  }
0x107c   : > { %11020 = vmatpush1.bf16.msra.mxu1 %v17379_v20  ;;  %v17414_v20 = vld [vmem:[%s17915_s2 + $0x600] ss:$20 sps:$4 sm:$0xff]  }
0x1114   : > { %v10411_v19 = vpop.f32.mrb[64].mxu1 }
0x1115   : > { %v15523_v63 = vadd.f32 %v10411_v19, %v9884_v11  ;;  %v10413_v1 = vpop.f32.mrb[65].mxu1  ;;  %v5897_v19 = vpack.c.bf16 %v18891_v7, %v18891_v7  ;;  %v17346_v7 = vld [vmem:[%s17915_s2 + $0x4b0] ss:$20 sps:$4 sm:$0xff]  }
0x1116   : > { %v15524_v46 = vadd.f32 %v10413_v1, %v9888_v27  ;;  %v10415_v14 = vpop.f32.mrb[66].mxu1 }
0x1117   : > { %v10417_v26 = vpop.f32.mrb[67].mxu1  ;;  %v10420_v50 = vpack.c.bf16 %v15523_v63, %v15523_v63  ;;  %v15525_v41 = vadd.f32 %v10415_v14, %v9884_v11  ;;  %v17387_v11 = vld [vmem:[%s17915_s2 + $0x5ac] ss:$20 sps:$4 sm:$0xff]   ;;  %v10594_v14 = vsel %vm6645_vm1, %v5897_v19, 0 }
0x1118   : > { %v10421_v36 = vpack.c.bf16 %v15524_v46, %v15524_v46  ;;  %v15526_v45 = vadd.f32 %v10417_v26, %v9888_v27  ;;  %11021 = vmatprep.subr.bf16.mxu1 %v17387_v11  ;;  %v17348_v46 = vld [vmem:[%s17915_s2 + $0x4b4] ss:$20 sps:$4 sm:$0xff]  }
0x1119   : > { %v10422_v47 = vpack.c.bf16 %v15525_v41, %v15525_v41  ;;  %11022 = vmatpush1.bf16.msra.mxu1 %v17385_v43  ;;  %v17372_v41 = vld [vmem:[%s17915_s2 + $0x554] ss:$20 sps:$4 sm:$0xff]  }
0x111a   : > { %v10423_v39 = vpack.c.bf16 %v15526_v45, %v15526_v45  ;;  %15172 = vmatprep.mubr.msk.bf16.mxu0 %vm6524_vm0, %v10421_v36  ;;  %v17354_v45 = vld [vmem:[%s17915_s2 + $0x4dc] ss:$20 sps:$4 sm:$0xff]  }
0x111b   : > { %10463 = vmatmul.mubr.bf16.vlgmr.msra.gmra.mrb[48].mxu0 %v10420_v50  ;;  %v17352_v50 = vld [vmem:[%s17915_s2 + $0x4d8] ss:$20 sps:$4 sm:$0xff]  }
0x111c   : > { %10477 = vmatpush1.bf16.xpose.msra.mxu0 %v5893_v9  ;;  %15174 = vmatprep.mubr.msk.bf16.mxu0 %vm6524_vm0, %v10423_v39  ;;  %v17360_v9 = vld [vmem:[%s17915_s2 + $0x504] ss:$20 sps:$4 sm:$0xff]   ;;  %v17358_v39 = vld [vmem:[%s17915_s2 + $0x500] ss:$20 sps:$4 sm:$0xff]  }
0x111d   : > { %15175 = vmatprep.subr.msk.bf16.mxu0 %vm6645_vm1, %v5896_v54  ;;  %v17364_v54 = vld [vmem:[%s17915_s2 + $0x528] ss:$20 sps:$4 sm:$0xff]  }
0x1123   : > { %10509 = vmatmul.mubr.bf16.vlgmr.msra.gmra.mrb[52].mxu0 %v10422_v47  ;;  %v17376_v47 = vld [vmem:[%s17915_s2 + $0x578] ss:$20 sps:$4 sm:$0xff]  }
0x1124   : > { %10550 = vmatpush1.bf16.msra.mxu0 %v10544_v18  ;;  %10581 = vmatprep.mubr.bf16.mxu0 %v17759_v34  ;;  %v17384_v18 = vld [vmem:[%s17915_s2 + $0x5a4] ss:$20 sps:$4 sm:$0xff]  }
0x1125   : > { %15177 = vmatprep.subr.msk.bf16.mxu0 %vm6645_vm1, %v5898_v49  ;;  %v17382_v49 = vld [vmem:[%s17915_s2 + $0x5a0] ss:$20 sps:$4 sm:$0xff]  }
0x11ee   : > { %v10464_v3 = vpop.f32.mrb[48].mxu0 }
0x11ef   : > { %v10466_v4 = vpop.f32.mrb[49].mxu0  ;;  %v10516_v31 = vsel %vm6617_vm2, %v10464_v3, -inf }
0x11f0   : > { %10517 = vmax.xlane.f32.xlu0 %v10516_v31  ;;  %v10467_v30 = vpop.f32.mrb[50].mxu0  ;;  %v17388_v4 = vld [vmem:[%s17915_s2 + $0x5c8] ss:$20 sps:$4 sm:$0xff]  }
0x11f1   : > { %v10468_v55 = vpop.f32.mrb[51].mxu0  ;;  %v17393_v31 = vld [vmem:[%s17915_s2 + $0x5d4] ss:$20 sps:$4 sm:$0xff]   ;;  %v17391_v30 = vld [vmem:[%s17915_s2 + $0x5d0] ss:$20 sps:$4 sm:$0xff]  }
0x11f2   : > { %11023 = vmatprep.subr.bf16.mxu1 %v17393_v31  ;;  %v17394_v55 = vld [vmem:[%s17915_s2 + $0x5f0] ss:$20 sps:$4 sm:$0xff]   ;;  %v19578_v31 = vsub.s32 4, %v18388_v38 }
0x11f3   : > { %11024 = vmatpush1.bf16.msra.mxu1 %v17391_v30 }
0x11f6   : > { %v10510_v48 = vpop.f32.mrb[52].mxu0 }
0x11f7   : > { %v10512_v53 = vpop.f32.mrb[53].mxu0  ;;  %v10519_v8 = vsel %vm6617_vm2, %v10510_v48, -inf }
0x11f8   : > { %10520 = vmax.xlane.f32.xlu1 %v10519_v8  ;;  %v10513_v60 = vpop.f32.mrb[54].mxu0  ;;  %v17397_v53 = vld [vmem:[%s17915_s2 + $0x5f8] ss:$20 sps:$4 sm:$0xff]   ;;  %v17399_v8 = vld [vmem:[%s17915_s2 + $0x5fc] ss:$20 sps:$4 sm:$0xff]  }
0x11f9   : > { %v10514_v59 = vpop.f32.mrb[55].mxu0  ;;  %11025 = vmatprep.subr.bf16.mxu1 %v17399_v8  ;;  %v17402_v60 = vld [vmem:[%s17915_s2 + $0x61c] ss:$20 sps:$4 sm:$0xff]  }
0x11fa   : > { %11026 = vmatpush1.bf16.msra.mxu1 %v17397_v53  ;;  %v17400_v59 = vld [vmem:[%s17915_s2 + $0x618] ss:$20 sps:$4 sm:$0xff]  }
0x127d   : > { %v10518_v33 = vpop.xlane.xlu0 %10517 }
0x127e   : > { %v10522_v58 = vsub.f32 %v10464_v3, %v10518_v33  ;;  %v17390_v3 = vld [vmem:[%s17915_s2 + $0x5cc] ss:$20 sps:$4 sm:$0xff]   ;;  %v17405_v33 = vld [vmem:[%s17915_s2 + $0x624] ss:$20 sps:$4 sm:$0xff]  }
0x127f   : > { %11027 = vmatprep.subr.bf16.mxu1 %v17405_v33 }
0x1280   : > { %v10524_v10 = vmul.f32 1.442695, %v10522_v58  ;;  %v17403_v58 = vld [vmem:[%s17915_s2 + $0x620] ss:$20 sps:$4 sm:$0xff]  }
0x1281   : > { %11028 = vmatpush1.bf16.msra.mxu1 %v17403_v58  ;;  %v17700_v58 = vld [vmem:[#allocation2 + $0x38] sm:$0xff] }
0x1282   : > { %17672 = vpow2.f32 %v10524_v10 }
0x1285   : > { %v10521_v61 = vpop.xlane.xlu1 %10520 }
0x1286   : > { %v10523_v28 = vsub.f32 %v10510_v48, %v10521_v61  ;;  %v17396_v48 = vld [vmem:[%s17915_s2 + $0x5f4] ss:$20 sps:$4 sm:$0xff]  }
0x1288   : > { %v10526_v13 = vmul.f32 1.442695, %v10523_v28 }
0x128a   : > { %17674 = vpow2.f32 %v10526_v13 }
0x128c   : > { %v17673_v62 = vpop.eup %17672 }
0x128d   : > { %v10528_v52 = vsel %vm6617_vm2, %v17673_v62, 0.0 }
0x128e   : > { %10529 = vadd.xlane.f32.xlu0 %v10528_v52 }
0x1294   : > { %v17675_v0 = vpop.eup %17674 }
0x1295   : > { %v10531_v21 = vsel %vm6617_vm2, %v17675_v0, 0.0 }
0x1296   : > { %10532 = vadd.xlane.f32.xlu1 %v10531_v21 }
0x131b   : > { %v10530_v27 = vpop.xlane.xlu0 %10529 }
0x131c   : > { %17676 = vrcp.f32 %v10530_v27 }
0x1323   : > { %v10533_v16 = vpop.xlane.xlu1 %10532 }
0x1324   : > { %17678 = vrcp.f32 %v10533_v16 }
0x1326   : > { %v17677_v23 = vpop.eup %17676 }
0x1327   : > { %v10536_v63 = vmul.f32 %v17677_v23, %v17673_v62 }
0x1329   : > { %v10538_v1 = vpack.c.bf16 %v10536_v63, %v10536_v63 }
0x132b   : > { %15176 = vmatmul.mubr.msk.bf16.vlgmr.msra.gmra.mrb[56].mxu0 %vm6617_vm2, %v10538_v1 }
0x132c   : > { %10600 = vmatpush1.bf16.msra.mxu0 %v10594_v14  ;;  %10631 = vmatprep.mubr.bf16.mxu0 %v17759_v34 }
0x132d   : > { %10966 = vmatprep.subr.bf16.mxu0 %v17348_v46  ;;  %v11103_v46 = vld [vmem:[%s20029_s18] sm:$0x1f] }
0x132e   : > { %v17679_v57 = vpop.eup %17678  ;;  %v11108_v14 = vrot.slane %v11103_v46, %v18396_v44 }
0x132f   : > { %v10537_v26 = vmul.f32 %v17679_v57, %v17675_v0  ;;  %v11112_v57 = vrot.slane %v11103_v46, %v18715_v29 }
0x1331   : > { %v10539_v36 = vpack.c.bf16 %v10537_v26, %v10537_v26  ;;  %v19562_v26 = vsub.s32 2, %v18388_v38 }
0x1333   : > { %15178 = vmatmul.mubr.msk.bf16.vlgmr.msra.gmra.mrb[60].mxu0 %vm6617_vm2, %v10539_v36 }
0x1334   : > { %10967 = vmatpush1.bf16.msra.mxu0 %v17346_v7 }
0x1335   : > { %10968 = vmatprep.subr.bf16.mxu0 %v17354_v45  ;;  %v19565_v45 = vsub.s32 3, %v18388_v38 }
0x1338   : > { %10969 = vmatpush1.bf16.msra.mxu0 %v17352_v50  ;;  %v11116_v50 = vrot.slane %v11103_v46, %v19562_v26 }
0x1339   : > { %10970 = vmatprep.subr.bf16.mxu0 %v17360_v9 }
0x133c   : > { %10971 = vmatpush1.bf16.msra.mxu0 %v17358_v39 }
0x133d   : > { %10972 = vmatprep.subr.bf16.mxu0 %v17366_v40  ;;  %v17695_v40 = vld [vmem:[#allocation2] sm:$0xff] }
0x1340   : > { %10973 = vmatpush1.bf16.msra.mxu0 %v17364_v54 }
0x1341   : > { %10974 = vmatprep.subr.bf16.mxu0 %v17372_v41  ;;  %v17696_v41 = vld [vmem:[#allocation2 + $0x8] sm:$0xff] }
0x1344   : > { %10975 = vmatpush1.bf16.msra.mxu0 %v17370_v5 }
0x1345   : > { %10976 = vmatprep.subr.bf16.mxu0 %v17378_v42  ;;  %v11120_v42 = vrot.slane %v11103_v46, %v19565_v45 }
0x1348   : > { %10977 = vmatpush1.bf16.msra.mxu0 %v17376_v47 }
0x1349   : > { %10978 = vmatprep.subr.bf16.mxu0 %v17384_v18  ;;  %v17697_v18 = vld [vmem:[#allocation2 + $0x28] sm:$0xff] }
0x134c   : > { %10979 = vmatpush1.bf16.msra.mxu0 %v17382_v49 }
0x134d   : > { %10980 = vmatprep.subr.bf16.mxu0 %v17390_v3  ;;  %v17698_v3 = vld [vmem:[#allocation2 + $0x30] sm:$0xff] }
0x1350   : > { %10981 = vmatpush1.bf16.msra.mxu0 %v17388_v4 }
0x1351   : > { %10982 = vmatprep.subr.bf16.mxu0 %v17396_v48  ;;  %v17699_v48 = vld [vmem:[#allocation2 + $0x10] sm:$0xff] }
0x1354   : > { %10983 = vmatpush1.bf16.msra.mxu0 %v17394_v55 }
0x1355   : > { %10984 = vmatprep.subr.bf16.mxu0 %v17402_v60 }
0x1358   : > { %10985 = vmatpush1.bf16.msra.mxu0 %v17400_v59  ;;  %v11124_v59 = vrot.slane %v11103_v46, %v19578_v31  ;;  %v17425_v46 = vld [vmem:[%s17932_s15 + $0x30] ss:$8 sps:$4 sm:$0xff]  }
0x1359   : > { %11052 = vmatprep.subr.bf16.mxu0 %v17759_v34 }
0x13fe   : > { %v10583_v10 = vpop.f32.mrb[56].mxu0 }
0x13ff   : > { %v10585_v61 = vpop.f32.mrb[57].mxu0 }
0x1400   : > { %v10587_v28 = vpop.f32.mrb[58].mxu0 }
0x1401   : > { %v10588_v13 = vpop.f32.mrb[59].mxu0 }
0x1406   : > { %v10633_v62 = vpop.f32.mrb[60].mxu0 }
0x1407   : > { %v10640_v52 = vpack.c.bf16 %v10633_v62, %v10583_v10  ;;  %v10635_v0 = vpop.f32.mrb[61].mxu0 }
0x1408   : > { %v10641_v21 = vpack.c.bf16 %v10635_v0, %v10585_v61  ;;  %v10637_v25 = vpop.f32.mrb[62].mxu0  ;;  %v17701_v0 = vld [vmem:[#allocation2 + $0x18] sm:$0xff] }
0x1409   : > { %v10638_v37 = vpop.f32.mrb[63].mxu0 }
0x140a   : > { %15289 = vmatprep.mubr.msk.bf16.mxu0 %vm6524_vm0, %v10641_v21  ;;  %15290 = vmatprep.mubr.msk.bf16.mxu1 %vm6524_vm0, %v10641_v21 }
0x140b   : > { %10999 = vmatmul.mubr.bf16.vlgmr.msra.gmra.mrb[36].mxu0 %v10640_v52  ;;  %11042 = vmatmul.mubr.bf16.vlgmr.msra.gmra.mrb[36].mxu1 %v10640_v52 }
0x140c   : > { %11053 = vmatpush1.bf16.msra.mxu0 %v17406_v24  ;;  %15291 = vmatprep.mubr.msk.bf16.mxu0 %vm6524_vm0, %v10641_v21 }
0x140d   : > { %11054 = vmatprep.subr.bf16.mxu0 %v17759_v34 }
0x1410   : > { %11055 = vmatpush1.bf16.msra.mxu0 %v17407_v12 }
0x1411   : > { %11056 = vmatprep.subr.bf16.mxu0 %v17759_v34 }
0x1414   : > { %11057 = vmatpush1.bf16.msra.mxu0 %v17408_v22  ;;  %v17702_v22 = vld [vmem:[#allocation2 + $0x40] sm:$0xff] }
0x1415   : > { %11058 = vmatprep.subr.bf16.mxu0 %v17759_v34 }
0x1418   : > { %11059 = vmatpush1.bf16.msra.mxu0 %v17409_v51 }
0x1419   : > { %11060 = vmatprep.subr.bf16.mxu0 %v17759_v34 }
0x141c   : > { %11061 = vmatpush1.bf16.msra.mxu0 %v17410_v2  ;;  %v17703_v2 = vld [vmem:[#allocation2 + $0x20] sm:$0xff] }
0x141d   : > { %11062 = vmatprep.subr.bf16.mxu0 %v17759_v34 }
0x1420   : > { %11063 = vmatpush1.bf16.msra.mxu0 %v17411_v32 }
0x1421   : > { %11064 = vmatprep.subr.bf16.mxu0 %v17759_v34 }
0x1424   : > { %11065 = vmatpush1.bf16.msra.mxu0 %v17412_v17 }
0x1425   : > { %11066 = vmatprep.subr.bf16.mxu0 %v17759_v34 }
0x1428   : > { %11067 = vmatpush1.bf16.msra.mxu0 %v17413_v15 }
0x1429   : > { %11068 = vmatprep.subr.bf16.mxu0 %v17759_v34 }
0x142c   : > { %11069 = vmatpush1.bf16.msra.mxu0 %v17414_v20  ;;  %v17704_v20 = vld [vmem:[#allocation2 + $0x48] sm:$0xff] }
0x142d   : > { %11070 = vmatprep.subr.bf16.mxu0 %v17759_v34 }
0x1430   : > { %11071 = vmatpush1.bf16.msra.mxu0 %v17415_v35 }
0x1433   : > { %11085 = vmatmul.mubr.bf16.vlgmr.msra.gmra.mrb[64].mxu0 %v10640_v52 }
0x14de   : > { %v11000_v43 = vpop.f32.mrb[36].mxu0  ;;  %v11043_v11 = vpop.f32.mrb[36].mxu1 }
0x14df   : > { %v11002_v27 = vpop.f32.mrb[37].mxu0  ;;  %v11045_v16 = vpop.f32.mrb[37].mxu1  ;;  %v11130_v7 = vadd.f32 %v11108_v14, %v11000_v43  ;;  %v11132_v47 = vadd.f32 %v11116_v50, %v11043_v11  ;;  %v17416_v11 = vld [vmem:[%s17932_s15] ss:$8 sps:$4 sm:$0xff]  }
0x14e0   : > { %v11004_v23 = vpop.f32.mrb[38].mxu0  ;;  %v11047_v19 = vpop.f32.mrb[38].mxu1  ;;  %v11131_v36 = vadd.f32 %v11112_v57, %v11002_v27  ;;  %v11133_v8 = vadd.f32 %v11120_v42, %v11045_v16  ;;  %v17418_v27 = vld [vmem:[%s17932_s15 + $0x4] ss:$8 sps:$4 sm:$0xff]   ;;  %v17421_v16 = vld [vmem:[%s17932_s15 + $0x14] ss:$8 sps:$4 sm:$0xff]  }
0x14e1   : > { %v11006_v63 = vpop.f32.mrb[39].mxu0  ;;  %v11049_v1 = vpop.f32.mrb[39].mxu1  ;;  %v11135_v9 = vadd.f32 %v11108_v14, %v11004_v23  ;;  %v19568_v54 = vadd.f32 %v17695_v40, %v11130_v7  ;;  %v11137_v55 = vadd.f32 %v11116_v50, %v11047_v19  ;;  %v19582_v53 = vadd.f32 %v17699_v48, %v11132_v47  ;;  %11784 = vmatprep.subr.bf16.mxu0 %v17418_v27  ;;  %v17419_v23 = vld [vmem:[%s17932_s15 + $0x10] ss:$8 sps:$4 sm:$0xff]   ;;  %v17424_v19 = vld [vmem:[%s17932_s15 + $0x24] ss:$8 sps:$4 sm:$0xff]  }
0x14e2   : > { %v11136_v39 = vadd.f32 %v11112_v57, %v11006_v63  ;;  %v19570_v5 = vadd.f32 %v17696_v41, %v11131_v36  ;;  %v11138_v61 = vadd.f32 %v11120_v42, %v11049_v1  ;;  %v19591_v21 = vadd.f32 %v17701_v0, %v11133_v8  ;;  %11785 = vmatpush1.bf16.msra.mxu0 %v17416_v11  ;;  %v17422_v63 = vld [vmem:[%s17932_s15 + $0x20] ss:$8 sps:$4 sm:$0xff]   ;;  %v17427_v1 = vld [vmem:[%s17932_s15 + $0x34] ss:$8 sps:$4 sm:$0xff]   ;;  %v17430_v14 = vld [vmem:[%s17932_s15 + $0x44] ss:$8 sps:$4 sm:$0xff]  }
0x14e3   : > { %v19573_v49 = vadd.f32 %v17697_v18, %v11135_v9  ;;  %v19587_v10 = vadd.f32 %v17700_v58, %v11137_v55  ;;  %11786 = vmatprep.subr.bf16.mxu0 %v17421_v16  ;;  %v17428_v57 = vld [vmem:[%s17932_s15 + $0x40] ss:$8 sps:$4 sm:$0xff]   ;;  %v17433_v7 = vld [vmem:[%s17932_s15 + $0x54] ss:$8 sps:$4 sm:$0xff]   ;;  %v17431_v36 = vld [vmem:[%s17932_s15 + $0x50] ss:$8 sps:$4 sm:$0xff]  }
0x14e4   : > { %v19575_v4 = vadd.f32 %v17698_v3, %v11136_v39  ;;  %v11152_v30 = vadd.f32 %v19570_v5, %v19568_v54  ;;  %v19595_v51 = vadd.f32 %v17702_v22, %v11138_v61  ;;  %v17436_v50 = vld [vmem:[%s17932_s15 + $0x64] ss:$8 sps:$4 sm:$0xff]   ;;  %v17434_v9 = vld [vmem:[%s17932_s15 + $0x60] ss:$8 sps:$4 sm:$0xff]   ;;  %v17439_v39 = vld [vmem:[%s17932_s15 + $0x74] ss:$8 sps:$4 sm:$0xff]  }
0x14e5   : > { %v17437_v40 = vld [vmem:[%s17932_s15 + $0x70] ss:$8 sps:$4 sm:$0xff]   ;;  %v17442_v41 = vld [vmem:[%s17932_s15 + $0x84] ss:$8 sps:$4 sm:$0xff]   ;;  %v17440_v42 = vld [vmem:[%s17932_s15 + $0x80] ss:$8 sps:$4 sm:$0xff]  }
0x14e6   : > { %v11158_v60 = vadd.f32 %v19575_v4, %v19573_v49  ;;  %v11153_v62 = vadd.f32 %v11152_v30, %v19582_v53  ;;  %11787 = vmatpush1.bf16.msra.mxu0 %v17419_v23  ;;  %v17445_v47 = vld [vmem:[%s17932_s15 + $0x94] ss:$8 sps:$4 sm:$0xff]   ;;  %v17443_v18 = vld [vmem:[%s17932_s15 + $0x90] ss:$8 sps:$4 sm:$0xff]   ;;  %v17452_v11 = vld [vmem:[%s17932_s15 + $0xc0] ss:$8 sps:$4 sm:$0xff]  }
0x14e7   : > { %11788 = vmatprep.subr.bf16.mxu0 %v17424_v19  ;;  %v17457_v27 = vld [vmem:[%s17932_s15 + $0xd4] ss:$8 sps:$4 sm:$0xff]   ;;  %v17455_v16 = vld [vmem:[%s17932_s15 + $0xd0] ss:$8 sps:$4 sm:$0xff]   ;;  %v17460_v23 = vld [vmem:[%s17932_s15 + $0xe4] ss:$8 sps:$4 sm:$0xff]  }
0x14e8   : > { %v11159_v12 = vadd.f32 %v11158_v60, %v19587_v10  ;;  %v11154_v17 = vadd.f32 %v11153_v62, %v19591_v21  ;;  %v17458_v19 = vld [vmem:[%s17932_s15 + $0xe0] ss:$8 sps:$4 sm:$0xff]  }
0x14ea   : > { %v11160_v35 = vadd.f32 %v11159_v12, %v19595_v51  ;;  %11789 = vmatpush1.bf16.msra.mxu0 %v17422_v63  ;;  %v17463_v63 = vld [vmem:[%s17932_s15 + $0xf4] ss:$8 sps:$4 sm:$0xff]  }
0x14eb   : > { %11790 = vmatprep.subr.bf16.mxu0 %v17427_v1  ;;  %v17461_v1 = vld [vmem:[%s17932_s15 + $0xf0] ss:$8 sps:$4 sm:$0xff]  }
0x14ee   : > { %11791 = vmatpush1.bf16.msra.mxu0 %v17425_v46  ;;  %v17466_v46 = vld [vmem:[%s17932_s15 + $0x104] ss:$8 sps:$4 sm:$0xff]  }
0x14ef   : > { %11792 = vmatprep.subr.bf16.mxu0 %v17430_v14  ;;  %v17536_v14 = vld [vmem:[%s17937_s29] ss:$20 sps:$4 sm:$0xff]  }
0x14f2   : > { %11793 = vmatpush1.bf16.msra.mxu0 %v17428_v57  ;;  %v17538_v57 = vld [vmem:[%s17937_s29 + $0x4] ss:$20 sps:$4 sm:$0xff]  }
0x14f3   : > { %11794 = vmatprep.subr.bf16.mxu0 %v17433_v7  ;;  %v17541_v7 = vld [vmem:[%s17937_s29 + $0x2c] ss:$20 sps:$4 sm:$0xff]   ;;  %12458 = vmatprep.subr.bf16.mxu1 %v17538_v57 }
0x14f4   : > { %12459 = vmatpush1.bf16.msra.mxu1 %v17536_v14 }
0x14f5   : > { %12460 = vmatprep.subr.bf16.mxu1 %v17541_v7 }
0x14f6   : > { %11795 = vmatpush1.bf16.msra.mxu0 %v17431_v36  ;;  %v17539_v36 = vld [vmem:[%s17937_s29 + $0x28] ss:$20 sps:$4 sm:$0xff]  }
0x14f7   : > { %11796 = vmatprep.subr.bf16.mxu0 %v17436_v50 }
0x14f8   : > { %12461 = vmatpush1.bf16.msra.mxu1 %v17539_v36 }
0x14fa   : > { %11797 = vmatpush1.bf16.msra.mxu0 %v17434_v9  ;;  %v17544_v9 = vld [vmem:[%s17937_s29 + $0x54] ss:$20 sps:$4 sm:$0xff]  }
0x14fb   : > { %11798 = vmatprep.subr.bf16.mxu0 %v17439_v39  ;;  %12462 = vmatprep.subr.bf16.mxu1 %v17544_v9  ;;  %v17557_v9 = vld [vmem:[%s17937_s29 + $0x118] ss:$20 sps:$4 sm:$0xff]  }
0x14fe   : > { %11799 = vmatpush1.bf16.msra.mxu0 %v17437_v40 }
0x14ff   : > { %11800 = vmatprep.subr.bf16.mxu0 %v17442_v41 }
0x1502   : > { %11801 = vmatpush1.bf16.msra.mxu0 %v17440_v42  ;;  %v17542_v42 = vld [vmem:[%s17937_s29 + $0x50] ss:$20 sps:$4 sm:$0xff]  }
0x1503   : > { %11802 = vmatprep.subr.bf16.mxu0 %v17445_v47  ;;  %12463 = vmatpush1.bf16.msra.mxu1 %v17542_v42  ;;  %v17464_v42 = vld [vmem:[%s17932_s15 + $0x100] ss:$8 sps:$4 sm:$0xff]  }
0x1506   : > { %v11086_v33 = vpop.f32.mrb[64].mxu0  ;;  %11803 = vmatpush1.bf16.msra.mxu0 %v17443_v18  ;;  %v17547_v18 = vld [vmem:[%s17937_s29 + $0x7c] ss:$20 sps:$4 sm:$0xff]  }
0x1507   : > { %v11097_v28 = vadd.f32 %v11086_v33, %v19459_v56  ;;  %v11088_v13 = vpop.f32.mrb[65].mxu0  ;;  %12464 = vmatprep.subr.bf16.mxu1 %v17547_v18 }
0x1508   : > { %v11089_v52 = vpop.f32.mrb[66].mxu0 }
0x1509   : > { %v11134_v25 = vadd.f32 %v11124_v59, %v11097_v28  ;;  %v11102_v24 = vadd.f32 %v11089_v52, %v19462_v6  ;;  %v11091_v37 = vpop.f32.mrb[67].mxu0 }
0x150b   : > { %v11139_v56 = vadd.f32 %v11124_v59, %v11102_v24  ;;  %v11144_v32 = vadd.f32 %v17703_v2, %v11134_v25 }
0x150d   : > { %v11155_v15 = vadd.f32 %v11154_v17, %v11144_v32  ;;  %v19598_v6 = vadd.f32 %v17704_v20, %v11139_v56  ;;  %v17446_v20 = vld [vmem:[%s17932_s15 + $0xa0] ss:$8 sps:$4 sm:$0xff]  }
0x150f   : > { %11156 = vadd.xlane.f32.xlu0 %v11155_v15  ;;  %v11161_v43 = vadd.f32 %v11160_v35, %v19598_v6  ;;  %v17448_v15 = vld [vmem:[%s17932_s15 + $0xa4] ss:$8 sps:$4 sm:$0xff]   ;;  %v17449_v35 = vld [vmem:[%s17932_s15 + $0xb0] ss:$8 sps:$4 sm:$0xff]  }
0x1510   : > { %11804 = vmatprep.subr.bf16.mxu0 %v17448_v15 }
0x1511   : > { %11162 = vadd.xlane.f32.xlu1 %v11161_v43  ;;  %11805 = vmatpush1.bf16.msra.mxu0 %v17446_v20  ;;  %v17454_v43 = vld [vmem:[%s17932_s15 + $0xc4] ss:$8 sps:$4 sm:$0xff]  }
0x159c   : > { %v11157_v3 = vpop.xlane.xlu0 %11156 }
0x159d   : > { %v11165_v30 = vmul.f32 0.0015625, %v11157_v3 }
0x159e   : > { %v11163_v55 = vpop.xlane.xlu1 %11162 }
0x159f   : > { %v11166_v48 = vmul.f32 0.0015625, %v11163_v55  ;;  %v19623_v8 = vsub.f32 %v19568_v54, %v11165_v30  ;;  %v19626_v60 = vsub.f32 %v19570_v5, %v11165_v30  ;;  %v19629_v59 = vsub.f32 %v19582_v53, %v11165_v30  ;;  %v17550_v55 = vld [vmem:[%s17937_s29 + $0xa4] ss:$20 sps:$4 sm:$0xff]  }
0x15a0   : > { %v19632_v33 = vsub.f32 %v19591_v21, %v11165_v30  ;;  %v19647_v53 = vsub.f32 %v11144_v32, %v11165_v30  ;;  %v17545_v30 = vld [vmem:[%s17937_s29 + $0x78] ss:$20 sps:$4 sm:$0xff]  }
0x15a1   : > { %v11177_v58 = vmul.f32 %v19623_v8, %v19623_v8  ;;  %v11178_v61 = vmul.f32 %v19626_v60, %v19626_v60  ;;  %v19639_v28 = vsub.f32 %v19573_v49, %v11166_v48  ;;  %v19642_v54 = vsub.f32 %v19575_v4, %v11166_v48  ;;  %12465 = vmatpush1.bf16.msra.mxu1 %v17545_v30 }
0x15a2   : > { %v19645_v5 = vsub.f32 %v19587_v10, %v11166_v48  ;;  %v11179_v13 = vmul.f32 %v19629_v59, %v19629_v59  ;;  %v19654_v0 = vsub.f32 %v19595_v51, %v11166_v48  ;;  %v11180_v4 = vmul.f32 %v19632_v33, %v19632_v33  ;;  %12466 = vmatprep.subr.bf16.mxu1 %v17550_v55 }
0x15a3   : > { %v11187_v62 = vadd.f32 %v11178_v61, %v11177_v58  ;;  %v11182_v52 = vmul.f32 %v19639_v28, %v19639_v28  ;;  %v11183_v49 = vmul.f32 %v19642_v54, %v19642_v54  ;;  %v19661_v21 = vsub.f32 %v19598_v6, %v11166_v48  ;;  %v17451_v6 = vld [vmem:[%s17932_s15 + $0xb4] ss:$8 sps:$4 sm:$0xff]   ;;  %v11150_v48 = vld [vmem:[%s20030_s1] sm:$0x1f] }
0x15a4   : > { %v11184_v25 = vmul.f32 %v19645_v5, %v19645_v5  ;;  %v11181_v37 = vmul.f32 %v19647_v53, %v19647_v53  ;;  %v11185_v22 = vmul.f32 %v19654_v0, %v19654_v0  ;;  %11806 = vmatprep.subr.bf16.mxu0 %v17451_v6  ;;  %v17548_v58 = vld [vmem:[%s17937_s29 + $0xa0] ss:$20 sps:$4 sm:$0xff]  }
0x15a5   : > { %v11188_v10 = vadd.f32 %v11187_v62, %v11179_v13  ;;  %v11193_v24 = vadd.f32 %v11183_v49, %v11182_v52  ;;  %v11186_v2 = vmul.f32 %v19661_v21, %v19661_v21  ;;  %11807 = vmatpush1.bf16.msra.mxu0 %v17449_v35  ;;  %v11151_v61 = vld [vmem:[%s20031_s11] sm:$0x1f]  ;;  %v11223_v62 = vrot.slane %v11150_v48, %v18715_v29 }
0x15a6   : > { %11808 = vmatprep.subr.bf16.mxu0 %v17454_v43  ;;  %v17553_v13 = vld [vmem:[%s17937_s29 + $0xcc] ss:$20 sps:$4 sm:$0xff]   ;;  %v11219_v52 = vrot.slane %v11150_v48, %v18396_v44  ;;  %v11227_v49 = vrot.slane %v11150_v48, %v19562_v26  ;;  %12467 = vmatpush1.bf16.msra.mxu1 %v17548_v58 }
0x15a7   : > { %v11189_v12 = vadd.f32 %v11188_v10, %v11180_v4  ;;  %v11194_v51 = vadd.f32 %v11193_v24, %v11184_v25  ;;  %v11231_v10 = vrot.slane %v11150_v48, %v19565_v45  ;;  %v11263_v25 = vrot.slane %v11151_v61, %v19562_v26  ;;  %v17551_v24 = vld [vmem:[%s17937_s29 + $0xc8] ss:$20 sps:$4 sm:$0xff]   ;;  %12468 = vmatprep.subr.bf16.mxu1 %v17553_v13  ;;  %v17565_v58 = vld [vmem:[%s17937_s29 + $0x16c] ss:$20 sps:$4 sm:$0xff]  }
0x15a8   : > { %v17472_v13 = vld [vmem:[%s17932_s15 + $0x124] ss:$8 sps:$4 sm:$0xff]  }
0x15a9   : > { %v11190_v56 = vadd.f32 %v11189_v12, %v11181_v37  ;;  %v11195_v32 = vadd.f32 %v11194_v51, %v11185_v22  ;;  %11809 = vmatpush1.bf16.msra.mxu0 %v17452_v11  ;;  %v17554_v11 = vld [vmem:[%s17937_s29 + $0xf0] ss:$20 sps:$4 sm:$0xff]  }
0x15aa   : > { %11810 = vmatprep.subr.bf16.mxu0 %v17457_v27  ;;  %12469 = vmatpush1.bf16.msra.mxu1 %v17551_v24  ;;  %v17473_v24 = vld [vmem:[%s17932_s15 + $0x130] ss:$8 sps:$4 sm:$0xff]  }
0x15ab   : > { %11191 = vadd.xlane.f32.xlu0 %v11190_v56  ;;  %v11196_v17 = vadd.f32 %v11195_v32, %v11186_v2  ;;  %v17556_v56 = vld [vmem:[%s17937_s29 + $0xf4] ss:$20 sps:$4 sm:$0xff]   ;;  %v11259_v2 = vrot.slane %v11151_v61, %v18715_v29  ;;  %v11255_v32 = vrot.slane %v11151_v61, %v18396_v44 }
0x15ac   : > { %12470 = vmatprep.subr.bf16.mxu1 %v17556_v56  ;;  %v17481_v56 = vld [vmem:[%s17932_s15 + $0x154] ss:$8 sps:$4 sm:$0xff]  }
0x15ad   : > { %11197 = vadd.xlane.f32.xlu1 %v11196_v17  ;;  %11811 = vmatpush1.bf16.msra.mxu0 %v17455_v16  ;;  %v11235_v17 = vrot.slane %v11150_v48, %v19578_v31  ;;  %v11267_v16 = vrot.slane %v11151_v61, %v19565_v45  ;;  %v17560_v48 = vld [vmem:[%s17937_s29 + $0x140] ss:$20 sps:$4 sm:$0xff]  }
0x15ae   : > { %11812 = vmatprep.subr.bf16.mxu0 %v17460_v23  ;;  %12471 = vmatpush1.bf16.msra.mxu1 %v17554_v11  ;;  %v17496_v11 = vld [vmem:[%s17932_s15 + $0x1a4] ss:$8 sps:$4 sm:$0xff]  }
0x15b1   : > { %11813 = vmatpush1.bf16.msra.mxu0 %v17458_v19  ;;  %v11271_v19 = vrot.slane %v11151_v61, %v19578_v31  ;;  %v17467_v61 = vld [vmem:[%s17932_s15 + $0x110] ss:$8 sps:$4 sm:$0xff]  }
0x15b2   : > { %11814 = vmatprep.subr.bf16.mxu0 %v17463_v63 }
0x15b5   : > { %11815 = vmatpush1.bf16.msra.mxu0 %v17461_v1 }
0x15b6   : > { %11827 = vmatprep.subr.bf16.mxu0 %v17466_v46 }
0x1638   : > { %v11192_v50 = vpop.xlane.xlu0 %11191 }
0x1639   : > { %v11199_v39 = vmul.f32 0.0015625, %v11192_v50 }
0x163a   : > { %v11198_v41 = vpop.xlane.xlu1 %11197 }
0x163b   : > { %v11201_v40 = vadd.f32 1e-05, %v11199_v39  ;;  %v11200_v47 = vmul.f32 0.0015625, %v11198_v41  ;;  %v17562_v41 = vld [vmem:[%s17937_s29 + $0x144] ss:$20 sps:$4 sm:$0xff]  }
0x163d   : > { %17680 = vrsqrt.f32 %v11201_v40  ;;  %v11202_v3 = vadd.f32 1e-05, %v11200_v47 }
0x163f   : > { %17682 = vrsqrt.f32 %v11202_v3  ;;  %v17469_v3 = vld [vmem:[%s17932_s15 + $0x114] ss:$8 sps:$4 sm:$0xff]  }
0x1647   : > { %v17681_v4 = vpop.eup %17680 }
0x1648   : > { %v11206_v37 = vmul.f32 %v17681_v4, %v19626_v60  ;;  %v11205_v12 = vmul.f32 %v17681_v4, %v19623_v8  ;;  %v11208_v22 = vmul.f32 %v17681_v4, %v19632_v33  ;;  %v11207_v51 = vmul.f32 %v17681_v4, %v19629_v59 }
0x1649   : > { %v17683_v15 = vpop.eup %17682  ;;  %v11209_v8 = vmul.f32 %v17681_v4, %v19647_v53  ;;  %v17559_v53 = vld [vmem:[%s17937_s29 + $0x11c] ss:$20 sps:$4 sm:$0xff]  }
0x164a   : > { %v11242_v20 = vmul.f32 %v11223_v62, %v11206_v37  ;;  %v11241_v6 = vmul.f32 %v11219_v52, %v11205_v12  ;;  %v11243_v60 = vmul.f32 %v11227_v49, %v11207_v51  ;;  %v11211_v33 = vmul.f32 %v17683_v15, %v19642_v54  ;;  %12472 = vmatprep.subr.bf16.mxu1 %v17559_v53  ;;  %v17475_v4 = vld [vmem:[%s17932_s15 + $0x134] ss:$8 sps:$4 sm:$0xff]   ;;  %v17478_v37 = vld [vmem:[%s17932_s15 + $0x144] ss:$8 sps:$4 sm:$0xff]   ;;  %v17476_v51 = vld [vmem:[%s17932_s15 + $0x140] ss:$8 sps:$4 sm:$0xff]  }
0x164b   : > { %v11210_v59 = vmul.f32 %v17683_v15, %v19639_v28  ;;  %v11213_v35 = vmul.f32 %v17683_v15, %v19654_v0  ;;  %v11212_v43 = vmul.f32 %v17683_v15, %v19645_v5  ;;  %v11244_v27 = vmul.f32 %v11231_v10, %v11208_v22  ;;  %12473 = vmatpush1.bf16.msra.mxu1 %v17557_v9  ;;  %v17569_v12 = vld [vmem:[%s17937_s29 + $0x1b8] ss:$20 sps:$4 sm:$0xff]  }
0x164c   : > { %v19726_v23 = vadd.f32 %v11263_v25, %v11243_v60  ;;  %v11247_v63 = vmul.f32 %v11223_v62, %v11211_v33  ;;  %v19730_v0 = vadd.f32 %v11259_v2, %v11242_v20  ;;  %v19732_v5 = vadd.f32 %v11255_v32, %v11241_v6  ;;  %12474 = vmatprep.subr.bf16.mxu1 %v17562_v41  ;;  %v17563_v62 = vld [vmem:[%s17937_s29 + $0x168] ss:$20 sps:$4 sm:$0xff]   ;;  %v17574_v22 = vld [vmem:[%s17937_s29 + $0x1e4] ss:$20 sps:$4 sm:$0xff]  }
0x164d   : > { %v11246_v54 = vmul.f32 %v11219_v52, %v11210_v59  ;;  %v11249_v28 = vmul.f32 %v11231_v10, %v11213_v35  ;;  %v11248_v1 = vmul.f32 %v11227_v49, %v11212_v43  ;;  %v11214_v46 = vmul.f32 %v17683_v15, %v19661_v21  ;;  %v17568_v52 = vld [vmem:[%s17937_s29 + $0x194] ss:$20 sps:$4 sm:$0xff]   ;;  %v17566_v10 = vld [vmem:[%s17937_s29 + $0x190] ss:$20 sps:$4 sm:$0xff]  }
0x164e   : > { %v11245_v14 = vmul.f32 %v11235_v17, %v11209_v8  ;;  %v19735_v57 = vadd.f32 %v11259_v2, %v11247_v63  ;;  %v19752_v18 = vadd.f32 %v11267_v16, %v11244_v27  ;;  %v17470_v49 = vld [vmem:[%s17932_s15 + $0x120] ss:$8 sps:$4 sm:$0xff]   ;;  %v17484_v15 = vld [vmem:[%s17932_s15 + $0x164] ss:$8 sps:$4 sm:$0xff]   ;;  %v17487_v60 = vld [vmem:[%s17932_s15 + $0x174] ss:$8 sps:$4 sm:$0xff]  }
0x164f   : > { %v19737_v7 = vadd.f32 %v11255_v32, %v11246_v54  ;;  %v19739_v36 = vadd.f32 %v11267_v16, %v11249_v28  ;;  %v19741_v50 = vadd.f32 %v11263_v25, %v11248_v1  ;;  %v11250_v39 = vmul.f32 %v11235_v17, %v11214_v46  ;;  %12475 = vmatpush1.bf16.msra.mxu1 %v17560_v48  ;;  %v17571_v25 = vld [vmem:[%s17937_s29 + $0x1bc] ss:$20 sps:$4 sm:$0xff]   ;;  %v17572_v2 = vld [vmem:[%s17937_s29 + $0x1e0] ss:$20 sps:$4 sm:$0xff]   ;;  %v17490_v33 = vld [vmem:[%s17932_s15 + $0x184] ss:$8 sps:$4 sm:$0xff]  }
0x1650   : > { %v19744_v40 = vadd.f32 %v11271_v19, %v11245_v14  ;;  %v11288_v21 = vpack.c.bf16 %v19735_v57, %v19730_v0  ;;  %12476 = vmatprep.subr.bf16.mxu1 %v17565_v58  ;;  %v17577_v32 = vld [vmem:[%s17937_s29 + $0x20c] ss:$20 sps:$4 sm:$0xff]   ;;  %v17479_v17 = vld [vmem:[%s17932_s15 + $0x150] ss:$8 sps:$4 sm:$0xff]   ;;  %v17575_v20 = vld [vmem:[%s17937_s29 + $0x208] ss:$20 sps:$4 sm:$0xff]  }
0x1651   : > { %v11287_v47 = vpack.c.bf16 %v19737_v7, %v19732_v5  ;;  %v19755_v30 = vadd.f32 %v11271_v19, %v11250_v39  ;;  %v11290_v55 = vpack.c.bf16 %v19739_v36, %v19752_v18  ;;  %v17482_v6 = vld [vmem:[%s17932_s15 + $0x160] ss:$8 sps:$4 sm:$0xff]   ;;  %v17485_v8 = vld [vmem:[%s17932_s15 + $0x170] ss:$8 sps:$4 sm:$0xff]   ;;  %v17493_v35 = vld [vmem:[%s17932_s15 + $0x194] ss:$8 sps:$4 sm:$0xff]  }
0x1652   : > { %11816 = vmatprep.mubr.bf16.mxu0 %v11288_v21  ;;  %v17488_v59 = vld [vmem:[%s17932_s15 + $0x180] ss:$8 sps:$4 sm:$0xff]   ;;  %v17491_v43 = vld [vmem:[%s17932_s15 + $0x190] ss:$8 sps:$4 sm:$0xff]   ;;  %v17499_v16 = vld [vmem:[%s17932_s15 + $0x1b4] ss:$8 sps:$4 sm:$0xff]   ;;  %v11289_v21 = vpack.c.bf16 %v19741_v50, %v19726_v23 }
0x1653   : > { %11817 = vmatmul.mubr.bf16.vlgmr.msra.gmra.mrb[68].mxu0 %v11287_v47  ;;  %12477 = vmatpush1.bf16.msra.mxu1 %v17563_v62  ;;  %v17494_v27 = vld [vmem:[%s17932_s15 + $0x1a0] ss:$8 sps:$4 sm:$0xff]   ;;  %v17497_v19 = vld [vmem:[%s17932_s15 + $0x1b0] ss:$8 sps:$4 sm:$0xff]   ;;  %v17502_v53 = vld [vmem:[%s17932_s15 + $0x1c4] ss:$8 sps:$4 sm:$0xff]  }
0x1654   : > { %11828 = vmatpush1.bf16.msra.mxu0 %v17464_v42  ;;  %11859 = vmatprep.mubr.bf16.mxu0 %v11290_v55  ;;  %v17500_v63 = vld [vmem:[%s17932_s15 + $0x1c0] ss:$8 sps:$4 sm:$0xff]   ;;  %v17505_v54 = vld [vmem:[%s17932_s15 + $0x1d4] ss:$8 sps:$4 sm:$0xff]   ;;  %v17503_v28 = vld [vmem:[%s17932_s15 + $0x1d0] ss:$8 sps:$4 sm:$0xff]  }
0x1655   : > { %11829 = vmatprep.subr.bf16.mxu0 %v17469_v3  ;;  %12478 = vmatprep.subr.bf16.mxu1 %v17568_v52  ;;  %v17508_v1 = vld [vmem:[%s17932_s15 + $0x1e4] ss:$8 sps:$4 sm:$0xff]   ;;  %v17506_v46 = vld [vmem:[%s17932_s15 + $0x1e0] ss:$8 sps:$4 sm:$0xff]   ;;  %v17511_v14 = vld [vmem:[%s17932_s15 + $0x1f4] ss:$8 sps:$4 sm:$0xff]  }
0x1656   : > { %v17509_v9 = vld [vmem:[%s17932_s15 + $0x1f0] ss:$8 sps:$4 sm:$0xff]   ;;  %v17514_v39 = vld [vmem:[%s17932_s15 + $0x204] ss:$8 sps:$4 sm:$0xff]   ;;  %v17512_v41 = vld [vmem:[%s17932_s15 + $0x200] ss:$8 sps:$4 sm:$0xff]  }
0x1657   : > { %12479 = vmatpush1.bf16.msra.mxu1 %v17566_v10  ;;  %v17517_v42 = vld [vmem:[%s17932_s15 + $0x214] ss:$8 sps:$4 sm:$0xff]   ;;  %v17515_v47 = vld [vmem:[%s17932_s15 + $0x210] ss:$8 sps:$4 sm:$0xff]   ;;  %v17520_v3 = vld [vmem:[%s17932_s15 + $0x224] ss:$8 sps:$4 sm:$0xff]  }
0x1658   : > { %11830 = vmatpush1.bf16.msra.mxu0 %v17467_v61  ;;  %12480 = vmatprep.subr.bf16.mxu1 %v17571_v25  ;;  %v17518_v55 = vld [vmem:[%s17932_s15 + $0x220] ss:$8 sps:$4 sm:$0xff]   ;;  %v17523_v48 = vld [vmem:[%s17932_s15 + $0x234] ss:$8 sps:$4 sm:$0xff]   ;;  %v17521_v58 = vld [vmem:[%s17932_s15 + $0x230] ss:$8 sps:$4 sm:$0xff]   ;;  %v11291_v25 = vpack.c.bf16 %v19755_v30, %v19744_v40 }
0x1659   : > { %11831 = vmatprep.subr.bf16.mxu0 %v17472_v13  ;;  %v17526_v61 = vld [vmem:[%s17932_s15 + $0x244] ss:$8 sps:$4 sm:$0xff]   ;;  %v17524_v13 = vld [vmem:[%s17932_s15 + $0x240] ss:$8 sps:$4 sm:$0xff]   ;;  %v17527_v62 = vld [vmem:[%s17932_s15 + $0x250] ss:$8 sps:$4 sm:$0xff]  }
0x165a   : > { %v17532_v52 = vld [vmem:[%s17932_s15 + $0x264] ss:$8 sps:$4 sm:$0xff]   ;;  %v17533_v10 = vld [vmem:[%s17932_s15 + $0x270] ss:$8 sps:$4 sm:$0xff]  }
0x165b   : > { %12481 = vmatpush1.bf16.msra.mxu1 %v17569_v12  ;;  %v17583_v12 = vld [vmem:[%s17937_s29 + $0x25c] ss:$20 sps:$4 sm:$0xff]  }
0x165c   : > { %11832 = vmatpush1.bf16.msra.mxu0 %v17470_v49  ;;  %12482 = vmatprep.subr.bf16.mxu1 %v17574_v22  ;;  %v17530_v49 = vld [vmem:[%s17932_s15 + $0x260] ss:$8 sps:$4 sm:$0xff]   ;;  %v17581_v22 = vld [vmem:[%s17937_s29 + $0x258] ss:$20 sps:$4 sm:$0xff]  }
0x165d   : > { %11833 = vmatprep.subr.bf16.mxu0 %v17475_v4  ;;  %v17535_v4 = vld [vmem:[%s17932_s15 + $0x274] ss:$8 sps:$4 sm:$0xff]  }
0x165f   : > { %12483 = vmatpush1.bf16.msra.mxu1 %v17572_v2 }
0x1660   : > { %11834 = vmatpush1.bf16.msra.mxu0 %v17473_v24  ;;  %12484 = vmatprep.subr.bf16.mxu1 %v17577_v32  ;;  %v17580_v24 = vld [vmem:[%s17937_s29 + $0x234] ss:$20 sps:$4 sm:$0xff]  }
0x1661   : > { %11835 = vmatprep.subr.bf16.mxu0 %v17478_v37  ;;  %v17578_v37 = vld [vmem:[%s17937_s29 + $0x230] ss:$20 sps:$4 sm:$0xff]  }
0x1663   : > { %12485 = vmatpush1.bf16.msra.mxu1 %v17575_v20 }
0x1664   : > { %11836 = vmatpush1.bf16.msra.mxu0 %v17476_v51  ;;  %12486 = vmatprep.subr.bf16.mxu1 %v17580_v24  ;;  %v17586_v51 = vld [vmem:[%s17937_s29 + $0xc] ss:$20 sps:$4 sm:$0xff]   ;;  %v17623_v24 = vld [vmem:[%s17937_s29 + $0x210] ss:$20 sps:$4 sm:$0xff]  }
0x1665   : > { %11837 = vmatprep.subr.bf16.mxu0 %v17481_v56  ;;  %v11372_v56 = vld [vmem:[%s20032_s5] sm:$0x3] }
0x1666   : > { %v11377_v2 = vrot.slane %v11372_v56, %v18396_v44  ;;  %v11381_v32 = vrot.slane %v11372_v56, %v18715_v29  ;;  %v17632_v56 = vld [vmem:[%s17937_s29 + $0x150] ss:$20 sps:$4 sm:$0xff]  }
0x1667   : > { %12487 = vmatpush1.bf16.msra.mxu1 %v17578_v37  ;;  %v17628_v37 = vld [vmem:[%s17937_s29 + $0x23c] ss:$20 sps:$4 sm:$0xff]  }
0x1668   : > { %11838 = vmatpush1.bf16.msra.mxu0 %v17479_v17  ;;  %12488 = vmatprep.subr.bf16.mxu1 %v17583_v12  ;;  %v17626_v12 = vld [vmem:[%s17937_s29 + $0x238] ss:$20 sps:$4 sm:$0xff]  }
0x1669   : > { %11839 = vmatprep.subr.bf16.mxu0 %v17484_v15 }
0x166b   : > { %12489 = vmatpush1.bf16.msra.mxu1 %v17581_v22  ;;  %v17631_v22 = vld [vmem:[%s17937_s29 + $0x264] ss:$20 sps:$4 sm:$0xff]  }
0x166c   : > { %11840 = vmatpush1.bf16.msra.mxu0 %v17482_v6  ;;  %12501 = vmatprep.subr.bf16.mxu1 %v17586_v51  ;;  %v17629_v51 = vld [vmem:[%s17937_s29 + $0x260] ss:$20 sps:$4 sm:$0xff]  }
0x166d   : > { %11841 = vmatprep.subr.bf16.mxu0 %v17487_v60 }
0x1670   : > { %11842 = vmatpush1.bf16.msra.mxu0 %v17485_v8 }
0x1671   : > { %11843 = vmatprep.subr.bf16.mxu0 %v17490_v33 }
0x1674   : > { %11844 = vmatpush1.bf16.msra.mxu0 %v17488_v59 }
0x1675   : > { %11845 = vmatprep.subr.bf16.mxu0 %v17493_v35 }
0x1678   : > { %11846 = vmatpush1.bf16.msra.mxu0 %v17491_v43 }
0x1679   : > { %11847 = vmatprep.subr.bf16.mxu0 %v17496_v11 }
0x167c   : > { %11848 = vmatpush1.bf16.msra.mxu0 %v17494_v27 }
0x167d   : > { %11849 = vmatprep.subr.bf16.mxu0 %v17499_v16 }
0x1680   : > { %11850 = vmatpush1.bf16.msra.mxu0 %v17497_v19 }
0x1681   : > { %11851 = vmatprep.subr.bf16.mxu0 %v17502_v53  ;;  %v17584_v53 = vld [vmem:[%s17937_s29 + $0x8] ss:$20 sps:$4 sm:$0xff]  }
0x1684   : > { %11852 = vmatpush1.bf16.msra.mxu0 %v17500_v63  ;;  %v17589_v63 = vld [vmem:[%s17937_s29 + $0x34] ss:$20 sps:$4 sm:$0xff]  }
0x1685   : > { %11853 = vmatprep.subr.bf16.mxu0 %v17505_v54  ;;  %v17587_v54 = vld [vmem:[%s17937_s29 + $0x30] ss:$20 sps:$4 sm:$0xff]  }
0x1688   : > { %11854 = vmatpush1.bf16.msra.mxu0 %v17503_v28  ;;  %v17592_v28 = vld [vmem:[%s17937_s29 + $0x5c] ss:$20 sps:$4 sm:$0xff]  }
0x1689   : > { %11855 = vmatprep.subr.bf16.mxu0 %v17508_v1  ;;  %v17590_v1 = vld [vmem:[%s17937_s29 + $0x58] ss:$20 sps:$4 sm:$0xff]  }
0x168c   : > { %11856 = vmatpush1.bf16.msra.mxu0 %v17506_v46  ;;  %v17595_v46 = vld [vmem:[%s17937_s29 + $0x84] ss:$20 sps:$4 sm:$0xff]  }
0x168d   : > { %11857 = vmatprep.subr.bf16.mxu0 %v17511_v14  ;;  %v17593_v14 = vld [vmem:[%s17937_s29 + $0x80] ss:$20 sps:$4 sm:$0xff]  }
0x1690   : > { %11858 = vmatpush1.bf16.msra.mxu0 %v17509_v9  ;;  %v17598_v9 = vld [vmem:[%s17937_s29 + $0xac] ss:$20 sps:$4 sm:$0xff]  }
0x1691   : > { %11870 = vmatprep.subr.bf16.mxu0 %v17514_v39  ;;  %v17596_v39 = vld [vmem:[%s17937_s29 + $0xa8] ss:$20 sps:$4 sm:$0xff]  }
0x1693   : > { %11860 = vmatmul.mubr.bf16.vlgmr.msra.gmra.mrb[68].mxu0 %v11289_v21  ;;  %v17599_v21 = vld [vmem:[%s17937_s29 + $0xd0] ss:$20 sps:$4 sm:$0xff]  }
0x1694   : > { %11871 = vmatpush1.bf16.msra.mxu0 %v17512_v41  ;;  %11902 = vmatprep.mubr.bf16.mxu0 %v17759_v34  ;;  %v17529_v34 = vld [vmem:[%s17932_s15 + $0x254] ss:$8 sps:$4 sm:$0xff]  }
0x1695   : > { %11872 = vmatprep.subr.bf16.mxu0 %v17517_v42  ;;  %v17601_v41 = vld [vmem:[%s17937_s29 + $0xd4] ss:$20 sps:$4 sm:$0xff]   ;;  %v17604_v42 = vld [vmem:[%s17937_s29 + $0xfc] ss:$20 sps:$4 sm:$0xff]  }
0x1698   : > { %11873 = vmatpush1.bf16.msra.mxu0 %v17515_v47  ;;  %v17602_v47 = vld [vmem:[%s17937_s29 + $0xf8] ss:$20 sps:$4 sm:$0xff]  }
0x1699   : > { %11874 = vmatprep.subr.bf16.mxu0 %v17520_v3  ;;  %v17607_v3 = vld [vmem:[%s17937_s29 + $0x124] ss:$20 sps:$4 sm:$0xff]  }
0x169c   : > { %11875 = vmatpush1.bf16.msra.mxu0 %v17518_v55  ;;  %v17605_v55 = vld [vmem:[%s17937_s29 + $0x120] ss:$20 sps:$4 sm:$0xff]  }
0x169d   : > { %11876 = vmatprep.subr.bf16.mxu0 %v17523_v48  ;;  %v17610_v48 = vld [vmem:[%s17937_s29 + $0x14c] ss:$20 sps:$4 sm:$0xff]  }
0x16a0   : > { %11877 = vmatpush1.bf16.msra.mxu0 %v17521_v58  ;;  %v17608_v58 = vld [vmem:[%s17937_s29 + $0x148] ss:$20 sps:$4 sm:$0xff]  }
0x16a1   : > { %11878 = vmatprep.subr.bf16.mxu0 %v17526_v61  ;;  %v17613_v61 = vld [vmem:[%s17937_s29 + $0x174] ss:$20 sps:$4 sm:$0xff]  }
0x16a4   : > { %11879 = vmatpush1.bf16.msra.mxu0 %v17524_v13  ;;  %v17611_v13 = vld [vmem:[%s17937_s29 + $0x170] ss:$20 sps:$4 sm:$0xff]  }
0x16a5   : > { %11880 = vmatprep.subr.bf16.mxu0 %v17529_v34  ;;  %v17616_v34 = vld [vmem:[%s17937_s29 + $0x19c] ss:$20 sps:$4 sm:$0xff]  }
0x16a8   : > { %11881 = vmatpush1.bf16.msra.mxu0 %v17527_v62  ;;  %v17614_v62 = vld [vmem:[%s17937_s29 + $0x198] ss:$20 sps:$4 sm:$0xff]  }
0x16a9   : > { %11882 = vmatprep.subr.bf16.mxu0 %v17532_v52  ;;  %v17619_v52 = vld [vmem:[%s17937_s29 + $0x1c4] ss:$20 sps:$4 sm:$0xff]  }
0x16ac   : > { %11883 = vmatpush1.bf16.msra.mxu0 %v17530_v49  ;;  %v17617_v49 = vld [vmem:[%s17937_s29 + $0x1c0] ss:$20 sps:$4 sm:$0xff]  }
0x16ad   : > { %11884 = vmatprep.subr.bf16.mxu0 %v17535_v4  ;;  %v17622_v4 = vld [vmem:[%s17937_s29 + $0x1ec] ss:$20 sps:$4 sm:$0xff]  }
0x16b0   : > { %11885 = vmatpush1.bf16.msra.mxu0 %v17533_v10  ;;  %v17620_v10 = vld [vmem:[%s17937_s29 + $0x1e8] ss:$20 sps:$4 sm:$0xff]  }
0x16b3   : > { %11903 = vmatmul.mubr.bf16.vlgmr.msra.gmra.mrb[68].mxu0 %v11291_v25  ;;  %v17625_v25 = vld [vmem:[%s17937_s29 + $0x214] ss:$20 sps:$4 sm:$0xff]  }
0x1786   : > { %v11904_v17 = vpop.f32.mrb[68].mxu0 }
0x1787   : > { %v15527_v15 = vadd.f32 %v11904_v17, %v11377_v2  ;;  %v11906_v20 = vpop.f32.mrb[69].mxu0  ;;  %v17635_v17 = vld [vmem:[%s17937_s29 + $0x38] ss:$20 sps:$4 sm:$0xff]  }
0x1788   : > { %v15528_v6 = vadd.f32 %v11906_v20, %v11381_v32  ;;  %v11908_v60 = vpop.f32.mrb[70].mxu0  ;;  %v17637_v20 = vld [vmem:[%s17937_s29 + $0x60] ss:$20 sps:$4 sm:$0xff]  }
0x1789   : > { %v15529_v8 = vadd.f32 %v11908_v60, %v11377_v2  ;;  %v11910_v33 = vpop.f32.mrb[71].mxu0  ;;  %v11913_v35 = vmax.f32 %v15527_v15, 0.0  ;;  %v17633_v2 = vld [vmem:[%s17937_s29 + $0x10] ss:$20 sps:$4 sm:$0xff]   ;;  %v17636_v15 = vld [vmem:[%s17937_s29 + $0x1a0] ss:$20 sps:$4 sm:$0xff]  }
0x178a   : > { %v15530_v59 = vadd.f32 %v11910_v33, %v11381_v32  ;;  %v11914_v11 = vmax.f32 %v15528_v6, 0.0  ;;  %v17634_v32 = vld [vmem:[%s17937_s29 + $0x178] ss:$20 sps:$4 sm:$0xff]   ;;  %v17638_v6 = vld [vmem:[%s17937_s29 + $0x1c8] ss:$20 sps:$4 sm:$0xff]  }
0x178b   : > { %v11915_v43 = vmax.f32 %v15529_v8, 0.0  ;;  %v17639_v60 = vld [vmem:[%s17937_s29 + $0x88] ss:$20 sps:$4 sm:$0xff]   ;;  %v17640_v8 = vld [vmem:[%s17937_s29 + $0x1f0] ss:$20 sps:$4 sm:$0xff]  }
0x178c   : > { %v11916_v27 = vmax.f32 %v15530_v59, 0.0  ;;  %v17641_v33 = vld [vmem:[%s17937_s29 + $0xb0] ss:$20 sps:$4 sm:$0xff]   ;;  %v17642_v59 = vld [vmem:[%s17937_s29 + $0x218] ss:$20 sps:$4 sm:$0xff]  }
0x178d   : > { %v19828_v16 = vpack.c.bf16 %v11915_v43, %v11913_v35  ;;  %v17643_v35 = vld [vmem:[%s17937_s29 + $0xd8] ss:$20 sps:$4 sm:$0xff]   ;;  %v17644_v43 = vld [vmem:[%s17937_s29 + $0x240] ss:$20 sps:$4 sm:$0xff]  }
0x178e   : > { %v19830_v19 = vpack.c.bf16 %v11916_v27, %v11914_v11  ;;  %v17645_v11 = vld [vmem:[%s17937_s29 + $0x100] ss:$20 sps:$4 sm:$0xff]   ;;  %v17646_v27 = vld [vmem:[%s17937_s29 + $0x268] ss:$20 sps:$4 sm:$0xff]  }
0x1790   : > { %12490 = vmatprep.mubr.bf16.mxu1 %v19830_v19 }
0x1791   : > { %12491 = vmatmul.mubr.bf16.vlgmr.msra.gmra.mrb[68].mxu1 %v19828_v16 }
0x1792   : > { %12502 = vmatpush1.bf16.msra.mxu1 %v17584_v53  ;;  %12533 = vmatprep.mubr.bf16.mxu1 %v19830_v19 }
0x1793   : > { %12503 = vmatprep.subr.bf16.mxu1 %v17589_v63 }
0x1796   : > { %12504 = vmatpush1.bf16.msra.mxu1 %v17587_v54 }
0x1797   : > { %12505 = vmatprep.subr.bf16.mxu1 %v17592_v28 }
0x179a   : > { %12506 = vmatpush1.bf16.msra.mxu1 %v17590_v1 }
0x179b   : > { %12507 = vmatprep.subr.bf16.mxu1 %v17595_v46 }
0x179e   : > { %12508 = vmatpush1.bf16.msra.mxu1 %v17593_v14 }
0x179f   : > { %12509 = vmatprep.subr.bf16.mxu1 %v17598_v9 }
0x17a2   : > { %12510 = vmatpush1.bf16.msra.mxu1 %v17596_v39  ;;  %v12015_v39 = vld [vmem:[%s838_s30] sm:$0x1f] }
0x17a3   : > { %12511 = vmatprep.subr.bf16.mxu1 %v17601_v41  ;;  %v12020_v41 = vrot.slane %v12015_v39, %v18396_v44 }
0x17a6   : > { %12512 = vmatpush1.bf16.msra.mxu1 %v17599_v21  ;;  %v12024_v21 = vrot.slane %v12015_v39, %v18715_v29 }
0x17a7   : > { %12513 = vmatprep.subr.bf16.mxu1 %v17604_v42  ;;  %v12028_v42 = vrot.slane %v12015_v39, %v19562_v26 }
0x17aa   : > { %12514 = vmatpush1.bf16.msra.mxu1 %v17602_v47 }
0x17ab   : > { %12515 = vmatprep.subr.bf16.mxu1 %v17607_v3 }
0x17ae   : > { %12516 = vmatpush1.bf16.msra.mxu1 %v17605_v55 }
0x17af   : > { %12517 = vmatprep.subr.bf16.mxu1 %v17610_v48 }
0x17b2   : > { %12518 = vmatpush1.bf16.msra.mxu1 %v17608_v58  ;;  %v12032_v58 = vrot.slane %v12015_v39, %v19565_v45 }
0x17b3   : > { %12519 = vmatprep.subr.bf16.mxu1 %v17613_v61 }
0x17b6   : > { %12520 = vmatpush1.bf16.msra.mxu1 %v17611_v13 }
0x17b7   : > { %12521 = vmatprep.subr.bf16.mxu1 %v17616_v34 }
0x17ba   : > { %12522 = vmatpush1.bf16.msra.mxu1 %v17614_v62 }
0x17bb   : > { %12523 = vmatprep.subr.bf16.mxu1 %v17619_v52 }
0x17be   : > { %12524 = vmatpush1.bf16.msra.mxu1 %v17617_v49 }
0x17bf   : > { %12525 = vmatprep.subr.bf16.mxu1 %v17622_v4 }
0x17c2   : > { %12526 = vmatpush1.bf16.msra.mxu1 %v17620_v10 }
0x17c3   : > { %12527 = vmatprep.subr.bf16.mxu1 %v17625_v25 }
0x17c6   : > { %12528 = vmatpush1.bf16.msra.mxu1 %v17623_v24 }
0x17c7   : > { %12529 = vmatprep.subr.bf16.mxu1 %v17628_v37 }
0x17ca   : > { %12530 = vmatpush1.bf16.msra.mxu1 %v17626_v12  ;;  %v12036_v12 = vrot.slane %v12015_v39, %v19578_v31 }
0x17cb   : > { %12531 = vmatprep.subr.bf16.mxu1 %v17631_v22 }
0x17ce   : > { %12532 = vmatpush1.bf16.msra.mxu1 %v17629_v51 }
0x17cf   : > { %15457 = vmatprep.subr.bf16.mxu1 %v17632_v56 }
0x17d1   : > { %12534 = vmatmul.mubr.bf16.vlgmr.msra.gmra.mrb[72].mxu1 %v19828_v16 }
0x17d2   : > { %15458 = vmatpush3.bf16.msra.mxu1 %v17633_v2  ;;  %12576 = vmatprep.mubr.bf16.mxu1 %v19830_v19  ;;  %v17647_v19 = vld [vmem:[%s17937_s29 + $0x128] ss:$20 sps:$4 sm:$0xff]  }
0x17d3   : > { %15459 = vmatprep.subr.bf16.mxu1 %v17634_v32 }
0x17d6   : > { %15460 = vmatpush3.bf16.msra.mxu1 %v17635_v17 }
0x17d7   : > { %15461 = vmatprep.subr.bf16.mxu1 %v17636_v15 }
0x17da   : > { %15462 = vmatpush3.bf16.msra.mxu1 %v17637_v20 }
0x17db   : > { %15463 = vmatprep.subr.bf16.mxu1 %v17638_v6 }
0x17de   : > { %15464 = vmatpush3.bf16.msra.mxu1 %v17639_v60 }
0x17df   : > { %15465 = vmatprep.subr.bf16.mxu1 %v17640_v8 }
0x17e2   : > { %15466 = vmatpush3.bf16.msra.mxu1 %v17641_v33 }
0x17e3   : > { %15467 = vmatprep.subr.bf16.mxu1 %v17642_v59 }
0x17e6   : > { %15468 = vmatpush3.bf16.msra.mxu1 %v17643_v35 }
0x17e7   : > { %15469 = vmatprep.subr.bf16.mxu1 %v17644_v43 }
0x17ea   : > { %15470 = vmatpush3.bf16.msra.mxu1 %v17645_v11 }
0x17eb   : > { %15471 = vmatprep.subr.bf16.mxu1 %v17646_v27 }
0x17ee   : > { %15472 = vmatpush3.bf16.msra.mxu1 %v17647_v19 }
0x17f1   : > { %12577 = vmatmul.mubr.bf16.vlgmr.msra.gmra.mrb[76].mxu1 %v19828_v16 }
0x1864   : > { %v12492_v53 = vpop.f32.mrb[68].mxu1 }
0x1865   : > { %v12494_v63 = vpop.f32.mrb[69].mxu1  ;;  %v12493_v16 = vadd.f32 %v12492_v53, %v12020_v41 }
0x1866   : > { %v12496_v54 = vpop.f32.mrb[70].mxu1  ;;  %v12495_v47 = vadd.f32 %v12494_v63, %v12024_v21 }
0x1867   : > { %v12498_v28 = vpop.f32.mrb[71].mxu1  ;;  %v12497_v3 = vadd.f32 %v12496_v54, %v12020_v41  ;;  %v12585_v61 = vadd.f32 %v12493_v16, %v19732_v5 }
0x1868   : > { %v12499_v55 = vadd.f32 %v12498_v28, %v12024_v21  ;;  %v12586_v13 = vadd.f32 %v12495_v47, %v19730_v0 }
0x1869   : > { %v12590_v62 = vadd.f32 %v12497_v3, %v19737_v7 }
0x186a   : > { %v12591_v52 = vadd.f32 %v12499_v55, %v19735_v57  ;;  %v12597_v10 = vadd.f32 %v12586_v13, %v12585_v61 }
0x186c   : > { %v12603_v51 = vadd.f32 %v12591_v52, %v12590_v62 }
0x18a4   : > { %v12535_v1 = vpop.f32.mrb[72].mxu1 }
0x18a5   : > { %v12537_v46 = vpop.f32.mrb[73].mxu1  ;;  %v12536_v48 = vadd.f32 %v12535_v1, %v12028_v42 }
0x18a6   : > { %v12539_v14 = vpop.f32.mrb[74].mxu1  ;;  %v12538_v4 = vadd.f32 %v12537_v46, %v12032_v58 }
0x18a7   : > { %v12541_v9 = vpop.f32.mrb[75].mxu1  ;;  %v12540_v34 = vadd.f32 %v12539_v14, %v12028_v42  ;;  %v12587_v49 = vadd.f32 %v12536_v48, %v19726_v23 }
0x18a8   : > { %v12542_v24 = vadd.f32 %v12541_v9, %v12032_v58  ;;  %v12588_v0 = vadd.f32 %v12538_v4, %v19752_v18 }
0x18a9   : > { %v12592_v25 = vadd.f32 %v12540_v34, %v19741_v50  ;;  %v12598_v5 = vadd.f32 %v12597_v10, %v12587_v49 }
0x18aa   : > { %v12593_v57 = vadd.f32 %v12542_v24, %v19739_v36 }
0x18ab   : > { %v12604_v32 = vadd.f32 %v12603_v51, %v12592_v25  ;;  %v12599_v20 = vadd.f32 %v12598_v5, %v12588_v0 }
0x18ad   : > { %v12605_v8 = vadd.f32 %v12604_v32, %v12593_v57 }
0x18c4   : > { %v15473_v37 = vpop.f32.mrb[76].mxu1 }
0x18c5   : > { %v15474_v22 = vpop.f32.mrb[77].mxu1 }
0x18c6   : > { %v15475_v56 = vadd.f32 %v15474_v22, %v15473_v37  ;;  %v15476_v2 = vpop.f32.mrb[78].mxu1  ;;  %v12595_v37 = vld [vmem:[%s842_s19] sm:$0x1f] }
0x18c7   : > { %v15477_v7 = vpop.f32.mrb[79].mxu1  ;;  %v12663_v22 = vrot.slane %v12595_v37, %v18396_v44  ;;  %v12667_v51 = vrot.slane %v12595_v37, %v18715_v29  ;;  %v12671_v5 = vrot.slane %v12595_v37, %v19562_v26 }
0x18c8   : > { %v12579_v23 = vadd.f32 %v15475_v56, %v12036_v12  ;;  %v15478_v17 = vadd.f32 %v15477_v7, %v15476_v2  ;;  %v12675_v56 = vrot.slane %v12595_v37, %v19565_v45 }
0x18ca   : > { %v12582_v15 = vadd.f32 %v15478_v17, %v12036_v12  ;;  %v12589_v50 = vadd.f32 %v12579_v23, %v19744_v40  ;;  %v12596_v12 = vld [vmem:[%s846_s7] sm:$0x1f]  ;;  %v12679_v23 = vrot.slane %v12595_v37, %v19578_v31  ;;  %s20035_s7 = sld [smem:[#allocation6_spill]] }
0x18cb   : > { %v12703_v7 = vrot.slane %v12596_v12, %v18715_v29  ;;  %v12707_v32 = vrot.slane %v12596_v12, %v19562_v26 }
0x18cc   : > { %v12600_v6 = vadd.f32 %v12599_v20, %v12589_v50  ;;  %v12594_v60 = vadd.f32 %v12582_v15, %v19755_v30 }
0x18ce   : > { %12601 = vadd.xlane.f32.xlu0 %v12600_v6  ;;  %v12606_v33 = vadd.f32 %v12605_v8, %v12594_v60  ;;  %v12715_v6 = vrot.slane %v12596_v12, %v19578_v31 }
0x18d0   : > { %12607 = vadd.xlane.f32.xlu1 %v12606_v33  ;;  %p15452_p6 = scmp.ne.s32.totalorder %s20035_s7, 1 }
0x18d1   : > { %vm12889_vm3 = vcmask (!%p15452_p6), 1041409   ;;  %vm12891_vm4 = vcmask (!%p15452_p6), 1043459   ;;  %vm12893_vm5 = vcmask (!%p15452_p6), 1045509   ;;  %vm12895_vm6 = vcmask (!%p15452_p6), 1047559  }
0x195b   : > { %v12602_v18 = vpop.xlane.xlu0 %12601 }
0x195c   : > { %v12609_v59 = vmul.f32 0.0015625, %v12602_v18 }
0x195d   : > { %v12608_v35 = vpop.xlane.xlu1 %12607 }
0x195e   : > { %v12610_v43 = vmul.f32 0.0015625, %v12608_v35  ;;  %v12611_v11 = vsub.f32 %v12585_v61, %v12609_v59  ;;  %v12612_v27 = vsub.f32 %v12586_v13, %v12609_v59  ;;  %v12613_v36 = vsub.f32 %v12587_v49, %v12609_v59 }
0x195f   : > { %v12614_v19 = vsub.f32 %v12588_v0, %v12609_v59  ;;  %v12615_v1 = vsub.f32 %v12589_v50, %v12609_v59  ;;  %v12699_v0 = vrot.slane %v12596_v12, %v18396_v44 }
0x1960   : > { %v12621_v53 = vmul.f32 %v12611_v11, %v12611_v11  ;;  %v12622_v63 = vmul.f32 %v12612_v27, %v12612_v27  ;;  %v12616_v54 = vsub.f32 %v12590_v62, %v12610_v43  ;;  %v12617_v40 = vsub.f32 %v12591_v52, %v12610_v43 }
0x1961   : > { %v12618_v28 = vsub.f32 %v12592_v25, %v12610_v43  ;;  %v12623_v46 = vmul.f32 %v12613_v36, %v12613_v36  ;;  %v12619_v9 = vsub.f32 %v12593_v57, %v12610_v43  ;;  %v12624_v41 = vmul.f32 %v12614_v19, %v12614_v19 }
0x1962   : > { %v12631_v30 = vadd.f32 %v12622_v63, %v12621_v53  ;;  %v12626_v14 = vmul.f32 %v12616_v54, %v12616_v54  ;;  %v12627_v39 = vmul.f32 %v12617_v40, %v12617_v40  ;;  %v12620_v42 = vsub.f32 %v12594_v60, %v12610_v43 }
0x1963   : > { %v12628_v16 = vmul.f32 %v12618_v28, %v12618_v28  ;;  %v12625_v3 = vmul.f32 %v12615_v1, %v12615_v1  ;;  %v12629_v48 = vmul.f32 %v12619_v9, %v12619_v9  ;;  %v12711_v57 = vrot.slane %v12596_v12, %v19565_v45 }
0x1964   : > { %v12632_v21 = vadd.f32 %v12631_v30, %v12623_v46  ;;  %v12637_v47 = vadd.f32 %v12627_v39, %v12626_v14  ;;  %v12630_v13 = vmul.f32 %v12620_v42, %v12620_v42 }
0x1966   : > { %v12633_v55 = vadd.f32 %v12632_v21, %v12624_v41  ;;  %v12638_v58 = vadd.f32 %v12637_v47, %v12628_v16 }
0x1968   : > { %v12634_v61 = vadd.f32 %v12633_v55, %v12625_v3  ;;  %v12639_v34 = vadd.f32 %v12638_v58, %v12629_v48 }
0x196a   : > { %12635 = vadd.xlane.f32.xlu0 %v12634_v61  ;;  %v12640_v62 = vadd.f32 %v12639_v34, %v12630_v13 }
0x196c   : > { %12641 = vadd.xlane.f32.xlu1 %v12640_v62 }
0x19f7   : > { %v12636_v52 = vpop.xlane.xlu0 %12635 }
0x19f8   : > { %v12643_v49 = vmul.f32 0.0015625, %v12636_v52 }
0x19f9   : > { %v12642_v10 = vpop.xlane.xlu1 %12641 }
0x19fa   : > { %v12645_v4 = vadd.f32 1e-05, %v12643_v49  ;;  %v12644_v25 = vmul.f32 0.0015625, %v12642_v10  ;;  %v17760_v49 = vmov (!%p15452_p6), 1983009808  }
0x19fc   : > { %17684 = vrsqrt.f32 %v12645_v4  ;;  %v12646_v24 = vadd.f32 1e-05, %v12644_v25  ;;  %v12839_v4 = vunpack.c.l.s4 (!%p15452_p6), %v17760_v49 }
0x19fe   : > { %17686 = vrsqrt.f32 %v12646_v24 }
0x1a06   : > { %v17685_v2 = vpop.eup %17684 }
0x1a07   : > { %v12649_v17 = vmul.f32 %v17685_v2, %v12611_v11  ;;  %v12650_v15 = vmul.f32 %v17685_v2, %v12612_v27  ;;  %v12651_v50 = vmul.f32 %v17685_v2, %v12613_v36  ;;  %v12652_v20 = vmul.f32 %v17685_v2, %v12614_v19 }
0x1a08   : > { %v12653_v60 = vmul.f32 %v17685_v2, %v12615_v1  ;;  %v17687_v8 = vpop.eup %17686 }
0x1a09   : > { %v12685_v44 = vmul.f32 %v12663_v22, %v12649_v17  ;;  %v12686_v33 = vmul.f32 %v12667_v51, %v12650_v15  ;;  %v12687_v18 = vmul.f32 %v12671_v5, %v12651_v50  ;;  %v12688_v59 = vmul.f32 %v12675_v56, %v12652_v20 }
0x1a0a   : > { %v12689_v35 = vmul.f32 %v12679_v23, %v12653_v60  ;;  %v12654_v29 = vmul.f32 %v17687_v8, %v12616_v54  ;;  %v12655_v43 = vmul.f32 %v17687_v8, %v12617_v40  ;;  %v12656_v26 = vmul.f32 %v17687_v8, %v12618_v28 }
0x1a0b   : > { %v12721_v53 = vadd.f32 %v12699_v0, %v12685_v44  ;;  %v12722_v45 = vadd.f32 %v12703_v7, %v12686_v33  ;;  %v12723_v63 = vadd.f32 %v12707_v32, %v12687_v18  ;;  %v12724_v46 = vadd.f32 %v12711_v57, %v12688_v59 }
0x1a0c   : > { %v12725_v11 = vadd.f32 %v12715_v6, %v12689_v35  ;;  %v12657_v27 = vmul.f32 %v17687_v8, %v12619_v9  ;;  %v12658_v36 = vmul.f32 %v17687_v8, %v12620_v42  ;;  %v12690_v19 = vmul.f32 %v12663_v22, %v12654_v29  ;;  %12744 = sbr.rel (%p15452_p6) target bundleno = 6716 (0x1a3c), region = 96 }
0x1a0d   : > { %12731 = vst [vmem:[#allocation2] sm:$0xff] %v12721_v53  ;;  %12732 = vst [vmem:[#allocation2 + $0x8] sm:$0xff] %v12722_v45  ;;  %v12691_v31 = vmul.f32 %v12667_v51, %v12655_v43  ;;  %v12692_v1 = vmul.f32 %v12671_v5, %v12656_v26 }
0x1a0e   : > { %12733 = vst [vmem:[#allocation2 + $0x10] sm:$0xff] %v12723_v63  ;;  %12734 = vst [vmem:[#allocation2 + $0x18] sm:$0xff] %v12724_v46  ;;  %v12693_v30 = vmul.f32 %v12675_v56, %v12657_v27  ;;  %v12694_v14 = vmul.f32 %v12679_v23, %v12658_v36  ;;  %v12726_v54 = vadd.f32 %v12699_v0, %v12690_v19 }
0x1a0f   : > { %12735 = vst [vmem:[#allocation2 + $0x20] sm:$0xff] %v12725_v11  ;;  %v12727_v40 = vadd.f32 %v12703_v7, %v12691_v31  ;;  %v12728_v28 = vadd.f32 %v12707_v32, %v12692_v1 }
0x1a10   : > { %v12729_v39 = vadd.f32 %v12711_v57, %v12693_v30  ;;  %v12730_v41 = vadd.f32 %v12715_v6, %v12694_v14  ;;  %12736 = vst [vmem:[#allocation2 + $0x28] sm:$0xff] %v12726_v54 }
0x1a11   : > { %12737 = vst [vmem:[#allocation2 + $0x30] sm:$0xff] %v12727_v40  ;;  %12738 = vst [vmem:[#allocation2 + $0x38] sm:$0xff] %v12728_v28 }
0x1a12   : > { %12739 = vst [vmem:[#allocation2 + $0x40] sm:$0xff] %v12729_v39  ;;  %12740 = vst [vmem:[#allocation2 + $0x48] sm:$0xff] %v12730_v41 }
0x1a14   : > { %v12745_v9 = vld [vmem:[#allocation2] sm:$0xff]  ;;  %v12746_v21 = vld [vmem:[#allocation2 + $0x8] sm:$0xff] }
0x1a15   : > { %v12747_v42 = vld [vmem:[#allocation2 + $0x10] sm:$0xff]  ;;  %v12748_v16 = vld [vmem:[#allocation2 + $0x18] sm:$0xff]  ;;  %v12755_v55 = vrot.slane %v12745_v9, 4  ;;  %v12761_v48 = vrot.slane %v12746_v21, 4 }
0x1a16   : > { %v12767_v58 = vrot.slane %v12747_v42, 4  ;;  %v12773_v34 = vrot.slane %v12748_v16, 4 }
0x1a17   : > { %v12750_v47 = vld [vmem:[#allocation2 + $0x28] sm:$0xff]  ;;  %v12756_v10 = vadd.f32 %v12755_v55, %v12745_v9  ;;  %v12762_v25 = vadd.f32 %v12761_v48, %v12746_v21  ;;  %v12749_v21 = vld [vmem:[#allocation2 + $0x20] sm:$0xff] }
0x1a18   : > { %v12751_v3 = vld [vmem:[#allocation2 + $0x30] sm:$0xff]  ;;  %v12752_v61 = vld [vmem:[#allocation2 + $0x38] sm:$0xff]  ;;  %v12785_v62 = vrot.slane %v12750_v47, 4  ;;  %v12768_v24 = vadd.f32 %v12767_v58, %v12747_v42  ;;  %v12774_v12 = vadd.f32 %v12773_v34, %v12748_v16 }
0x1a19   : > { %v12753_v13 = vld [vmem:[#allocation2 + $0x40] sm:$0xff]  ;;  %v12791_v52 = vrot.slane %v12751_v3, 4  ;;  %v12797_v37 = vrot.slane %v12752_v61, 4  ;;  %v12757_v0 = vrot.slane %v12756_v10, 2  ;;  %v12763_v56 = vrot.slane %v12762_v25, 2  ;;  %v12754_v42 = vld [vmem:[#allocation2 + $0x48] sm:$0xff] }
0x1a1a   : > { %v12786_v22 = vadd.f32 %v12785_v62, %v12750_v47  ;;  %v12803_v5 = vrot.slane %v12753_v13, 4  ;;  %v12769_v2 = vrot.slane %v12768_v24, 2  ;;  %v12775_v32 = vrot.slane %v12774_v12, 2 }
0x1a1b   : > { %v12792_v51 = vadd.f32 %v12791_v52, %v12751_v3  ;;  %v12798_v7 = vadd.f32 %v12797_v37, %v12752_v61  ;;  %v12758_v15 = vadd.f32 %v12757_v0, %v12756_v10  ;;  %v12764_v50 = vadd.f32 %v12763_v56, %v12762_v25 }
0x1a1c   : > { %v12787_v57 = vrot.slane %v12786_v22, 2  ;;  %v12804_v17 = vadd.f32 %v12803_v5, %v12753_v13  ;;  %v12770_v20 = vadd.f32 %v12769_v2, %v12768_v24  ;;  %v12776_v60 = vadd.f32 %v12775_v32, %v12774_v12 }
0x1a1d   : > { %v12793_v23 = vrot.slane %v12792_v51, 2  ;;  %v12799_v6 = vrot.slane %v12798_v7, 2  ;;  %v12759_v18 = vrot.slane %v12758_v15, 1  ;;  %v12765_v59 = vrot.slane %v12764_v50, 1 }
0x1a1e   : > { %v12788_v8 = vadd.f32 %v12787_v57, %v12786_v22  ;;  %v12805_v33 = vrot.slane %v12804_v17, 2  ;;  %v12771_v35 = vrot.slane %v12770_v20, 1  ;;  %v12777_v43 = vrot.slane %v12776_v60, 1 }
0x1a1f   : > { %v12794_v44 = vadd.f32 %v12793_v23, %v12792_v51  ;;  %v12800_v29 = vadd.f32 %v12799_v6, %v12798_v7  ;;  %v12760_v63 = vadd.f32 %v12759_v18, %v12758_v15  ;;  %v12766_v46 = vadd.f32 %v12765_v59, %v12764_v50 }
0x1a20   : > { %v12789_v26 = vrot.slane %v12788_v8, 1  ;;  %v12806_v45 = vadd.f32 %v12805_v33, %v12804_v17  ;;  %v12772_v11 = vadd.f32 %v12771_v35, %v12770_v20  ;;  %v12778_v36 = vadd.f32 %v12777_v43, %v12776_v60 }
0x1a21   : > { %v12795_v53 = vrot.slane %v12794_v44, 1  ;;  %v12801_v27 = vrot.slane %v12800_v29, 1  ;;  %v12816_v14 = vmul.f32 0.125, %v12760_v63  ;;  %v12817_v54 = vmul.f32 0.125, %v12766_v46 }
0x1a22   : > { %v12790_v19 = vadd.f32 %v12789_v26, %v12788_v8  ;;  %v12807_v1 = vrot.slane %v12806_v45, 1  ;;  %v12818_v40 = vmul.f32 0.125, %v12772_v11  ;;  %v12819_v39 = vmul.f32 0.125, %v12778_v36 }
0x1a23   : > { %v12796_v31 = vadd.f32 %v12795_v53, %v12794_v44  ;;  %v12802_v30 = vadd.f32 %v12801_v27, %v12800_v29  ;;  %v12836_v47 = vcombine.low %v12816_v14, %v12817_v54  ;;  %v12840_v3 = vunpack.c.0.s8 %v12839_v4 }
0x1a24   : > { %v12808_v28 = vadd.f32 %v12807_v1, %v12806_v45  ;;  %v12821_v41 = vmul.f32 0.125, %v12790_v19  ;;  %v12837_v48 = vcombine.low %v12818_v40, %v12819_v39  ;;  %v12779_v13 = vrot.slane %v12749_v21, 4 }
0x1a25   : > { %v12822_v9 = vmul.f32 0.125, %v12796_v31  ;;  %v12823_v16 = vmul.f32 0.125, %v12802_v30  ;;  %v12843_v61 = vsub.s32 %v12840_v3, %v18388_v38  ;;  %v12809_v34 = vrot.slane %v12754_v42, 4 }
0x1a26   : > { %v12824_v55 = vmul.f32 0.125, %v12808_v28  ;;  %v12780_v25 = vadd.f32 %v12779_v13, %v12749_v21 }
0x1a27   : > { %v12860_v58 = vcombine.low %v12821_v41, %v12822_v9  ;;  %v12844_v52 = vrot.slane %v12836_v47, %v12843_v61  ;;  %v12851_v49 = vrot.slane %v12837_v48, %v12843_v61  ;;  %v12810_v37 = vadd.f32 %v12809_v34, %v12754_v42 }
0x1a28   : > { %v12861_v62 = vcombine.low %v12823_v16, %v12824_v55  ;;  %v12781_v12 = vrot.slane %v12780_v25, 2 }
0x1a29   : > { %v12868_v10 = vrot.slane %v12860_v58, %v12843_v61  ;;  %v12852_v22 = vcombine.low %v12844_v52, %v12851_v49  ;;  %v12811_v5 = vrot.slane %v12810_v37, 2 }
0x1a2a   : > { %v12875_v24 = vrot.slane %v12861_v62, %v12843_v61  ;;  %v12782_v4 = vadd.f32 %v12781_v12, %v12780_v25 }
0x1a2b   : > { %v12812_v56 = vadd.f32 %v12811_v5, %v12810_v37 }
0x1a2c   : > { %v12876_v51 = vcombine.low %v12868_v10, %v12875_v24  ;;  %v12783_v38 = vrot.slane %v12782_v4, 1 }
0x1a2d   : > { %v12813_v7 = vrot.slane %v12812_v56, 1 }
0x1a2e   : > { %v12888_v0 = vrot.slane %v12876_v51, 7  ;;  %v12784_v57 = vadd.f32 %v12783_v38, %v12782_v4 }
0x1a2f   : > { %v12814_v17 = vadd.f32 %v12813_v7, %v12812_v56 }
0x1a30   : > { %v12890_v2 = vsel %vm12889_vm3, %v12888_v0, %v12852_v22  ;;  %v12820_v50 = vmul.f32 0.125, %v12784_v57 }
0x1a31   : > { %v12892_v32 = vsel %vm12891_vm4, %v12888_v0, %v12890_v2  ;;  %v12825_v20 = vmul.f32 0.125, %v12814_v17 }
0x1a32   : > { %v12894_v23 = vsel %vm12893_vm5, %v12888_v0, %v12892_v32  ;;  %v12859_v6 = vrot.slane %v12820_v50, %v12843_v61 }
0x1a33   : > { %v12896_v15 = vsel %vm12895_vm6, %v12888_v0, %v12894_v23  ;;  %v12883_v60 = vrot.slane %v12825_v20, %v12843_v61 }
0x1a34   : > { %12906 = vst [vmem:[#allocation3] sm:$0xff] %v12896_v15 }
0x1a35   : > { %v12899_v8 = vrot.slane %v12883_v60, 7 }
0x1a37   : > { %v12900_v44 = vsel %vm12889_vm3, %v12899_v8, %v12859_v6 }
0x1a38   : > { %v12901_v33 = vsel %vm12891_vm4, %v12899_v8, %v12900_v44 }
0x1a39   : > { %v12902_v18 = vsel %vm12893_vm5, %v12899_v8, %v12901_v33 }
0x1a3a   : > { %v12903_v59 = vsel %vm12895_vm6, %v12899_v8, %v12902_v18 }
0x1a3b   : > { %12907 = vst [vmem:[#allocation3 + $0x8] sm:$0x3] %v12903_v59 }
0x1a3c PF: > { %s20036_s27 = sld [smem:[#allocation8_spill]]  ;;  %s17761_s0 = smov [#allocation3]  }
0x1a3d   : > { %s12918_s23 = sshll.u32 %s17761_s0, 4  ;;  %s12919_s23 = int_to_ptr.vmem [resolvable:$true] %s12918_s23 }
0x1a3e   : > { %s17705_s24 = scalar_lea.vmem %s12919_s23, 160  ;;  %p17712_p11 = scmp.lt.s32.totalorder %s12919_s23, %s12919_s23 }
0x1a3f   : > { %p17706_p8 = scmp.ne.s32.totalorder %s12919_s23, %s17705_s24  ;;  %p17713_p12 = scmp.lt.s32.totalorder %s17705_s24, %s17705_s24 }
0x1a41   : > { %p17714_p13 = por %p17713_p12, %p17712_p11 }
0x1a42   : > { %s20037_s19 = sadd.s32 4294967295, %s20036_s27  }
0x1a43   : > { %p19937_p7 = scmp.eq.s32.totalorder %s20037_s19, 1 }
0x1a45   : > { %p17707_p9 = pnand %p17706_p8, %p19937_p7 }
0x1a47   : > { %p17708_p10 = pneg %p17707_p9 }
0x1a49   : > { %p17715_p0 = pnand %p17714_p13, %p17708_p10 }
0x1a4b   : > { %17718 = shalt.err (!%p17715_p0)
}
0x1a4c   : > { %s20039_s18 = sld [smem:[#allocation24_spill]] }
0x1a52   : > { %s17719_s20 = scalar_lea.hbm %s20039_s18, 160 }
0x1a53   : > { %p17720_p1 = scmp.ne.s32.totalorder %s20039_s18, %s17719_s20  ;;  %p17725_p4 = scmp.lt.u32.totalorder %s17719_s20, %s20039_s18 }
0x1a55   : > { %p17721_p2 = pnand %p17720_p1, %p19937_p7 }
0x1a57   : > { %p17722_p3 = pneg %p17721_p2 }
0x1a59   : > { %p17727_p5 = pnand %p17725_p4, %p17722_p3 }
0x1a5b   : > { %17730 = shalt.err (!%p17727_p5)
}
0x1a5c   : > { %15664 = dma.vmem_to_hbm [thread:$0]  (%p19937_p7), %s12919_s23, 160, %s20039_s18, [#allocation4]  }
0x1a5d   : > { %17744 = dma.done.wait (%p19937_p7), [#allocation4], 160  }
0x1a5e   : > { %17746 = vsyncadd (%p19937_p7), [#allocation4], 4294967136 }
0x1a5f PF: > { %s20040_s15 = sld [smem:[#allocation8_spill]]  ;;  %s20041_s24 = sld [smem:[#allocation7_spill]] }
0x1a60   : > { %s20042_s25 = sld [smem:[#allocation9_spill]] }
0x1a65   : > { %s28_s26 = sadd.s32 1, %s20040_s15  }
0x1a66   : > { %p25_p6 = scmp.ge.s32.totalorder %s28_s26, 4  }
0x1a68   :  { %27 = sbr.rel (!%p25_p6) target bundleno = 16 (0x10), region = 193 }
0x1a6f   :  { %12931 = vsyncpa [#allocation4], 1 }
0x1a70   :  { %12933 = vsyncpa [#allocation4 + $0x1], 1 }

</bundles_post_ra>
